<compile_context>
chip_gen: v7x
topology: tpu7x:2x2x1
jax: 0.10.0
libtpu: 0.0.40
codegen_flags: <defaults>
</compile_context>

<pallas_src>
import functools

import jax
import jax.numpy as jnp
from jax.experimental import pallas as pl
from jax.experimental.pallas import tpu as pltpu

_BIG = 1e9        # "infinite" cost for excluded pixels in the min-plus passes
_HALF_BIG = 5e8   # reachability threshold (reachable pixels have cost ~0)
_LANES = 128


def _minplus(dmat, vals):
    """out[p, q] = min_n (dmat[p, n] + vals[q, n]), chunked over n.

    The reduction axis stays on lanes (<=128-wide tiles); cross-tile
    accumulation uses jnp.minimum (VPU) so the (P, Q, chunk) intermediate is
    bounded and only one lane-reduce per tile is issued.
    """
    n = dmat.shape[-1]
    acc = None
    for s in range(0, n, _LANES):
        e = min(n, s + _LANES)
        part = jnp.min(dmat[:, None, s:e] + vals[None, :, s:e], axis=-1)
        acc = part if acc is None else jnp.minimum(acc, part)
    return acc


def _sep_minplus(rmat, cmat, vals):
    """out[i, j] = min_{y, x} rmat[i, y] + cmat[j, x] + vals[y, x].

    Exact separable two-pass min-plus: used for the squared Euclidean distance
    transform (rmat/cmat = squared coordinate differences) and for the 3x3
    morphological dilations (rmat/cmat = 0/BIG band matrices).  MXU-free.
    """
    t = _minplus(cmat, vals)     # (W, H): t[j, y] = min_x cmat[j, x] + vals[y, x]
    return _minplus(rmat, t)     # (H, W)


def _boundary_loss_kernel(x_ref, t_ref, out_ref, *, H, W, Bt, theta, max_dist,
                          emit_map):
    f32 = jnp.float32

    # --- constants rebuilt in-kernel from iota (no HBM constant operands) ---
    ih = jax.lax.broadcasted_iota(jnp.int32, (H, H), 0)
    yh = jax.lax.broadcasted_iota(jnp.int32, (H, H), 1)
    dr2 = ((ih - yh) * (ih - yh)).astype(f32)                       # (i - y)^2
    band_r = jnp.where(jnp.abs(ih - yh) <= 1, 0.0, _BIG).astype(f32)

    iw = jax.lax.broadcasted_iota(jnp.int32, (W, W), 0)
    xw = jax.lax.broadcasted_iota(jnp.int32, (W, W), 1)
    dc2 = ((iw - xw) * (iw - xw)).astype(f32)                       # (j - x)^2
    band_c = jnp.where(jnp.abs(iw - xw) <= 1, 0.0, _BIG).astype(f32)

    # Static (unrolled) loop over the Bt images of this grid step.
    for bl in range(Bt):
        m = t_ref[bl]            # (H, W) binary mask {0, 1}
        x = x_ref[bl]            # (H, W) logits

        # --- cv2 MORPH_GRADIENT, 3x3 kernel, out-of-bounds excluded ---------
        # boundary pixel <=> the in-bounds 3x3 window contains both a
        # foreground and a background pixel (dilate=1 and erode=0).
        s_fg = jnp.where(m > 0.5, 0.0, _BIG).astype(f32)
        s_bg = jnp.where(m > 0.5, _BIG, 0.0).astype(f32)
        reach_fg = _sep_minplus(band_r, band_c, s_fg)
        reach_bg = _sep_minplus(band_r, band_c, s_bg)
        boundary = jnp.logical_and(reach_fg < _HALF_BIG, reach_bg < _HALF_BIG)

        # --- exact EDT to the boundary set (separable, chunked min-plus) ----
        mdist = jnp.where(boundary, 0.0, _BIG).astype(f32)
        dist2 = _sep_minplus(dr2, dc2, mdist)
        dist = jnp.sqrt(jnp.maximum(dist2, 0.0))
        if max_dist is not None:
            dist = jnp.clip(dist, 0.0, float(max_dist))
        weight = jnp.exp(-dist * theta)

        # --- BCE-with-logits (numerically stable, matches torch) ------------
        bce = jnp.maximum(x, 0.0) - x * m + jnp.log(1.0 + jnp.exp(-jnp.abs(x)))
        wb = weight * bce

        if emit_map:
            out_ref[pl.ds(bl, 1), :, :] = wb.reshape(1, H, W)
        else:
            # Lane-dense (1, 128) row per image; reduced in the wrapper.
            out_ref[pl.ds(bl, 1), :] = jnp.full((1, _LANES), jnp.sum(wb),
                                                dtype=f32)


def boundary_loss(pred_logits, target, *, theta=0.7, reduction="mean",
                  max_dist=None):
    """Boundary-weighted BCE loss. Inputs are NCHW (B, 1, H, W)."""
    B, C, H, W = pred_logits.shape
    assert C == 1, "BoundaryLoss expects single-channel masks"
    x = pred_logits.reshape(B, H, W).astype(jnp.float32)
    t = target.reshape(B, H, W).astype(jnp.float32)

    # Batch tile per grid step: all B when small, else tiles of 8.  Padded
    # images (zeros) are dropped by the wrapper-side reduction.
    Bt = min(B, 8)
    G = (B + Bt - 1) // Bt
    B_pad = G * Bt
    if B_pad != B:
        pad = B_pad - B
        x = jnp.concatenate([x, jnp.zeros((pad, H, W), jnp.float32)], axis=0)
        t = jnp.concatenate([t, jnp.zeros((pad, H, W), jnp.float32)], axis=0)

    emit_map = reduction not in ("mean", "sum")
    kernel = functools.partial(
        _boundary_loss_kernel, H=H, W=W, Bt=Bt, theta=float(theta),
        max_dist=max_dist, emit_map=emit_map)

    if emit_map:
        out_shape = jax.ShapeDtypeStruct((B_pad, H, W), jnp.float32)
        out_spec = pl.BlockSpec((Bt, H, W), lambda g: (g, 0, 0))
    else:
        out_shape = jax.ShapeDtypeStruct((B_pad, _LANES), jnp.float32)
        out_spec = pl.BlockSpec((Bt, _LANES), lambda g: (g, 0))

    out = pl.pallas_call(
        kernel,
        out_shape=out_shape,
        grid_spec=pltpu.PrefetchScalarGridSpec(
            num_scalar_prefetch=0,
            grid=(G,),
            in_specs=[
                pl.BlockSpec((Bt, H, W), lambda g: (g, 0, 0)),   # logits
                pl.BlockSpec((Bt, H, W), lambda g: (g, 0, 0)),   # target
            ],
            out_specs=out_spec,
        ),
        compiler_params=pltpu.CompilerParams(
            dimension_semantics=("parallel",)),
    )(x, t)

    if emit_map:
        return out[:B].reshape(B, C, H, W)
    total = jnp.sum(out[:B, 0])
    if reduction == "mean":
        return total / float(B * C * H * W)
    return total


if __name__ == "__main__":
    key = jax.random.PRNGKey(0)
    B, C, H, W = 2, 1, 16, 16
    pred_logits = jax.random.normal(key, (B, C, H, W), dtype=jnp.float32)

    # Deterministic binary target masks (square blobs -> real boundaries).
    yy = jnp.arange(H)[:, None]
    xx = jnp.arange(W)[None, :]
    m0 = ((yy >= 4) & (yy < 12) & (xx >= 4) & (xx < 12)).astype(jnp.float32)
    m1 = ((yy >= 2) & (yy < 10) & (xx >= 6) & (xx < 14)).astype(jnp.float32)
    target = jnp.stack([m0, m1], axis=0)[:, None, :, :]

    loss_mean = boundary_loss(pred_logits, target, theta=0.7, reduction="mean",
                              max_dist=None)
    jax.block_until_ready(loss_mean)
    assert bool(jnp.isfinite(loss_mean))

    loss_sum = boundary_loss(pred_logits, target, theta=0.7, reduction="sum",
                             max_dist=None)
    jax.block_until_ready(loss_sum)
    assert bool(jnp.isfinite(loss_sum))

    loss_map = boundary_loss(pred_logits, target, theta=0.7, reduction="none",
                             max_dist=None)
    jax.block_until_ready(loss_map)
    assert loss_map.shape == (B, C, H, W)
    assert bool(jnp.all(jnp.isfinite(loss_map)))

    print("KERNEL_OK")
</pallas_src>

<mosaic_0001>
module attributes {stable_mosaic.version = 11 : i64} {
  func.func @_boundary_loss_kernel(%arg0: i32, %arg1: memref<2x16x16xf32, #tpu.memory_space<vmem>>, %arg2: memref<2x16x16xf32, #tpu.memory_space<vmem>>, %arg3: memref<2x128xf32, #tpu.memory_space<vmem>>) attributes {dimension_semantics = [#tpu.dimension_semantics<parallel>], iteration_bounds = array<i64: 1>, scalar_prefetch = 0 : i64, scratch_operands = 0 : i64, tpu.core_type = #tpu.core_type<tc>, window_params = [{transform_indices = @transform_0, window_bounds = array<i64: 2, 16, 16>}, {transform_indices = @transform_1, window_bounds = array<i64: 2, 16, 16>}, {transform_indices = @transform_2, window_bounds = array<i64: 2, 128>}]} {
    %0 = tpu.iota {dimensions = array<i32: 0>} : vector<16x16xi32>
    %1 = tpu.iota {dimensions = array<i32: 1>} : vector<16x16xi32>
    %2 = arith.subi %0, %1 : vector<16x16xi32>
    %3 = arith.subi %0, %1 : vector<16x16xi32>
    %4 = arith.muli %2, %3 : vector<16x16xi32>
    %5 = arith.sitofp %4 : vector<16x16xi32> to vector<16x16xf32>
    %6 = arith.subi %0, %1 : vector<16x16xi32>
    %7 = math.absi %6 : vector<16x16xi32>
    %c1_i32 = arith.constant 1 : i32
    %8 = vector.broadcast %c1_i32 : i32 to vector<16x16xi32>
    %9 = arith.cmpi sle, %7, %8 : vector<16x16xi32>
    %cst = arith.constant 0.000000e+00 : f32
    %cst_0 = arith.constant 1.000000e+09 : f32
    %10 = vector.broadcast %cst : f32 to vector<16x16xf32>
    %11 = vector.broadcast %cst_0 : f32 to vector<16x16xf32>
    %12 = arith.select %9, %10, %11 : vector<16x16xi1>, vector<16x16xf32>
    %13 = tpu.iota {dimensions = array<i32: 0>} : vector<16x16xi32>
    %14 = tpu.iota {dimensions = array<i32: 1>} : vector<16x16xi32>
    %15 = arith.subi %13, %14 : vector<16x16xi32>
    %16 = arith.subi %13, %14 : vector<16x16xi32>
    %17 = arith.muli %15, %16 : vector<16x16xi32>
    %18 = arith.sitofp %17 : vector<16x16xi32> to vector<16x16xf32>
    %19 = arith.subi %13, %14 : vector<16x16xi32>
    %20 = math.absi %19 : vector<16x16xi32>
    %c1_i32_1 = arith.constant 1 : i32
    %21 = vector.broadcast %c1_i32_1 : i32 to vector<16x16xi32>
    %22 = arith.cmpi sle, %20, %21 : vector<16x16xi32>
    %cst_2 = arith.constant 0.000000e+00 : f32
    %cst_3 = arith.constant 1.000000e+09 : f32
    %23 = vector.broadcast %cst_2 : f32 to vector<16x16xf32>
    %24 = vector.broadcast %cst_3 : f32 to vector<16x16xf32>
    %25 = arith.select %22, %23, %24 : vector<16x16xi1>, vector<16x16xf32>
    %c0 = arith.constant 0 : index
    %c0_4 = arith.constant 0 : index
    %c0_5 = arith.constant 0 : index
    %26 = vector.load %arg2[%c0, %c0_4, %c0_5] : memref<2x16x16xf32, #tpu.memory_space<vmem>>, vector<1x16x16xf32>
    %27 = vector.shape_cast %26 : vector<1x16x16xf32> to vector<16x16xf32>
    %c0_6 = arith.constant 0 : index
    %c0_7 = arith.constant 0 : index
    %c0_8 = arith.constant 0 : index
    %28 = vector.load %arg1[%c0_6, %c0_7, %c0_8] : memref<2x16x16xf32, #tpu.memory_space<vmem>>, vector<1x16x16xf32>
    %29 = vector.shape_cast %28 : vector<1x16x16xf32> to vector<16x16xf32>
    %cst_9 = arith.constant 5.000000e-01 : f32
    %30 = vector.broadcast %cst_9 : f32 to vector<16x16xf32>
    %31 = arith.cmpf ogt, %27, %30 : vector<16x16xf32>
    %cst_10 = arith.constant 0.000000e+00 : f32
    %cst_11 = arith.constant 1.000000e+09 : f32
    %32 = vector.broadcast %cst_10 : f32 to vector<16x16xf32>
    %33 = vector.broadcast %cst_11 : f32 to vector<16x16xf32>
    %34 = arith.select %31, %32, %33 : vector<16x16xi1>, vector<16x16xf32>
    %cst_12 = arith.constant 5.000000e-01 : f32
    %35 = vector.broadcast %cst_12 : f32 to vector<16x16xf32>
    %36 = arith.cmpf ogt, %27, %35 : vector<16x16xf32>
    %cst_13 = arith.constant 1.000000e+09 : f32
    %cst_14 = arith.constant 0.000000e+00 : f32
    %37 = vector.broadcast %cst_13 : f32 to vector<16x16xf32>
    %38 = vector.broadcast %cst_14 : f32 to vector<16x16xf32>
    %39 = arith.select %36, %37, %38 : vector<16x16xi1>, vector<16x16xf32>
    %40 = vector.shape_cast %25 : vector<16x16xf32> to vector<16x1x16xf32>
    %41 = vector.shape_cast %34 : vector<16x16xf32> to vector<1x16x16xf32>
    %42 = vector.broadcast %40 : vector<16x1x16xf32> to vector<16x16x16xf32>
    %43 = vector.broadcast %41 : vector<1x16x16xf32> to vector<16x16x16xf32>
    %44 = arith.addf %42, %43 : vector<16x16x16xf32>
    %cst_15 = arith.constant dense<0x7F800000> : vector<16x16xf32>
    %45 = vector.multi_reduction <minimumf>, %44, %cst_15 [2] : vector<16x16x16xf32> to vector<16x16xf32>
    %46 = vector.shape_cast %12 : vector<16x16xf32> to vector<16x1x16xf32>
    %47 = vector.shape_cast %45 : vector<16x16xf32> to vector<1x16x16xf32>
    %48 = vector.broadcast %46 : vector<16x1x16xf32> to vector<16x16x16xf32>
    %49 = vector.broadcast %47 : vector<1x16x16xf32> to vector<16x16x16xf32>
    %50 = arith.addf %48, %49 : vector<16x16x16xf32>
    %cst_16 = arith.constant dense<0x7F800000> : vector<16x16xf32>
    %51 = vector.multi_reduction <minimumf>, %50, %cst_16 [2] : vector<16x16x16xf32> to vector<16x16xf32>
    %52 = vector.shape_cast %25 : vector<16x16xf32> to vector<16x1x16xf32>
    %53 = vector.shape_cast %39 : vector<16x16xf32> to vector<1x16x16xf32>
    %54 = vector.broadcast %52 : vector<16x1x16xf32> to vector<16x16x16xf32>
    %55 = vector.broadcast %53 : vector<1x16x16xf32> to vector<16x16x16xf32>
    %56 = arith.addf %54, %55 : vector<16x16x16xf32>
    %cst_17 = arith.constant dense<0x7F800000> : vector<16x16xf32>
    %57 = vector.multi_reduction <minimumf>, %56, %cst_17 [2] : vector<16x16x16xf32> to vector<16x16xf32>
    %58 = vector.shape_cast %12 : vector<16x16xf32> to vector<16x1x16xf32>
    %59 = vector.shape_cast %57 : vector<16x16xf32> to vector<1x16x16xf32>
    %60 = vector.broadcast %58 : vector<16x1x16xf32> to vector<16x16x16xf32>
    %61 = vector.broadcast %59 : vector<1x16x16xf32> to vector<16x16x16xf32>
    %62 = arith.addf %60, %61 : vector<16x16x16xf32>
    %cst_18 = arith.constant dense<0x7F800000> : vector<16x16xf32>
    %63 = vector.multi_reduction <minimumf>, %62, %cst_18 [2] : vector<16x16x16xf32> to vector<16x16xf32>
    %cst_19 = arith.constant 5.000000e+08 : f32
    %64 = vector.broadcast %cst_19 : f32 to vector<16x16xf32>
    %65 = arith.cmpf olt, %51, %64 : vector<16x16xf32>
    %cst_20 = arith.constant 5.000000e+08 : f32
    %66 = vector.broadcast %cst_20 : f32 to vector<16x16xf32>
    %67 = arith.cmpf olt, %63, %66 : vector<16x16xf32>
    %68 = arith.andi %65, %67 : vector<16x16xi1>
    %cst_21 = arith.constant 0.000000e+00 : f32
    %cst_22 = arith.constant 1.000000e+09 : f32
    %69 = vector.broadcast %cst_21 : f32 to vector<16x16xf32>
    %70 = vector.broadcast %cst_22 : f32 to vector<16x16xf32>
    %71 = arith.select %68, %69, %70 : vector<16x16xi1>, vector<16x16xf32>
    %72 = vector.shape_cast %18 : vector<16x16xf32> to vector<16x1x16xf32>
    %73 = vector.shape_cast %71 : vector<16x16xf32> to vector<1x16x16xf32>
    %74 = vector.broadcast %72 : vector<16x1x16xf32> to vector<16x16x16xf32>
    %75 = vector.broadcast %73 : vector<1x16x16xf32> to vector<16x16x16xf32>
    %76 = arith.addf %74, %75 : vector<16x16x16xf32>
    %cst_23 = arith.constant dense<0x7F800000> : vector<16x16xf32>
    %77 = vector.multi_reduction <minimumf>, %76, %cst_23 [2] : vector<16x16x16xf32> to vector<16x16xf32>
    %78 = vector.shape_cast %5 : vector<16x16xf32> to vector<16x1x16xf32>
    %79 = vector.shape_cast %77 : vector<16x16xf32> to vector<1x16x16xf32>
    %80 = vector.broadcast %78 : vector<16x1x16xf32> to vector<16x16x16xf32>
    %81 = vector.broadcast %79 : vector<1x16x16xf32> to vector<16x16x16xf32>
    %82 = arith.addf %80, %81 : vector<16x16x16xf32>
    %cst_24 = arith.constant dense<0x7F800000> : vector<16x16xf32>
    %83 = vector.multi_reduction <minimumf>, %82, %cst_24 [2] : vector<16x16x16xf32> to vector<16x16xf32>
    %cst_25 = arith.constant 0.000000e+00 : f32
    %84 = vector.broadcast %cst_25 : f32 to vector<16x16xf32>
    %85 = arith.maximumf %83, %84 : vector<16x16xf32>
    %86 = math.sqrt %85 : vector<16x16xf32>
    %cst_26 = arith.constant 0.000000e+00 : f32
    %87 = vector.broadcast %cst_26 : f32 to vector<16x16xf32>
    %88 = arith.subf %87, %86 : vector<16x16xf32>
    %cst_27 = arith.constant 0.699999988 : f32
    %89 = vector.broadcast %cst_27 : f32 to vector<16x16xf32>
    %90 = arith.mulf %88, %89 : vector<16x16xf32>
    %91 = math.exp %90 : vector<16x16xf32>
    %cst_28 = arith.constant 0.000000e+00 : f32
    %92 = vector.broadcast %cst_28 : f32 to vector<16x16xf32>
    %93 = arith.maximumf %29, %92 : vector<16x16xf32>
    %94 = arith.mulf %29, %27 : vector<16x16xf32>
    %95 = arith.subf %93, %94 : vector<16x16xf32>
    %96 = math.absf %29 : vector<16x16xf32>
    %cst_29 = arith.constant 0.000000e+00 : f32
    %97 = vector.broadcast %cst_29 : f32 to vector<16x16xf32>
    %98 = arith.subf %97, %96 : vector<16x16xf32>
    %99 = math.exp %98 : vector<16x16xf32>
    %cst_30 = arith.constant 1.000000e+00 : f32
    %100 = vector.broadcast %cst_30 : f32 to vector<16x16xf32>
    %101 = arith.addf %100, %99 : vector<16x16xf32>
    %102 = math.log %101 : vector<16x16xf32>
    %103 = arith.addf %95, %102 : vector<16x16xf32>
    %104 = arith.mulf %91, %103 : vector<16x16xf32>
    %105 = vector.shape_cast %104 : vector<16x16xf32> to vector<1x16x16xf32>
    %cst_31 = arith.constant dense<0.000000e+00> : vector<1xf32>
    %106 = vector.multi_reduction <add>, %105, %cst_31 [1, 2] : vector<1x16x16xf32> to vector<1xf32>
    %107 = vector.shape_cast %106 : vector<1xf32> to vector<1x1x1xf32>
    %108 = vector.extract %107[0, 0, 0] : f32 from vector<1x1x1xf32>
    %109 = vector.broadcast %108 : f32 to vector<1x128xf32>
    %c0_32 = arith.constant 0 : index
    %c0_33 = arith.constant 0 : index
    %110 = vector.load %arg3[%c0_32, %c0_33] : memref<2x128xf32, #tpu.memory_space<vmem>>, vector<1x128xf32>
    tpu.vector_store %arg3[%c0_32, %c0_33], %109 {strides = array<i32>} : memref<2x128xf32, #tpu.memory_space<vmem>>, vector<1x128xf32>,
    %c1 = arith.constant 1 : index
    %c0_34 = arith.constant 0 : index
    %c0_35 = arith.constant 0 : index
    %111 = vector.load %arg2[%c1, %c0_34, %c0_35] : memref<2x16x16xf32, #tpu.memory_space<vmem>>, vector<1x16x16xf32>
    %112 = vector.shape_cast %111 : vector<1x16x16xf32> to vector<16x16xf32>
    %c1_36 = arith.constant 1 : index
    %c0_37 = arith.constant 0 : index
    %c0_38 = arith.constant 0 : index
    %113 = vector.load %arg1[%c1_36, %c0_37, %c0_38] : memref<2x16x16xf32, #tpu.memory_space<vmem>>, vector<1x16x16xf32>
    %114 = vector.shape_cast %113 : vector<1x16x16xf32> to vector<16x16xf32>
    %cst_39 = arith.constant 5.000000e-01 : f32
    %115 = vector.broadcast %cst_39 : f32 to vector<16x16xf32>
    %116 = arith.cmpf ogt, %112, %115 : vector<16x16xf32>
    %cst_40 = arith.constant 0.000000e+00 : f32
    %cst_41 = arith.constant 1.000000e+09 : f32
    %117 = vector.broadcast %cst_40 : f32 to vector<16x16xf32>
    %118 = vector.broadcast %cst_41 : f32 to vector<16x16xf32>
    %119 = arith.select %116, %117, %118 : vector<16x16xi1>, vector<16x16xf32>
    %cst_42 = arith.constant 5.000000e-01 : f32
    %120 = vector.broadcast %cst_42 : f32 to vector<16x16xf32>
    %121 = arith.cmpf ogt, %112, %120 : vector<16x16xf32>
    %cst_43 = arith.constant 1.000000e+09 : f32
    %cst_44 = arith.constant 0.000000e+00 : f32
    %122 = vector.broadcast %cst_43 : f32 to vector<16x16xf32>
    %123 = vector.broadcast %cst_44 : f32 to vector<16x16xf32>
    %124 = arith.select %121, %122, %123 : vector<16x16xi1>, vector<16x16xf32>
    %125 = vector.shape_cast %25 : vector<16x16xf32> to vector<16x1x16xf32>
    %126 = vector.shape_cast %119 : vector<16x16xf32> to vector<1x16x16xf32>
    %127 = vector.broadcast %125 : vector<16x1x16xf32> to vector<16x16x16xf32>
    %128 = vector.broadcast %126 : vector<1x16x16xf32> to vector<16x16x16xf32>
    %129 = arith.addf %127, %128 : vector<16x16x16xf32>
    %cst_45 = arith.constant dense<0x7F800000> : vector<16x16xf32>
    %130 = vector.multi_reduction <minimumf>, %129, %cst_45 [2] : vector<16x16x16xf32> to vector<16x16xf32>
    %131 = vector.shape_cast %12 : vector<16x16xf32> to vector<16x1x16xf32>
    %132 = vector.shape_cast %130 : vector<16x16xf32> to vector<1x16x16xf32>
    %133 = vector.broadcast %131 : vector<16x1x16xf32> to vector<16x16x16xf32>
    %134 = vector.broadcast %132 : vector<1x16x16xf32> to vector<16x16x16xf32>
    %135 = arith.addf %133, %134 : vector<16x16x16xf32>
    %cst_46 = arith.constant dense<0x7F800000> : vector<16x16xf32>
    %136 = vector.multi_reduction <minimumf>, %135, %cst_46 [2] : vector<16x16x16xf32> to vector<16x16xf32>
    %137 = vector.shape_cast %25 : vector<16x16xf32> to vector<16x1x16xf32>
    %138 = vector.shape_cast %124 : vector<16x16xf32> to vector<1x16x16xf32>
    %139 = vector.broadcast %137 : vector<16x1x16xf32> to vector<16x16x16xf32>
    %140 = vector.broadcast %138 : vector<1x16x16xf32> to vector<16x16x16xf32>
    %141 = arith.addf %139, %140 : vector<16x16x16xf32>
    %cst_47 = arith.constant dense<0x7F800000> : vector<16x16xf32>
    %142 = vector.multi_reduction <minimumf>, %141, %cst_47 [2] : vector<16x16x16xf32> to vector<16x16xf32>
    %143 = vector.shape_cast %12 : vector<16x16xf32> to vector<16x1x16xf32>
    %144 = vector.shape_cast %142 : vector<16x16xf32> to vector<1x16x16xf32>
    %145 = vector.broadcast %143 : vector<16x1x16xf32> to vector<16x16x16xf32>
    %146 = vector.broadcast %144 : vector<1x16x16xf32> to vector<16x16x16xf32>
    %147 = arith.addf %145, %146 : vector<16x16x16xf32>
    %cst_48 = arith.constant dense<0x7F800000> : vector<16x16xf32>
    %148 = vector.multi_reduction <minimumf>, %147, %cst_48 [2] : vector<16x16x16xf32> to vector<16x16xf32>
    %cst_49 = arith.constant 5.000000e+08 : f32
    %149 = vector.broadcast %cst_49 : f32 to vector<16x16xf32>
    %150 = arith.cmpf olt, %136, %149 : vector<16x16xf32>
    %cst_50 = arith.constant 5.000000e+08 : f32
    %151 = vector.broadcast %cst_50 : f32 to vector<16x16xf32>
    %152 = arith.cmpf olt, %148, %151 : vector<16x16xf32>
    %153 = arith.andi %150, %152 : vector<16x16xi1>
    %cst_51 = arith.constant 0.000000e+00 : f32
    %cst_52 = arith.constant 1.000000e+09 : f32
    %154 = vector.broadcast %cst_51 : f32 to vector<16x16xf32>
    %155 = vector.broadcast %cst_52 : f32 to vector<16x16xf32>
    %156 = arith.select %153, %154, %155 : vector<16x16xi1>, vector<16x16xf32>
    %157 = vector.shape_cast %18 : vector<16x16xf32> to vector<16x1x16xf32>
    %158 = vector.shape_cast %156 : vector<16x16xf32> to vector<1x16x16xf32>
    %159 = vector.broadcast %157 : vector<16x1x16xf32> to vector<16x16x16xf32>
    %160 = vector.broadcast %158 : vector<1x16x16xf32> to vector<16x16x16xf32>
    %161 = arith.addf %159, %160 : vector<16x16x16xf32>
    %cst_53 = arith.constant dense<0x7F800000> : vector<16x16xf32>
    %162 = vector.multi_reduction <minimumf>, %161, %cst_53 [2] : vector<16x16x16xf32> to vector<16x16xf32>
    %163 = vector.shape_cast %5 : vector<16x16xf32> to vector<16x1x16xf32>
    %164 = vector.shape_cast %162 : vector<16x16xf32> to vector<1x16x16xf32>
    %165 = vector.broadcast %163 : vector<16x1x16xf32> to vector<16x16x16xf32>
    %166 = vector.broadcast %164 : vector<1x16x16xf32> to vector<16x16x16xf32>
    %167 = arith.addf %165, %166 : vector<16x16x16xf32>
    %cst_54 = arith.constant dense<0x7F800000> : vector<16x16xf32>
    %168 = vector.multi_reduction <minimumf>, %167, %cst_54 [2] : vector<16x16x16xf32> to vector<16x16xf32>
    %cst_55 = arith.constant 0.000000e+00 : f32
    %169 = vector.broadcast %cst_55 : f32 to vector<16x16xf32>
    %170 = arith.maximumf %168, %169 : vector<16x16xf32>
    %171 = math.sqrt %170 : vector<16x16xf32>
    %cst_56 = arith.constant 0.000000e+00 : f32
    %172 = vector.broadcast %cst_56 : f32 to vector<16x16xf32>
    %173 = arith.subf %172, %171 : vector<16x16xf32>
    %cst_57 = arith.constant 0.699999988 : f32
    %174 = vector.broadcast %cst_57 : f32 to vector<16x16xf32>
    %175 = arith.mulf %173, %174 : vector<16x16xf32>
    %176 = math.exp %175 : vector<16x16xf32>
    %cst_58 = arith.constant 0.000000e+00 : f32
    %177 = vector.broadcast %cst_58 : f32 to vector<16x16xf32>
    %178 = arith.maximumf %114, %177 : vector<16x16xf32>
    %179 = arith.mulf %114, %112 : vector<16x16xf32>
    %180 = arith.subf %178, %179 : vector<16x16xf32>
    %181 = math.absf %114 : vector<16x16xf32>
    %cst_59 = arith.constant 0.000000e+00 : f32
    %182 = vector.broadcast %cst_59 : f32 to vector<16x16xf32>
    %183 = arith.subf %182, %181 : vector<16x16xf32>
    %184 = math.exp %183 : vector<16x16xf32>
    %cst_60 = arith.constant 1.000000e+00 : f32
    %185 = vector.broadcast %cst_60 : f32 to vector<16x16xf32>
    %186 = arith.addf %185, %184 : vector<16x16xf32>
    %187 = math.log %186 : vector<16x16xf32>
    %188 = arith.addf %180, %187 : vector<16x16xf32>
    %189 = arith.mulf %176, %188 : vector<16x16xf32>
    %190 = vector.shape_cast %189 : vector<16x16xf32> to vector<1x16x16xf32>
    %cst_61 = arith.constant dense<0.000000e+00> : vector<1xf32>
    %191 = vector.multi_reduction <add>, %190, %cst_61 [1, 2] : vector<1x16x16xf32> to vector<1xf32>
    %192 = vector.shape_cast %191 : vector<1xf32> to vector<1x1x1xf32>
    %193 = vector.extract %192[0, 0, 0] : f32 from vector<1x1x1xf32>
    %194 = vector.broadcast %193 : f32 to vector<1x128xf32>
    %c1_62 = arith.constant 1 : index
    %c0_63 = arith.constant 0 : index
    %195 = vector.load %arg3[%c1_62, %c0_63] : memref<2x128xf32, #tpu.memory_space<vmem>>, vector<1x128xf32>
    tpu.vector_store %arg3[%c1_62, %c0_63], %194 {strides = array<i32>} : memref<2x128xf32, #tpu.memory_space<vmem>>, vector<1x128xf32>,
    return
  }
  func.func @transform_0(%arg0: i32) -> (i32, i32, i32) {
    %c0_i32 = arith.constant 0 : i32
    %c0_i32_0 = arith.constant 0 : i32
    %c0_i32_1 = arith.constant 0 : i32
    return %arg0, %c0_i32, %c0_i32_0 : i32, i32, i32
  }
  func.func @transform_1(%arg0: i32) -> (i32, i32, i32) {
    %c0_i32 = arith.constant 0 : i32
    %c0_i32_0 = arith.constant 0 : i32
    %c0_i32_1 = arith.constant 0 : i32
    return %arg0, %c0_i32, %c0_i32_0 : i32, i32, i32
  }
  func.func @transform_2(%arg0: i32) -> (i32, i32) {
    %c0_i32 = arith.constant 0 : i32
    %c0_i32_0 = arith.constant 0 : i32
    return %arg0, %c0_i32 : i32, i32
  }
}

</mosaic_0001>

<bundles_post_ra>
// kernel: tpu_custom_call.1
= control target key start
LH: loop header
LB: loop body
LE: loop exit
PB: predicated region body
PF: predicated region fallthrough
CT: control target
= control target key end

     0   :  { %7 = vsyncpa [#allocation3], 0  ;;  %s9959_s0 = inlined_call_operand.hbm [shape: f32[2,16,16], index: 0, kind: input, shape index: {}]   ;;  %s9960_s1 = inlined_call_operand.hbm [shape: f32[2,16,16], index: 1, kind: input, shape index: {}]   ;;  %s9961_s2 = inlined_call_operand.hbm [shape: f32[2,128], index: 2, kind: output, shape index: {}]  }
   0x1   :  { %8 = vsyncpa [#allocation6], 0 }
   0x2   :  { %9 = vsyncpa [#allocation4], 0  ;;  %s6062_s9 = smov [#allocation2]   ;;  %s5990_s13 = scalar_lea.hbm %s9959_s0, 512 }
   0x3   :  { %s15_s10 = sshll.u32 %s6062_s9, 4  ;;  %p5991_p0 = scmp.ne.s32.totalorder %s9959_s0, %s5990_s13  ;;  %s16_s10 = int_to_ptr.vmem [resolvable:$true] %s15_s10 }
   0x4   :  { %p5994_p1 = scmp.lt.u32.totalorder %s5990_s13, %s9959_s0 }
   0x6   :  { %p5996_p2 = pnand %p5994_p1, %p5991_p0 }
   0x8   :  { %5999 = shalt.err (!%p5996_p2)
}
   0x9   :  { %s6000_s18 = scalar_lea.vmem %s16_s10, 512  ;;  %p6005_p4 = scmp.lt.s32.totalorder %s16_s10, %s16_s10 }
   0xa   :  { %p6001_p3 = scmp.ne.s32.totalorder %s16_s10, %s6000_s18  ;;  %p6006_p5 = scmp.lt.s32.totalorder %s6000_s18, %s6000_s18 }
   0xc   :  { %p6007_p6 = por %p6006_p5, %p6005_p4 }
   0xe   :  { %p6008_p7 = pnand %p6007_p6, %p6001_p3 }
  0x10   :  { %6011 = shalt.err (!%p6008_p7)
}
  0x11   :  { %s6063_s19 = smov 128   ;;  %s6064_s20 = smov 8  }
  0x12   :  { %21 = dma.hbm_to_vmem [thread:$0]  %s9959_s0, 512, %s16_s10, [#allocation3], %s6063_s19, %s6063_s19, %s6064_s20  }
  0x13   :  { %s6065_s23 = smov [#allocation5]   ;;  %s6012_s27 = scalar_lea.hbm %s9960_s1, 512 }
  0x14   :  { %s27_s24 = sshll.u32 %s6065_s23, 4  ;;  %p6013_p8 = scmp.ne.s32.totalorder %s9960_s1, %s6012_s27  ;;  %s28_s24 = int_to_ptr.vmem [resolvable:$true] %s27_s24 }
  0x15   :  { %p6016_p9 = scmp.lt.u32.totalorder %s6012_s27, %s9960_s1 }
  0x17   :  { %p6018_p10 = pnand %p6016_p9, %p6013_p8 }
  0x19   :  { %6021 = shalt.err (!%p6018_p10)
}
  0x1a   :  { %s6022_s4 = scalar_lea.vmem %s28_s24, 512  ;;  %p6027_p12 = scmp.lt.s32.totalorder %s28_s24, %s28_s24 }
  0x1b   :  { %p6023_p11 = scmp.ne.s32.totalorder %s28_s24, %s6022_s4  ;;  %p6028_p13 = scmp.lt.s32.totalorder %s6022_s4, %s6022_s4 }
  0x1d   :  { %p6029_p0 = por %p6028_p13, %p6027_p12 }
  0x1f   :  { %p6030_p1 = pnand %p6029_p0, %p6023_p11 }
  0x21   :  { %6033 = shalt.err (!%p6030_p1)
}
  0x22   :  { %33 = dma.hbm_to_vmem [thread:$0]  %s9960_s1, 512, %s28_s24, [#allocation6], %s6063_s19, %s6063_s19, %s6064_s20  }
  0x23   :  { %6056 = dma.done.wait [#allocation3], 512  }
  0x24   :  { %6057 = vsyncadd [#allocation3], 4294966784 }
  0x25   :  { %6058 = dma.done.wait [#allocation6], 512  }
  0x26   :  { %6059 = vsyncadd [#allocation6], 4294966784  ;;  %v40_v0 = vlaneseq  ;;  %v6066_v1 = vmov 1966171168   ;;  %v6123_v10 = vld [vmem:[#allocation5] sm:$0xff]  ;;  %v6125_v11 = vld [vmem:[#allocation5 + $0x8] sm:$0xff] }
  0x27   :  { %v75_v2 = vunpack.c.l.s4 %v6066_v1  ;;  %v9964_v13 = vmov 1e+09   ;;  %vm65_vm1 = vcmp.gt.f32.partialorder %v6123_v10, 0.5  ;;  %vm66_vm2 = vcmp.gt.f32.partialorder %v6125_v11, 0.5  ;;  %s6070_s6 = smov [#allocation7]  }
  0x28   :  { %v6110_v3 = vshrl.u32 %v40_v0, 7  ;;  %v6112_v4 = vand.u32 127, %v40_v0  ;;  %v6143_v22 = vsel %vm65_vm1, 0.0, %v9964_v13  ;;  %v6148_v23 = vsel %vm66_vm2, 0.0, %v9964_v13  ;;  %s5687_s7 = sshll.u32 %s6070_s6, 4  ;;  %s5688_s7 = int_to_ptr.vmem [resolvable:$true] %s5687_s7 }
  0x29   :  { %v76_v6 = vunpack.c.0.s8 %v75_v2  ;;  %vm9978_vm3 = vcmask 130048   ;;  %vm9986_vm5 = vcmask 130112   ;;  %vm9985_vm6 = vcmask 1041409   ;;  %s6034_s9 = scalar_lea.vmem %s5688_s7, 32  ;;  %p6039_p3 = scmp.lt.s32.totalorder %s5688_s7, %s5688_s7 }
  0x2a   :  { %v6116_v5 = vsub.s32 %v6110_v3, %v6112_v4  ;;  %v42_v12 = vadd.s32 8, %v6110_v3  ;;  %v6130_v15 = vsub.s32 0, %v6110_v3  ;;  %vm9984_vm7 = vcmask 1042434   ;;  %p6035_p2 = scmp.ne.s32.totalorder %s5688_s7, %s6034_s9  ;;  %p6040_p4 = scmp.lt.s32.totalorder %s6034_s9, %s6034_s9 }
  0x2b   :  { %v6121_v9 = vsub.s32 %v76_v6, %v6110_v3  ;;  %vm9983_vm8 = vcmask 1043459   ;;  %vm9982_vm9 = vcmask 1044484   ;;  %vm9981_vm10 = vcmask 1045509  }
  0x2c   :  { %v52_v7 = vsub.s32 0, %v6116_v5  ;;  %10082 = vst [vmem:[#allocation11_spill] sm:$0xff] %v6130_v15  ;;  %v6136_v18 = vsub.s32 %v42_v12, %v6112_v4  ;;  %vm9980_vm11 = vcmask 1046534   ;;  %vm9979_vm12 = vcmask 1047559   ;;  %p6041_p5 = por %p6040_p4, %p6039_p3 }
  0x2e   :  { %v5697_v8 = vmin.u32 %v52_v7, %v6116_v5  ;;  %10083 = vst [vmem:[#allocation12_spill] sm:$0xff] %v6136_v18  ;;  %v55_v28 = vsub.s32 0, %v6136_v18  ;;  %p6042_p6 = pnand %p6041_p5, %p6035_p2 }
  0x30   :  { %vm57_vm0 = vcmp.le.s32.totalorder %v5697_v8, 1  ;;  %v5698_v38 = vmin.u32 %v55_v28, %v6136_v18 }
  0x31   :  { %v59_v14 = vsel %vm57_vm0, 0.0, %v9964_v13 }
  0x32   :  { %v73_v16 = vcombine.high %v59_v14, %v59_v14  ;;  %v80_v17 = vrot.slane %v59_v14, %v6121_v9  ;;  %vm58_vm4 = vcmp.le.s32.totalorder %v5698_v38, 1 }
  0x33   :  { %v60_v51 = vsel %vm58_vm4, 0.0, %v9964_v13 }
  0x34   :  { %v96_v19 = vrot.slane %v80_v17, %v6121_v9  ;;  %v88_v20 = vcombine.high %v80_v17, %v80_v17  ;;  %v87_v21 = vrot.slane %v73_v16, %v6121_v9  ;;  %v129_v58 = vrot.slane %v60_v51, %v6121_v9 }
  0x36   :  { %v6151_v24 = vrot.slane %v96_v19, %v6130_v15  ;;  %v110_v25 = vrot.slane %v88_v20, %v6121_v9  ;;  %v118_v26 = vcombine.high %v96_v19, %v96_v19  ;;  %v103_v27 = vrot.slane %v87_v21, %v6121_v9 }
  0x37   :  { %v89_v37 = vcombine.high %v87_v21, %v87_v21  ;;  %v145_v1 = vrot.slane %v129_v58, %v6121_v9  ;;  %v137_v8 = vcombine.high %v129_v58, %v129_v58 }
  0x38   :  { %10084 = vst [vmem:[#allocation13_spill] sm:$0xff] %v6151_v24  ;;  %v251_v29 = vadd.f32 %v6151_v24, %v6143_v22  ;;  %v6159_v30 = vrot.slane %v110_v25, %v6130_v15  ;;  %v252_v31 = vadd.f32 %v6151_v24, %v6148_v23  ;;  %v6164_v32 = vrot.slane %v118_v26, %v6130_v15 }
  0x39   :  { %v6172_v36 = vrot.slane %v103_v27, %v6130_v15  ;;  %v120_v42 = vcombine.high %v110_v25, %v110_v25  ;;  %v117_v48 = vrot.slane %v89_v37, %v6121_v9  ;;  %v119_v55 = vcombine.high %v103_v27, %v103_v27 }
  0x3a   :  { %10085 = vst [vmem:[#allocation14_spill] sm:$0xff] %v6159_v30  ;;  %10086 = vst [vmem:[#allocation15_spill] sm:$0xff] %v6164_v32  ;;  %v284_v33 = vsel %vm9978_vm3, %v251_v29, inf  ;;  %v253_v34 = vadd.f32 %v6159_v30, %v6143_v22  ;;  %v254_v35 = vadd.f32 %v6159_v30, %v6148_v23  ;;  %v287_v40 = vsel %vm9978_vm3, %v252_v31, inf }
  0x3b   :  { %285 = vmin.xlane.f32.xlu0 %v284_v33  ;;  %10087 = vst [vmem:[#allocation16_spill] sm:$0xff] %v6172_v36  ;;  %v255_v41 = vadd.f32 %v6164_v32, %v6143_v22  ;;  %v256_v44 = vadd.f32 %v6164_v32, %v6148_v23  ;;  %v259_v46 = vadd.f32 %v6172_v36, %v6143_v22 }
  0x3c   :  { %v290_v39 = vsel %vm9978_vm3, %v253_v34, inf  ;;  %v293_v43 = vsel %vm9978_vm3, %v254_v35, inf  ;;  %v6186_v47 = vrot.slane %v120_v42, %v6130_v15  ;;  %v260_v50 = vadd.f32 %v6172_v36, %v6148_v23 }
  0x3d   :  { %291 = vmin.xlane.f32.xlu1 %v290_v39  ;;  %v296_v45 = vsel %vm9978_vm3, %v255_v41, inf  ;;  %v299_v49 = vsel %vm9978_vm3, %v256_v44, inf  ;;  %v308_v52 = vsel %vm9978_vm3, %v259_v46, inf  ;;  %v6197_v54 = vrot.slane %v117_v48, %v6130_v15 }
  0x3e   :  { %10088 = vst [vmem:[#allocation17_spill] sm:$0xff] %v6186_v47  ;;  %v257_v53 = vadd.f32 %v6186_v47, %v6143_v22  ;;  %v311_v56 = vsel %vm9978_vm3, %v260_v50, inf  ;;  %v258_v57 = vadd.f32 %v6186_v47, %v6148_v23  ;;  %v6207_v61 = vrot.slane %v119_v55, %v6130_v15 }
  0x3f   :  { %288 = vmin.xlane.f32.xlu0 %v287_v40  ;;  %10089 = vst [vmem:[#allocation18_spill] sm:$0xff] %v6197_v54  ;;  %v261_v60 = vadd.f32 %v6197_v54, %v6143_v22  ;;  %v121_v62 = vcombine.high %v117_v48, %v117_v48  ;;  %v262_v0 = vadd.f32 %v6197_v54, %v6148_v23 }
  0x40   :  { %v302_v59 = vsel %vm9978_vm3, %v257_v53, inf  ;;  %10090 = vst [vmem:[#allocation19_spill] sm:$0xff] %v6207_v61  ;;  %v305_v63 = vsel %vm9978_vm3, %v258_v57, inf  ;;  %v263_v6 = vadd.f32 %v6207_v61, %v6143_v22  ;;  %v264_v14 = vadd.f32 %v6207_v61, %v6148_v23 }
  0x41   :  { %294 = vmin.xlane.f32.xlu1 %v293_v43  ;;  %v314_v2 = vsel %vm9978_vm3, %v261_v60, inf  ;;  %v6217_v7 = vrot.slane %v121_v62, %v6130_v15  ;;  %v317_v12 = vsel %vm9978_vm3, %v262_v0, inf  ;;  %v6226_v19 = vrot.slane %v145_v1, %v6130_v15 }
  0x42   :  { %v320_v16 = vsel %vm9978_vm3, %v263_v6, inf  ;;  %v159_v20 = vrot.slane %v137_v8, %v6121_v9  ;;  %v323_v21 = vsel %vm9978_vm3, %v264_v14, inf  ;;  %v122_v26 = vcombine.high %v60_v51, %v60_v51 }
  0x43   :  { %297 = vmin.xlane.f32.xlu0 %v296_v45  ;;  %10091 = vst [vmem:[#allocation20_spill] sm:$0xff] %v6217_v7  ;;  %v265_v17 = vadd.f32 %v6217_v7, %v6143_v22  ;;  %10092 = vst [vmem:[#allocation21_spill] sm:$0xff] %v6226_v19  ;;  %v266_v25 = vadd.f32 %v6217_v7, %v6148_v23  ;;  %v267_v28 = vadd.f32 %v6226_v19, %v6143_v22 }
  0x44   :  { %v6236_v29 = vrot.slane %v159_v20, %v6130_v15  ;;  %v167_v31 = vcombine.high %v145_v1, %v145_v1  ;;  %v268_v34 = vadd.f32 %v6226_v19, %v6148_v23  ;;  %v169_v35 = vcombine.high %v159_v20, %v159_v20 }
  0x45   :  { %300 = vmin.xlane.f32.xlu1 %v299_v49  ;;  %v326_v27 = vsel %vm9978_vm3, %v265_v17, inf  ;;  %v329_v33 = vsel %vm9978_vm3, %v266_v25, inf  ;;  %v332_v37 = vsel %vm9978_vm3, %v267_v28, inf  ;;  %v136_v40 = vrot.slane %v122_v26, %v6121_v9 }
  0x46   :  { %10093 = vst [vmem:[#allocation22_spill] sm:$0xff] %v6236_v29  ;;  %v269_v38 = vadd.f32 %v6236_v29, %v6143_v22  ;;  %v6245_v39 = vrot.slane %v167_v31, %v6130_v15  ;;  %v335_v41 = vsel %vm9978_vm3, %v268_v34, inf  ;;  %v270_v42 = vadd.f32 %v6236_v29, %v6148_v23 }
  0x47   :  { %309 = vmin.xlane.f32.xlu0 %v308_v52  ;;  %v6252_v43 = vrot.slane %v169_v35, %v6130_v15  ;;  %v152_v46 = vrot.slane %v136_v40, %v6121_v9  ;;  %v138_v48 = vcombine.high %v136_v40, %v136_v40  ;;  %v9962_v28 = vmov 0.0  }
  0x48   :  { %10094 = vst [vmem:[#allocation23_spill] sm:$0xff] %v6245_v39  ;;  %v338_v44 = vsel %vm9978_vm3, %v269_v38, inf  ;;  %v271_v45 = vadd.f32 %v6245_v39, %v6143_v22  ;;  %v341_v49 = vsel %vm9978_vm3, %v270_v42, inf  ;;  %v272_v50 = vadd.f32 %v6245_v39, %v6148_v23 }
  0x49   :  { %312 = vmin.xlane.f32.xlu1 %v311_v56  ;;  %10095 = vst [vmem:[#allocation24_spill] sm:$0xff] %v6252_v43  ;;  %v273_v52 = vadd.f32 %v6252_v43, %v6143_v22  ;;  %v6265_v53 = vrot.slane %v152_v46, %v6130_v15  ;;  %v166_v55 = vrot.slane %v138_v48, %v6121_v9  ;;  %v6304_v31 = vsel %vm65_vm1, 1e+09, %v9962_v28 }
  0x4a   :  { %v344_v51 = vsel %vm9978_vm3, %v271_v45, inf  ;;  %v347_v56 = vsel %vm9978_vm3, %v272_v50, inf  ;;  %v274_v57 = vadd.f32 %v6252_v43, %v6148_v23  ;;  %v168_v62 = vcombine.high %v152_v46, %v152_v46 }
  0x4b   :  { %303 = vmin.xlane.f32.xlu0 %v302_v59  ;;  %10096 = vst [vmem:[#allocation25_spill] sm:$0xff] %v6265_v53  ;;  %v350_v58 = vsel %vm9978_vm3, %v273_v52, inf  ;;  %v275_v59 = vadd.f32 %v6265_v53, %v6143_v22  ;;  %v6275_v60 = vrot.slane %v166_v55, %v6130_v15  ;;  %v276_v0 = vadd.f32 %v6265_v53, %v6148_v23 }
  0x4c   :  { %v6284_v6 = vrot.slane %v168_v62, %v6130_v15  ;;  %v170_v8 = vcombine.high %v166_v55, %v166_v55  ;;  %v6312_v35 = vsel %vm66_vm2, 1e+09, %v9962_v28  ;;  %v711_v40 = vadd.f32 %v6159_v30, %v6304_v31 }
  0x4d   :  { %306 = vmin.xlane.f32.xlu1 %v305_v63  ;;  %10097 = vst [vmem:[#allocation26_spill] sm:$0xff] %v6275_v60  ;;  %v353_v63 = vsel %vm9978_vm3, %v274_v57, inf  ;;  %v356_v1 = vsel %vm9978_vm3, %v275_v59, inf  ;;  %v278_v14 = vadd.f32 %v6275_v60, %v6148_v23  ;;  %v710_v38 = vadd.f32 %v6151_v24, %v6312_v35 }
  0x4e   :  { %10098 = vst [vmem:[#allocation27_spill] sm:$0xff] %v6284_v6  ;;  %v279_v17 = vadd.f32 %v6284_v6, %v6143_v22  ;;  %v6293_v20 = vrot.slane %v170_v8, %v6130_v15  ;;  %v280_v25 = vadd.f32 %v6284_v6, %v6148_v23  ;;  %v747_v42 = vsel %vm9978_vm3, %v711_v40, inf }
  0x4f   :  { %315 = vmin.xlane.f32.xlu0 %v314_v2  ;;  %v277_v2 = vadd.f32 %v6275_v60, %v6143_v22  ;;  %v744_v11 = vsel %vm9978_vm3, %v710_v38, inf  ;;  %v714_v46 = vadd.f32 %v6164_v32, %v6312_v35  ;;  %v717_v55 = vadd.f32 %v6172_v36, %v6304_v31 }
  0x50   :  { %10099 = vst [vmem:[#allocation28_spill] sm:$0xff] %v6293_v20  ;;  %v368_v26 = vsel %vm9978_vm3, %v279_v17, inf  ;;  %v282_v34 = vadd.f32 %v6293_v20, %v6148_v23  ;;  %v718_v57 = vadd.f32 %v6172_v36, %v6312_v35  ;;  %v719_v59 = vadd.f32 %v6197_v54, %v6304_v31 }
  0x51   :  { %318 = vmin.xlane.f32.xlu1 %v317_v12  ;;  %v359_v12 = vsel %vm9978_vm3, %v276_v0, inf  ;;  %v756_v50 = vsel %vm9978_vm3, %v714_v46, inf  ;;  %v722_v8 = vadd.f32 %v6207_v61, %v6312_v35  ;;  %v724_v17 = vadd.f32 %v6217_v7, %v6312_v35 }
  0x52   :  { %v377_v10 = vsel %vm9978_vm3, %v282_v34, inf  ;;  %v768_v62 = vsel %vm9978_vm3, %v718_v57, inf  ;;  %v771_v0 = vsel %vm9978_vm3, %v719_v59, inf  ;;  %v727_v34 = vadd.f32 %v6236_v29, %v6304_v31 }
  0x53   :  { %321 = vmin.xlane.f32.xlu0 %v320_v16  ;;  %v362_v16 = vsel %vm9978_vm3, %v277_v2, inf  ;;  %v729_v38 = vadd.f32 %v6245_v39, %v6304_v31  ;;  %v730_v40 = vadd.f32 %v6245_v39, %v6312_v35  ;;  %v733_v46 = vadd.f32 %v6265_v53, %v6304_v31 }
  0x55   :  { %324 = vmin.xlane.f32.xlu1 %v323_v21  ;;  %v365_v21 = vsel %vm9978_vm3, %v278_v14, inf  ;;  %v723_v14 = vadd.f32 %v6217_v7, %v6304_v31 }
  0x57   :  { %327 = vmin.xlane.f32.xlu0 %v326_v27  ;;  %v281_v27 = vadd.f32 %v6293_v20, %v6143_v22 }
  0x59   :  { %330 = vmin.xlane.f32.xlu1 %v329_v33  ;;  %v371_v33 = vsel %vm9978_vm3, %v280_v25, inf  ;;  %v374_v22 = vsel %vm9978_vm3, %v281_v27, inf  ;;  %v725_v25 = vadd.f32 %v6226_v19, %v6304_v31  ;;  %v726_v27 = vadd.f32 %v6226_v19, %v6312_v35 }
  0x5b   :  { %333 = vmin.xlane.f32.xlu0 %v332_v37  ;;  %v709_v37 = vadd.f32 %v6151_v24, %v6304_v31 }
  0x5d   :  { %336 = vmin.xlane.f32.xlu1 %v335_v41  ;;  %v741_v23 = vsel %vm9978_vm3, %v709_v37, inf  ;;  %v712_v41 = vadd.f32 %v6159_v30, %v6312_v35  ;;  %v728_v37 = vadd.f32 %v6236_v29, %v6312_v35 }
  0x5f   :  { %339 = vmin.xlane.f32.xlu0 %v338_v44  ;;  %v713_v44 = vadd.f32 %v6164_v32, %v6304_v31  ;;  %v750_v45 = vsel %vm9978_vm3, %v712_v41, inf  ;;  %v731_v41 = vadd.f32 %v6252_v43, %v6304_v31 }
  0x61   :  { %342 = vmin.xlane.f32.xlu1 %v341_v49  ;;  %v753_v48 = vsel %vm9978_vm3, %v713_v44, inf  ;;  %v715_v49 = vadd.f32 %v6186_v47, %v6304_v31  ;;  %v732_v44 = vadd.f32 %v6252_v43, %v6312_v35 }
  0x63   :  { %345 = vmin.xlane.f32.xlu0 %v344_v51  ;;  %v716_v51 = vadd.f32 %v6186_v47, %v6312_v35  ;;  %v759_v52 = vsel %vm9978_vm3, %v715_v49, inf  ;;  %v734_v49 = vadd.f32 %v6265_v53, %v6312_v35 }
  0x65   :  { %348 = vmin.xlane.f32.xlu1 %v347_v56  ;;  %v762_v56 = vsel %vm9978_vm3, %v716_v51, inf  ;;  %v816_v51 = vsel %vm9978_vm3, %v734_v49, inf }
  0x67   :  { %351 = vmin.xlane.f32.xlu0 %v350_v58  ;;  %v765_v58 = vsel %vm9978_vm3, %v717_v55, inf }
  0x69   :  { %354 = vmin.xlane.f32.xlu1 %v353_v63  ;;  %v720_v63 = vadd.f32 %v6197_v54, %v6312_v35 }
  0x6b   :  { %357 = vmin.xlane.f32.xlu0 %v356_v1  ;;  %v721_v1 = vadd.f32 %v6207_v61, %v6304_v31  ;;  %v774_v2 = vsel %vm9978_vm3, %v720_v63, inf }
  0x6d   :  { %360 = vmin.xlane.f32.xlu1 %v359_v12  ;;  %v777_v12 = vsel %vm9978_vm3, %v721_v1, inf  ;;  %v416_v1 = vadd.s32 4294967288, %v6112_v4 }
  0x6f   :  { %363 = vmin.xlane.f32.xlu0 %v362_v16  ;;  %v780_v16 = vsel %vm9978_vm3, %v722_v8, inf }
  0x71   :  { %366 = vmin.xlane.f32.xlu1 %v365_v21  ;;  %v783_v21 = vsel %vm9978_vm3, %v723_v14, inf  ;;  %v6403_v14 = vsub.s32 %v416_v1, %v6110_v3 }
  0x73   :  { %369 = vmin.xlane.f32.xlu0 %v368_v26  ;;  %v786_v26 = vsel %vm9978_vm3, %v724_v17, inf  ;;  %10101 = vst [vmem:[#allocation30_spill] sm:$0xff] %v6403_v14 }
  0x75   :  { %372 = vmin.xlane.f32.xlu1 %v371_v33  ;;  %v789_v33 = vsel %vm9978_vm3, %v725_v25, inf }
  0x77   :  { %375 = vmin.xlane.f32.xlu0 %v374_v22  ;;  %v792_v22 = vsel %vm9978_vm3, %v726_v27, inf }
  0x79   :  { %378 = vmin.xlane.f32.xlu1 %v377_v10  ;;  %v795_v10 = vsel %vm9978_vm3, %v727_v34, inf }
  0x7b   :  { %742 = vmin.xlane.f32.xlu0 %v741_v23  ;;  %v798_v23 = vsel %vm9978_vm3, %v728_v37, inf }
  0x7d   :  { %745 = vmin.xlane.f32.xlu1 %v744_v11  ;;  %v801_v11 = vsel %vm9978_vm3, %v729_v38, inf }
  0x7f   :  { %748 = vmin.xlane.f32.xlu0 %v747_v42  ;;  %v804_v42 = vsel %vm9978_vm3, %v730_v40, inf }
  0x81   :  { %751 = vmin.xlane.f32.xlu1 %v750_v45  ;;  %v807_v45 = vsel %vm9978_vm3, %v731_v41, inf }
  0x83   :  { %754 = vmin.xlane.f32.xlu0 %v753_v48  ;;  %v810_v48 = vsel %vm9978_vm3, %v732_v44, inf }
  0x85   :  { %757 = vmin.xlane.f32.xlu1 %v756_v50  ;;  %v813_v50 = vsel %vm9978_vm3, %v733_v46, inf }
  0x87   :  { %760 = vmin.xlane.f32.xlu0 %v759_v52  ;;  %v736_v52 = vadd.f32 %v6275_v60, %v6312_v35 }
  0x89   :  { %763 = vmin.xlane.f32.xlu1 %v762_v56  ;;  %v822_v55 = vsel %vm9978_vm3, %v736_v52, inf }
  0x8b   :  { %766 = vmin.xlane.f32.xlu0 %v765_v58 }
  0x8d   :  { %769 = vmin.xlane.f32.xlu1 %v768_v62 }
  0x8f   :  { %772 = vmin.xlane.f32.xlu0 %v771_v0 }
  0x91   :  { %775 = vmin.xlane.f32.xlu1 %v774_v2 }
  0x93   :  { %778 = vmin.xlane.f32.xlu0 %v777_v12  ;;  %v6400_v12 = vsub.s32 %v6112_v4, %v6110_v3 }
  0x95   :  { %781 = vmin.xlane.f32.xlu1 %v780_v16  ;;  %10100 = vst [vmem:[#allocation29_spill] sm:$0xff] %v6400_v12 }
  0x97   :  { %784 = vmin.xlane.f32.xlu0 %v783_v21 }
  0x99   :  { %787 = vmin.xlane.f32.xlu1 %v786_v26 }
  0x9b   :  { %790 = vmin.xlane.f32.xlu0 %v789_v33 }
  0x9d   :  { %793 = vmin.xlane.f32.xlu1 %v792_v22 }
  0x9f   :  { %796 = vmin.xlane.f32.xlu0 %v795_v10 }
  0xa1   :  { %799 = vmin.xlane.f32.xlu1 %v798_v23 }
  0xa3   :  { %802 = vmin.xlane.f32.xlu0 %v801_v11 }
  0xa5   :  { %805 = vmin.xlane.f32.xlu1 %v804_v42 }
  0xa7   :  { %808 = vmin.xlane.f32.xlu0 %v807_v45 }
  0xa9   :  { %811 = vmin.xlane.f32.xlu1 %v810_v48 }
  0xab   :  { %814 = vmin.xlane.f32.xlu0 %v813_v50 }
  0xad   :  { %817 = vmin.xlane.f32.xlu1 %v816_v51 }
  0xb1   :  { %823 = vmin.xlane.f32.xlu1 %v822_v55 }
  0xc8   :  { %v286_v56 = vpop.xlane.xlu0 %285 }
  0xc9   :  { %v415_v37 = vrot.slane %v286_v56, %v6400_v12 }
  0xca   :  { %v292_v57 = vpop.xlane.xlu1 %291 }
  0xcb   :  { %v426_v27 = vrot.slane %v292_v57, %v6400_v12 }
  0xcc   :  { %v289_v58 = vpop.xlane.xlu0 %288 }
  0xcd   :  { %v420_v33 = vrot.slane %v289_v58, %v6403_v14 }
  0xce   :  { %v295_v59 = vpop.xlane.xlu1 %294 }
  0xcf   :  { %v430_v17 = vrot.slane %v295_v59, %v6403_v14  ;;  %v422_v40 = vsel %vm9986_vm5, %v420_v33, %v415_v37 }
  0xd0   :  { %v298_v62 = vpop.xlane.xlu0 %297 }
  0xd1   :  { %v435_v25 = vrot.slane %v298_v62, %v6400_v12  ;;  %v431_v10 = vsel %vm9986_vm5, %v430_v17, %v426_v27 }
  0xd2   :  { %v301_v63 = vpop.xlane.xlu1 %300  ;;  %v559_v44 = vsel %vm9985_vm6, %v431_v10, %v422_v40 }
  0xd3   :  { %v439_v21 = vrot.slane %v301_v63, %v6403_v14 }
  0xd4   :  { %v310_v0 = vpop.xlane.xlu0 %309 }
  0xd5   :  { %v440_v38 = vsel %vm9986_vm5, %v439_v21, %v435_v25  ;;  %v453_v46 = vrot.slane %v310_v0, %v6400_v12 }
  0xd6   :  { %v313_v2 = vpop.xlane.xlu1 %312  ;;  %v561_v50 = vsel %vm9984_vm7, %v440_v38, %v559_v44 }
  0xd7   :  { %v457_v45 = vrot.slane %v313_v2, %v6403_v14 }
  0xd8   :  { %v304_v8 = vpop.xlane.xlu0 %303 }
  0xd9   :  { %v444_v4 = vrot.slane %v304_v8, %v6400_v12  ;;  %v458_v58 = vsel %vm9986_vm5, %v457_v45, %v453_v46 }
  0xda   :  { %v307_v16 = vpop.xlane.xlu1 %306 }
  0xdb   :  { %v448_v34 = vrot.slane %v307_v16, %v6403_v14 }
  0xdc   :  { %v316_v26 = vpop.xlane.xlu0 %315 }
  0xdd   :  { %v449_v11 = vsel %vm9986_vm5, %v448_v34, %v444_v4  ;;  %v462_v42 = vrot.slane %v316_v26, %v6400_v12 }
  0xde   :  { %v319_v22 = vpop.xlane.xlu1 %318  ;;  %v563_v52 = vsel %vm9983_vm8, %v449_v11, %v561_v50 }
  0xdf   :  { %v466_v41 = vrot.slane %v319_v22, %v6403_v14  ;;  %v565_v63 = vsel %vm9982_vm9, %v458_v58, %v563_v52 }
  0xe0   :  { %v322_v23 = vpop.xlane.xlu0 %321 }
  0xe1   :  { %v471_v49 = vrot.slane %v322_v23, %v6400_v12  ;;  %v467_v56 = vsel %vm9986_vm5, %v466_v41, %v462_v42 }
  0xe2   :  { %v325_v48 = vpop.xlane.xlu1 %324  ;;  %v567_v1 = vsel %vm9981_vm10, %v467_v56, %v565_v63 }
  0xe3   :  { %v475_v51 = vrot.slane %v325_v48, %v6403_v14 }
  0xe4   :  { %v328_v55 = vpop.xlane.xlu0 %327 }
  0xe5   :  { %v480_v57 = vrot.slane %v328_v55, %v6400_v12  ;;  %v476_v59 = vsel %vm9986_vm5, %v475_v51, %v471_v49 }
  0xe6   :  { %v331_v62 = vpop.xlane.xlu1 %330  ;;  %v569_v8 = vsel %vm9980_vm11, %v476_v59, %v567_v1 }
  0xe7   :  { %v484_v0 = vrot.slane %v331_v62, %v6403_v14 }
  0xe8   :  { %v334_v2 = vpop.xlane.xlu0 %333 }
  0xe9   :  { %v485_v16 = vsel %vm9986_vm5, %v484_v0, %v480_v57  ;;  %v489_v58 = vrot.slane %v334_v2, %v6400_v12 }
  0xea   :  { %v6436_v17 = vsel %vm9979_vm12, %v485_v16, %v569_v8  ;;  %v337_v21 = vpop.xlane.xlu1 %336 }
  0xeb   :  { %v581_v25 = vadd.f32 %v6436_v17, %v6151_v24  ;;  %v583_v33 = vadd.f32 %v6436_v17, %v6159_v30  ;;  %v585_v37 = vadd.f32 %v6436_v17, %v6164_v32  ;;  %v587_v40 = vadd.f32 %v6436_v17, %v6186_v47 }
  0xec   :  { %v340_v26 = vpop.xlane.xlu0 %339  ;;  %v589_v44 = vadd.f32 %v6436_v17, %v6172_v36  ;;  %v591_v51 = vadd.f32 %v6436_v17, %v6197_v54  ;;  %v493_v57 = vrot.slane %v337_v21, %v6403_v14  ;;  %v593_v8 = vadd.f32 %v6436_v17, %v6207_v61 }
  0xed   :  { %v613_v27 = vsel %vm9978_vm3, %v581_v25, inf  ;;  %v619_v22 = vsel %vm9978_vm3, %v583_v33, inf  ;;  %v625_v23 = vsel %vm9978_vm3, %v585_v37, inf  ;;  %v631_v42 = vsel %vm9978_vm3, %v587_v40, inf }
  0xee   :  { %v343_v34 = vpop.xlane.xlu1 %342  ;;  %614 = vmin.xlane.f32.xlu0 %v613_v27  ;;  %v498_v49 = vrot.slane %v340_v26, %v6400_v12  ;;  %v637_v50 = vsel %vm9978_vm3, %v589_v44, inf  ;;  %v643_v2 = vsel %vm9978_vm3, %v591_v51, inf }
  0xef   :  { %v502_v48 = vrot.slane %v343_v34, %v6403_v14  ;;  %v494_v34 = vsel %vm9986_vm5, %v493_v57, %v489_v58  ;;  %v597_v57 = vadd.f32 %v6436_v17, %v6226_v19 }
  0xf0   :  { %v346_v4 = vpop.xlane.xlu0 %345 }
  0xf1   :  { %v507_v55 = vrot.slane %v346_v4, %v6400_v12  ;;  %v503_v16 = vsel %vm9986_vm5, %v502_v48, %v498_v49 }
  0xf2   :  { %v349_v10 = vpop.xlane.xlu1 %348  ;;  %620 = vmin.xlane.f32.xlu0 %v619_v22  ;;  %v572_v37 = vsel %vm9985_vm6, %v503_v16, %v494_v34 }
  0xf3   :  { %v511_v52 = vrot.slane %v349_v10, %v6403_v14 }
  0xf4   :  { %v352_v38 = vpop.xlane.xlu0 %351 }
  0xf5   :  { %v516_v62 = vrot.slane %v352_v38, %v6400_v12  ;;  %v512_v26 = vsel %vm9986_vm5, %v511_v52, %v507_v55  ;;  %v649_v38 = vsel %vm9978_vm3, %v593_v8, inf  ;;  %v599_v8 = vadd.f32 %v6436_v17, %v6236_v29 }
  0xf6   :  { %v355_v11 = vpop.xlane.xlu1 %354  ;;  %626 = vmin.xlane.f32.xlu0 %v625_v23  ;;  %v573_v40 = vsel %vm9984_vm7, %v512_v26, %v572_v37 }
  0xf7   :  { %v520_v59 = vrot.slane %v355_v11, %v6403_v14 }
  0xf8   :  { %v358_v41 = vpop.xlane.xlu0 %357 }
  0xf9   :  { %v525_v0 = vrot.slane %v358_v41, %v6400_v12  ;;  %v521_v4 = vsel %vm9986_vm5, %v520_v59, %v516_v62 }
  0xfa   :  { %v361_v45 = vpop.xlane.xlu1 %360  ;;  %632 = vmin.xlane.f32.xlu0 %v631_v42  ;;  %v595_v42 = vadd.f32 %v6436_v17, %v6217_v7  ;;  %v574_v44 = vsel %vm9983_vm8, %v521_v4, %v573_v40 }
  0xfb   :  { %v529_v63 = vrot.slane %v361_v45, %v6403_v14 }
  0xfc   :  { %v364_v46 = vpop.xlane.xlu0 %363 }
  0xfd   :  { %v534_v21 = vrot.slane %v364_v46, %v6400_v12  ;;  %v530_v10 = vsel %vm9986_vm5, %v529_v63, %v525_v0  ;;  %v661_v0 = vsel %vm9978_vm3, %v597_v57, inf }
  0xfe   :  { %v367_v56 = vpop.xlane.xlu1 %366  ;;  %638 = vmin.xlane.f32.xlu0 %v637_v50  ;;  %v575_v48 = vsel %vm9982_vm9, %v530_v10, %v574_v44  ;;  %v603_v10 = vadd.f32 %v6436_v17, %v6252_v43  ;;  %v605_v44 = vadd.f32 %v6436_v17, %v6265_v53 }
  0xff   :  { %v538_v25 = vrot.slane %v367_v56, %v6403_v14  ;;  %v655_v56 = vsel %vm9978_vm3, %v595_v42, inf }
 0x100   :  { %v370_v1 = vpop.xlane.xlu0 %369  ;;  %v685_v57 = vsel %vm9978_vm3, %v605_v44, inf }
 0x101   :  { %v543_v33 = vrot.slane %v370_v1, %v6400_v12  ;;  %v539_v11 = vsel %vm9986_vm5, %v538_v25, %v534_v21 }
 0x102   :  { %v373_v27 = vpop.xlane.xlu1 %372  ;;  %644 = vmin.xlane.f32.xlu0 %v643_v2  ;;  %v576_v50 = vsel %vm9981_vm10, %v539_v11, %v575_v48  ;;  %v667_v2 = vsel %vm9978_vm3, %v599_v8, inf }
 0x103   :  { %v547_v22 = vrot.slane %v373_v27, %v6403_v14  ;;  %v601_v27 = vadd.f32 %v6436_v17, %v6245_v39 }
 0x104   :  { %v376_v23 = vpop.xlane.xlu0 %375 }
 0x105   :  { %v552_v41 = vrot.slane %v376_v23, %v6400_v12  ;;  %v548_v45 = vsel %vm9986_vm5, %v547_v22, %v543_v33  ;;  %v673_v22 = vsel %vm9978_vm3, %v601_v27, inf  ;;  %v609_v27 = vadd.f32 %v6436_v17, %v6284_v6 }
 0x106   :  { %v379_v46 = vpop.xlane.xlu1 %378  ;;  %650 = vmin.xlane.f32.xlu0 %v649_v38  ;;  %v577_v52 = vsel %vm9980_vm11, %v548_v45, %v576_v50 }
 0x107   :  { %v556_v49 = vrot.slane %v379_v46, %v6403_v14  ;;  %v679_v46 = vsel %vm9978_vm3, %v603_v10, inf  ;;  %v697_v44 = vsel %vm9978_vm3, %v609_v27, inf }
 0x108   :  { %v743_v51 = vpop.xlane.xlu0 %742 }
 0x109   :  { %v557_v55 = vsel %vm9986_vm5, %v556_v49, %v552_v41  ;;  %v872_v11 = vrot.slane %v743_v51, %v6400_v12 }
 0x10a   :  { %v6495_v58 = vsel %vm9979_vm12, %v557_v55, %v577_v52  ;;  %656 = vmin.xlane.f32.xlu0 %v655_v56  ;;  %v746_v59 = vpop.xlane.xlu1 %745 }
 0x10b   :  { %v582_v62 = vadd.f32 %v6495_v58, %v6151_v24  ;;  %v584_v16 = vadd.f32 %v6495_v58, %v6159_v30  ;;  %v586_v33 = vadd.f32 %v6495_v58, %v6164_v32  ;;  %v588_v38 = vadd.f32 %v6495_v58, %v6186_v47 }
 0x10c   :  { %v749_v63 = vpop.xlane.xlu0 %748  ;;  %v876_v40 = vrot.slane %v746_v59, %v6403_v14  ;;  %v590_v49 = vadd.f32 %v6495_v58, %v6172_v36  ;;  %v607_v59 = vadd.f32 %v6436_v17, %v6275_v60  ;;  %v594_v10 = vadd.f32 %v6495_v58, %v6207_v61 }
 0x10d   :  { %v616_v1 = vsel %vm9978_vm3, %v582_v62, inf  ;;  %v622_v26 = vsel %vm9978_vm3, %v584_v16, inf  ;;  %v628_v37 = vsel %vm9978_vm3, %v586_v33, inf  ;;  %v881_v42 = vrot.slane %v749_v63, %v6400_v12 }
 0x10e   :  { %662 = vmin.xlane.f32.xlu0 %v661_v0  ;;  %617 = vmin.xlane.f32.xlu1 %v616_v1  ;;  %v752_v25 = vpop.xlane.xlu1 %751  ;;  %v634_v48 = vsel %vm9978_vm3, %v588_v38, inf  ;;  %v877_v55 = vsel %vm9986_vm5, %v876_v40, %v872_v11  ;;  %v640_v63 = vsel %vm9978_vm3, %v590_v49, inf  ;;  %v592_v1 = vadd.f32 %v6495_v58, %v6197_v54 }
 0x10f   :  { %v885_v41 = vrot.slane %v752_v25, %v6403_v14 }
 0x110   :  { %v755_v21 = vpop.xlane.xlu0 %754 }
 0x111   :  { %v890_v51 = vrot.slane %v755_v21, %v6400_v12  ;;  %v886_v56 = vsel %vm9986_vm5, %v885_v41, %v881_v42  ;;  %v611_v42 = vadd.f32 %v6436_v17, %v6293_v20  ;;  %v735_v17 = vadd.f32 %v6275_v60, %v6304_v31 }
 0x112   :  { %668 = vmin.xlane.f32.xlu0 %v667_v2  ;;  %623 = vmin.xlane.f32.xlu1 %v622_v26  ;;  %v758_v34 = vpop.xlane.xlu1 %757  ;;  %v1013_v16 = vsel %vm9985_vm6, %v886_v56, %v877_v55  ;;  %v691_v2 = vsel %vm9978_vm3, %v607_v59, inf  ;;  %v598_v59 = vadd.f32 %v6495_v58, %v6226_v19 }
 0x113   :  { %v894_v50 = vrot.slane %v758_v34, %v6403_v14  ;;  %v703_v56 = vsel %vm9978_vm3, %v611_v42, inf }
 0x114   :  { %v761_v4 = vpop.xlane.xlu0 %760 }
 0x115   :  { %v899_v8 = vrot.slane %v761_v4, %v6400_v12  ;;  %v895_v25 = vsel %vm9986_vm5, %v894_v50, %v890_v51  ;;  %v646_v4 = vsel %vm9978_vm3, %v592_v1, inf }
 0x116   :  { %674 = vmin.xlane.f32.xlu0 %v673_v22  ;;  %629 = vmin.xlane.f32.xlu1 %v628_v37  ;;  %v764_v23 = vpop.xlane.xlu1 %763  ;;  %v1014_v22 = vsel %vm9984_vm7, %v895_v25, %v1013_v16  ;;  %v737_v16 = vadd.f32 %v6284_v6, %v6304_v31  ;;  %v664_v25 = vsel %vm9978_vm3, %v598_v59, inf  ;;  %v738_v59 = vadd.f32 %v6284_v6, %v6312_v35 }
 0x117   :  { %v903_v0 = vrot.slane %v764_v23, %v6403_v14 }
 0x118   :  { %v767_v45 = vpop.xlane.xlu0 %766  ;;  %v825_v27 = vsel %vm9978_vm3, %v737_v16, inf }
 0x119   :  { %v908_v33 = vrot.slane %v767_v45, %v6400_v12  ;;  %v904_v37 = vsel %vm9986_vm5, %v903_v0, %v899_v8  ;;  %v652_v45 = vsel %vm9978_vm3, %v594_v10, inf  ;;  %v819_v8 = vsel %vm9978_vm3, %v735_v17, inf }
 0x11a   :  { %680 = vmin.xlane.f32.xlu0 %v679_v46  ;;  %635 = vmin.xlane.f32.xlu1 %v634_v48  ;;  %v770_v52 = vpop.xlane.xlu1 %769  ;;  %v1015_v11 = vsel %vm9983_vm8, %v904_v37, %v1014_v22  ;;  %v596_v46 = vadd.f32 %v6495_v58, %v6217_v7 }
 0x11b   :  { %v912_v26 = vrot.slane %v770_v52, %v6403_v14 }
 0x11c   :  { %v773_v62 = vpop.xlane.xlu0 %772 }
 0x11d   :  { %v917_v40 = vrot.slane %v773_v62, %v6400_v12  ;;  %v913_v41 = vsel %vm9986_vm5, %v912_v26, %v908_v33  ;;  %v739_v33 = vadd.f32 %v6293_v20, %v6304_v31  ;;  %v604_v31 = vadd.f32 %v6495_v58, %v6252_v43 }
 0x11e   :  { %686 = vmin.xlane.f32.xlu0 %v685_v57  ;;  %641 = vmin.xlane.f32.xlu1 %v640_v63  ;;  %v776_v21 = vpop.xlane.xlu1 %775  ;;  %v1016_v52 = vsel %vm9982_vm9, %v913_v41, %v1015_v11  ;;  %v658_v57 = vsel %vm9978_vm3, %v596_v46, inf  ;;  %v606_v41 = vadd.f32 %v6495_v58, %v6265_v53  ;;  %v608_v46 = vadd.f32 %v6495_v58, %v6275_v60 }
 0x11f   :  { %v921_v23 = vrot.slane %v776_v21, %v6403_v14  ;;  %v831_v37 = vsel %vm9978_vm3, %v739_v33, inf  ;;  %v682_v11 = vsel %vm9978_vm3, %v604_v31, inf }
 0x120   :  { %v779_v34 = vpop.xlane.xlu0 %778 }
 0x121   :  { %v926_v49 = vrot.slane %v779_v34, %v6400_v12  ;;  %v922_v55 = vsel %vm9986_vm5, %v921_v23, %v917_v40 }
 0x122   :  { %692 = vmin.xlane.f32.xlu0 %v691_v2  ;;  %647 = vmin.xlane.f32.xlu1 %v646_v4  ;;  %v782_v38 = vpop.xlane.xlu1 %781  ;;  %v1017_v0 = vsel %vm9981_vm10, %v922_v55, %v1016_v52  ;;  %v600_v2 = vadd.f32 %v6495_v58, %v6236_v29  ;;  %v602_v4 = vadd.f32 %v6495_v58, %v6245_v39 }
 0x123   :  { %v930_v48 = vrot.slane %v782_v38, %v6403_v14 }
 0x124   :  { %v785_v51 = vpop.xlane.xlu0 %784  ;;  %v670_v22 = vsel %vm9978_vm3, %v600_v2, inf  ;;  %v676_v38 = vsel %vm9978_vm3, %v602_v4, inf }
 0x125   :  { %v935_v63 = vrot.slane %v785_v51, %v6400_v12  ;;  %v931_v1 = vsel %vm9986_vm5, %v930_v48, %v926_v49  ;;  %v610_v51 = vadd.f32 %v6495_v58, %v6284_v6 }
 0x126   :  { %698 = vmin.xlane.f32.xlu0 %v697_v44  ;;  %653 = vmin.xlane.f32.xlu1 %v652_v45  ;;  %v788_v50 = vpop.xlane.xlu1 %787  ;;  %v1018_v21 = vsel %vm9980_vm11, %v931_v1, %v1017_v0  ;;  %v688_v45 = vsel %vm9978_vm3, %v606_v41, inf  ;;  %v828_v0 = vsel %vm9978_vm3, %v738_v59, inf }
 0x127   :  { %v939_v62 = vrot.slane %v788_v50, %v6403_v14  ;;  %v694_v50 = vsel %vm9978_vm3, %v608_v46, inf  ;;  %v700_v17 = vsel %vm9978_vm3, %v610_v51, inf }
 0x128   :  { %v6647_v4 = vpop.xlane.xlu0 %790 }
 0x129   :  { %v940_v26 = vsel %vm9986_vm5, %v939_v62, %v935_v63  ;;  %v944_v18 = vrot.slane %v6647_v4, %v6400_v12 }
 0x12a   :  { %704 = vmin.xlane.f32.xlu0 %v703_v56  ;;  %659 = vmin.xlane.f32.xlu1 %v658_v57  ;;  %v6587_v34 = vsel %vm9979_vm12, %v940_v26, %v1018_v21  ;;  %v612_v56 = vadd.f32 %v6495_v58, %v6293_v20  ;;  %v740_v58 = vadd.f32 %v6293_v20, %v6312_v35  ;;  %v794_v51 = vpop.xlane.xlu1 %793 }
 0x12b   :  { %v1029_v10 = vadd.f32 %v6587_v34, %v6151_v24  ;;  %v1031_v40 = vadd.f32 %v6587_v34, %v6159_v30  ;;  %v1033_v44 = vadd.f32 %v6587_v34, %v6164_v32  ;;  %v1035_v49 = vadd.f32 %v6587_v34, %v6186_v47 }
 0x12c   :  { %v1037_v55 = vadd.f32 %v6587_v34, %v6172_v36  ;;  %v1039_v62 = vadd.f32 %v6587_v34, %v6197_v54  ;;  %v706_v63 = vsel %vm9978_vm3, %v612_v56, inf  ;;  %v834_v16 = vsel %vm9978_vm3, %v740_v58, inf }
 0x12d   :  { %v1061_v23 = vsel %vm9978_vm3, %v1029_v10, inf  ;;  %v1067_v42 = vsel %vm9978_vm3, %v1031_v40, inf  ;;  %v1073_v48 = vsel %vm9978_vm3, %v1033_v44, inf  ;;  %v1079_v52 = vsel %vm9978_vm3, %v1035_v49, inf }
 0x12e   :  { %820 = vmin.xlane.f32.xlu0 %v819_v8  ;;  %665 = vmin.xlane.f32.xlu1 %v664_v25  ;;  %v1085_v57 = vsel %vm9978_vm3, %v1037_v55, inf  ;;  %v1091_v1 = vsel %vm9978_vm3, %v1039_v62, inf  ;;  %v1041_v8 = vadd.f32 %v6587_v34, %v6207_v61  ;;  %v1043_v21 = vadd.f32 %v6587_v34, %v6217_v7  ;;  %v800_v55 = vpop.xlane.xlu1 %799 }
 0x12f   :  { %v1045_v26 = vadd.f32 %v6587_v34, %v6226_v19  ;;  %v1051_v10 = vadd.f32 %v6587_v34, %v6252_v43  ;;  %v1053_v31 = vadd.f32 %v6587_v34, %v6265_v53  ;;  %v1057_v44 = vadd.f32 %v6587_v34, %v6284_v6 }
 0x130   :  { %v1097_v25 = vsel %vm9978_vm3, %v1041_v8, inf  ;;  %v1103_v2 = vsel %vm9978_vm3, %v1043_v21, inf }
 0x131   :  { %v1109_v35 = vsel %vm9978_vm3, %v1045_v26, inf  ;;  %v1133_v40 = vsel %vm9978_vm3, %v1053_v31, inf }
 0x132   :  { %826 = vmin.xlane.f32.xlu0 %v825_v27  ;;  %671 = vmin.xlane.f32.xlu1 %v670_v22  ;;  %v1047_v27 = vadd.f32 %v6587_v34, %v6236_v29  ;;  %v1049_v22 = vadd.f32 %v6587_v34, %v6245_v39 }
 0x134   :  { %v1115_v33 = vsel %vm9978_vm3, %v1047_v27, inf }
 0x136   :  { %832 = vmin.xlane.f32.xlu0 %v831_v37  ;;  %677 = vmin.xlane.f32.xlu1 %v676_v38  ;;  %v1121_v37 = vsel %vm9978_vm3, %v1049_v22, inf  ;;  %v1127_v38 = vsel %vm9978_vm3, %v1051_v10, inf }
 0x13a   :  { %683 = vmin.xlane.f32.xlu1 %v682_v11  ;;  %1062 = vmin.xlane.f32.xlu0 %v1061_v23  ;;  %v6655_v23 = vpop.xlane.xlu0 %796  ;;  %v1055_v11 = vadd.f32 %v6587_v34, %v6275_v60 }
 0x13e   :  { %689 = vmin.xlane.f32.xlu1 %v688_v45  ;;  %1068 = vmin.xlane.f32.xlu0 %v1067_v42  ;;  %v6660_v41 = vpop.xlane.xlu0 %802  ;;  %v1139_v42 = vsel %vm9978_vm3, %v1055_v11, inf  ;;  %v1145_v45 = vsel %vm9978_vm3, %v1057_v44, inf }
 0x142   :  { %695 = vmin.xlane.f32.xlu1 %v694_v50  ;;  %1074 = vmin.xlane.f32.xlu0 %v1073_v48  ;;  %v6666_v46 = vpop.xlane.xlu0 %808  ;;  %v1059_v48 = vadd.f32 %v6587_v34, %v6293_v20 }
 0x143   :  { %v971_v4 = vrot.slane %v6666_v46, %v6400_v12 }
 0x144   :  { %v1151_v49 = vsel %vm9978_vm3, %v1059_v48, inf }
 0x146   :  { %701 = vmin.xlane.f32.xlu1 %v700_v17  ;;  %1080 = vmin.xlane.f32.xlu0 %v1079_v52  ;;  %v6671_v50 = vpop.xlane.xlu0 %814 }
 0x14a   :  { %707 = vmin.xlane.f32.xlu1 %v706_v63  ;;  %1086 = vmin.xlane.f32.xlu0 %v1085_v57  ;;  %v806_v57 = vpop.xlane.xlu1 %805 }
 0x14e   :  { %829 = vmin.xlane.f32.xlu1 %v828_v0  ;;  %1092 = vmin.xlane.f32.xlu0 %v1091_v1  ;;  %v812_v62 = vpop.xlane.xlu1 %811 }
 0x152   :  { %835 = vmin.xlane.f32.xlu1 %v834_v16  ;;  %1098 = vmin.xlane.f32.xlu0 %v1097_v25  ;;  %v818_v0 = vpop.xlane.xlu1 %817 }
 0x156   :  { %1104 = vmin.xlane.f32.xlu0 %v1103_v2  ;;  %v824_v58 = vpop.xlane.xlu1 %823 }
 0x15a   :  { %1110 = vmin.xlane.f32.xlu0 %v1109_v35 }
 0x15e   :  { %1116 = vmin.xlane.f32.xlu0 %v1115_v33 }
 0x162   :  { %1122 = vmin.xlane.f32.xlu0 %v1121_v37 }
 0x166   :  { %1128 = vmin.xlane.f32.xlu0 %v1127_v38 }
 0x16a   :  { %1134 = vmin.xlane.f32.xlu0 %v1133_v40 }
 0x16e   :  { %1140 = vmin.xlane.f32.xlu0 %v1139_v42 }
 0x172   :  { %1146 = vmin.xlane.f32.xlu0 %v1145_v45 }
 0x176   :  { %1152 = vmin.xlane.f32.xlu0 %v1151_v49 }
 0x17b   :  { %v6673_v52 = vpop.xlane.xlu0 %614 }
 0x17c   :  { %vm1157_vm15 = vcmp.lt.f32.partialorder %v6673_v52, 5e+08  ;;  %v10118_v52 = vmov 0 }
 0x17f   :  { %v6675_v17 = vpop.xlane.xlu0 %620 }
 0x180   :  { %vm1159_vm1 = vcmp.lt.f32.partialorder %v6675_v17, 5e+08  ;;  %v10120_v17 = vmov 0 }
 0x183   :  { %v6677_v56 = vpop.xlane.xlu0 %626 }
 0x187   :  { %v6679_v59 = vpop.xlane.xlu0 %632 }
 0x18b   :  { %v6681_v63 = vpop.xlane.xlu0 %638 }
 0x18f   :  { %v6683_v34 = vpop.xlane.xlu0 %644 }
 0x193   :  { %v6685_v1 = vpop.xlane.xlu0 %650 }
 0x197   :  { %v6687_v8 = vpop.xlane.xlu0 %656 }
 0x19b   :  { %v6689_v16 = vpop.xlane.xlu1 %617  ;;  %v6693_v21 = vpop.xlane.xlu0 %662 }
 0x19f   :  { %v6691_v25 = vpop.xlane.xlu1 %623  ;;  %v6697_v26 = vpop.xlane.xlu0 %668 }
 0x1a3   :  { %v6695_v2 = vpop.xlane.xlu1 %629  ;;  %v6703_v33 = vpop.xlane.xlu0 %674 }
 0x1a7   :  { %v6699_v35 = vpop.xlane.xlu1 %635  ;;  %v6707_v37 = vpop.xlane.xlu0 %680 }
 0x1a8   :  { %10102 = vst [vmem:[#allocation31_spill] sm:$0xff] %v6707_v37 }
 0x1ab   :  { %v6701_v27 = vpop.xlane.xlu1 %641  ;;  %v6713_v31 = vpop.xlane.xlu0 %686 }
 0x1ac   :  { %10103 = vst [vmem:[#allocation32_spill] sm:$0xff] %v6713_v31 }
 0x1af   :  { %v6705_v22 = vpop.xlane.xlu1 %647  ;;  %v6717_v11 = vpop.xlane.xlu0 %692 }
 0x1b0   :  { %10105 = vst [vmem:[#allocation34_spill] sm:$0xff] %v6717_v11 }
 0x1b3   :  { %v6709_v10 = vpop.xlane.xlu1 %653  ;;  %v6723_v45 = vpop.xlane.xlu0 %698 }
 0x1b4   :  { %10108 = vst [vmem:[#allocation37_spill] sm:$0xff] %v6723_v45 }
 0x1b7   :  { %v6711_v38 = vpop.xlane.xlu1 %659  ;;  %v6727_v49 = vpop.xlane.xlu0 %704 }
 0x1b8   :  { %10110 = vst [vmem:[#allocation39_spill] sm:$0xff] %v6727_v49  ;;  %v966_v49 = vrot.slane %v806_v57, %v6403_v14  ;;  %v984_v57 = vrot.slane %v818_v0, %v6403_v14 }
 0x1bb   :  { %v6715_v40 = vpop.xlane.xlu1 %665  ;;  %v821_v11 = vpop.xlane.xlu0 %820 }
 0x1bc   :  { %10104 = vst [vmem:[#allocation33_spill] sm:$0xff] %v6715_v40  ;;  %v953_v40 = vrot.slane %v6655_v23, %v6400_v12  ;;  %v975_v23 = vrot.slane %v812_v62, %v6403_v14  ;;  %v989_v46 = vrot.slane %v821_v11, %v6400_v12 }
 0x1bf   :  { %v6719_v42 = vpop.xlane.xlu1 %671  ;;  %v827_v31 = vpop.xlane.xlu0 %826 }
 0x1c0   :  { %10106 = vst [vmem:[#allocation35_spill] sm:$0xff] %v6719_v42  ;;  %v948_v42 = vrot.slane %v794_v51, %v6403_v14  ;;  %v998_v62 = vrot.slane %v827_v31, %v6400_v12 }
 0x1c3   :  { %v6721_v44 = vpop.xlane.xlu1 %677 }
 0x1c4   :  { %10107 = vst [vmem:[#allocation36_spill] sm:$0xff] %v6721_v44  ;;  %v957_v44 = vrot.slane %v800_v55, %v6403_v14 }
 0x1c7   :  { %v6725_v48 = vpop.xlane.xlu1 %683 }
 0x1c8   :  { %10109 = vst [vmem:[#allocation38_spill] sm:$0xff] %v6725_v48  ;;  %v962_v48 = vrot.slane %v6660_v41, %v6400_v12  ;;  %v980_v41 = vrot.slane %v6671_v50, %v6400_v12  ;;  %v833_v50 = vpop.xlane.xlu0 %832 }
 0x1ca   :  { %v967_v55 = vsel %vm9986_vm5, %v966_v49, %v962_v48  ;;  %v985_v48 = vsel %vm9986_vm5, %v984_v57, %v980_v41  ;;  %v1007_v49 = vrot.slane %v833_v50, %v6400_v12 }
 0x1cb   :  { %v6729_v28 = vpop.xlane.xlu1 %689 }
 0x1cc   :  { %10111 = vst [vmem:[#allocation40_spill] sm:$0xff] %v6729_v28  ;;  %v958_v28 = vsel %vm9986_vm5, %v957_v44, %v953_v40  ;;  %v976_v40 = vsel %vm9986_vm5, %v975_v23, %v971_v4 }
 0x1cf   :  { %v6731_v13 = vpop.xlane.xlu1 %695 }
 0x1d0   :  { %10112 = vst [vmem:[#allocation41_spill] sm:$0xff] %v6731_v13  ;;  %v949_v13 = vsel %vm9986_vm5, %v948_v42, %v944_v18 }
 0x1d1   :  { %v1020_v51 = vsel %vm9985_vm6, %v958_v28, %v949_v13  ;;  %v993_v13 = vrot.slane %v824_v58, %v6403_v14  ;;  %vm1160_vm6 = vcmp.lt.f32.partialorder %v6691_v25, 5e+08 }
 0x1d2   :  { %v1021_v18 = vsel %vm9984_vm7, %v967_v55, %v1020_v51 }
 0x1d3   :  { %v6742_v45 = vpop.xlane.xlu1 %701  ;;  %v1022_v44 = vsel %vm9983_vm8, %v976_v40, %v1021_v18  ;;  %v994_v0 = vsel %vm9986_vm5, %v993_v13, %v989_v46  ;;  %v63_v18 = vld [vmem:[#allocation2] sm:$0xff] }
 0x1d4   :  { %v1023_v11 = vsel %vm9982_vm9, %v985_v48, %v1022_v44  ;;  %v2495_v40 = vand.u32 2147483647, %v63_v18 }
 0x1d5   :  { %v1024_v58 = vsel %vm9981_vm10, %v994_v0, %v1023_v11  ;;  %vm1163_vm10 = vcmp.lt.f32.partialorder %v6679_v59, 5e+08  ;;  %v10124_v59 = vmov 1e+09  }
 0x1d7   :  { %v6751_v37 = vpop.xlane.xlu1 %707 }
 0x1db   :  { %v830_v42 = vpop.xlane.xlu1 %829 }
 0x1dc   :  { %v1002_v28 = vrot.slane %v830_v42, %v6403_v14  ;;  %v2497_v42 = vsub.f32 0.0, %v2495_v40  ;;  %v2489_v40 = vmax.f32 %v63_v18, 0.0 }
 0x1de   :  { %v1003_v4 = vsel %vm9986_vm5, %v1002_v28, %v998_v62  ;;  %v2499_v44 = vmul.f32 1.442695, %v2497_v42 }
 0x1df   :  { %v836_v23 = vpop.xlane.xlu1 %835  ;;  %v1025_v51 = vsel %vm9980_vm11, %v1003_v4, %v1024_v58 }
 0x1e0   :  { %v1011_v31 = vrot.slane %v836_v23, %v6403_v14  ;;  %5714 = vpow2.f32 %v2499_v44 }
 0x1e2   :  { %v1012_v55 = vsel %vm9986_vm5, %v1011_v31, %v1007_v49 }
 0x1e3   :  { %v1026_v41 = vsel %vm9979_vm12, %v1012_v55, %v1025_v51 }
 0x1e4   :  { %v1030_v57 = vadd.f32 %v1026_v41, %v6151_v24  ;;  %v1032_v62 = vadd.f32 %v1026_v41, %v6159_v30  ;;  %v1034_v28 = vadd.f32 %v1026_v41, %v6164_v32  ;;  %v1036_v50 = vadd.f32 %v1026_v41, %v6186_v47 }
 0x1e5   :  { %v1038_v49 = vadd.f32 %v1026_v41, %v6172_v36  ;;  %v1040_v23 = vadd.f32 %v1026_v41, %v6197_v54  ;;  %v1042_v58 = vadd.f32 %v1026_v41, %v6207_v61 }
 0x1e6   :  { %v1064_v46 = vsel %vm9978_vm3, %v1030_v57, inf  ;;  %v1070_v13 = vsel %vm9978_vm3, %v1032_v62, inf  ;;  %v1076_v48 = vsel %vm9978_vm3, %v1034_v28, inf  ;;  %v1082_v0 = vsel %vm9978_vm3, %v1036_v50, inf }
 0x1e7   :  { %1065 = vmin.xlane.f32.xlu1 %v1064_v46  ;;  %v1088_v4 = vsel %vm9978_vm3, %v1038_v49, inf  ;;  %v1094_v31 = vsel %vm9978_vm3, %v1040_v23, inf  ;;  %v1100_v55 = vsel %vm9978_vm3, %v1042_v58, inf  ;;  %v1044_v57 = vadd.f32 %v1026_v41, %v6217_v7  ;;  %v5986_v46 = vld [vmem:[#allocation5] sm:$0xff] }
 0x1e8   :  { %v2491_v62 = vmul.f32 %v5986_v46, %v63_v18  ;;  %v1048_v50 = vadd.f32 %v1026_v41, %v6236_v29  ;;  %v1050_v23 = vadd.f32 %v1026_v41, %v6245_v39  ;;  %v1058_v46 = vadd.f32 %v1026_v41, %v6284_v6 }
 0x1e9   :  { %v1106_v42 = vsel %vm9978_vm3, %v1044_v57, inf  ;;  %v1056_v57 = vadd.f32 %v1026_v41, %v6275_v60 }
 0x1ea   :  { %v5715_v11 = vpop.eup %5714  ;;  %v2493_v28 = vsub.f32 %v2489_v40, %v2491_v62  ;;  %v1148_v62 = vsel %vm9978_vm3, %v1058_v46, inf }
 0x1eb   :  { %1071 = vmin.xlane.f32.xlu1 %v1070_v13  ;;  %v2503_v51 = vadd.f32 1.0, %v5715_v11  ;;  %v1046_v13 = vadd.f32 %v1026_v41, %v6226_v19  ;;  %v1124_v11 = vsel %vm9978_vm3, %v1050_v23, inf  ;;  %v1142_v40 = vsel %vm9978_vm3, %v1056_v57, inf }
 0x1ed   :  { %5716 = vlog2.f32 %v2503_v51  ;;  %v1054_v51 = vadd.f32 %v1026_v41, %v6265_v53 }
 0x1ef   :  { %1077 = vmin.xlane.f32.xlu1 %v1076_v48  ;;  %v1112_v48 = vsel %vm9978_vm3, %v1046_v13, inf }
 0x1f3   :  { %1083 = vmin.xlane.f32.xlu1 %v1082_v0 }
 0x1f7   :  { %1089 = vmin.xlane.f32.xlu1 %v1088_v4  ;;  %v5717_v44 = vpop.eup %5716  ;;  %v1118_v4 = vsel %vm9978_vm3, %v1048_v50, inf }
 0x1f8   :  { %v2506_v0 = vmul.f32 0.6931472, %v5717_v44 }
 0x1fa   :  { %v6792_v49 = vadd.f32 %v2506_v0, %v2493_v28  ;;  %v6810_v28 = vsub.s32 1, %v6110_v3 }
 0x1fb   :  { %1095 = vmin.xlane.f32.xlu1 %v1094_v31  ;;  %v1052_v31 = vadd.f32 %v1026_v41, %v6252_v43 }
 0x1fc   :  { %v2516_v18 = vrot.slane %v6792_v49, %v6130_v15  ;;  %10113 = vst [vmem:[#allocation42_spill] sm:$0xff] %v6810_v28  ;;  %v6814_v44 = vrot.slane %v6792_v49, %v6810_v28 }
 0x1fd   :  { %v1130_v58 = vsel %vm9978_vm3, %v1052_v31, inf }
 0x1fe   :  { %2518 = vbcast.lane.b32.xlu0 %v2516_v18, 256 }
 0x1ff   :  { %1101 = vmin.xlane.f32.xlu1 %v1100_v55  ;;  %v1136_v55 = vsel %vm9978_vm3, %v1054_v51, inf }
 0x203   :  { %1107 = vmin.xlane.f32.xlu1 %v1106_v42  ;;  %v1060_v42 = vadd.f32 %v1026_v41, %v6293_v20 }
 0x205   :  { %v1154_v13 = vsel %vm9978_vm3, %v1060_v42, inf  ;;  %vm1161_vm3 = vcmp.lt.f32.partialorder %v6677_v56, 5e+08  ;;  %v10122_v56 = vmov 0 }
 0x207   :  { %1113 = vmin.xlane.f32.xlu1 %v1112_v48  ;;  %v1063_v48 = vpop.xlane.xlu0 %1062 }
 0x208   :  { %vm1189_vm13 = vcmp.lt.f32.partialorder %v1063_v48, 5e+08  ;;  %v47_v48 = vmul.u32 %v6116_v5, %v6116_v5 }
 0x209   :  { %vm6827_vm2 = vmand %vm1157_vm15, %vm1189_vm13  ;;  %vm1158_vm15 = vcmp.lt.f32.partialorder %v6689_v16, 5e+08  ;;  %vm1162_vm13 = vcmp.lt.f32.partialorder %v6695_v2, 5e+08 }
 0x20a   :  { %v6858_v16 = vsel %vm6827_vm2, 0.0, %v10124_v59 }
 0x20b   :  { %1119 = vmin.xlane.f32.xlu1 %v1118_v4  ;;  %v1069_v50 = vpop.xlane.xlu0 %1068 }
 0x20c   :  { %vm1191_vm14 = vcmp.lt.f32.partialorder %v1069_v50, 5e+08 }
 0x20d   :  { %vm6832_vm12 = vmand %vm1159_vm1, %vm1191_vm14 }
 0x20f   :  { %1125 = vmin.xlane.f32.xlu1 %v1124_v11  ;;  %v1075_v0 = vpop.xlane.xlu0 %1074 }
 0x210   :  { %vm1193_vm0 = vcmp.lt.f32.partialorder %v1075_v0, 5e+08 }
 0x211   :  { %vm6837_vm9 = vmand %vm1161_vm3, %vm1193_vm0  ;;  %vm1171_vm0 = vcmp.lt.f32.partialorder %v6687_v8, 5e+08 }
 0x212   :  { %v10119_v52 = vsel %vm6837_vm9, 4294967295, %v10118_v52 }
 0x213   :  { %1131 = vmin.xlane.f32.xlu1 %v1130_v58  ;;  %v1081_v4 = vpop.xlane.xlu0 %1080 }
 0x214   :  { %vm1195_vm4 = vcmp.lt.f32.partialorder %v1081_v4, 5e+08 }
 0x215   :  { %vm6843_vm7 = vmand %vm1163_vm10, %vm1195_vm4  ;;  %vm1164_vm4 = vcmp.lt.f32.partialorder %v6699_v35, 5e+08  ;;  %v1500_v35 = vrot.slane %v6858_v16, %v6400_v12 }
 0x216   :  { %v10121_v17 = vsel %vm6843_vm7, 4294967295, %v10120_v17  ;;  %vm1166_vm7 = vcmp.lt.f32.partialorder %v6701_v27, 5e+08  ;;  %v1255_v27 = vsel %vm6832_vm12, 0.0, %v10124_v59  ;;  %vm1172_vm12 = vcmp.lt.f32.partialorder %v6711_v38, 5e+08 }
 0x217   :  { %1137 = vmin.xlane.f32.xlu1 %v1136_v55  ;;  %v1087_v23 = vpop.xlane.xlu0 %1086 }
 0x21b   :  { %1143 = vmin.xlane.f32.xlu1 %v1142_v40  ;;  %v1093_v41 = vpop.xlane.xlu0 %1092 }
 0x21f   :  { %1149 = vmin.xlane.f32.xlu1 %v1148_v62  ;;  %v6817_v11 = vpop.xlane.xlu0 %1098 }
 0x223   :  { %1155 = vmin.xlane.f32.xlu1 %v1154_v13  ;;  %v6819_v31 = vpop.xlane.xlu0 %1104 }
 0x227   :  { %v6821_v51 = vpop.xlane.xlu0 %1110 }
 0x22b   :  { %v6824_v57 = vpop.xlane.xlu0 %1116 }
 0x22f   :  { %v6860_v42 = vpop.xlane.xlu0 %1122 }
 0x234   :  { %2522 = vbcast.lane.b32.xlu1 %v2516_v18, 264 }
 0x238   :  { %2529 = vbcast.lane.b32.xlu1 %v6814_v44, 256 }
 0x274   :  { %v1066_v58 = vpop.xlane.xlu1 %1065 }
 0x275   :  { %vm1190_vm11 = vcmp.lt.f32.partialorder %v1066_v58, 5e+08 }
 0x276   :  { %vm6849_vm5 = vmand %vm1158_vm15, %vm1190_vm11  ;;  %vm1197_vm11 = vcmp.lt.f32.partialorder %v1087_v23, 5e+08 }
 0x277   :  { %v10123_v56 = vsel %vm6849_vm5, 4294967295, %v10122_v56  ;;  %vm1199_vm5 = vcmp.lt.f32.partialorder %v1093_v41, 5e+08 }
 0x278   :  { %v1072_v18 = vpop.xlane.xlu1 %1071 }
 0x279   :  { %vm1192_vm8 = vcmp.lt.f32.partialorder %v1072_v18, 5e+08 }
 0x27a   :  { %vm1224_vm10 = vmand %vm1160_vm6, %vm1192_vm8  ;;  %vm1168_vm6 = vcmp.lt.f32.partialorder %v6705_v22, 5e+08  ;;  %vm1170_vm8 = vcmp.lt.f32.partialorder %v6709_v10, 5e+08 }
 0x27b   :  { %v1256_v50 = vsel %vm1224_vm10, 0.0, %v10124_v59 }
 0x27c   :  { %v1078_v55 = vpop.xlane.xlu1 %1077  ;;  %v1513_v40 = vrot.slane %v1256_v50, %v6403_v14 }
 0x27d   :  { %vm1194_vm14 = vcmp.lt.f32.partialorder %v1078_v55, 5e+08 }
 0x27e   :  { %vm6863_vm15 = vmand %vm1162_vm13, %vm1194_vm14  ;;  %vm10131_vm13 = vnez %v10119_v52  ;;  %vm10132_vm14 = vcmp.lt.f32.partialorder %v6681_v63, 5e+08  ;;  %v1509_v52 = vrot.slane %v1255_v27, %v6400_v12 }
 0x27f   :  { %v1257_v5 = vsel %vm10131_vm13, 0.0, %v10124_v59  ;;  %v1258_v58 = vsel %vm6863_vm15, 0.0, %v10124_v59  ;;  %vm10139_vm13 = vnez %v10121_v17 }
 0x280   :  { %v1084_v62 = vpop.xlane.xlu1 %1083  ;;  %v1259_v41 = vsel %vm10139_vm13, 0.0, %v10124_v59  ;;  %v1518_v2 = vrot.slane %v1257_v5, %v6400_v12 }
 0x281   :  { %vm1196_vm3 = vcmp.lt.f32.partialorder %v1084_v62, 5e+08  ;;  %v6927_v62 = vcvt.s32.f32 %v47_v48  ;;  %v1527_v48 = vrot.slane %v1259_v41, %v6400_v12 }
 0x282   :  { %vm6869_vm9 = vmand %vm1164_vm4, %vm1196_vm3  ;;  %vm1203_vm4 = vcmp.lt.f32.partialorder %v6819_v31, 5e+08 }
 0x283   :  { %vm6893_vm3 = vmand %vm10132_vm14, %vm1197_vm11  ;;  %vm10138_vm11 = vnez %v10123_v56  ;;  %v1260_v55 = vsel %vm6869_vm9, 0.0, %v10124_v59  ;;  %vm10140_vm9 = vcmp.lt.f32.partialorder %v6685_v1, 5e+08  ;;  %v1522_v56 = vrot.slane %v1258_v58, %v6403_v14 }
 0x284   :  { %v1090_v13 = vpop.xlane.xlu1 %1089  ;;  %v1254_v63 = vsel %vm10138_vm11, 0.0, %v10124_v59  ;;  %v1261_v17 = vsel %vm6893_vm3, 0.0, %v10124_v59  ;;  %v1294_v1 = vrot.slane %v6927_v62, %v6121_v9 }
 0x285   :  { %vm1198_vm1 = vcmp.lt.f32.partialorder %v1090_v13, 5e+08  ;;  %v1504_v13 = vrot.slane %v1254_v63, %v6403_v14  ;;  %v1536_v31 = vrot.slane %v1261_v17, %v6400_v12 }
 0x286   :  { %vm6880_vm2 = vmand %vm1166_vm7, %vm1198_vm1  ;;  %vm1201_vm7 = vcmp.lt.f32.partialorder %v6817_v11, 5e+08  ;;  %vm10135_vm1 = vcmp.lt.f32.partialorder %v6683_v34, 5e+08  ;;  %v6919_v34 = vpop.xlane.xlu0 %1128  ;;  %v1531_v11 = vrot.slane %v1260_v55, %v6403_v14 }
 0x287   :  { %vm6905_vm10 = vmand %vm10135_vm1, %vm1199_vm5  ;;  %v1262_v46 = vsel %vm6880_vm2, 0.0, %v10124_v59 }
 0x288   :  { %v1096_v18 = vpop.xlane.xlu1 %1095  ;;  %vm1233_vm14 = vmand %vm10140_vm9, %vm1201_vm7  ;;  %v1263_v22 = vsel %vm6905_vm10, 0.0, %v10124_v59  ;;  %v1540_v50 = vrot.slane %v1262_v46, %v6403_v14  ;;  %v1302_v46 = vcombine.high %v1294_v1, %v1294_v1  ;;  %vm10149_vm9 = vcmask 1043459  }
 0x289   :  { %vm1200_vm15 = vcmp.lt.f32.partialorder %v1096_v18, 5e+08  ;;  %v1265_v8 = vsel %vm1233_vm14, 0.0, %v10124_v59  ;;  %v1545_v4 = vrot.slane %v1263_v22, %v6400_v12 }
 0x28a   :  { %vm1232_vm5 = vmand %vm1168_vm6, %vm1200_vm15  ;;  %v6963_v23 = vpop.xlane.xlu0 %1134  ;;  %v1554_v10 = vrot.slane %v1265_v8, %v6400_v12  ;;  %vm10147_vm15 = vcmask 1042434   ;;  %v1324_v38 = vrot.slane %v1302_v46, %v6121_v9 }
 0x28b   :  { %v1264_v16 = vsel %vm1232_vm5, 0.0, %v10124_v59  ;;  %vm1235_vm6 = vmand %vm1171_vm0, %vm1203_vm4  ;;  %vm10141_vm0 = vcmask 130112  }
 0x28c   :  { %v1102_v25 = vpop.xlane.xlu1 %1101  ;;  %v1514_v0 = vsel %vm10141_vm0, %v1513_v40, %v1509_v52  ;;  %v1549_v27 = vrot.slane %v1264_v16, %v6403_v14  ;;  %v1267_v5 = vsel %vm1235_vm6, 0.0, %v10124_v59  ;;  %vm10142_vm7 = vmmov %vm10141_vm0  ;;  %vm10151_vm6 = vcmask 1044484  }
 0x28d   :  { %vm1202_vm2 = vcmp.lt.f32.partialorder %v1102_v25, 5e+08  ;;  %v1523_v58 = vsel %vm10142_vm7, %v1522_v56, %v1518_v2  ;;  %vm10143_vm1 = vmmov %vm10141_vm0  ;;  %v1563_v22 = vrot.slane %v1267_v5, %v6400_v12  ;;  %vm1173_vm7 = vcmp.lt.f32.partialorder %v6693_v21, 5e+08  ;;  %v10159_v21 = vld [vmem:[#allocation31_spill] sm:$0xff] }
 0x28e   :  { %vm1234_vm3 = vmand %vm1170_vm8, %vm1202_vm2  ;;  %v1505_v63 = vsel %vm10143_vm1, %v1504_v13, %v1500_v35  ;;  %vm10145_vm8 = vcmask 1041409   ;;  %v1310_v35 = vrot.slane %v1294_v1, %v6121_v9  ;;  %v1141_v8 = vpop.xlane.xlu0 %1140  ;;  %vm10154_vm2 = vcmask 1046534  }
 0x28f   :  { %v1266_v18 = vsel %vm1234_vm3, 0.0, %v10124_v59  ;;  %vm10144_vm10 = vmmov %vm10141_vm0  ;;  %v1641_v52 = vsel %vm10145_vm8, %v1514_v0, %v1505_v63  ;;  %vm10156_vm3 = vcmask 1047559   ;;  %vm1205_vm1 = vcmp.lt.f32.partialorder %v6821_v51, 5e+08  ;;  %v10160_v51 = vld [vmem:[#allocation32_spill] sm:$0xff] }
 0x290   :  { %v1532_v55 = vsel %vm10144_vm10, %v1531_v11, %v1527_v48  ;;  %v1558_v41 = vrot.slane %v1266_v18, %v6403_v14  ;;  %v1108_v40 = vpop.xlane.xlu1 %1107  ;;  %vm10146_vm4 = vmmov %vm10141_vm0  ;;  %v1642_v56 = vsel %vm10147_vm15, %v1523_v58, %v1641_v52  ;;  %v1332_v5 = vcombine.high %v1310_v35, %v1310_v35 }
 0x291   :  { %v1541_v17 = vsel %vm10146_vm4, %v1540_v50, %v1536_v31  ;;  %vm1204_vm11 = vcmp.lt.f32.partialorder %v1108_v40, 5e+08  ;;  %vm10148_vm13 = vmmov %vm10141_vm0  ;;  %v1643_v13 = vsel %vm10149_vm9, %v1532_v55, %v1642_v56  ;;  %v6985_v31 = vrot.slane %v1310_v35, %v6130_v15 }
 0x292   :  { %v1550_v16 = vsel %vm10148_vm13, %v1549_v27, %v1545_v4  ;;  %vm1236_vm5 = vmand %vm1172_vm12, %vm1204_vm11  ;;  %v1644_v2 = vsel %vm10151_vm6, %v1541_v17, %v1643_v13  ;;  %vm10153_vm12 = vcmask 1045509   ;;  %v6992_v4 = vrot.slane %v1324_v38, %v6130_v15  ;;  %v1147_v52 = vpop.xlane.xlu0 %1146 }
 0x293   :  { %vm10150_vm14 = vmmov %vm10141_vm0  ;;  %v1268_v25 = vsel %vm1236_vm5, 0.0, %v10124_v59  ;;  %10152 = vst [vmem:[#allocation43_spill] sm:$0xff] %v6985_v31  ;;  %v1645_v1 = vsel %vm10153_vm12, %v1550_v16, %v1644_v2  ;;  %v1287_v55 = vcombine.high %v6927_v62, %v6927_v62  ;;  %vm1207_vm10 = vcmp.lt.f32.partialorder %v6824_v57, 5e+08  ;;  %v10171_v57 = vld [vmem:[#allocation33_spill] sm:$0xff] }
 0x294   :  { %v1559_v11 = vsel %vm10150_vm14, %v1558_v41, %v1554_v10  ;;  %v1567_v48 = vrot.slane %v1268_v25, %v6403_v14  ;;  %v6982_v50 = vpop.xlane.xlu1 %1113  ;;  %10155 = vst [vmem:[#allocation44_spill] sm:$0xff] %v6992_v4  ;;  %vm10157_vm8 = vcmask 130048   ;;  %v7008_v46 = vrot.slane %v1332_v5, %v6130_v15  ;;  %vm7015_vm9 = vmand %vm1173_vm7, %vm1205_vm1  ;;  %v10175_v25 = vld [vmem:[#allocation36_spill] sm:$0xff] }
 0x295   :  { %v1646_v0 = vsel %vm10154_vm2, %v1559_v11, %v1645_v1  ;;  %v1334_v10 = vcombine.high %v1324_v38, %v1324_v38  ;;  %vm1175_vm4 = vcmp.lt.f32.partialorder %v6697_v26, 5e+08  ;;  %vm1177_vm11 = vcmp.lt.f32.partialorder %v6703_v33, 5e+08  ;;  %v10163_v26 = vld [vmem:[#allocation34_spill] sm:$0xff]  ;;  %v10164_v33 = vld [vmem:[#allocation37_spill] sm:$0xff]  ;;  %vm10169_vm1 = vmmov %vm10157_vm8 }
 0x296   :  { %v1568_v27 = vsel %vm10141_vm0, %v1567_v48, %v1563_v22  ;;  %10158 = vst [vmem:[#allocation45_spill] sm:$0xff] %v7008_v46  ;;  %vm1209_vm15 = vcmp.lt.f32.partialorder %v6860_v42, 5e+08  ;;  %vm1179_vm13 = vcmp.lt.f32.partialorder %v10159_v21, 5e+08  ;;  %v1301_v56 = vrot.slane %v1287_v55, %v6121_v9  ;;  %vm7025_vm2 = vmand %vm1175_vm4, %vm1207_vm10  ;;  %v10172_v11 = vld [vmem:[#allocation35_spill] sm:$0xff] }
 0x297   :  { %v6995_v58 = vsel %vm10156_vm3, %v1568_v27, %v1646_v0  ;;  %vm1181_vm5 = vcmp.lt.f32.partialorder %v10160_v51, 5e+08  ;;  %vm1211_vm14 = vcmp.lt.f32.partialorder %v6919_v34, 5e+08  ;;  %vm1183_vm6 = vcmp.lt.f32.partialorder %v10163_v26, 5e+08  ;;  %vm7030_vm3 = vmand %vm1177_vm11, %vm1209_vm15 }
 0x298   :  { %v1120_v18 = vpop.xlane.xlu1 %1119  ;;  %v1657_v63 = vadd.f32 %v6995_v58, %v6985_v31  ;;  %v1659_v40 = vadd.f32 %v6995_v58, %v6992_v4  ;;  %vm1185_vm12 = vcmp.lt.f32.partialorder %v10164_v33, 5e+08  ;;  %vm1213_vm0 = vcmp.lt.f32.partialorder %v6963_v23, 5e+08  ;;  %vm7046_vm4 = vmand %vm1179_vm13, %vm1211_vm14  ;;  %v10188_v21 = vld [vmem:[#allocation39_spill] sm:$0xff]  ;;  %v10189_v51 = vld [vmem:[#allocation41_spill] sm:$0xff] }
 0x299   :  { %vm1215_vm7 = vcmp.lt.f32.partialorder %v1141_v8, 5e+08  ;;  %v1661_v22 = vadd.f32 %v6995_v58, %v7008_v46  ;;  %v7038_v13 = vrot.slane %v1334_v10, %v6130_v15  ;;  %vm1174_vm10 = vcmp.lt.f32.partialorder %v10171_v57, 5e+08  ;;  %v10185_v10 = vld [vmem:[#allocation40_spill] sm:$0xff] }
 0x29a   :  { %v1689_v41 = vsel %vm10157_vm8, %v1657_v63, inf  ;;  %v1695_v35 = vsel %vm10169_vm1, %v1659_v40, inf  ;;  %vm1217_vm11 = vcmp.lt.f32.partialorder %v1147_v52, 5e+08  ;;  %vm1178_vm15 = vcmp.lt.f32.partialorder %v10175_v25, 5e+08  ;;  %vm7053_vm1 = vmand %vm1181_vm5, %vm1213_vm0 }
 0x29b   :  { %1690 = vmin.xlane.f32.xlu0 %v1689_v41  ;;  %10170 = vst [vmem:[#allocation31_spill] sm:$0xff] %v7038_v13  ;;  %vm1206_vm8 = vcmp.lt.f32.partialorder %v6982_v50, 5e+08  ;;  %v1317_v34 = vrot.slane %v1301_v56, %v6121_v9  ;;  %v1303_v38 = vcombine.high %v1301_v56, %v1301_v56  ;;  %v7062_v1 = vsel %vm7015_vm9, 0.0, %v10124_v59  ;;  %vm7077_vm13 = vmand %vm1183_vm6, %vm1215_vm7  ;;  %v10184_v40 = vld [vmem:[#allocation38_spill] sm:$0xff]  ;;  %v10193_v26 = vld [vmem:[#allocation12_spill] sm:$0xff] }
 0x29c   :  { %v1126_v17 = vpop.xlane.xlu1 %1125  ;;  %v7067_v0 = vsel %vm7025_vm2, 0.0, %v10124_v59  ;;  %v7072_v27 = vsel %vm7030_vm3, 0.0, %v10124_v59  ;;  %vm1208_vm5 = vcmp.lt.f32.partialorder %v1120_v18, 5e+08  ;;  %vm7083_vm9 = vmand %vm1185_vm12, %vm1217_vm11  ;;  %vm10182_vm2 = vcmask 130048  }
 0x29d   :  { %vm1210_vm14 = vcmp.lt.f32.partialorder %v1126_v17, 5e+08  ;;  %v1701_v55 = vsel %vm10182_vm2, %v1661_v22, inf  ;;  %v1663_v41 = vadd.f32 %v6995_v58, %v7038_v13  ;;  %v7091_v8 = vrot.slane %v1317_v34, %v6130_v15  ;;  %vm7099_vm12 = vmand %vm1174_vm10, %vm1206_vm8 }
 0x29e   :  { %vm1180_vm6 = vcmp.lt.f32.partialorder %v10184_v40, 5e+08  ;;  %vm1187_vm7 = vcmp.lt.f32.partialorder %v10188_v21, 5e+08  ;;  %vm1184_vm11 = vcmp.lt.f32.partialorder %v10189_v51, 5e+08  ;;  %v1572_v62 = vrot.slane %v7062_v1, %v6400_v12  ;;  %vm1242_vm8 = vmand %vm1178_vm15, %vm1210_vm14 }
 0x29f   :  { %1696 = vmin.xlane.f32.xlu0 %v1695_v35  ;;  %10183 = vst [vmem:[#allocation32_spill] sm:$0xff] %v7091_v8  ;;  %vm10190_vm2 = vcmp.lt.f32.partialorder %v10172_v11, 5e+08  ;;  %v1331_v56 = vrot.slane %v1303_v38, %v6121_v9  ;;  %v48_v33 = vmul.u32 %v10193_v26, %v10193_v26  ;;  %v1581_v42 = vrot.slane %v7067_v0, %v6400_v12  ;;  %v1153_v35 = vpop.xlane.xlu0 %1152 }
 0x2a0   :  { %v1132_v48 = vpop.xlane.xlu1 %1131  ;;  %vm7109_vm0 = vmand %vm10190_vm2, %vm1208_vm5  ;;  %v1590_v16 = vrot.slane %v7072_v27, %v6400_v12  ;;  %v1333_v22 = vcombine.high %v1317_v34, %v1317_v34  ;;  %v1275_v57 = vsel %vm7046_vm4, 0.0, %v10124_v59  ;;  %vm10196_vm10 = vcmask 130048  }
 0x2a1   :  { %vm1212_vm3 = vcmp.lt.f32.partialorder %v1132_v48, 5e+08  ;;  %v1707_v38 = vsel %vm10196_vm10, %v1663_v41, inf  ;;  %v1665_v17 = vadd.f32 %v6995_v58, %v7091_v8  ;;  %v7138_v25 = vrot.slane %v1331_v56, %v6130_v15 }
 0x2a2   :  { %vm7130_vm2 = vmand %vm1180_vm6, %vm1212_vm3  ;;  %v1277_v23 = vsel %vm7053_vm1, 0.0, %v10124_v59  ;;  %v1279_v48 = vsel %vm7077_vm13, 0.0, %v10124_v59  ;;  %v1281_v34 = vsel %vm7083_vm9, 0.0, %v10124_v59  ;;  %v1272_v0 = vsel %vm7109_vm0, 0.0, %v10124_v59 }
 0x2a3   :  { %1702 = vmin.xlane.f32.xlu0 %v1701_v55  ;;  %10197 = vst [vmem:[#allocation34_spill] sm:$0xff] %v7138_v25  ;;  %vm10198_vm4 = vcmp.lt.f32.partialorder %v10185_v10, 5e+08  ;;  %vm1219_vm14 = vcmp.lt.f32.partialorder %v1153_v35, 5e+08  ;;  %v1274_v2 = vsel %vm1242_vm8, 0.0, %v10124_v59  ;;  %v1335_v55 = vcombine.high %v1331_v56, %v1331_v56  ;;  %vm10200_vm6 = vmmov %vm10196_vm10 }
 0x2a4   :  { %v1138_v50 = vpop.xlane.xlu1 %1137  ;;  %v7155_v41 = vcvt.s32.f32 %v48_v33  ;;  %vm1188_vm1 = vcmp.lt.f32.partialorder %v6751_v37, 5e+08  ;;  %v1270_v5 = vsel %vm7099_vm12, 0.0, %v10124_v59  ;;  %v1276_v63 = vsel %vm7130_vm2, 0.0, %v10124_v59  ;;  %vm1251_vm0 = vmand %vm1187_vm7, %vm1219_vm14 }
 0x2a5   :  { %vm1214_vm5 = vcmp.lt.f32.partialorder %v1138_v50, 5e+08  ;;  %v7165_v40 = vrot.slane %v1333_v22, %v6130_v15  ;;  %v1585_v10 = vrot.slane %v1272_v0, %v6403_v14  ;;  %v1713_v50 = vsel %vm10200_vm6, %v1665_v17, inf  ;;  %vm10204_vm8 = vmmov %vm10200_vm6 }
 0x2a6   :  { %vm1246_vm15 = vmand %vm10198_vm4, %vm1214_vm5  ;;  %v1667_v18 = vadd.f32 %v6995_v58, %v7138_v25  ;;  %v1599_v56 = vrot.slane %v1275_v57, %v6400_v12  ;;  %v1594_v26 = vrot.slane %v1274_v2, %v6403_v14  ;;  %v1343_v22 = vrot.slane %v7155_v41, %v6121_v9 }
 0x2a7   :  { %1708 = vmin.xlane.f32.xlu0 %v1707_v38  ;;  %10199 = vst [vmem:[#allocation37_spill] sm:$0xff] %v7165_v40  ;;  %v1278_v52 = vsel %vm1246_vm15, 0.0, %v10124_v59  ;;  %v1608_v11 = vrot.slane %v1277_v23, %v6400_v12  ;;  %v1617_v51 = vrot.slane %v1279_v48, %v6400_v12  ;;  %v1576_v38 = vrot.slane %v1270_v5, %v6403_v14 }
 0x2a8   :  { %v1144_v27 = vpop.xlane.xlu1 %1143  ;;  %v1603_v17 = vrot.slane %v1276_v63, %v6403_v14  ;;  %v1612_v57 = vrot.slane %v1278_v52, %v6403_v14  ;;  %v7189_v2 = vrot.slane %v1335_v55, %v6130_v15  ;;  %vm10202_vm3 = vcmask 130112  }
 0x2a9   :  { %vm1216_vm13 = vcmp.lt.f32.partialorder %v1144_v27, 5e+08  ;;  %v1626_v27 = vrot.slane %v1281_v34, %v6400_v12  ;;  %v1586_v23 = vsel %vm10202_vm3, %v1585_v10, %v1581_v42  ;;  %v1719_v5 = vsel %vm10204_vm8, %v1667_v18, inf  ;;  %vm10205_vm5 = vmmov %vm10202_vm3 }
 0x2aa   :  { %vm1248_vm9 = vmand %vm1184_vm11, %vm1216_vm13  ;;  %10201 = vst [vmem:[#allocation33_spill] sm:$0xff] %v7189_v2  ;;  %vm10203_vm11 = vcmp.lt.f32.partialorder %v6742_v45, 5e+08  ;;  %v1669_v35 = vadd.f32 %v6995_v58, %v7165_v40  ;;  %v1595_v21 = vsel %vm10205_vm5, %v1594_v26, %v1590_v16  ;;  %v1359_v55 = vrot.slane %v1343_v22, %v6121_v9 }
 0x2ab   :  { %v1280_v33 = vsel %vm1248_vm9, 0.0, %v10124_v59  ;;  %1714 = vmin.xlane.f32.xlu0 %v1713_v50  ;;  %v1351_v63 = vcombine.high %v1343_v22, %v1343_v22  ;;  %v1283_v42 = vsel %vm1251_vm0, 0.0, %v10124_v59  ;;  %vm10206_vm7 = vmmov %vm10202_vm3  ;;  %vm10208_vm4 = vcmask 1041409  }
 0x2ac   :  { %v1150_v0 = vpop.xlane.xlu1 %1149  ;;  %v1621_v48 = vrot.slane %v1280_v33, %v6403_v14  ;;  %v1577_v45 = vsel %vm10206_vm7, %v1576_v38, %v1572_v62  ;;  %vm10207_vm2 = vmmov %vm10202_vm3  ;;  %v7211_v26 = vrot.slane %v1359_v55, %v6130_v15  ;;  %vm10211_vm13 = vcmask 1042434  }
 0x2ad   :  { %vm1218_vm12 = vcmp.lt.f32.partialorder %v1150_v0, 5e+08  ;;  %v1604_v10 = vsel %vm10207_vm2, %v1603_v17, %v1599_v56  ;;  %v1648_v16 = vsel %vm10208_vm4, %v1586_v23, %v1577_v45  ;;  %vm10209_vm15 = vmmov %vm10207_vm2  ;;  %v1671_v62 = vadd.f32 %v6995_v58, %v7189_v2 }
 0x2ae   :  { %vm1250_vm10 = vmand %vm10203_vm11, %vm1218_vm12  ;;  %v1613_v18 = vsel %vm10209_vm15, %v1612_v57, %v1608_v11  ;;  %10210 = vst [vmem:[#allocation35_spill] sm:$0xff] %v7211_v26  ;;  %v1649_v33 = vsel %vm10211_vm13, %v1595_v21, %v1648_v16  ;;  %vm10214_vm12 = vcmask 1043459   ;;  %v1373_v17 = vrot.slane %v1351_v63, %v6121_v9 }
 0x2af   :  { %v1282_v34 = vsel %vm1250_vm10, 0.0, %v10124_v59  ;;  %1720 = vmin.xlane.f32.xlu0 %v1719_v5  ;;  %vm10212_vm9 = vmmov %vm10207_vm2  ;;  %v1650_v56 = vsel %vm10214_vm12, %v1604_v10, %v1649_v33  ;;  %v1635_v0 = vrot.slane %v1283_v42, %v6400_v12  ;;  %vm10216_vm11 = vcmask 1044484  }
 0x2b0   :  { %v1630_v52 = vrot.slane %v1282_v34, %v6403_v14  ;;  %v1156_v50 = vpop.xlane.xlu1 %1155  ;;  %v1622_v22 = vsel %vm10212_vm9, %v1621_v48, %v1617_v51  ;;  %vm10213_vm0 = vmmov %vm10204_vm8  ;;  %v1651_v51 = vsel %vm10216_vm11, %v1613_v18, %v1650_v56  ;;  %v7229_v23 = vrot.slane %v1373_v17, %v6130_v15 }
 0x2b1   :  { %vm1220_vm14 = vcmp.lt.f32.partialorder %v1156_v50, 5e+08  ;;  %v1725_v1 = vsel %vm10213_vm0, %v1669_v35, inf  ;;  %vm10215_vm3 = vmmov %vm10207_vm2  ;;  %v1381_v48 = vcombine.high %v1359_v55, %v1359_v55  ;;  %vm10219_vm10 = vcmask 1046534  }
 0x2b2   :  { %vm1252_vm6 = vmand %vm1188_vm1, %vm1220_vm14  ;;  %v1631_v11 = vsel %vm10215_vm3, %v1630_v52, %v1626_v27  ;;  %vm10217_vm1 = vcmask 1045509   ;;  %10218 = vst [vmem:[#allocation36_spill] sm:$0xff] %v7229_v23  ;;  %v1673_v21 = vadd.f32 %v6995_v58, %v7211_v26  ;;  %vm10222_vm7 = vcmask 1047559  }
 0x2b3   :  { %v1284_v38 = vsel %vm1252_vm6, 0.0, %v10124_v59  ;;  %1726 = vmin.xlane.f32.xlu0 %v1725_v1  ;;  %v1652_v57 = vsel %vm10217_vm1, %v1622_v22, %v1651_v51  ;;  %vm10220_vm8 = vmmov %vm10207_vm2  ;;  %v1336_v63 = vcombine.high %v7155_v41, %v7155_v41  ;;  %v7244_v55 = vrot.slane %v1381_v48, %v6130_v15 }
 0x2b4   :  { %v1639_v37 = vrot.slane %v1284_v38, %v6403_v14  ;;  %v1653_v5 = vsel %vm10219_vm10, %v1631_v11, %v1652_v57  ;;  %vm10221_vm5 = vmmov %vm10213_vm0  ;;  %v1383_v45 = vcombine.high %v1373_v17, %v1373_v17  ;;  %v1675_v50 = vadd.f32 %v6995_v58, %v7229_v23 }
 0x2b5   :  { %v1731_v35 = vsel %vm10221_vm5, %v1671_v62, inf  ;;  %10223 = vst [vmem:[#allocation38_spill] sm:$0xff] %v7244_v55  ;;  %vm10224_vm2 = vmmov %vm10213_vm0  ;;  %v1350_v41 = vrot.slane %v1336_v63, %v6121_v9  ;;  %v1677_v1 = vadd.f32 %v6995_v58, %v7244_v55 }
 0x2b6   :  { %v1640_v27 = vsel %vm10220_vm8, %v1639_v37, %v1635_v0  ;;  %v1737_v10 = vsel %vm10224_vm2, %v1673_v21, inf  ;;  %vm10225_vm4 = vmmov %vm10213_vm0  ;;  %v7254_v18 = vrot.slane %v1383_v45, %v6130_v15 }
 0x2b7   :  { %v7237_v34 = vsel %vm10222_vm7, %v1640_v27, %v1653_v5  ;;  %1732 = vmin.xlane.f32.xlu0 %v1731_v35  ;;  %vm10227_vm15 = vmmov %vm10213_vm0  ;;  %v1366_v56 = vrot.slane %v1350_v41, %v6121_v9  ;;  %v1352_v11 = vcombine.high %v1350_v41, %v1350_v41 }
 0x2b8   :  { %v1658_v42 = vadd.f32 %v7237_v34, %v6985_v31  ;;  %v1660_v16 = vadd.f32 %v7237_v34, %v6992_v4  ;;  %10226 = vst [vmem:[#allocation40_spill] sm:$0xff] %v7254_v18  ;;  %v1743_v33 = vsel %vm10227_vm15, %v1675_v50, inf  ;;  %vm10228_vm14 = vmmov %vm10213_vm0  ;;  %v1662_v62 = vadd.f32 %v7237_v34, %v7008_v46 }
 0x2b9   :  { %v7264_v38 = vrot.slane %v1366_v56, %v6130_v15  ;;  %vm10230_vm13 = vmmov %vm10213_vm0  ;;  %v1679_v51 = vadd.f32 %v6995_v58, %v7254_v18  ;;  %v1664_v37 = vadd.f32 %v7237_v34, %v7038_v13  ;;  %v1380_v57 = vrot.slane %v1352_v11, %v6121_v9 }
 0x2ba   :  { %v1692_v52 = vsel %vm10225_vm4, %v1658_v42, inf  ;;  %v1698_v22 = vsel %vm10228_vm14, %v1660_v16, inf  ;;  %v1749_v17 = vsel %vm10230_vm13, %v1677_v1, inf  ;;  %vm10231_vm9 = vmmov %vm10213_vm0  ;;  %v1382_v5 = vcombine.high %v1366_v56, %v1366_v56  ;;  %v7291_v16 = vld [vmem:[#allocation2 + $0x8] sm:$0xff] }
 0x2bb   :  { %1738 = vmin.xlane.f32.xlu0 %v1737_v10  ;;  %1693 = vmin.xlane.f32.xlu1 %v1692_v52  ;;  %10229 = vst [vmem:[#allocation39_spill] sm:$0xff] %v7264_v38  ;;  %v1704_v0 = vsel %vm10231_vm9, %v1662_v62, inf  ;;  %v7274_v48 = vrot.slane %v1380_v57, %v6130_v15  ;;  %vm10233_vm6 = vmmov %vm10213_vm0  ;;  %v1710_v35 = vsel %vm10213_vm0, %v1664_v37, inf  ;;  %v1681_v21 = vadd.f32 %v6995_v58, %v7264_v38 }
 0x2bc   :  { %v1755_v27 = vsel %vm10233_vm6, %v1679_v51, inf  ;;  %v1666_v63 = vadd.f32 %v7237_v34, %v7091_v8  ;;  %v7283_v42 = vrot.slane %v1382_v5, %v6130_v15  ;;  %v1384_v9 = vcombine.high %v1380_v57, %v1380_v57  ;;  %vm10235_vm12 = vmmov %vm10213_vm0 }
 0x2bd   :  { %10232 = vst [vmem:[#allocation41_spill] sm:$0xff] %v7274_v48  ;;  %v1761_v45 = vsel %vm10235_vm12, %v1681_v21, inf  ;;  %vm10236_vm3 = vmmov %vm10213_vm0  ;;  %v1683_v52 = vadd.f32 %v6995_v58, %v7274_v48  ;;  %v1668_v50 = vadd.f32 %v7237_v34, %v7138_v25  ;;  %v1670_v62 = vadd.f32 %v7237_v34, %v7165_v40 }
 0x2be   :  { %10234 = vst [vmem:[#allocation12_spill] sm:$0xff] %v7283_v42  ;;  %v1716_v10 = vsel %vm10236_vm3, %v1666_v63, inf  ;;  %v7294_v41 = vrot.slane %v1384_v9, %v6130_v15  ;;  %vm10238_vm11 = vmmov %vm10213_vm0  ;;  %v1685_v1 = vadd.f32 %v6995_v58, %v7283_v42  ;;  %v2496_v56 = vand.u32 2147483647, %v7291_v16 }
 0x2bf   :  { %1744 = vmin.xlane.f32.xlu0 %v1743_v33  ;;  %1699 = vmin.xlane.f32.xlu1 %v1698_v22  ;;  %v1767_v33 = vsel %vm10238_vm11, %v1683_v52, inf  ;;  %vm10239_vm1 = vmmov %vm10213_vm0  ;;  %v1672_v51 = vadd.f32 %v7237_v34, %v7189_v2  ;;  %v1678_v9 = vadd.f32 %v7237_v34, %v7244_v55 }
 0x2c0   :  { %10237 = vst [vmem:[#allocation46_spill] sm:$0xff] %v7294_v41  ;;  %v1722_v22 = vsel %vm10239_vm1, %v1668_v50, inf  ;;  %vm10240_vm10 = vmmov %vm10213_vm0  ;;  %v2498_v37 = vsub.f32 0.0, %v2496_v56  ;;  %v7323_v50 = vsub.s32 2, %v6110_v3  ;;  %v7331_v56 = vsub.s32 3, %v6110_v3 }
 0x2c1   :  { %v1773_v11 = vsel %vm10240_vm10, %v1685_v1, inf  ;;  %vm10241_vm8 = vmmov %vm10213_vm0  ;;  %vm10263_vm10 = vcmask 130112  }
 0x2c2   :  { %vm10242_vm5 = vmmov %vm10213_vm0  ;;  %10247 = vst [vmem:[#allocation47_spill] sm:$0xff] %v7323_v50 }
 0x2c3   :  { %1750 = vmin.xlane.f32.xlu0 %v1749_v17  ;;  %1705 = vmin.xlane.f32.xlu1 %v1704_v0  ;;  %v1728_v17 = vsel %vm10241_vm8, %v1670_v62, inf  ;;  %v1687_v0 = vadd.f32 %v6995_v58, %v7294_v41  ;;  %vm10243_vm7 = vmmov %vm10213_vm0  ;;  %v1676_v58 = vadd.f32 %v7237_v34, %v7229_v23  ;;  %v2538_v62 = vrot.slane %v6792_v49, %v7323_v50 }
 0x2c4   :  { %v1734_v5 = vsel %vm10243_vm7, %v1672_v51, inf  ;;  %vm10244_vm2 = vmmov %vm10213_vm0  ;;  %10249 = vst [vmem:[#allocation48_spill] sm:$0xff] %v7331_v56  ;;  %v7339_v51 = vsub.s32 4, %v6110_v3 }
 0x2c5   :  { %v1779_v57 = vsel %vm10242_vm5, %v1687_v0, inf  ;;  %vm10245_vm4 = vmmov %vm10213_vm0  ;;  %v2549_v0 = vrot.slane %v6792_v49, %v7331_v56 }
 0x2c6   :  { %v1746_v63 = vsel %vm10245_vm4, %v1676_v58, inf  ;;  %vm10246_vm15 = vmmov %vm10213_vm0  ;;  %10251 = vst [vmem:[#allocation49_spill] sm:$0xff] %v7339_v51 }
 0x2c7   :  { %1756 = vmin.xlane.f32.xlu0 %v1755_v27  ;;  %1711 = vmin.xlane.f32.xlu1 %v1710_v35  ;;  %v1674_v27 = vadd.f32 %v7237_v34, %v7211_v26  ;;  %v2501_v35 = vmul.f32 1.442695, %v2498_v37  ;;  %vm10248_vm14 = vmmov %vm10213_vm0 }
 0x2c8   :  { %vm10250_vm13 = vmmov %vm10213_vm0 }
 0x2c9   :  { %v1740_v21 = vsel %vm10244_vm2, %v1674_v27, inf  ;;  %5718 = vpow2.f32 %v2501_v35  ;;  %vm10252_vm9 = vmmov %vm10213_vm0  ;;  %v7347_v27 = vsub.s32 5, %v6110_v3  ;;  %vm10267_vm2 = vcmask 1041409  }
 0x2ca   :  { %vm10254_vm6 = vmmov %vm10213_vm0 }
 0x2cb   :  { %1762 = vmin.xlane.f32.xlu0 %v1761_v45  ;;  %1717 = vmin.xlane.f32.xlu1 %v1716_v10  ;;  %v1752_v45 = vsel %vm10246_vm15, %v1678_v9, inf  ;;  %v1680_v10 = vadd.f32 %v7237_v34, %v7254_v18  ;;  %10253 = vst [vmem:[#allocation50_spill] sm:$0xff] %v7347_v27  ;;  %v2571_v58 = vrot.slane %v6792_v49, %v7347_v27  ;;  %v2490_v9 = vmax.f32 %v7291_v16, 0.0  ;;  %vm10259_vm11 = vmmov %vm10213_vm0 }
 0x2cc   :  { %vm10261_vm1 = vmmov %vm10213_vm0  ;;  %vm10269_vm15 = vcmask 1042434  }
 0x2cd   :  { %vm10264_vm8 = vmmov %vm10263_vm10 }
 0x2ce   :  { %vm10265_vm5 = vmmov %vm10264_vm8 }
 0x2cf   :  { %1768 = vmin.xlane.f32.xlu0 %v1767_v33  ;;  %1723 = vmin.xlane.f32.xlu1 %v1722_v22  ;;  %v1758_v33 = vsel %vm10248_vm14, %v1680_v10, inf  ;;  %v1682_v22 = vadd.f32 %v7237_v34, %v7264_v38  ;;  %vm10266_vm7 = vmmov %vm10265_vm5 }
 0x2d0   :  { %vm10268_vm4 = vmmov %vm10265_vm5 }
 0x2d1   :  { %vm10270_vm14 = vmmov %vm10268_vm4 }
 0x2d3   :  { %1774 = vmin.xlane.f32.xlu0 %v1773_v11  ;;  %1729 = vmin.xlane.f32.xlu1 %v1728_v17  ;;  %v5719_v52 = vpop.eup %5718  ;;  %v1764_v11 = vsel %vm10250_vm13, %v1682_v22, inf  ;;  %v1684_v17 = vadd.f32 %v7237_v34, %v7274_v48  ;;  %v7363_v22 = vsub.s32 7, %v6110_v3  ;;  %vm10271_vm13 = vcmask 1043459  }
 0x2d4   :  { %v2504_v1 = vadd.f32 1.0, %v5719_v52 }
 0x2d5   :  { %v1770_v37 = vsel %vm10252_vm9, %v1684_v17, inf  ;;  %10256 = vst [vmem:[#allocation52_spill] sm:$0xff] %v7363_v22  ;;  %v2593_v17 = vrot.slane %v6792_v49, %v7363_v22  ;;  %vm10272_vm9 = vmmov %vm10268_vm4 }
 0x2d6   :  { %5720 = vlog2.f32 %v2504_v1 }
 0x2d7   :  { %1780 = vmin.xlane.f32.xlu0 %v1779_v57  ;;  %1735 = vmin.xlane.f32.xlu1 %v1734_v5  ;;  %v1686_v57 = vadd.f32 %v7237_v34, %v7283_v42  ;;  %v2560_v5 = vrot.slane %v6792_v49, %v7339_v51 }
 0x2d9   :  { %v1776_v35 = vsel %vm10254_vm6, %v1686_v57, inf  ;;  %vm10273_vm6 = vcmask 1044484  }
 0x2db   :  { %1741 = vmin.xlane.f32.xlu1 %v1740_v21  ;;  %v1688_v21 = vadd.f32 %v7237_v34, %v7294_v41 }
 0x2df   :  { %1747 = vmin.xlane.f32.xlu1 %v1746_v63  ;;  %v7355_v63 = vsub.s32 6, %v6110_v3 }
 0x2e0   :  { %v5721_v52 = vpop.eup %5720 }
 0x2e1   :  { %10255 = vst [vmem:[#allocation51_spill] sm:$0xff] %v7355_v63  ;;  %v2582_v34 = vrot.slane %v6792_v49, %v7355_v63 }
 0x2e3   :  { %1753 = vmin.xlane.f32.xlu1 %v1752_v45  ;;  %v5987_v45 = vld [vmem:[#allocation5 + $0x8] sm:$0xff] }
 0x2e4   :  { %v2492_v10 = vmul.f32 %v5987_v45, %v7291_v16  ;;  %v7378_v45 = vld [vmem:[#allocation5 + $0x10] sm:$0xff] }
 0x2e5   :  { %vm3061_vm12 = vcmp.gt.f32.partialorder %v7378_v45, 0.5 }
 0x2e6   :  { %v2494_v1 = vsub.f32 %v2490_v9, %v2492_v10  ;;  %v7381_v10 = vld [vmem:[#allocation5 + $0x18] sm:$0xff] }
 0x2e7   :  { %1759 = vmin.xlane.f32.xlu1 %v1758_v33  ;;  %v1782_v33 = vsel %vm10213_vm0, %v1688_v21, inf  ;;  %vm3062_vm3 = vcmp.gt.f32.partialorder %v7381_v10, 0.5  ;;  %vm10274_vm0 = vcmask 1045509  }
 0x2eb   :  { %1765 = vmin.xlane.f32.xlu1 %v1764_v11  ;;  %v2508_v11 = vmul.f32 0.6931472, %v5721_v52  ;;  %v7386_v52 = vsel %vm3061_vm12, 0.0, %v10124_v59 }
 0x2ec   :  { %10257 = vst [vmem:[#allocation53_spill] sm:$0xff] %v7386_v52 }
 0x2ed   :  { %2540 = vbcast.lane.b32.xlu0 %v2538_v62, 256 }
 0x2ef   :  { %1771 = vmin.xlane.f32.xlu1 %v1770_v37  ;;  %v2510_v37 = vadd.f32 %v2508_v11, %v2494_v1  ;;  %v7394_v1 = vsel %vm3062_vm3, 0.0, %v10124_v59 }
 0x2f0   :  { %10258 = vst [vmem:[#allocation54_spill] sm:$0xff] %v7394_v1  ;;  %v3070_v10 = vadd.f32 %v7394_v1, %v6159_v30 }
 0x2f1   :  { %2551 = vbcast.lane.b32.xlu0 %v2549_v0, 256  ;;  %v2604_v16 = vrot.slane %v2510_v37, %v6130_v15  ;;  %v2615_v57 = vrot.slane %v2510_v37, %v6810_v28  ;;  %v2637_v3 = vrot.slane %v2510_v37, %v7331_v56  ;;  %v2648_v49 = vrot.slane %v2510_v37, %v7339_v51 }
 0x2f2   :  { %v2659_v21 = vrot.slane %v2510_v37, %v7347_v27  ;;  %v2670_v9 = vrot.slane %v2510_v37, %v7355_v63 }
 0x2f3   :  { %1777 = vmin.xlane.f32.xlu1 %v1776_v35  ;;  %v2626_v35 = vrot.slane %v2510_v37, %v7323_v50 }
 0x2f5   :  { %2562 = vbcast.lane.b32.xlu0 %v2560_v5, 256 }
 0x2f7   :  { %1783 = vmin.xlane.f32.xlu1 %v1782_v33  ;;  %v3067_v33 = vadd.f32 %v7386_v52, %v6151_v24 }
 0x2f9   :  { %2573 = vbcast.lane.b32.xlu0 %v2571_v58, 256  ;;  %v3099_v11 = vsel %vm10259_vm11, %v3067_v33, inf  ;;  %vm10275_vm11 = vcmask 1046534  }
 0x2fd   :  { %2584 = vbcast.lane.b32.xlu0 %v2582_v34, 256 }
 0x301   :  { %2595 = vbcast.lane.b32.xlu0 %v2593_v17, 256 }
 0x305   :  { %2606 = vbcast.lane.b32.xlu0 %v2604_v16, 256 }
 0x308   :  { %2533 = vbcast.lane.b32.xlu1 %v6814_v44, 264  ;;  %v2681_v44 = vrot.slane %v2510_v37, %v7363_v22  ;;  %v7399_v37 = vpop.permute.xlu1 %2522 }
 0x309   :  { %2617 = vbcast.lane.b32.xlu0 %v2615_v57, 256  ;;  %10260 = vst [vmem:[#allocation55_spill] sm:$0xff] %v7399_v37 }
 0x30c   :  { %2544 = vbcast.lane.b32.xlu1 %v2538_v62, 264  ;;  %v7376_v62 = vpop.permute.xlu0 %2518 }
 0x30d   :  { %2628 = vbcast.lane.b32.xlu0 %v2626_v35, 256 }
 0x310   :  { %2555 = vbcast.lane.b32.xlu1 %v2549_v0, 264 }
 0x311   :  { %2639 = vbcast.lane.b32.xlu0 %v2637_v3, 256 }
 0x314   :  { %2566 = vbcast.lane.b32.xlu1 %v2560_v5, 264 }
 0x315   :  { %2650 = vbcast.lane.b32.xlu0 %v2648_v49, 256 }
 0x318   :  { %2577 = vbcast.lane.b32.xlu1 %v2571_v58, 264 }
 0x319   :  { %2661 = vbcast.lane.b32.xlu0 %v2659_v21, 256 }
 0x31c   :  { %2588 = vbcast.lane.b32.xlu1 %v2582_v34, 264 }
 0x31d   :  { %2672 = vbcast.lane.b32.xlu0 %v2670_v9, 256 }
 0x320   :  { %2599 = vbcast.lane.b32.xlu1 %v2593_v17, 264  ;;  %v3068_v17 = vadd.f32 %v7394_v1, %v6151_v24 }
 0x321   :  { %2683 = vbcast.lane.b32.xlu0 %v2681_v44, 256 }
 0x324   :  { %2610 = vbcast.lane.b32.xlu1 %v2604_v16, 264 }
 0x328   :  { %v1691_v0 = vpop.xlane.xlu0 %1690  ;;  %2621 = vbcast.lane.b32.xlu1 %v2615_v57, 264  ;;  %v3102_v57 = vsel %vm10261_vm1, %v3068_v17, inf  ;;  %vm10276_vm1 = vmmov %vm10268_vm4 }
 0x329   :  { %v1820_v20 = vrot.slane %v1691_v0, %v6400_v12 }
 0x32c   :  { %2632 = vbcast.lane.b32.xlu1 %v2626_v35, 264  ;;  %v1697_v5 = vpop.xlane.xlu0 %1696  ;;  %v7402_v35 = vpop.permute.xlu1 %2529 }
 0x32d   :  { %10262 = vst [vmem:[#allocation56_spill] sm:$0xff] %v7402_v35  ;;  %v1829_v17 = vrot.slane %v1697_v5, %v6400_v12 }
 0x330   :  { %2643 = vbcast.lane.b32.xlu1 %v2637_v3, 264  ;;  %v1703_v58 = vpop.xlane.xlu0 %1702 }
 0x331   :  { %v1838_v28 = vrot.slane %v1703_v58, %v6400_v12 }
 0x334   :  { %2654 = vbcast.lane.b32.xlu1 %v2648_v49, 264  ;;  %v1709_v34 = vpop.xlane.xlu0 %1708 }
 0x335   :  { %v1847_v7 = vrot.slane %v1709_v34, %v6400_v12 }
 0x338   :  { %2665 = vbcast.lane.b32.xlu1 %v2659_v21, 264  ;;  %v1715_v16 = vpop.xlane.xlu0 %1714 }
 0x339   :  { %v1856_v5 = vrot.slane %v1715_v16, %v6400_v12 }
 0x33c   :  { %2676 = vbcast.lane.b32.xlu1 %v2670_v9, 264  ;;  %v1721_v3 = vpop.xlane.xlu0 %1720 }
 0x340   :  { %3100 = vmin.xlane.f32.xlu0 %v3099_v11  ;;  %2687 = vbcast.lane.b32.xlu1 %v2681_v44, 264  ;;  %v1727_v21 = vpop.xlane.xlu0 %1726 }
 0x341   :  { %v1874_v0 = vrot.slane %v1727_v21, %v6400_v12 }
 0x344   :  { %3103 = vmin.xlane.f32.xlu0 %v3102_v57  ;;  %v1733_v63 = vpop.xlane.xlu0 %1732 }
 0x348   :  { %v1694_v49 = vpop.xlane.xlu1 %1693  ;;  %v7404_v27 = vpop.xlane.xlu0 %1738 }
 0x349   :  { %v1824_v50 = vrot.slane %v1694_v49, %v6403_v14 }
 0x34b   :  { %v1825_v58 = vsel %vm10265_vm5, %v1824_v50, %v1820_v20 }
 0x34c   :  { %v1700_v22 = vpop.xlane.xlu1 %1699  ;;  %v7412_v15 = vpop.xlane.xlu0 %1744 }
 0x34d   :  { %v1833_v56 = vrot.slane %v1700_v22, %v6403_v14 }
 0x34f   :  { %v1834_v22 = vsel %vm10263_vm10, %v1833_v56, %v1829_v17  ;;  %vm10277_vm10 = vcmask 1047559  }
 0x350   :  { %v1706_v9 = vpop.xlane.xlu1 %1705  ;;  %v1961_v34 = vsel %vm10267_vm2, %v1834_v22, %v1825_v58 }
 0x351   :  { %v1842_v11 = vrot.slane %v1706_v9, %v6403_v14 }
 0x353   :  { %v1843_v49 = vsel %vm10264_vm8, %v1842_v11, %v1838_v28  ;;  %v1751_v28 = vpop.xlane.xlu0 %1750  ;;  %vm10278_vm8 = vcmask 130048  }
 0x354   :  { %v1712_v33 = vpop.xlane.xlu1 %1711  ;;  %vm10279_vm5 = vmmov %vm10278_vm8 }
 0x355   :  { %v1851_v57 = vrot.slane %v1712_v33, %v6403_v14  ;;  %v1865_v33 = vrot.slane %v1721_v3, %v6400_v12  ;;  %vm10281_vm2 = vmmov %vm10279_vm5 }
 0x357   :  { %v1852_v35 = vsel %vm10266_vm7, %v1851_v57, %v1847_v7  ;;  %v1883_v7 = vrot.slane %v1733_v63, %v6400_v12  ;;  %vm10280_vm7 = vmmov %vm10279_vm5 }
 0x358   :  { %v1718_v51 = vpop.xlane.xlu1 %1717 }
 0x359   :  { %v1860_v59 = vrot.slane %v1718_v51, %v6403_v14 }
 0x35b   :  { %v1861_v56 = vsel %vm10268_vm4, %v1860_v59, %v1856_v5  ;;  %vm10282_vm4 = vmmov %vm10281_vm2 }
 0x35c   :  { %v1724_v44 = vpop.xlane.xlu1 %1723 }
 0x35d   :  { %v1869_v9 = vrot.slane %v1724_v44, %v6403_v14  ;;  %v1962_v44 = vsel %vm10269_vm15, %v1843_v49, %v1961_v34  ;;  %vm10283_vm15 = vmmov %vm10276_vm1 }
 0x35e   :  { %v1963_v11 = vsel %vm10271_vm13, %v1852_v35, %v1962_v44  ;;  %vm10285_vm13 = vmmov %vm10276_vm1 }
 0x35f   :  { %v1870_v16 = vsel %vm10270_vm14, %v1869_v9, %v1865_v33  ;;  %v1964_v50 = vsel %vm10273_vm6, %v1861_v56, %v1963_v11  ;;  %v1757_v9 = vpop.xlane.xlu0 %1756  ;;  %vm10284_vm14 = vmmov %vm10281_vm2 }
 0x360   :  { %v1730_v37 = vpop.xlane.xlu1 %1729  ;;  %v1965_v21 = vsel %vm10274_vm0, %v1870_v16, %v1964_v50  ;;  %vm10287_vm6 = vmmov %vm10276_vm1  ;;  %vm10288_vm0 = vcmask 1041409  }
 0x361   :  { %v1878_v51 = vrot.slane %v1730_v37, %v6403_v14 }
 0x363   :  { %v1879_v3 = vsel %vm10272_vm9, %v1878_v51, %v1874_v0  ;;  %v1763_v51 = vpop.xlane.xlu0 %1762  ;;  %vm10286_vm9 = vmmov %vm10276_vm1 }
 0x364   :  { %v1736_v20 = vpop.xlane.xlu1 %1735  ;;  %v1966_v59 = vsel %vm10275_vm11, %v1879_v3, %v1965_v21  ;;  %vm10289_vm11 = vmmov %vm10276_vm1 }
 0x365   :  { %v1887_v37 = vrot.slane %v1736_v20, %v6403_v14 }
 0x367   :  { %v1888_v17 = vsel %vm10276_vm1, %v1887_v37, %v1883_v7  ;;  %v1769_v16 = vpop.xlane.xlu0 %1768  ;;  %vm10290_vm1 = vcmask 1042434  }
 0x368   :  { %v7439_v57 = vsel %vm10277_vm10, %v1888_v17, %v1966_v59  ;;  %v1742_v22 = vpop.xlane.xlu1 %1741  ;;  %vm10291_vm10 = vmmov %vm10287_vm6 }
 0x369   :  { %v1977_v35 = vadd.f32 %v7439_v57, %v6985_v31  ;;  %v1979_v5 = vadd.f32 %v7439_v57, %v6992_v4  ;;  %v1981_v58 = vadd.f32 %v7439_v57, %v7008_v46  ;;  %v1983_v56 = vadd.f32 %v7439_v57, %v7038_v13 }
 0x36a   :  { %v1985_v3 = vadd.f32 %v7439_v57, %v7091_v8  ;;  %v1987_v37 = vadd.f32 %v7439_v57, %v7138_v25 }
 0x36b   :  { %v2009_v63 = vsel %vm10278_vm8, %v1977_v35, inf  ;;  %v2015_v33 = vsel %vm10279_vm5, %v1979_v5, inf  ;;  %v2021_v34 = vsel %vm10280_vm7, %v1981_v58, inf  ;;  %v2027_v11 = vsel %vm10281_vm2, %v1983_v56, inf  ;;  %v1775_v21 = vpop.xlane.xlu0 %1774  ;;  %vm10292_vm8 = vmmov %vm10281_vm2 }
 0x36c   :  { %v1748_v49 = vpop.xlane.xlu1 %1747  ;;  %2010 = vmin.xlane.f32.xlu0 %v2009_v63  ;;  %v2033_v50 = vsel %vm10282_vm4, %v1985_v3, inf  ;;  %v1901_v35 = vrot.slane %v7412_v15, %v6400_v12  ;;  %v1896_v63 = vrot.slane %v1742_v22, %v6403_v14  ;;  %v1919_v58 = vrot.slane %v1757_v9, %v6400_v12  ;;  %vm10294_vm7 = vmmov %vm10287_vm6 }
 0x36d   :  { %v1905_v7 = vrot.slane %v1748_v49, %v6403_v14  ;;  %v1892_v49 = vrot.slane %v7404_v27, %v6400_v12  ;;  %v1989_v15 = vadd.f32 %v7439_v57, %v7165_v40  ;;  %v1928_v22 = vrot.slane %v1763_v51, %v6400_v12 }
 0x36e   :  { %vm10293_vm5 = vcmask 1043459   ;;  %vm10295_vm2 = vcmask 1044484   ;;  %vm10296_vm4 = vcmask 1045509  }
 0x36f   :  { %v1897_v9 = vsel %vm10286_vm9, %v1896_v63, %v1892_v49  ;;  %vm10300_vm9 = vcmask 1047559  }
 0x370   :  { %v1754_v0 = vpop.xlane.xlu1 %1753  ;;  %2016 = vmin.xlane.f32.xlu0 %v2015_v33  ;;  %v1910_v33 = vrot.slane %v1751_v28, %v6400_v12  ;;  %v1937_v28 = vrot.slane %v1769_v16, %v6400_v12  ;;  %v1991_v16 = vadd.f32 %v7439_v57, %v7189_v2 }
 0x371   :  { %v1914_v59 = vrot.slane %v1754_v0, %v6403_v14  ;;  %v1906_v0 = vsel %vm10283_vm15, %v1905_v7, %v1901_v35  ;;  %v1946_v7 = vrot.slane %v1775_v21, %v6400_v12  ;;  %v2045_v35 = vsel %vm10292_vm8, %v1989_v15, inf }
 0x372   :  { %vm10297_vm15 = vcmask 1046534   ;;  %v1993_v15 = vadd.f32 %v7439_v57, %v7211_v26 }
 0x374   :  { %v1760_v44 = vpop.xlane.xlu1 %1759  ;;  %2022 = vmin.xlane.f32.xlu0 %v2021_v34 }
 0x375   :  { %v1923_v5 = vrot.slane %v1760_v44, %v6403_v14  ;;  %v1915_v44 = vsel %vm10285_vm13, %v1914_v59, %v1910_v33  ;;  %vm10299_vm13 = vmmov %vm10292_vm8 }
 0x377   :  { %v1924_v3 = vsel %vm10287_vm6, %v1923_v5, %v1919_v58 }
 0x378   :  { %v1766_v20 = vpop.xlane.xlu1 %1765  ;;  %2028 = vmin.xlane.f32.xlu0 %v2027_v11  ;;  %v2039_v11 = vsel %vm10284_vm14, %v1987_v37, inf  ;;  %v1968_v37 = vsel %vm10288_vm0, %v1906_v0, %v1897_v9  ;;  %vm10298_vm14 = vmmov %vm10287_vm6  ;;  %v1995_v9 = vadd.f32 %v7439_v57, %v7229_v23 }
 0x379   :  { %v1932_v34 = vrot.slane %v1766_v20, %v6403_v14  ;;  %v1969_v51 = vsel %vm10290_vm1, %v1915_v44, %v1968_v37  ;;  %vm10301_vm6 = vmmov %vm10292_vm8 }
 0x37a   :  { %v1970_v63 = vsel %vm10293_vm5, %v1924_v3, %v1969_v51  ;;  %vm10302_vm0 = vmmov %vm10301_vm6 }
 0x37b   :  { %vm10304_vm1 = vmmov %vm10302_vm0 }
 0x37c   :  { %v1772_v17 = vpop.xlane.xlu1 %1771  ;;  %2034 = vmin.xlane.f32.xlu0 %v2033_v50  ;;  %v1781_v50 = vpop.xlane.xlu0 %1780  ;;  %vm10306_vm8 = vmmov %vm10302_vm0 }
 0x37d   :  { %v1941_v56 = vrot.slane %v1772_v17, %v6403_v14  ;;  %v1933_v17 = vsel %vm10289_vm11, %v1932_v34, %v1928_v22  ;;  %v1955_v21 = vrot.slane %v1781_v50, %v6400_v12  ;;  %vm10303_vm11 = vmmov %vm10302_vm0  ;;  %v1997_v50 = vadd.f32 %v7439_v57, %v7244_v55 }
 0x37e   :  { %v1971_v33 = vsel %vm10295_vm2, %v1933_v17, %v1970_v63  ;;  %vm10307_vm5 = vmmov %vm10302_vm0 }
 0x37f   :  { %v1942_v59 = vsel %vm10291_vm10, %v1941_v56, %v1937_v28  ;;  %vm10305_vm10 = vmmov %vm10302_vm0 }
 0x380   :  { %v1778_v27 = vpop.xlane.xlu1 %1777  ;;  %2040 = vmin.xlane.f32.xlu0 %v2039_v11  ;;  %v1972_v34 = vsel %vm10296_vm4, %v1942_v59, %v1971_v33  ;;  %v2051_v11 = vsel %vm10299_vm13, %v1991_v16, inf  ;;  %v2069_v17 = vsel %vm10305_vm10, %v1997_v50, inf  ;;  %v1999_v59 = vadd.f32 %v7439_v57, %v7254_v18  ;;  %vm10309_vm2 = vmmov %vm10302_vm0 }
 0x381   :  { %v1950_v20 = vrot.slane %v1778_v27, %v6403_v14  ;;  %v2057_v27 = vsel %vm10301_vm6, %v1993_v15, inf  ;;  %vm10310_vm4 = vmmov %vm10302_vm0  ;;  %v2005_v15 = vadd.f32 %v7439_v57, %v7283_v42 }
 0x382   :  { %v2075_v16 = vsel %vm10307_vm5, %v1999_v59, inf  ;;  %vm10313_vm13 = vmmov %vm10302_vm0  ;;  %v3071_v59 = vadd.f32 %v7386_v52, %v6164_v32 }
 0x383   :  { %v1951_v5 = vsel %vm10294_vm7, %v1950_v20, %v1946_v7  ;;  %v2063_v20 = vsel %vm10303_vm11, %v1995_v9, inf  ;;  %vm10308_vm7 = vmmov %vm10302_vm0 }
 0x384   :  { %v1784_v49 = vpop.xlane.xlu1 %1783  ;;  %2046 = vmin.xlane.f32.xlu0 %v2045_v35  ;;  %v1973_v0 = vsel %vm10297_vm15, %v1951_v5, %v1972_v34  ;;  %v2001_v5 = vadd.f32 %v7439_v57, %v7264_v38  ;;  %vm10311_vm15 = vmmov %vm10302_vm0 }
 0x385   :  { %v1959_v58 = vrot.slane %v1784_v49, %v6403_v14  ;;  %vm10315_vm6 = vmmov %vm10302_vm0 }
 0x386   :  { %vm10316_vm11 = vmmov %vm10302_vm0 }
 0x387   :  { %v1960_v56 = vsel %vm10298_vm14, %v1959_v58, %v1955_v21  ;;  %v2081_v21 = vsel %vm10309_vm2, %v2001_v5, inf  ;;  %v2003_v58 = vadd.f32 %v7439_v57, %v7274_v48  ;;  %vm10312_vm14 = vmmov %vm10302_vm0  ;;  %v3073_v5 = vadd.f32 %v7386_v52, %v6186_v47 }
 0x388   :  { %v7500_v22 = vsel %vm10300_vm9, %v1960_v56, %v1973_v0  ;;  %2052 = vmin.xlane.f32.xlu0 %v2051_v11  ;;  %v7534_v0 = vpop.permute.xlu0 %2540  ;;  %vm10314_vm9 = vmmov %vm10302_vm0 }
 0x389   :  { %v1978_v44 = vadd.f32 %v7500_v22, %v6985_v31  ;;  %v1980_v3 = vadd.f32 %v7500_v22, %v6992_v4  ;;  %v1982_v37 = vadd.f32 %v7500_v22, %v7008_v46  ;;  %v1984_v35 = vadd.f32 %v7500_v22, %v7038_v13  ;;  %vm10318_vm10 = vmmov %vm10302_vm0 }
 0x38a   :  { %v1986_v49 = vadd.f32 %v7500_v22, %v7091_v8  ;;  %v1988_v34 = vadd.f32 %v7500_v22, %v7138_v25  ;;  %v2087_v56 = vsel %vm10311_vm15, %v2003_v58, inf  ;;  %vm10320_vm5 = vmmov %vm10302_vm0 }
 0x38b   :  { %v2012_v28 = vsel %vm10302_vm0, %v1978_v44, inf  ;;  %v2018_v7 = vsel %vm10304_vm1, %v1980_v3, inf  ;;  %v2024_v51 = vsel %vm10306_vm8, %v1982_v37, inf  ;;  %v2030_v63 = vsel %vm10308_vm7, %v1984_v35, inf  ;;  %vm10317_vm1 = vmmov %vm10302_vm0 }
 0x38c   :  { %2058 = vmin.xlane.f32.xlu0 %v2057_v27  ;;  %2013 = vmin.xlane.f32.xlu1 %v2012_v28  ;;  %v2036_v33 = vsel %vm10310_vm4, %v1986_v49, inf  ;;  %v2042_v11 = vsel %vm10312_vm14, %v1988_v34, inf  ;;  %v1990_v44 = vadd.f32 %v7500_v22, %v7165_v40  ;;  %v7542_v27 = vpop.permute.xlu0 %2551  ;;  %v2093_v28 = vsel %vm10313_vm13, %v2005_v15, inf  ;;  %vm10319_vm8 = vmmov %vm10302_vm0 }
 0x38d   :  { %v2007_v3 = vadd.f32 %v7439_v57, %v7294_v41  ;;  %v3117_v58 = vsel %vm10320_vm5, %v3073_v5, inf  ;;  %v3075_v34 = vadd.f32 %v7386_v52, %v6172_v36  ;;  %vm10321_vm7 = vmmov %vm10302_vm0  ;;  %v2000_v15 = vadd.f32 %v7500_v22, %v7254_v18 }
 0x38e   :  { %v2048_v9 = vsel %vm10314_vm9, %v1990_v44, inf  ;;  %vm10322_vm2 = vmmov %vm10302_vm0 }
 0x38f   :  { %v2099_v50 = vsel %vm10315_vm6, %v2007_v3, inf  ;;  %vm10323_vm4 = vmmov %vm10302_vm0 }
 0x390   :  { %2064 = vmin.xlane.f32.xlu0 %v2063_v20  ;;  %2019 = vmin.xlane.f32.xlu1 %v2018_v7  ;;  %v1992_v20 = vadd.f32 %v7500_v22, %v7189_v2  ;;  %v3069_v7 = vadd.f32 %v7386_v52, %v6159_v30  ;;  %v2078_v3 = vsel %vm10323_vm4, %v2000_v15, inf  ;;  %vm10324_vm15 = vmmov %vm10302_vm0 }
 0x391   :  { %vm10325_vm14 = vmmov %vm10302_vm0 }
 0x392   :  { %v2054_v37 = vsel %vm10302_vm0, %v1992_v20, inf  ;;  %v3105_v57 = vsel %vm10316_vm11, %v3069_v7, inf  ;;  %v2002_v20 = vadd.f32 %v7500_v22, %v7264_v38  ;;  %vm10326_vm13 = vmmov %vm10302_vm0 }
 0x393   :  { %vm10329_vm9 = vmmov %vm10302_vm0 }
 0x394   :  { %2070 = vmin.xlane.f32.xlu0 %v2069_v17  ;;  %2025 = vmin.xlane.f32.xlu1 %v2024_v51  ;;  %v1994_v17 = vadd.f32 %v7500_v22, %v7211_v26  ;;  %v7556_v51 = vpop.permute.xlu0 %2562  ;;  %vm10330_vm6 = vmmov %vm10302_vm0 }
 0x395   :  { %vm10332_vm11 = vmmov %vm10302_vm0 }
 0x396   :  { %v2060_v35 = vsel %vm10317_vm1, %v1994_v17, inf  ;;  %v2084_v17 = vsel %vm10325_vm14, %v2002_v20, inf  ;;  %vm10333_vm1 = vmmov %vm10302_vm0 }
 0x397   :  { %vm10336_vm5 = vmmov %vm10302_vm0 }
 0x398   :  { %2076 = vmin.xlane.f32.xlu0 %v2075_v16  ;;  %2031 = vmin.xlane.f32.xlu1 %v2030_v63  ;;  %v1996_v16 = vadd.f32 %v7500_v22, %v7229_v23  ;;  %v3111_v63 = vsel %vm10318_vm10, %v3071_v59, inf  ;;  %v7567_v49 = vpop.permute.xlu0 %2573  ;;  %vm10334_vm10 = vmmov %vm10302_vm0 }
 0x399   :  { %vm10340_vm4 = vmmov %vm10302_vm0 }
 0x39a   :  { %vm10344_vm14 = vmmov %vm10302_vm0 }
 0x39c   :  { %2082 = vmin.xlane.f32.xlu0 %v2081_v21  ;;  %2037 = vmin.xlane.f32.xlu1 %v2036_v33  ;;  %v2066_v21 = vsel %vm10319_vm8, %v1996_v16, inf  ;;  %v1998_v33 = vadd.f32 %v7500_v22, %v7244_v55  ;;  %v7578_v44 = vpop.permute.xlu0 %2584  ;;  %v10327_v16 = vmov 0.0   ;;  %vm10335_vm8 = vmmov %vm10302_vm0 }
 0x3a0   :  { %2088 = vmin.xlane.f32.xlu0 %v2087_v56  ;;  %2043 = vmin.xlane.f32.xlu1 %v2042_v11  ;;  %v6069_v56 = vmov 0   ;;  %v2072_v11 = vsel %vm10321_vm7, %v1998_v33, inf  ;;  %vm10337_vm7 = vmmov %vm10302_vm0 }
 0x3a1   :  { %5712 = vset.pattern.permute.xlu0 %v6069_v56  ;;  %5713 = vset.pattern.permute.xlu1 %v6069_v56 }
 0x3a4   :  { %2094 = vmin.xlane.f32.xlu0 %v2093_v28  ;;  %2049 = vmin.xlane.f32.xlu1 %v2048_v9  ;;  %v3123_v28 = vsel %vm10322_vm2, %v3075_v34, inf  ;;  %v3077_v9 = vadd.f32 %v7386_v52, %v6197_v54  ;;  %vm10338_vm2 = vmmov %vm10302_vm0 }
 0x3a6   :  { %v3129_v7 = vsel %vm10324_vm15, %v3077_v9, inf  ;;  %vm10341_vm15 = vmmov %vm10302_vm0 }
 0x3a8   :  { %2100 = vmin.xlane.f32.xlu0 %v2099_v50  ;;  %2055 = vmin.xlane.f32.xlu1 %v2054_v37  ;;  %v3084_v50 = vadd.f32 %v7394_v1, %v6226_v19  ;;  %v7589_v37 = vpop.permute.xlu0 %2595 }
 0x3aa   :  { %v3150_v59 = vsel %vm10326_vm13, %v3084_v50, inf  ;;  %vm10345_vm13 = vmmov %vm10302_vm0 }
 0x3ac   :  { %3106 = vmin.xlane.f32.xlu0 %v3105_v57  ;;  %2061 = vmin.xlane.f32.xlu1 %v2060_v35  ;;  %v2004_v57 = vadd.f32 %v7500_v22, %v7274_v48  ;;  %v3086_v35 = vadd.f32 %v7394_v1, %v6236_v29  ;;  %v7605_v33 = vpop.permute.xlu0 %2606 }
 0x3ae   :  { %v2090_v5 = vsel %vm10329_vm9, %v2004_v57, inf  ;;  %v3156_v34 = vsel %vm10330_vm6, %v3086_v35, inf  ;;  %vm10347_vm9 = vmmov %vm10302_vm0 }
 0x3af   :  { %vm10349_vm6 = vmmov %vm10302_vm0 }
 0x3b0   :  { %3112 = vmin.xlane.f32.xlu0 %v3111_v63  ;;  %2067 = vmin.xlane.f32.xlu1 %v2066_v21  ;;  %v7600_v63 = vsel %vm3062_vm3, 1e+09, %v10327_v16  ;;  %v2006_v21 = vadd.f32 %v7500_v22, %v7283_v42  ;;  %vm10331_vm3 = vmmov %vm10302_vm0  ;;  %v7621_v20 = vpop.permute.xlu0 %2617 }
 0x3b1   :  { %10328 = vst [vmem:[#allocation57_spill] sm:$0xff] %v7600_v63  ;;  %v3516_v56 = vadd.f32 %v7600_v63, %v6151_v24  ;;  %v3518_v9 = vadd.f32 %v7600_v63, %v6159_v30  ;;  %v3532_v57 = vadd.f32 %v7600_v63, %v6226_v19 }
 0x3b3   :  { %v3550_v15 = vsel %vm10302_vm0, %v3516_v56, inf  ;;  %v3556_v50 = vsel %vm10333_vm1, %v3518_v9, inf  ;;  %v3534_v56 = vadd.f32 %v7600_v63, %v6236_v29  ;;  %v3083_v9 = vadd.f32 %v7386_v52, %v6226_v19  ;;  %vm10354_vm1 = vmmov %vm10302_vm0 }
 0x3b4   :  { %3118 = vmin.xlane.f32.xlu0 %v3117_v58  ;;  %2073 = vmin.xlane.f32.xlu1 %v2072_v11  ;;  %v7607_v58 = vpop.permute.xlu1 %2533  ;;  %v2096_v11 = vsel %vm10331_vm3, %v2006_v21, inf  ;;  %v7631_v35 = vpop.permute.xlu0 %2628  ;;  %v3598_v21 = vsel %vm10335_vm8, %v3532_v57, inf  ;;  %vm10350_vm3 = vmmov %vm10302_vm0 }
 0x3b5   :  { %v3147_v57 = vsel %vm10341_vm15, %v3083_v9, inf  ;;  %vm10356_vm8 = vmmov %vm10302_vm0 }
 0x3b6   :  { %vm10363_vm15 = vmmov %vm10302_vm0 }
 0x3b8   :  { %3124 = vmin.xlane.f32.xlu0 %v3123_v28  ;;  %2079 = vmin.xlane.f32.xlu1 %v2078_v3  ;;  %v3108_v28 = vsel %vm10332_vm11, %v3070_v10, inf  ;;  %v3072_v3 = vadd.f32 %v7394_v1, %v6164_v32  ;;  %v3076_v10 = vadd.f32 %v7394_v1, %v6172_v36  ;;  %vm10352_vm11 = vmmov %vm10302_vm0 }
 0x3bc   :  { %3130 = vmin.xlane.f32.xlu0 %v3129_v7  ;;  %2085 = vmin.xlane.f32.xlu1 %v2084_v17  ;;  %v7623_v7 = vpop.permute.xlu1 %2544  ;;  %v3114_v17 = vsel %vm10334_vm10, %v3072_v3, inf  ;;  %v7647_v3 = vpop.permute.xlu0 %2639  ;;  %vm10355_vm10 = vmmov %vm10302_vm0 }
 0x3bd   :  { %10339 = vst [vmem:[#allocation58_spill] sm:$0xff] %v7647_v3 }
 0x3c0   :  { %3151 = vmin.xlane.f32.xlu0 %v3150_v59  ;;  %2091 = vmin.xlane.f32.xlu1 %v2090_v5  ;;  %v3074_v59 = vadd.f32 %v7394_v1, %v6186_v47  ;;  %v7633_v5 = vpop.permute.xlu1 %2555 }
 0x3c4   :  { %3157 = vmin.xlane.f32.xlu0 %v3156_v34  ;;  %2097 = vmin.xlane.f32.xlu1 %v2096_v11  ;;  %v3120_v34 = vsel %vm10336_vm5, %v3074_v59, inf  ;;  %v3604_v11 = vsel %vm10337_vm7, %v3534_v56, inf  ;;  %v3520_v59 = vadd.f32 %v7600_v63, %v6164_v32  ;;  %v7662_v56 = vpop.permute.xlu0 %2650  ;;  %vm10357_vm5 = vmmov %vm10302_vm0 }
 0x3c5   :  { %10343 = vst [vmem:[#allocation60_spill] sm:$0xff] %v7662_v56  ;;  %vm10359_vm7 = vmmov %vm10302_vm0 }
 0x3c8   :  { %3551 = vmin.xlane.f32.xlu0 %v3550_v15  ;;  %3109 = vmin.xlane.f32.xlu1 %v3108_v28  ;;  %v3126_v15 = vsel %vm10338_vm2, %v3076_v10, inf  ;;  %v3088_v28 = vadd.f32 %v7394_v1, %v6245_v39  ;;  %vm10360_vm2 = vmmov %vm10302_vm0 }
 0x3cc   :  { %3557 = vmin.xlane.f32.xlu0 %v3556_v50  ;;  %3115 = vmin.xlane.f32.xlu1 %v3114_v17  ;;  %v7649_v50 = vpop.permute.xlu1 %2566  ;;  %v3162_v17 = vsel %vm10340_vm4, %v3088_v28, inf  ;;  %v3536_v28 = vadd.f32 %v7600_v63, %v6245_v39  ;;  %vm10362_vm4 = vmmov %vm10302_vm0 }
 0x3d0   :  { %3599 = vmin.xlane.f32.xlu0 %v3598_v21  ;;  %3121 = vmin.xlane.f32.xlu1 %v3120_v34  ;;  %v3085_v21 = vadd.f32 %v7386_v52, %v6236_v29  ;;  %v7660_v34 = vsel %vm3061_vm12, 1e+09, %v10327_v16  ;;  %v7664_v10 = vpop.permute.xlu1 %2577  ;;  %vm10346_vm12 = vmmov %vm10302_vm0 }
 0x3d1   :  { %10342 = vst [vmem:[#allocation59_spill] sm:$0xff] %v7660_v34  ;;  %v3515_v9 = vadd.f32 %v7660_v34, %v6151_v24  ;;  %v3610_v45 = vsel %vm10346_vm12, %v3536_v28, inf  ;;  %vm10366_vm12 = vmmov %vm10302_vm0 }
 0x3d3   :  { %v3547_v16 = vsel %vm10347_vm9, %v3515_v9, inf  ;;  %v2008_v9 = vadd.f32 %v7500_v22, %v7294_v41  ;;  %vm10367_vm9 = vmmov %vm10302_vm0 }
 0x3d4   :  { %3605 = vmin.xlane.f32.xlu0 %v3604_v11  ;;  %3127 = vmin.xlane.f32.xlu1 %v3126_v15  ;;  %v3562_v11 = vsel %vm10344_vm14, %v3520_v59, inf  ;;  %v3153_v15 = vsel %vm10345_vm13, %v3085_v21, inf  ;;  %v3517_v59 = vadd.f32 %v7660_v34, %v6159_v30  ;;  %v7680_v21 = vpop.permute.xlu1 %2588  ;;  %vm10364_vm14 = vmmov %vm10302_vm0 }
 0x3d5   :  { %vm10365_vm13 = vmmov %vm10302_vm0 }
 0x3d8   :  { %3163 = vmin.xlane.f32.xlu0 %v3162_v17  ;;  %3148 = vmin.xlane.f32.xlu1 %v3147_v57  ;;  %v7674_v17 = vpop.permute.xlu0 %2661  ;;  %v3090_v57 = vadd.f32 %v7394_v1, %v6252_v43  ;;  %v7690_v42 = vpop.permute.xlu1 %2599 }
 0x3d9   :  { %10348 = vst [vmem:[#allocation61_spill] sm:$0xff] %v7674_v17 }
 0x3da   :  { %v3168_v2 = vsel %vm10349_vm6, %v3090_v57, inf  ;;  %v2102_v57 = vsel %vm10352_vm11, %v2008_v9, inf  ;;  %vm10368_vm6 = vmmov %vm10302_vm0 }
 0x3db   :  { %vm10370_vm11 = vmmov %vm10302_vm0 }
 0x3dc   :  { %3563 = vmin.xlane.f32.xlu0 %v3562_v11  ;;  %3154 = vmin.xlane.f32.xlu1 %v3153_v15  ;;  %v3553_v11 = vsel %vm10350_vm3, %v3517_v59, inf  ;;  %v3522_v15 = vadd.f32 %v7600_v63, %v6186_v47  ;;  %v7686_v28 = vpop.permute.xlu0 %2672  ;;  %v7706_v41 = vpop.permute.xlu1 %2610  ;;  %vm10369_vm3 = vmmov %vm10302_vm0 }
 0x3dd   :  { %10351 = vst [vmem:[#allocation62_spill] sm:$0xff] %v7686_v28 }
 0x3de   :  { %v3568_v40 = vsel %vm10302_vm0, %v3522_v15, inf  ;;  %v3092_v15 = vadd.f32 %v7394_v1, %v6265_v53 }
 0x3e0   :  { %3611 = vmin.xlane.f32.xlu0 %v3610_v45  ;;  %3548 = vmin.xlane.f32.xlu1 %v3547_v16  ;;  %v3531_v45 = vadd.f32 %v7660_v34, %v6226_v19  ;;  %v3538_v16 = vadd.f32 %v7600_v63, %v6252_v43  ;;  %v7698_v59 = vpop.permute.xlu0 %2683  ;;  %v7716_v48 = vpop.permute.xlu1 %2621 }
 0x3e1   :  { %10353 = vst [vmem:[#allocation63_spill] sm:$0xff] %v7698_v59 }
 0x3e2   :  { %v3595_v22 = vsel %vm10354_vm1, %v3531_v45, inf  ;;  %v3087_v45 = vadd.f32 %v7386_v52, %v6245_v39 }
 0x3e4   :  { %3169 = vmin.xlane.f32.xlu0 %v3168_v2  ;;  %3554 = vmin.xlane.f32.xlu1 %v3553_v11  ;;  %v3616_v2 = vsel %vm10355_vm10, %v3538_v16, inf  ;;  %v3533_v11 = vadd.f32 %v7660_v34, %v6236_v29  ;;  %v3524_v16 = vadd.f32 %v7600_v63, %v6172_v36  ;;  %v3159_v25 = vsel %vm10359_vm7, %v3087_v45, inf  ;;  %vm10371_vm10 = vmmov %vm10302_vm0 }
 0x3e5   :  { %v3093_v45 = vadd.f32 %v7386_v52, %v6275_v60  ;;  %vm10374_vm7 = vmmov %vm10302_vm0 }
 0x3e6   :  { %v3601_v9 = vsel %vm10356_vm8, %v3533_v11, inf  ;;  %v3540_v11 = vadd.f32 %v7600_v63, %v6265_v53  ;;  %vm10373_vm8 = vmmov %vm10302_vm0 }
 0x3e8   :  { %3569 = vmin.xlane.f32.xlu0 %v3568_v40  ;;  %2103 = vmin.xlane.f32.xlu1 %v2102_v57  ;;  %v3174_v40 = vsel %vm10357_vm5, %v3092_v15, inf  ;;  %v7710_v57 = vpop.xlane.xlu0 %3100 }
 0x3e9   :  { %10358 = vst [vmem:[#allocation64_spill] sm:$0xff] %v7710_v57 }
 0x3ec   :  { %3596 = vmin.xlane.f32.xlu1 %v3595_v22  ;;  %3617 = vmin.xlane.f32.xlu0 %v3616_v2  ;;  %v3574_v22 = vsel %vm10360_vm2, %v3524_v16, inf  ;;  %v3519_v2 = vadd.f32 %v7660_v34, %v6164_v32  ;;  %v7724_v15 = vpop.xlane.xlu0 %3103  ;;  %v7732_v16 = vpop.permute.xlu1 %2632  ;;  %vm10375_vm2 = vmmov %vm10302_vm0 }
 0x3ed   :  { %10361 = vst [vmem:[#allocation65_spill] sm:$0xff] %v7724_v15  ;;  %v3526_v15 = vadd.f32 %v7600_v63, %v6197_v54 }
 0x3ee   :  { %v3559_v38 = vsel %vm10362_vm4, %v3519_v2, inf  ;;  %v3525_v2 = vadd.f32 %v7660_v34, %v6197_v54  ;;  %vm10377_vm4 = vmmov %vm10302_vm0 }
 0x3f0   :  { %3602 = vmin.xlane.f32.xlu1 %v3601_v9  ;;  %3175 = vmin.xlane.f32.xlu0 %v3174_v40  ;;  %v3622_v9 = vsel %vm10363_vm15, %v3540_v11, inf  ;;  %v3535_v40 = vadd.f32 %v7660_v34, %v6245_v39  ;;  %v7740_v13 = vpop.permute.xlu1 %2643  ;;  %vm10378_vm15 = vmmov %vm10302_vm0 }
 0x3f2   :  { %v3607_v18 = vsel %vm10364_vm14, %v3535_v40, inf  ;;  %v3521_v40 = vadd.f32 %v7660_v34, %v6186_v47  ;;  %v3523_v47 = vadd.f32 %v7660_v34, %v6172_v36  ;;  %v3543_v36 = vadd.f32 %v7660_v34, %v6284_v6 }
 0x3f4   :  { %3160 = vmin.xlane.f32.xlu1 %v3159_v25  ;;  %3575 = vmin.xlane.f32.xlu0 %v3574_v22  ;;  %v3177_v25 = vsel %vm10365_vm13, %v3093_v45, inf  ;;  %v3089_v22 = vadd.f32 %v7386_v52, %v6252_v43  ;;  %v3541_v45 = vadd.f32 %v7660_v34, %v6275_v60  ;;  %v7759_v26 = vpop.permute.xlu1 %2654 }
 0x3f8   :  { %3560 = vmin.xlane.f32.xlu1 %v3559_v38  ;;  %3623 = vmin.xlane.f32.xlu0 %v3622_v9  ;;  %v3165_v38 = vsel %vm10366_vm12, %v3089_v22, inf  ;;  %v3577_v9 = vsel %vm10367_vm9, %v3525_v2, inf  ;;  %v3537_v22 = vadd.f32 %v7660_v34, %v6252_v43  ;;  %v3079_v2 = vadd.f32 %v7386_v52, %v6207_v61  ;;  %vm10379_vm12 = vmmov %vm10302_vm0 }
 0x3f9   :  { %v2011_v8 = vpop.xlane.xlu0 %2010 }
 0x3fa   :  { %v2105_v11 = vmax.f32 %v2011_v8, 0.0 }
 0x3fc   :  { %5722 = vrsqrt.f32 %v2105_v11  ;;  %3608 = vmin.xlane.f32.xlu1 %v3607_v18  ;;  %3178 = vmin.xlane.f32.xlu0 %v3177_v25  ;;  %v3565_v18 = vsel %vm10368_vm6, %v3521_v40, inf  ;;  %v3625_v25 = vsel %vm10369_vm3, %v3541_v45, inf  ;;  %v3135_v40 = vsel %vm10370_vm11, %v3079_v2, inf  ;;  %vm10381_vm11 = vmmov %vm10375_vm2 }
 0x3fd   :  { %v2017_v55 = vpop.xlane.xlu0 %2016  ;;  %v3095_v45 = vadd.f32 %v7386_v52, %v6284_v6  ;;  %vm2139_vm1 = vcmp.eq.f32.partialorder %v2105_v11, inf  ;;  %vm2141_vm5 = vcmp.eq.f32.partialorder %v2105_v11, 0.0 }
 0x3fe   :  { %v7748_v46 = vmax.f32 %v2017_v55, 0.0  ;;  %v3091_v55 = vadd.f32 %v7386_v52, %v6265_v53 }
 0x3ff   :  { %v3183_v2 = vsel %vm10373_vm8, %v3095_v45, inf  ;;  %v3539_v45 = vadd.f32 %v7660_v34, %v6265_v53 }
 0x400   :  { %3166 = vmin.xlane.f32.xlu1 %v3165_v38  ;;  %3578 = vmin.xlane.f32.xlu0 %v3577_v9  ;;  %5724 = vrsqrt.f32 %v7748_v46  ;;  %v3613_v9 = vsel %vm10302_vm0, %v3537_v22, inf  ;;  %vm2153_vm14 = vcmp.eq.f32.partialorder %v7748_v46, inf  ;;  %vm2155_vm9 = vcmp.eq.f32.partialorder %v7748_v46, 0.0 }
 0x401   :  { %v2023_v8 = vpop.xlane.xlu0 %2022 }
 0x402   :  { %v7757_v23 = vmax.f32 %v2023_v8, 0.0 }
 0x404   :  { %5726 = vrsqrt.f32 %v7757_v23  ;;  %3566 = vmin.xlane.f32.xlu1 %v3565_v18  ;;  %3626 = vmin.xlane.f32.xlu0 %v3625_v25  ;;  %v3171_v18 = vsel %vm10371_vm10, %v3091_v55, inf  ;;  %v7772_v25 = vpop.permute.xlu1 %2665  ;;  %vm2167_vm13 = vcmp.eq.f32.partialorder %v7757_v23, inf  ;;  %vm2169_vm3 = vcmp.eq.f32.partialorder %v7757_v23, 0.0 }
 0x405   :  { %v2029_v38 = vpop.xlane.xlu0 %2028  ;;  %10372 = vst [vmem:[#allocation66_spill] sm:$0xff] %v7772_v25 }
 0x406   :  { %v5723_v4 = vpop.eup %5722  ;;  %v7768_v8 = vmax.f32 %v2029_v38, 0.0  ;;  %v3527_v38 = vadd.f32 %v7660_v34, %v6207_v61 }
 0x407   :  { %v2138_v31 = vmul.f32 %v5723_v4, %v2105_v11  ;;  %v2142_v4 = vand.u32 2147483648, %v2105_v11 }
 0x408   :  { %5728 = vrsqrt.f32 %v7768_v8  ;;  %3614 = vmin.xlane.f32.xlu1 %v3613_v9  ;;  %3136 = vmin.xlane.f32.xlu0 %v3135_v40  ;;  %v3583_v40 = vsel %vm10375_vm2, %v3527_v38, inf  ;;  %v7787_v19 = vpop.permute.xlu1 %2676  ;;  %v3631_v38 = vsel %vm10378_vm15, %v3543_v36, inf  ;;  %v3094_v36 = vadd.f32 %v7394_v1, %v6275_v60 }
 0x409   :  { %v2140_v43 = vsel %vm2139_vm1, %v2105_v11, %v2138_v31  ;;  %v2035_v22 = vpop.xlane.xlu0 %2034  ;;  %v3571_v31 = vsel %vm10374_vm7, %v3523_v47, inf  ;;  %10376 = vst [vmem:[#allocation67_spill] sm:$0xff] %v7787_v19  ;;  %v3078_v47 = vadd.f32 %v7394_v1, %v6197_v54  ;;  %vm2181_vm6 = vcmp.eq.f32.partialorder %v7768_v8, inf  ;;  %vm10382_vm1 = vmmov %vm10375_vm2 }
 0x40a   :  { %v5725_v39 = vpop.eup %5724  ;;  %v7779_v32 = vmax.f32 %v2035_v22, 0.0  ;;  %v2143_v55 = vsel %vm2141_vm5, %v2142_v4, %v2140_v43  ;;  %vm2183_vm0 = vcmp.eq.f32.partialorder %v7768_v8, 0.0  ;;  %vm10383_vm8 = vmmov %vm10382_vm1 }
 0x40b   :  { %v2152_v11 = vmul.f32 %v5725_v39, %v7748_v46  ;;  %v2361_v22 = vsub.f32 0.0, %v2143_v55  ;;  %vm10384_vm7 = vmmov %vm10382_vm1 }
 0x40c   :  { %3172 = vmin.xlane.f32.xlu1 %v3171_v18  ;;  %3184 = vmin.xlane.f32.xlu0 %v3183_v2  ;;  %5730 = vrsqrt.f32 %v7779_v32  ;;  %v3619_v2 = vsel %vm10377_vm4, %v3539_v45, inf  ;;  %v3132_v45 = vsel %vm10379_vm12, %v3078_v47, inf  ;;  %v7805_v53 = vpop.permute.xlu1 %2687  ;;  %v2184_v47 = vand.u32 2147483648, %v7768_v8  ;;  %vm10385_vm2 = vmmov %vm10382_vm1 }
 0x40d   :  { %v2041_v9 = vpop.xlane.xlu0 %2040  ;;  %v2154_v39 = vsel %vm2153_vm14, %v7748_v46, %v2152_v11  ;;  %v2393_v55 = vmul.f32 0.7, %v2361_v22  ;;  %10380 = vst [vmem:[#allocation68_spill] sm:$0xff] %v7805_v53  ;;  %v2170_v11 = vand.u32 2147483648, %v7757_v23  ;;  %vm2195_vm10 = vcmp.eq.f32.partialorder %v7779_v32, inf  ;;  %vm10386_vm4 = vmmov %vm10382_vm1 }
 0x40e   :  { %v5727_v29 = vpop.eup %5726  ;;  %v7810_v22 = vmax.f32 %v2041_v9, 0.0  ;;  %vm2197_vm5 = vcmp.eq.f32.partialorder %v7779_v32, 0.0  ;;  %vm10387_vm14 = vmmov %vm10382_vm1 }
 0x40f   :  { %v2166_v18 = vmul.f32 %v5727_v29, %v7757_v23 }
 0x410   :  { %3572 = vmin.xlane.f32.xlu1 %v3571_v31  ;;  %3584 = vmin.xlane.f32.xlu0 %v3583_v40  ;;  %v2156_v31 = vand.u32 2147483648, %v7748_v46  ;;  %v3180_v46 = vsel %vm10381_vm11, %v3094_v36, inf  ;;  %5732 = vrsqrt.f32 %v7810_v22  ;;  %v3580_v36 = vsel %vm10382_vm1, %v3526_v15, inf }
 0x411   :  { %v2047_v43 = vpop.xlane.xlu0 %2046  ;;  %v2168_v40 = vsel %vm2167_vm13, %v7757_v23, %v2166_v18  ;;  %v3528_v15 = vadd.f32 %v7600_v63, %v6207_v61  ;;  %vm2209_vm15 = vcmp.eq.f32.partialorder %v7810_v22, inf  ;;  %vm2211_vm13 = vcmp.eq.f32.partialorder %v7810_v22, 0.0 }
 0x412   :  { %v5729_v4 = vpop.eup %5728  ;;  %v2171_v30 = vsel %vm2169_vm3, %v2170_v11, %v2168_v40  ;;  %v3542_v11 = vadd.f32 %v7600_v63, %v6275_v60 }
 0x413   :  { %v2180_v29 = vmul.f32 %v5729_v4, %v7768_v8 }
 0x414   :  { %3620 = vmin.xlane.f32.xlu1 %v3619_v2  ;;  %3632 = vmin.xlane.f32.xlu0 %v3631_v38  ;;  %v2157_v2 = vsel %vm2155_vm9, %v2156_v31, %v2154_v39  ;;  %v2425_v38 = vmul.f32 1.442695, %v2393_v55  ;;  %v7820_v39 = vmax.f32 %v2047_v43, 0.0  ;;  %v2365_v55 = vsub.f32 0.0, %v2171_v30 }
 0x415   :  { %v2053_v4 = vpop.xlane.xlu0 %2052  ;;  %v2182_v18 = vsel %vm2181_vm6, %v7768_v8, %v2180_v29  ;;  %v2363_v23 = vsub.f32 0.0, %v2157_v2 }
 0x416   :  { %v2185_v57 = vsel %vm2183_vm0, %v2184_v47, %v2182_v18  ;;  %v5731_v29 = vpop.eup %5730  ;;  %5734 = vpow2.f32 %v2425_v38  ;;  %v7832_v30 = vmax.f32 %v2053_v4, 0.0  ;;  %v3096_v47 = vadd.f32 %v7394_v1, %v6284_v6 }
 0x417   :  { %v2367_v8 = vsub.f32 0.0, %v2185_v57  ;;  %v2194_v40 = vmul.f32 %v5731_v29, %v7779_v32  ;;  %v2395_v18 = vmul.f32 0.7, %v2363_v23  ;;  %v3080_v57 = vadd.f32 %v7394_v1, %v6207_v61 }
 0x418   :  { %3133 = vmin.xlane.f32.xlu1 %v3132_v45  ;;  %v3628_v23 = vsel %vm10383_vm8, %v3542_v11, inf  ;;  %v3544_v29 = vadd.f32 %v7600_v63, %v6284_v6  ;;  %v7854_v11 = vsel %vm10386_vm4, %v3528_v15, inf  ;;  %vm2223_vm9 = vcmp.eq.f32.partialorder %v7820_v39, inf }
 0x419   :  { %v2014_v24 = vpop.xlane.xlu1 %2013  ;;  %v2059_v9 = vpop.xlane.xlu0 %2058  ;;  %v2399_v38 = vmul.f32 0.7, %v2367_v8  ;;  %v3138_v8 = vsel %vm10384_vm7, %v3080_v57, inf  ;;  %vm2225_vm3 = vcmp.eq.f32.partialorder %v7820_v39, 0.0  ;;  %vm2237_vm11 = vcmp.eq.f32.partialorder %v7832_v30, inf }
 0x41a   :  { %v7822_v31 = vmax.f32 %v2014_v24, 0.0  ;;  %v2397_v24 = vmul.f32 0.7, %v2365_v55  ;;  %v2429_v55 = vmul.f32 1.442695, %v2395_v18  ;;  %v5733_v54 = vpop.eup %5732 }
 0x41b   :  { %v2437_v6 = vmul.f32 1.442695, %v2399_v38 }
 0x41c   :  { %5736 = vrsqrt.f32 %v7822_v31  ;;  %3181 = vmin.xlane.f32.xlu1 %v3180_v46  ;;  %v2196_v46 = vsel %vm2195_vm10, %v7779_v32, %v2194_v40  ;;  %v2433_v60 = vmul.f32 1.442695, %v2397_v24  ;;  %v3186_v40 = vsel %vm10385_vm2, %v3096_v47, inf }
 0x41d   :  { %v2020_v45 = vpop.xlane.xlu1 %2019  ;;  %5738 = vrsqrt.f32 %v7820_v39  ;;  %v2065_v2 = vpop.xlane.xlu0 %2064  ;;  %vm2146_vm12 = vcmp.eq.f32.partialorder %v7822_v31, inf  ;;  %vm2148_vm6 = vcmp.eq.f32.partialorder %v7822_v31, 0.0 }
 0x41e   :  { %v7830_v43 = vmax.f32 %v2020_v45, 0.0  ;;  %v2198_v45 = vand.u32 2147483648, %v7779_v32  ;;  %v7864_v47 = vmax.f32 %v2065_v2, 0.0 }
 0x420   :  { %5740 = vrsqrt.f32 %v7830_v43  ;;  %3581 = vmin.xlane.f32.xlu1 %v3580_v36  ;;  %v7849_v36 = vmax.f32 %v2059_v9, 0.0  ;;  %v2199_v18 = vsel %vm2197_vm5, %v2198_v45, %v2196_v46  ;;  %v5735_v61 = vpop.eup %5734  ;;  %v7860_v9 = vsel %vm10387_vm14, %v3544_v29, inf }
 0x421   :  { %v2026_v4 = vpop.xlane.xlu1 %2025  ;;  %5742 = vrsqrt.f32 %v7832_v30  ;;  %v2071_v32 = vpop.xlane.xlu0 %2070  ;;  %v2369_v46 = vsub.f32 0.0, %v2199_v18  ;;  %v2212_v29 = vand.u32 2147483648, %v7810_v22  ;;  %v2149_v45 = vand.u32 2147483648, %v7822_v31 }
 0x422   :  { %v7857_v24 = vmax.f32 %v2026_v4, 0.0  ;;  %5744 = vpow2.f32 %v2429_v55  ;;  %vm2160_vm0 = vcmp.eq.f32.partialorder %v7830_v43, inf  ;;  %vm2162_vm1 = vcmp.eq.f32.partialorder %v7830_v43, 0.0 }
 0x423   :  { %5746 = vpow2.f32 %v2433_v60  ;;  %v2401_v18 = vmul.f32 0.7, %v2369_v46  ;;  %vm2251_vm10 = vcmp.eq.f32.partialorder %v7849_v36, inf  ;;  %vm2265_vm7 = vcmp.eq.f32.partialorder %v7864_v47, inf }
 0x424   :  { %3629 = vmin.xlane.f32.xlu1 %v3628_v23  ;;  %v2208_v23 = vmul.f32 %v5733_v54, %v7810_v22  ;;  %5748 = vrsqrt.f32 %v7849_v36  ;;  %v2721_v54 = vmul.f32 %v5735_v61, %v7376_v62  ;;  %vm2174_vm8 = vcmp.eq.f32.partialorder %v7857_v24, inf }
 0x425   :  { %v2032_v14 = vpop.xlane.xlu1 %2031  ;;  %5750 = vpow2.f32 %v2437_v6  ;;  %vm2176_vm5 = vcmp.eq.f32.partialorder %v7857_v24, 0.0 }
 0x426   :  { %v5737_v57 = vpop.eup %5736  ;;  %v7868_v38 = vmax.f32 %v2032_v14, 0.0  ;;  %5752 = vrsqrt.f32 %v7857_v24  ;;  %v2210_v55 = vsel %vm2209_vm15, %v7810_v22, %v2208_v23 }
 0x427   :  { %v2145_v15 = vmul.f32 %v5737_v57, %v7822_v31  ;;  %v5739_v4 = vpop.eup %5738  ;;  %5754 = vrsqrt.f32 %v7864_v47 }
 0x428   :  { %3139 = vmin.xlane.f32.xlu1 %v3138_v8  ;;  %v2222_v6 = vmul.f32 %v5739_v4, %v7820_v39  ;;  %5756 = vrsqrt.f32 %v7868_v38  ;;  %v2077_v8 = vpop.xlane.xlu0 %2076  ;;  %vm2188_vm2 = vcmp.eq.f32.partialorder %v7868_v38, inf  ;;  %vm2190_vm4 = vcmp.eq.f32.partialorder %v7868_v38, 0.0 }
 0x429   :  { %v2147_v60 = vsel %vm2146_vm12, %v7822_v31, %v2145_v15  ;;  %v2038_v14 = vpop.xlane.xlu1 %2037  ;;  %v2226_v15 = vand.u32 2147483648, %v7820_v39  ;;  %v2213_v31 = vsel %vm2211_vm13, %v2212_v29, %v2210_v55 }
 0x42a   :  { %v5741_v2 = vpop.eup %5740  ;;  %v7882_v61 = vmax.f32 %v2038_v14, 0.0  ;;  %2786 = vperm.xlu0 %5712, %v2721_v54   ;;  %v2150_v57 = vsel %vm2148_vm6, %v2149_v45, %v2147_v60  ;;  %v7895_v54 = vmax.f32 %v2071_v32, 0.0  ;;  %v2224_v60 = vsel %vm2223_vm9, %v7820_v39, %v2222_v6 }
 0x42b   :  { %v2159_v62 = vmul.f32 %v5741_v2, %v7830_v43  ;;  %v5743_v23 = vpop.eup %5742  ;;  %v2163_v2 = vand.u32 2147483648, %v7830_v43  ;;  %v2362_v45 = vsub.f32 0.0, %v2150_v57  ;;  %v2441_v32 = vmul.f32 1.442695, %v2401_v18 }
 0x42c   :  { %5758 = vrsqrt.f32 %v7882_v61  ;;  %3187 = vmin.xlane.f32.xlu1 %v3186_v40  ;;  %v5745_v40 = vpop.eup %5744  ;;  %v2236_v34 = vmul.f32 %v5743_v23, %v7832_v30  ;;  %v7908_v14 = vmax.f32 %v2077_v8, 0.0  ;;  %v2371_v18 = vsub.f32 0.0, %v2213_v31 }
 0x42d   :  { %v2161_v4 = vsel %vm2160_vm0, %v7830_v43, %v2159_v62  ;;  %v2044_v46 = vpop.xlane.xlu1 %2043  ;;  %v5747_v62 = vpop.eup %5746  ;;  %v2394_v55 = vmul.f32 0.7, %v2362_v45  ;;  %v2177_v39 = vand.u32 2147483648, %v7857_v24  ;;  %vm2279_vm15 = vcmp.eq.f32.partialorder %v7895_v54, inf }
 0x42e   :  { %v7899_v12 = vmax.f32 %v2044_v46, 0.0  ;;  %v2164_v22 = vsel %vm2162_vm1, %v2163_v2, %v2161_v4  ;;  %v5749_v29 = vpop.eup %5748  ;;  %v2083_v43 = vpop.xlane.xlu0 %2082  ;;  %v10388_v46 = vld [vmem:[#allocation56_spill] sm:$0xff]  ;;  %v7929_v31 = vsel %vm2237_vm11, %v7832_v30, %v2236_v34  ;;  %v7939_v45 = vmul.f32 %v5747_v62, %v7534_v0 }
 0x42f   :  { %v5751_v57 = vpop.eup %5750  ;;  %v7919_v52 = vmul.f32 %v5745_v40, %v10388_v46  ;;  %v2364_v2 = vsub.f32 0.0, %v2164_v22  ;;  %v7941_v34 = vmul.f32 0.7, %v2371_v18  ;;  %v2427_v62 = vmul.f32 1.442695, %v2394_v55 }
 0x430   :  { %5760 = vrsqrt.f32 %v7899_v12  ;;  %3587 = vmin.xlane.f32.xlu1 %v7854_v11  ;;  %v7923_v11 = vsel %vm2225_vm3, %v2226_v15, %v2224_v60  ;;  %v5753_v4 = vpop.eup %5752  ;;  %vm2202_vm14 = vcmp.eq.f32.partialorder %v7882_v61, inf  ;;  %vm2293_vm13 = vcmp.eq.f32.partialorder %v7908_v14, inf }
 0x431   :  { %5762 = vrsqrt.f32 %v7895_v54  ;;  %v2050_v6 = vpop.xlane.xlu1 %2049  ;;  %v5755_v63 = vpop.eup %5754  ;;  %v2173_v22 = vmul.f32 %v5753_v4, %v7857_v24  ;;  %v2396_v0 = vmul.f32 0.7, %v2364_v2  ;;  %v2191_v4 = vand.u32 2147483648, %v7868_v38 }
 0x432   :  { %v7916_v8 = vmax.f32 %v2050_v6, 0.0  ;;  %5764 = vpow2.f32 %v2441_v32  ;;  %v2250_v6 = vmul.f32 %v5749_v29, %v7849_v36  ;;  %v5757_v15 = vpop.eup %5756  ;;  %v7944_v29 = vmax.f32 %v2083_v43, 0.0  ;;  %v2089_v40 = vpop.xlane.xlu0 %2088 }
 0x433   :  { %5766 = vrsqrt.f32 %v7908_v14  ;;  %v2187_v43 = vmul.f32 %v5757_v15, %v7868_v38  ;;  %v2264_v23 = vmul.f32 %v5755_v63, %v7864_v47  ;;  %v7965_v2 = vmul.f32 %v5751_v57, %v7542_v27 }
 0x434   :  { %3635 = vmin.xlane.f32.xlu1 %v7860_v9  ;;  %5768 = vrsqrt.f32 %v7916_v8  ;;  %v7955_v18 = vsel %vm2251_vm10, %v7849_v36, %v2250_v6  ;;  %v2175_v15 = vsel %vm2174_vm8, %v7857_v24, %v2173_v22  ;;  %v7975_v1 = vmax.f32 %v2089_v40, 0.0 }
 0x435   :  { %v2056_v60 = vpop.xlane.xlu1 %2055  ;;  %v2431_v53 = vmul.f32 1.442695, %v2396_v0  ;;  %v2189_v27 = vsel %vm2188_vm2, %v7868_v38, %v2187_v43  ;;  %v2205_v57 = vand.u32 2147483648, %v7882_v61  ;;  %vm2216_vm12 = vcmp.eq.f32.partialorder %v7899_v12, inf }
 0x436   :  { %v5759_v32 = vpop.eup %5758  ;;  %v7946_v46 = vmax.f32 %v2056_v60, 0.0  ;;  %v2095_v0 = vpop.xlane.xlu0 %2094  ;;  %v2178_v43 = vsel %vm2176_vm5, %v2177_v39, %v2175_v15  ;;  %v2219_v28 = vand.u32 2147483648, %v7899_v12  ;;  %vm2204_vm9 = vcmp.eq.f32.partialorder %v7882_v61, 0.0 }
 0x437   :  { %v2201_v9 = vmul.f32 %v5759_v32, %v7882_v61  ;;  %v2366_v19 = vsub.f32 0.0, %v2178_v43  ;;  %vm2218_vm6 = vcmp.eq.f32.partialorder %v7899_v12, 0.0  ;;  %v8002_v24 = vsel %vm2265_vm7, %v7864_v47, %v2264_v23 }
 0x438   :  { %5770 = vrsqrt.f32 %v7946_v46  ;;  %v8004_v39 = vmax.f32 %v2095_v0, 0.0  ;;  %vm2230_vm3 = vcmp.eq.f32.partialorder %v7916_v8, inf  ;;  %vm2232_vm0 = vcmp.eq.f32.partialorder %v7916_v8, 0.0 }
 0x439   :  { %v2062_v55 = vpop.xlane.xlu1 %2061  ;;  %5772 = vrsqrt.f32 %v7944_v29  ;;  %v2233_v43 = vand.u32 2147483648, %v7916_v8  ;;  %vm2307_vm11 = vcmp.eq.f32.partialorder %v7944_v29, inf  ;;  %vm2321_vm1 = vcmp.eq.f32.partialorder %v7975_v1, inf }
 0x43a   :  { %v5761_v6 = vpop.eup %5760  ;;  %v7972_v63 = vmax.f32 %v2062_v55, 0.0  ;;  %5774 = vpow2.f32 %v2427_v62  ;;  %v2203_v55 = vsel %vm2202_vm14, %v7882_v61, %v2201_v9  ;;  %vm2244_vm10 = vcmp.eq.f32.partialorder %v7946_v46, inf }
 0x43b   :  { %v5763_v60 = vpop.eup %5762  ;;  %v2215_v32 = vmul.f32 %v5761_v6, %v7899_v12  ;;  %v2206_v9 = vsel %vm2204_vm9, %v2205_v57, %v2203_v55  ;;  %vm2239_vm8 = vcmp.eq.f32.partialorder %v7832_v30, 0.0  ;;  %vm2246_vm5 = vcmp.eq.f32.partialorder %v7946_v46, 0.0 }
 0x43c   :  { %5776 = vrsqrt.f32 %v7972_v63  ;;  %v7984_v22 = vpop.eup %5764  ;;  %v2278_v59 = vmul.f32 %v5763_v60, %v7895_v54  ;;  %v2370_v55 = vsub.f32 0.0, %v2206_v9  ;;  %vm2258_vm7 = vcmp.eq.f32.partialorder %v7972_v63, inf }
 0x43d   :  { %v2217_v40 = vsel %vm2216_vm12, %v7899_v12, %v2215_v32  ;;  %v2068_v62 = vpop.xlane.xlu1 %2067  ;;  %5778 = vpow2.f32 %v2431_v53  ;;  %v5767_v6 = vpop.eup %5766  ;;  %v2192_v53 = vsel %vm2190_vm4, %v2191_v4, %v2189_v27  ;;  %v2398_v12 = vmul.f32 0.7, %v2366_v19 }
 0x43e   :  { %v7992_v17 = vmax.f32 %v2068_v62, 0.0  ;;  %v5769_v56 = vpop.eup %5768  ;;  %5780 = vrsqrt.f32 %v7975_v1  ;;  %v2220_v60 = vsel %vm2218_vm6, %v2219_v28, %v2217_v40  ;;  %v2292_v15 = vmul.f32 %v5767_v6, %v7908_v14  ;;  %v2101_v6 = vpop.xlane.xlu0 %2100 }
 0x43f   :  { %v2368_v62 = vsub.f32 0.0, %v2192_v53  ;;  %v8011_v38 = vsel %vm2279_vm15, %v7895_v54, %v2278_v59  ;;  %v2229_v4 = vmul.f32 %v5769_v56, %v7916_v8  ;;  %v2435_v28 = vmul.f32 1.442695, %v2398_v12  ;;  %v10389_v12 = vld [vmem:[#allocation55_spill] sm:$0xff] }
 0x440   :  { %5782 = vrsqrt.f32 %v7992_v17  ;;  %v2372_v40 = vsub.f32 0.0, %v2220_v60  ;;  %v8024_v56 = vsel %vm2293_vm13, %v7908_v14, %v2292_v15  ;;  %v2402_v25 = vmul.f32 0.7, %v2370_v55 }
 0x441   :  { %v2074_v32 = vpop.xlane.xlu1 %2073  ;;  %v2400_v57 = vmul.f32 0.7, %v2368_v62  ;;  %5784 = vrsqrt.f32 %v8004_v39  ;;  %v2231_v15 = vsel %vm2230_vm3, %v7916_v8, %v2229_v4  ;;  %v8039_v3 = vmax.f32 %v2101_v6, 0.0 }
 0x442   :  { %v8015_v23 = vmax.f32 %v2074_v32, 0.0  ;;  %v5771_v27 = vpop.eup %5770  ;;  %5786 = vpow2.f32 %v2435_v28  ;;  %v2404_v28 = vmul.f32 0.7, %v2372_v40  ;;  %vm2260_vm2 = vcmp.eq.f32.partialorder %v7972_v63, 0.0 }
 0x443   :  { %v5773_v0 = vpop.eup %5772  ;;  %v2439_v9 = vmul.f32 1.442695, %v2400_v57  ;;  %v2243_v32 = vmul.f32 %v5771_v27, %v7946_v46  ;;  %v8047_v27 = vpop.xlane.xlu0 %3106  ;;  %vm2253_vm4 = vcmp.eq.f32.partialorder %v7849_v36, 0.0  ;;  %vm2267_vm15 = vcmp.eq.f32.partialorder %v7864_v47, 0.0 }
 0x444   :  { %v5775_v59 = vpop.eup %5774  ;;  %5788 = vrsqrt.f32 %v8015_v23  ;;  %v2306_v57 = vmul.f32 %v5773_v0, %v7944_v29  ;;  %v2447_v55 = vmul.f32 1.442695, %v2404_v28  ;;  %v2247_v0 = vand.u32 2147483648, %v7946_v46 }
 0x445   :  { %v2080_v53 = vpop.xlane.xlu1 %2079  ;;  %v2722_v62 = vmul.f32 %v5775_v59, %v10389_v12  ;;  %5790 = vpow2.f32 %v2439_v9  ;;  %v2443_v9 = vmul.f32 1.442695, %v2402_v25  ;;  %v2245_v40 = vsel %vm2244_vm10, %v7946_v46, %v2243_v32 }
 0x446   :  { %v5777_v60 = vpop.eup %5776  ;;  %v8030_v19 = vmax.f32 %v2080_v53, 0.0  ;;  %v2445_v25 = vmul.f32 1.442695, %v7941_v34  ;;  %v2261_v34 = vand.u32 2147483648, %v7972_v63  ;;  %vm2272_vm14 = vcmp.eq.f32.partialorder %v7992_v17, inf }
 0x447   :  { %v5779_v61 = vpop.eup %5778  ;;  %2789 = vperm.xlu1 %5713, %v2722_v62   ;;  %v2257_v12 = vmul.f32 %v5777_v60, %v7972_v63  ;;  %vm2274_vm13 = vcmp.eq.f32.partialorder %v7992_v17, 0.0  ;;  %vm2286_vm12 = vcmp.eq.f32.partialorder %v8015_v23, inf  ;;  %vm2288_vm9 = vcmp.eq.f32.partialorder %v8015_v23, 0.0 }
 0x448   :  { %v2724_v59 = vmul.f32 %v5779_v61, %v7607_v58  ;;  %v5781_v53 = vpop.eup %5780  ;;  %5792 = vrsqrt.f32 %v8030_v19  ;;  %v2234_v58 = vsel %vm2232_vm0, %v2233_v43, %v2231_v15  ;;  %v2248_v15 = vsel %vm2246_vm5, %v2247_v0, %v2245_v40  ;;  %v8075_v0 = vpop.xlane.xlu0 %3112 }
 0x449   :  { %v2086_v4 = vpop.xlane.xlu1 %2085  ;;  %5794 = vpow2.f32 %v2443_v9  ;;  %v2374_v6 = vsub.f32 0.0, %v2234_v58  ;;  %v2320_v62 = vmul.f32 %v5781_v53, %v7975_v1  ;;  %v2259_v8 = vsel %vm2258_vm7, %v7972_v63, %v2257_v12 }
 0x44a   :  { %2795 = vperm.xlu0 %5712, %v2724_v59   ;;  %v8052_v61 = vmax.f32 %v2086_v4, 0.0  ;;  %v5783_v60 = vpop.eup %5782  ;;  %5796 = vrsqrt.f32 %v8039_v3  ;;  %v2376_v59 = vsub.f32 0.0, %v2248_v15  ;;  %v10390_v12 = vsub.f32 0.0, %v7923_v11 }
 0x44b   :  { %2792 = vperm.xlu1 %5713, %v7919_v52   ;;  %5798 = vpow2.f32 %v2447_v55  ;;  %v2406_v32 = vmul.f32 0.7, %v2374_v6  ;;  %v5785_v28 = vpop.eup %5784  ;;  %v8072_v55 = vsel %vm2307_vm11, %v7944_v29, %v2306_v57  ;;  %v2271_v40 = vmul.f32 %v5783_v60, %v7992_v17 }
 0x44c   :  { %5800 = vpow2.f32 %v2445_v25  ;;  %v5787_v46 = vpop.eup %5786  ;;  %v2405_v4 = vmul.f32 0.7, %v10390_v12  ;;  %v2262_v6 = vsel %vm2260_vm2, %v2261_v34, %v2259_v8  ;;  %v8084_v11 = vsel %vm2321_vm1, %v7975_v1, %v2320_v62 }
 0x44d   :  { %v2092_v43 = vpop.xlane.xlu1 %2091  ;;  %5802 = vrsqrt.f32 %v8052_v61  ;;  %v2451_v52 = vmul.f32 1.442695, %v2406_v32  ;;  %v2726_v58 = vmul.f32 %v5787_v46, %v7623_v7  ;;  %v8087_v57 = vmul.f32 %v5785_v28, %v8004_v39 }
 0x44e   :  { %v8065_v53 = vmax.f32 %v2092_v43, 0.0  ;;  %v5789_v9 = vpop.eup %5788  ;;  %v2408_v60 = vmul.f32 0.7, %v2376_v59  ;;  %v2449_v63 = vmul.f32 1.442695, %v2405_v4  ;;  %v2378_v8 = vsub.f32 0.0, %v2262_v6  ;;  %v8111_v4 = vpop.xlane.xlu0 %3118 }
 0x44f   :  { %2798 = vperm.xlu1 %5713, %v7939_v45   ;;  %v5791_v25 = vpop.eup %5790  ;;  %5804 = vpow2.f32 %v2451_v52  ;;  %2801 = vperm.xlu0 %5712, %v2726_v58   ;;  %v10391_v32 = vand.u32 2147483648, %v7832_v30  ;;  %v2273_v34 = vsel %vm2272_vm14, %v7992_v17, %v2271_v40  ;;  %v2275_v46 = vand.u32 2147483648, %v7992_v17 }
 0x450   :  { %v2728_v7 = vmul.f32 %v5791_v25, %v7633_v5  ;;  %5806 = vrsqrt.f32 %v8065_v53  ;;  %v2455_v62 = vmul.f32 1.442695, %v2408_v60  ;;  %v2285_v5 = vmul.f32 %v5789_v9, %v8015_v23 }
 0x451   :  { %v2098_v43 = vpop.xlane.xlu1 %2097  ;;  %v2241_v15 = vsel %vm2239_vm8, %v10391_v32, %v7929_v31  ;;  %v2410_v12 = vmul.f32 0.7, %v2378_v8  ;;  %v2276_v25 = vsel %vm2274_vm13, %v2275_v46, %v2273_v34  ;;  %vm2300_vm6 = vcmp.eq.f32.partialorder %v8030_v19, inf }
 0x452   :  { %v8092_v45 = vmax.f32 %v2098_v43, 0.0  ;;  %v5793_v28 = vpop.eup %5792  ;;  %v2375_v30 = vsub.f32 0.0, %v2241_v15  ;;  %v2287_v60 = vsel %vm2286_vm12, %v8015_v23, %v2285_v5  ;;  %vm2302_vm3 = vcmp.eq.f32.partialorder %v8030_v19, 0.0 }
 0x453   :  { %2804 = vperm.xlu1 %5713, %v7965_v2   ;;  %v5795_v59 = vpop.eup %5794  ;;  %2807 = vperm.xlu0 %5712, %v2728_v7   ;;  %v2729_v2 = vmul.f32 %v7984_v22, %v7556_v51  ;;  %v2459_v58 = vmul.f32 1.442695, %v2410_v12  ;;  %v2380_v7 = vsub.f32 0.0, %v2276_v25  ;;  %vm2281_vm0 = vcmp.eq.f32.partialorder %v7895_v54, 0.0  ;;  %v8147_v12 = vpop.xlane.xlu0 %3124 }
 0x454   :  { %5808 = vrsqrt.f32 %v8092_v45  ;;  %v8108_v31 = vpop.eup %5796  ;;  %v2730_v9 = vmul.f32 %v5795_v59, %v7649_v50  ;;  %v2407_v6 = vmul.f32 0.7, %v2375_v30  ;;  %v10392_v50 = vand.u32 2147483648, %v7849_v36 }
 0x455   :  { %v8106_v52 = vpop.xlane.xlu1 %3109  ;;  %5810 = vpow2.f32 %v2455_v62  ;;  %v5799_v40 = vpop.eup %5798  ;;  %v2299_v62 = vmul.f32 %v5793_v28, %v8030_v19  ;;  %vm2295_vm11 = vcmp.eq.f32.partialorder %v7908_v14, 0.0  ;;  %v2412_v32 = vmul.f32 0.7, %v2380_v7 }
 0x456   :  { %5812 = vpow2.f32 %v2449_v63  ;;  %v5801_v43 = vpop.eup %5800  ;;  %v2255_v51 = vsel %vm2253_vm4, %v10392_v50, %v7955_v18  ;;  %v2289_v63 = vand.u32 2147483648, %v8015_v23  ;;  %v2732_v8 = vmul.f32 %v5799_v40, %v7664_v10 }
 0x457   :  { %2810 = vperm.xlu1 %5713, %v2729_v2   ;;  %v5803_v22 = vpop.eup %5802  ;;  %5814 = vpow2.f32 %v2459_v58  ;;  %2813 = vperm.xlu0 %5712, %v2730_v9   ;;  %v2731_v36 = vmul.f32 %v5801_v43, %v7567_v49  ;;  %v2453_v18 = vmul.f32 1.442695, %v2407_v6  ;;  %v2303_v28 = vand.u32 2147483648, %v8030_v19 }
 0x458   :  { %v2377_v34 = vsub.f32 0.0, %v2255_v51  ;;  %v2290_v5 = vsel %vm2288_vm9, %v2289_v63, %v2287_v60  ;;  %v10393_v59 = vand.u32 2147483648, %v7864_v47  ;;  %v2301_v10 = vsel %vm2300_vm6, %v8030_v19, %v2299_v62 }
 0x459   :  { %v8129_v17 = vpop.xlane.xlu1 %3115  ;;  %v5805_v15 = vpop.eup %5804  ;;  %v2313_v49 = vmul.f32 %v5803_v22, %v8052_v61  ;;  %5816 = vpow2.f32 %v2453_v18  ;;  %v2463_v30 = vmul.f32 1.442695, %v2412_v32  ;;  %vm2314_vm1 = vcmp.eq.f32.partialorder %v8052_v61, inf }
 0x45a   :  { %v2269_v46 = vsel %vm2267_vm15, %v10393_v59, %v8002_v24  ;;  %v5807_v9 = vpop.eup %5806  ;;  %vm2316_vm10 = vcmp.eq.f32.partialorder %v8052_v61, 0.0  ;;  %v2409_v47 = vmul.f32 0.7, %v2377_v34  ;;  %v2382_v24 = vsub.f32 0.0, %v2290_v5 }
 0x45b   :  { %2816 = vperm.xlu1 %5713, %v2731_v36   ;;  %v2317_v40 = vand.u32 2147483648, %v8052_v61  ;;  %2819 = vperm.xlu0 %5712, %v2732_v8   ;;  %v2734_v58 = vmul.f32 %v5805_v15, %v7680_v21  ;;  %5818 = vpow2.f32 %v2463_v30  ;;  %v2379_v6 = vsub.f32 0.0, %v2269_v46  ;;  %v8169_v36 = vpop.xlane.xlu0 %3130 }
 0x45c   :  { %vm2328_vm8 = vcmp.eq.f32.partialorder %v8065_v53, inf  ;;  %v2457_v43 = vmul.f32 1.442695, %v2409_v47  ;;  %v2414_v60 = vmul.f32 0.7, %v2382_v24  ;;  %v2304_v62 = vsel %vm2302_vm3, %v2303_v28, %v2301_v10 }
 0x45d   :  { %v8151_v23 = vpop.xlane.xlu1 %3121  ;;  %vm2309_vm5 = vcmp.eq.f32.partialorder %v7944_v29, 0.0  ;;  %vm2335_vm7 = vcmp.eq.f32.partialorder %v8004_v39, inf  ;;  %v2315_v50 = vsel %vm2314_vm1, %v8052_v61, %v2313_v49  ;;  %v2327_v21 = vmul.f32 %v5807_v9, %v8065_v53 }
 0x45e   :  { %v5809_v2 = vpop.eup %5808  ;;  %v2411_v51 = vmul.f32 0.7, %v2379_v6  ;;  %v2384_v22 = vsub.f32 0.0, %v2304_v62  ;;  %vm2330_vm2 = vcmp.eq.f32.partialorder %v8065_v53, 0.0  ;;  %v2331_v63 = vand.u32 2147483648, %v8065_v53 }
 0x45f   :  { %v5811_v25 = vpop.eup %5810  ;;  %5820 = vpow2.f32 %v2457_v43  ;;  %v2341_v18 = vmul.f32 %v5809_v2, %v8092_v45  ;;  %2825 = vperm.xlu0 %5712, %v2734_v58   ;;  %v2467_v15 = vmul.f32 1.442695, %v2414_v60  ;;  %vm2323_vm4 = vcmp.eq.f32.partialorder %v7975_v1, 0.0  ;;  %v8200_v43 = vpop.xlane.xlu0 %3151 }
 0x460   :  { %v5813_v7 = vpop.eup %5812  ;;  %v2736_v32 = vmul.f32 %v5811_v25, %v7690_v42  ;;  %v2461_v28 = vmul.f32 1.442695, %v2411_v51  ;;  %v2416_v5 = vmul.f32 0.7, %v2384_v22  ;;  %v2318_v46 = vsel %vm2316_vm10, %v2317_v40, %v2315_v50 }
 0x461   :  { %v2733_v19 = vmul.f32 %v5813_v7, %v7578_v44  ;;  %v8167_v8 = vpop.xlane.xlu1 %3127  ;;  %v5815_v34 = vpop.eup %5814  ;;  %v10394_v44 = vand.u32 2147483648, %v7895_v54  ;;  %v10395_v10 = vand.u32 2147483648, %v7908_v14  ;;  %v2329_v49 = vsel %vm2328_vm8, %v8065_v53, %v2327_v21 }
 0x462   :  { %vm2342_vm15 = vcmp.eq.f32.partialorder %v8092_v45, inf  ;;  %5822 = vpow2.f32 %v2467_v15  ;;  %vm2337_vm14 = vcmp.eq.f32.partialorder %v8004_v39, 0.0  ;;  %v2345_v54 = vand.u32 2147483648, %v8092_v45 }
 0x463   :  { %2822 = vperm.xlu1 %5713, %v2733_v19   ;;  %v2283_v59 = vsel %vm2281_vm0, %v10394_v44, %v8011_v38  ;;  %v2297_v42 = vsel %vm2295_vm11, %v10395_v10, %v8024_v56  ;;  %5824 = vpow2.f32 %v2461_v28  ;;  %v2471_v61 = vmul.f32 1.442695, %v2416_v5  ;;  %v5817_v47 = vpop.eup %5816  ;;  %2831 = vperm.xlu0 %5712, %v2736_v32  }
 0x464   :  { %v2381_v30 = vsub.f32 0.0, %v2283_v59  ;;  %v2386_v9 = vsub.f32 0.0, %v2318_v46  ;;  %v2343_v14 = vsel %vm2342_vm15, %v8092_v45, %v2341_v18  ;;  %v2738_v56 = vmul.f32 %v5815_v34, %v7706_v41  ;;  %v8227_v46 = vpop.xlane.xlu0 %3157 }
 0x465   :  { %v8192_v38 = vpop.xlane.xlu1 %3148  ;;  %v2383_v2 = vsub.f32 0.0, %v2297_v42  ;;  %v2735_v40 = vmul.f32 %v5817_v47, %v7589_v37  ;;  %5826 = vpow2.f32 %v2471_v61  ;;  %v2332_v6 = vsel %vm2330_vm2, %v2331_v63, %v2329_v49  ;;  %v5819_v25 = vpop.eup %5818 }
 0x466   :  { %v2413_v24 = vmul.f32 0.7, %v2381_v30  ;;  %v2418_v58 = vmul.f32 0.7, %v2386_v9  ;;  %vm2344_vm13 = vcmp.eq.f32.partialorder %v8092_v45, 0.0  ;;  %v2388_v7 = vsub.f32 0.0, %v2332_v6 }
 0x467   :  { %v2415_v62 = vmul.f32 0.7, %v2383_v2  ;;  %v2336_v41 = vsel %vm2335_vm7, %v8004_v39, %v8087_v57  ;;  %2828 = vperm.xlu1 %5713, %v2735_v40   ;;  %v10396_v53 = vand.u32 2147483648, %v7944_v29  ;;  %v2346_v21 = vsel %vm2344_vm13, %v2345_v54, %v2343_v14  ;;  %2837 = vperm.xlu0 %5712, %v2738_v56  }
 0x468   :  { %v2465_v60 = vmul.f32 1.442695, %v2413_v24  ;;  %v2475_v50 = vmul.f32 1.442695, %v2418_v58  ;;  %v2348_v51 = vmul.f32 %v8108_v31, %v8039_v3  ;;  %v2740_v22 = vmul.f32 %v5819_v25, %v7716_v48  ;;  %v8239_v58 = vpop.xlane.xlu0 %3551 }
 0x469   :  { %v8206_v37 = vpop.xlane.xlu1 %3154  ;;  %v2311_v45 = vsel %vm2309_vm5, %v10396_v53, %v8072_v55  ;;  %v2469_v63 = vmul.f32 1.442695, %v2415_v62  ;;  %v5821_v57 = vpop.eup %5820  ;;  %v2420_v19 = vmul.f32 0.7, %v2388_v7  ;;  %v2390_v32 = vsub.f32 0.0, %v2346_v21 }
 0x46a   :  { %5828 = vpow2.f32 %v2465_v60  ;;  %v2385_v18 = vsub.f32 0.0, %v2311_v45  ;;  %vm2349_vm12 = vcmp.eq.f32.partialorder %v8039_v3, inf  ;;  %v2737_v15 = vmul.f32 %v5821_v57, %v7605_v33 }
 0x46b   :  { %5830 = vpow2.f32 %v2475_v50  ;;  %v10397_v29 = vand.u32 2147483648, %v7975_v1  ;;  %v2479_v48 = vmul.f32 1.442695, %v2420_v19  ;;  %v2422_v34 = vmul.f32 0.7, %v2390_v32  ;;  %2843 = vperm.xlu0 %5712, %v2740_v22   ;;  %v10399_v50 = vld [vmem:[#allocation58_spill] sm:$0xff] }
 0x46c   :  { %5832 = vpow2.f32 %v2469_v63  ;;  %v2417_v28 = vmul.f32 0.7, %v2385_v18  ;;  %v5823_v5 = vpop.eup %5822  ;;  %v2350_v44 = vsel %vm2349_vm12, %v8039_v3, %v2348_v51  ;;  %v2352_v59 = vand.u32 2147483648, %v8039_v3  ;;  %2834 = vperm.xlu1 %5713, %v2737_v15   ;;  %v8246_v51 = vpop.xlane.xlu0 %3557  ;;  %v10402_v32 = vld [vmem:[#allocation67_spill] sm:$0xff] }
 0x46d   :  { %v2325_v55 = vsel %vm2323_vm4, %v10397_v29, %v8084_v11  ;;  %v8223_v31 = vpop.xlane.xlu1 %3548  ;;  %v10398_v10 = vand.u32 2147483648, %v8004_v39  ;;  %v5825_v11 = vpop.eup %5824  ;;  %v2742_v42 = vmul.f32 %v5823_v5, %v7732_v16  ;;  %5834 = vpow2.f32 %v2479_v48 }
 0x46e   :  { %v2387_v33 = vsub.f32 0.0, %v2325_v55  ;;  %v2473_v49 = vmul.f32 1.442695, %v2417_v28  ;;  %v2483_v30 = vmul.f32 1.442695, %v2422_v34  ;;  %vm2351_vm9 = vcmp.eq.f32.partialorder %v8039_v3, 0.0 }
 0x46f   :  { %v2339_v1 = vsel %vm2337_vm14, %v10398_v10, %v2336_v41  ;;  %v2739_v54 = vmul.f32 %v5825_v11, %v7621_v20  ;;  %v5827_v47 = vpop.eup %5826  ;;  %v2353_v56 = vsel %vm2351_vm9, %v2352_v59, %v2350_v44  ;;  %2849 = vperm.xlu0 %5712, %v2742_v42   ;;  %v10403_v28 = vld [vmem:[#allocation61_spill] sm:$0xff]  ;;  %vm10409_vm0 = vcmask 130048  }
 0x470   :  { %v2419_v61 = vmul.f32 0.7, %v2387_v33  ;;  %v2389_v9 = vsub.f32 0.0, %v2339_v1  ;;  %5836 = vpow2.f32 %v2473_v49  ;;  %v2744_v39 = vmul.f32 %v5827_v47, %v7740_v13  ;;  %v8253_v55 = vpop.xlane.xlu0 %3599  ;;  %v10404_v1 = vld [vmem:[#allocation62_spill] sm:$0xff]  ;;  %vm10411_vm11 = vmmov %vm10409_vm0 }
 0x471   :  { %v8236_v14 = vpop.xlane.xlu1 %3554  ;;  %2840 = vperm.xlu1 %5713, %v2739_v54   ;;  %5838 = vpow2.f32 %v2483_v30  ;;  %v2391_v2 = vsub.f32 0.0, %v2353_v56  ;;  %vm10414_vm1 = vmmov %vm10409_vm0  ;;  %vm10455_vm4 = vcmask 130112   ;;  %vm10457_vm14 = vcmask 1041409  }
 0x472   :  { %v2477_v16 = vmul.f32 1.442695, %v2419_v61  ;;  %v2421_v24 = vmul.f32 0.7, %v2389_v9  ;;  %v10405_v9 = vld [vmem:[#allocation63_spill] sm:$0xff]  ;;  %vm10415_vm10 = vmmov %vm10409_vm0 }
 0x473   :  { %2855 = vperm.xlu0 %5712, %v2744_v39   ;;  %v2423_v41 = vmul.f32 0.7, %v2391_v2  ;;  %vm10416_vm8 = vmmov %vm10409_vm0 }
 0x474   :  { %v5829_v40 = vpop.eup %5828  ;;  %5840 = vpow2.f32 %v2477_v16  ;;  %v2481_v25 = vmul.f32 1.442695, %v2421_v24  ;;  %v8261_v30 = vpop.xlane.xlu0 %3605  ;;  %vm10417_vm5 = vmmov %vm10409_vm0 }
 0x475   :  { %v5831_v3 = vpop.eup %5830  ;;  %v2741_v20 = vmul.f32 %v5829_v40, %v7631_v35  ;;  %v2104_v6 = vpop.xlane.xlu1 %2103  ;;  %v2485_v21 = vmul.f32 1.442695, %v2423_v41  ;;  %v10400_v35 = vld [vmem:[#allocation66_spill] sm:$0xff]  ;;  %vm10419_vm7 = vmmov %vm10409_vm0 }
 0x476   :  { %v5833_v60 = vpop.eup %5832  ;;  %v2746_v62 = vmul.f32 %v5831_v3, %v7759_v26  ;;  %v2136_v7 = vmax.f32 %v2104_v6, 0.0  ;;  %5842 = vpow2.f32 %v2481_v25  ;;  %v10401_v26 = vld [vmem:[#allocation60_spill] sm:$0xff]  ;;  %vm10421_vm2 = vmmov %vm10409_vm0 }
 0x477   :  { %2846 = vperm.xlu1 %5713, %v2741_v20   ;;  %v5835_v13 = vpop.eup %5834  ;;  %v2743_v53 = vmul.f32 %v5833_v60, %v10399_v50  ;;  %v10406_v60 = vld [vmem:[#allocation68_spill] sm:$0xff]  ;;  %vm10456_vm15 = vmmov %vm10455_vm4 }
 0x478   :  { %5844 = vrsqrt.f32 %v2136_v7  ;;  %2861 = vperm.xlu0 %5712, %v2746_v62   ;;  %v2748_v22 = vmul.f32 %v5835_v13, %v10400_v35  ;;  %vm2356_vm6 = vcmp.eq.f32.partialorder %v2136_v7, inf  ;;  %v2359_v33 = vand.u32 2147483648, %v2136_v7  ;;  %v8266_v24 = vpop.xlane.xlu0 %3163  ;;  %vm10458_vm13 = vmmov %vm10455_vm4 }
 0x479   :  { %v8244_v45 = vpop.xlane.xlu1 %3596  ;;  %5846 = vpow2.f32 %v2485_v21  ;;  %vm2358_vm3 = vcmp.eq.f32.partialorder %v2136_v7, 0.0  ;;  %v10408_v21 = vld [vmem:[#allocation54_spill] sm:$0xff]  ;;  %vm10459_vm12 = vmmov %vm10455_vm4 }
 0x47a   :  { %v5837_v63 = vpop.eup %5836  ;;  %vm10460_vm9 = vmmov %vm10455_vm4 }
 0x47b   :  { %2852 = vperm.xlu1 %5713, %v2743_v53   ;;  %v5839_v57 = vpop.eup %5838  ;;  %v2745_v19 = vmul.f32 %v5837_v63, %v10401_v26  ;;  %v10407_v53 = vld [vmem:[#allocation20_spill] sm:$0xff] }
 0x47c   :  { %2867 = vperm.xlu0 %5712, %v2748_v22   ;;  %v2750_v15 = vmul.f32 %v5839_v57, %v10402_v32  ;;  %v8270_v40 = vpop.xlane.xlu0 %3563  ;;  %v3082_v35 = vadd.f32 %v10408_v21, %v10407_v53  ;;  %v10410_v26 = vld [vmem:[#allocation28_spill] sm:$0xff] }
 0x47d   :  { %v8250_v18 = vpop.xlane.xlu1 %3602 }
 0x47e   :  { %v5841_v29 = vpop.eup %5840  ;;  %v3144_v57 = vsel %vm10409_vm0, %v3082_v35, inf  ;;  %vm10463_vm0 = vcmask 1043459  }
 0x47f   :  { %2858 = vperm.xlu1 %5713, %v2745_v19   ;;  %v2747_v34 = vmul.f32 %v5841_v29, %v10403_v28  ;;  %v3098_v19 = vadd.f32 %v10408_v21, %v10410_v26 }
 0x480   :  { %v5843_v48 = vpop.eup %5842  ;;  %2873 = vperm.xlu0 %5712, %v2750_v15   ;;  %v8274_v6 = vpop.xlane.xlu0 %3611 }
 0x481   :  { %v8256_v5 = vpop.xlane.xlu1 %3160  ;;  %v2749_v11 = vmul.f32 %v5843_v48, %v10404_v1  ;;  %v3192_v29 = vsel %vm10411_vm11, %v3098_v19, inf  ;;  %v10412_v48 = vld [vmem:[#allocation57_spill] sm:$0xff]  ;;  %vm10464_vm11 = vmmov %vm10455_vm4 }
 0x482   :  { %v5845_v44 = vpop.eup %5844  ;;  %v3530_v28 = vadd.f32 %v10412_v48, %v10407_v53 }
 0x483   :  { %v2355_v59 = vmul.f32 %v5845_v44, %v2136_v7  ;;  %2864 = vperm.xlu1 %5713, %v2747_v34   ;;  %v5847_v49 = vpop.eup %5846  ;;  %v10413_v34 = vld [vmem:[#allocation53_spill] sm:$0xff] }
 0x484   :  { %v2751_v47 = vmul.f32 %v5847_v49, %v10405_v9  ;;  %v3081_v44 = vadd.f32 %v10413_v34, %v10407_v53  ;;  %v3097_v49 = vadd.f32 %v10413_v34, %v10410_v26  ;;  %v10418_v9 = vld [vmem:[#allocation59_spill] sm:$0xff] }
 0x485   :  { %v2357_v10 = vsel %vm2356_vm6, %v2136_v7, %v2355_v59  ;;  %v8259_v42 = vpop.xlane.xlu1 %3560  ;;  %v8279_v7 = vpop.xlane.xlu0 %3169  ;;  %v3592_v59 = vsel %vm10414_vm1, %v3530_v28, inf  ;;  %vm10461_vm6 = vmmov %vm10455_vm4  ;;  %vm10465_vm1 = vcmask 1044484  }
 0x486   :  { %v2360_v54 = vsel %vm2358_vm3, %v2359_v33, %v2357_v10  ;;  %v3546_v33 = vadd.f32 %v10412_v48, %v10410_v26  ;;  %vm10462_vm3 = vcmask 1042434  }
 0x487   :  { %2870 = vperm.xlu1 %5713, %v2749_v11   ;;  %v2392_v61 = vsub.f32 0.0, %v2360_v54  ;;  %v3141_v11 = vsel %vm10415_vm10, %v3081_v44, inf  ;;  %vm10466_vm10 = vmmov %vm10457_vm14 }
 0x488   :  { %v3640_v54 = vsel %vm10416_vm8, %v3546_v33, inf  ;;  %vm10467_vm8 = vmmov %vm10455_vm4 }
 0x489   :  { %v8264_v56 = vpop.xlane.xlu1 %3608  ;;  %v2424_v39 = vmul.f32 0.7, %v2392_v61  ;;  %v8283_v13 = vpop.xlane.xlu0 %3569  ;;  %v3189_v61 = vsel %vm10417_vm5, %v3097_v49, inf  ;;  %vm10468_vm5 = vmmov %vm10455_vm4 }
 0x48b   :  { %2876 = vperm.xlu1 %5713, %v2751_v47   ;;  %v2487_v16 = vmul.f32 1.442695, %v2424_v39  ;;  %v3529_v47 = vadd.f32 %v10418_v9, %v10407_v53 }
 0x48d   :  { %v8268_v2 = vpop.xlane.xlu1 %3166  ;;  %5848 = vpow2.f32 %v2487_v16  ;;  %v8289_v22 = vpop.xlane.xlu0 %3617 }
 0x491   :  { %v8272_v3 = vpop.xlane.xlu1 %3566  ;;  %v8296_v32 = vpop.xlane.xlu0 %3175 }
 0x495   :  { %v8276_v25 = vpop.xlane.xlu1 %3614  ;;  %v8308_v10 = vpop.xlane.xlu0 %3575 }
 0x497   :  { %v5849_v20 = vpop.eup %5848 }
 0x498   :  { %v2752_v62 = vmul.f32 %v5849_v20, %v10406_v60  ;;  %v3589_v20 = vsel %vm10419_vm7, %v3529_v47, inf  ;;  %v3545_v60 = vadd.f32 %v10418_v9, %v10410_v26  ;;  %vm10469_vm7 = vmmov %vm10455_vm4 }
 0x499   :  { %v8281_v41 = vpop.xlane.xlu1 %3172  ;;  %v8319_v39 = vpop.xlane.xlu0 %3623 }
 0x49a   :  { %2879 = vperm.xlu0 %5712, %v2752_v62   ;;  %v3637_v35 = vsel %vm10421_vm2, %v3545_v60, inf  ;;  %vm10470_vm2 = vmmov %vm10455_vm4 }
 0x49d   :  { %v8285_v50 = vpop.xlane.xlu1 %3572  ;;  %v8326_v62 = vpop.xlane.xlu0 %3178 }
 0x4a1   :  { %v8291_v63 = vpop.xlane.xlu1 %3620 }
 0x4a5   :  { %v8298_v15 = vpop.xlane.xlu1 %3133 }
 0x4a9   :  { %v8310_v1 = vpop.xlane.xlu1 %3181 }
 0x4ad   :  { %v8321_v16 = vpop.xlane.xlu1 %3581 }
 0x4af   :  { %3145 = vmin.xlane.f32.xlu1 %v3144_v57  ;;  %v8331_v57 = vpop.xlane.xlu0 %3578 }
 0x4b1   :  { %v8328_v21 = vpop.xlane.xlu1 %3629 }
 0x4b2   :  { %10420 = vst [vmem:[#allocation56_spill] sm:$0xff] %v8328_v21 }
 0x4b3   :  { %3193 = vmin.xlane.f32.xlu1 %v3192_v29  ;;  %v8335_v29 = vpop.xlane.xlu0 %3626 }
 0x4b5   :  { %v8333_v19 = vpop.xlane.xlu1 %3139 }
 0x4b7   :  { %3593 = vmin.xlane.f32.xlu1 %v3592_v59  ;;  %v8339_v28 = vpop.xlane.xlu0 %3136 }
 0x4b9   :  { %3142 = vmin.xlane.f32.xlu0 %v3141_v11  ;;  %v8337_v48 = vpop.xlane.xlu1 %3187 }
 0x4bb   :  { %3641 = vmin.xlane.f32.xlu1 %v3640_v54  ;;  %v8343_v44 = vpop.xlane.xlu0 %3184 }
 0x4bd   :  { %3190 = vmin.xlane.f32.xlu0 %v3189_v61  ;;  %v8341_v34 = vpop.xlane.xlu1 %3587 }
 0x4bf   :  { %v8347_v33 = vpop.xlane.xlu0 %3584 }
 0x4c1   :  { %3590 = vmin.xlane.f32.xlu0 %v3589_v20  ;;  %v8345_v59 = vpop.xlane.xlu1 %3635 }
 0x4c2   :  { %10422 = vst [vmem:[#allocation55_spill] sm:$0xff] %v8345_v59 }
 0x4c3   :  { %v8351_v49 = vpop.xlane.xlu0 %3632 }
 0x4c4   :  { %10424 = vst [vmem:[#allocation66_spill] sm:$0xff] %v8351_v49 }
 0x4c5   :  { %3638 = vmin.xlane.f32.xlu0 %v3637_v35 }
 0x4c6   :  { %v8349_v11 = vpop.permute.xlu1 %2789 }
 0x4c7   :  { %10423 = vst [vmem:[#allocation58_spill] sm:$0xff] %v8349_v11  ;;  %v8355_v61 = vpop.permute.xlu0 %2786 }
 0x4c8   :  { %10426 = vst [vmem:[#allocation67_spill] sm:$0xff] %v8355_v61 }
 0x4ca   :  { %v8353_v54 = vpop.permute.xlu1 %2792 }
 0x4cb   :  { %10425 = vst [vmem:[#allocation60_spill] sm:$0xff] %v8353_v54  ;;  %v8359_v47 = vpop.permute.xlu0 %2795 }
 0x4cc   :  { %10428 = vst [vmem:[#allocation62_spill] sm:$0xff] %v8359_v47 }
 0x4ce   :  { %v8357_v9 = vpop.permute.xlu1 %2798 }
 0x4cf   :  { %10427 = vst [vmem:[#allocation61_spill] sm:$0xff] %v8357_v9  ;;  %v8363_v60 = vpop.permute.xlu0 %2801 }
 0x4d0   :  { %10430 = vst [vmem:[#allocation68_spill] sm:$0xff] %v8363_v60 }
 0x4d2   :  { %v8361_v20 = vpop.permute.xlu1 %2804 }
 0x4d3   :  { %10429 = vst [vmem:[#allocation63_spill] sm:$0xff] %v8361_v20  ;;  %v8367_v26 = vpop.permute.xlu0 %2807 }
 0x4d4   :  { %10432 = vst [vmem:[#allocation57_spill] sm:$0xff] %v8367_v26 }
 0x4d6   :  { %v8365_v35 = vpop.permute.xlu1 %2810 }
 0x4d7   :  { %10431 = vst [vmem:[#allocation54_spill] sm:$0xff] %v8365_v35  ;;  %v8371_v11 = vpop.permute.xlu0 %2813 }
 0x4d8   :  { %10434 = vst [vmem:[#allocation59_spill] sm:$0xff] %v8371_v11 }
 0x4da   :  { %v8369_v53 = vpop.permute.xlu1 %2816 }
 0x4db   :  { %10433 = vst [vmem:[#allocation53_spill] sm:$0xff] %v8369_v53  ;;  %v8375_v54 = vpop.permute.xlu0 %2819 }
 0x4dc   :  { %10436 = vst [vmem:[#allocation70_spill] sm:$0xff] %v8375_v54 }
 0x4df   :  { %v8379_v9 = vpop.permute.xlu0 %2825 }
 0x4e0   :  { %10438 = vst [vmem:[#allocation72_spill] sm:$0xff] %v8379_v9 }
 0x4e2   :  { %v8373_v59 = vpop.permute.xlu1 %2822 }
 0x4e3   :  { %10435 = vst [vmem:[#allocation69_spill] sm:$0xff] %v8373_v59  ;;  %v8383_v20 = vpop.permute.xlu0 %2831 }
 0x4e4   :  { %10440 = vst [vmem:[#allocation74_spill] sm:$0xff] %v8383_v20 }
 0x4e6   :  { %v8377_v61 = vpop.permute.xlu1 %2828 }
 0x4e7   :  { %10437 = vst [vmem:[#allocation71_spill] sm:$0xff] %v8377_v61  ;;  %v8387_v35 = vpop.permute.xlu0 %2837 }
 0x4e8   :  { %10442 = vst [vmem:[#allocation76_spill] sm:$0xff] %v8387_v35 }
 0x4eb   :  { %v8381_v47 = vpop.permute.xlu1 %2834  ;;  %v8391_v53 = vpop.permute.xlu0 %2843 }
 0x4ec   :  { %10439 = vst [vmem:[#allocation73_spill] sm:$0xff] %v8381_v47  ;;  %10444 = vst [vmem:[#allocation78_spill] sm:$0xff] %v8391_v53  ;;  %v10449_v47 = vld [vmem:[#allocation29_spill] sm:$0xff]  ;;  %v10452_v53 = vld [vmem:[#allocation64_spill] sm:$0xff] }
 0x4ed   :  { %v3239_v20 = vrot.slane %v8047_v27, %v10449_v47  ;;  %v3257_v27 = vrot.slane %v8111_v4, %v10449_v47 }
 0x4ef   :  { %v8395_v59 = vpop.permute.xlu0 %2849 }
 0x4f0   :  { %v8385_v60 = vpop.permute.xlu1 %2840  ;;  %10446 = vst [vmem:[#allocation80_spill] sm:$0xff] %v8395_v59 }
 0x4f1   :  { %10441 = vst [vmem:[#allocation75_spill] sm:$0xff] %v8385_v60  ;;  %v10450_v60 = vld [vmem:[#allocation30_spill] sm:$0xff] }
 0x4f2   :  { %v3243_v35 = vrot.slane %v8106_v52, %v10450_v60  ;;  %v3306_v4 = vrot.slane %v8200_v43, %v10450_v60  ;;  %v3754_v43 = vrot.slane %v8253_v55, %v10450_v60 }
 0x4f3   :  { %v8399_v61 = vpop.permute.xlu0 %2855 }
 0x4f4   :  { %v3244_v52 = vsel %vm10455_vm4, %v3243_v35, %v3239_v20  ;;  %v3275_v35 = vrot.slane %v8169_v36, %v10449_v47  ;;  %vm10471_vm4 = vmmov %vm10470_vm2 }
 0x4f6   :  { %v8389_v26 = vpop.permute.xlu1 %2846 }
 0x4f7   :  { %10443 = vst [vmem:[#allocation77_spill] sm:$0xff] %v8389_v26  ;;  %v8407_v21 = vpop.permute.xlu0 %2861  ;;  %v3230_v26 = vrot.slane %v10452_v53, %v10449_v47  ;;  %v3266_v53 = vrot.slane %v8147_v12, %v10449_v47 }
 0x4f8   :  { %10451 = vst [vmem:[#allocation29_spill] sm:$0xff] %v8407_v21  ;;  %v3261_v21 = vrot.slane %v8151_v23, %v10450_v60  ;;  %v3682_v23 = vrot.slane %v8239_v58, %v10450_v60  ;;  %v3763_v58 = vrot.slane %v8261_v30, %v10450_v60  ;;  %v3324_v30 = vrot.slane %v8266_v24, %v10450_v60 }
 0x4f9   :  { %v3700_v24 = vrot.slane %v8270_v40, %v10450_v60  ;;  %v3333_v40 = vrot.slane %v8279_v7, %v10450_v60  ;;  %v3342_v7 = vrot.slane %v8296_v32, %v10450_v60  ;;  %v3790_v32 = vrot.slane %v8319_v39, %v10450_v60 }
 0x4fa   :  { %v8393_v11 = vpop.permute.xlu1 %2852 }
 0x4fb   :  { %10445 = vst [vmem:[#allocation79_spill] sm:$0xff] %v8393_v11  ;;  %v10453_v11 = vld [vmem:[#allocation65_spill] sm:$0xff]  ;;  %v8437_v20 = vpop.permute.xlu0 %2867 }
 0x4fc   :  { %v3234_v59 = vrot.slane %v10453_v11, %v10450_v60  ;;  %v3315_v11 = vrot.slane %v8227_v46, %v10450_v60 }
 0x4fe   :  { %v8397_v54 = vpop.permute.xlu1 %2858 }
 0x4ff   :  { %10447 = vst [vmem:[#allocation81_spill] sm:$0xff] %v8397_v54  ;;  %v3248_v54 = vrot.slane %v8075_v0, %v10449_v47  ;;  %v3270_v0 = vrot.slane %v8167_v8, %v10450_v60  ;;  %v3691_v8 = vrot.slane %v8246_v51, %v10450_v60 }
 0x502   :  { %v8401_v9 = vpop.permute.xlu1 %2864 }
 0x503   :  { %10448 = vst [vmem:[#allocation82_spill] sm:$0xff] %v8401_v9  ;;  %v3252_v9 = vrot.slane %v8129_v17, %v10450_v60  ;;  %v3311_v17 = vrot.slane %v8206_v37, %v10449_v47  ;;  %v3302_v37 = vrot.slane %v8192_v38, %v10449_v47  ;;  %v3750_v38 = vrot.slane %v8244_v45, %v10449_v47 }
 0x505   :  { %v3253_v46 = vsel %vm10458_vm13, %v3252_v9, %v3248_v54  ;;  %v3271_v54 = vsel %vm10460_vm9, %v3270_v0, %v3266_v53  ;;  %v3316_v51 = vsel %vm10461_vm6, %v3315_v11, %v3311_v17  ;;  %v3320_v9 = vrot.slane %v8256_v5, %v10449_v47  ;;  %vm10474_vm13 = vmmov %vm10462_vm3 }
 0x506   :  { %v8413_v49 = vpop.permute.xlu1 %2870  ;;  %v3307_v45 = vsel %vm10464_vm11, %v3306_v4, %v3302_v37  ;;  %v3772_v5 = vrot.slane %v8274_v6, %v10450_v60  ;;  %v3755_v36 = vsel %vm10468_vm5, %v3754_v43, %v3750_v38  ;;  %v3696_v17 = vrot.slane %v8259_v42, %v10449_v47  ;;  %vm10476_vm9 = vmmov %vm10470_vm2 }
 0x507   :  { %10454 = vst [vmem:[#allocation30_spill] sm:$0xff] %v8413_v49  ;;  %v3235_v49 = vsel %vm10456_vm15, %v3234_v59, %v3230_v26  ;;  %v3262_v26 = vsel %vm10459_vm12, %v3261_v21, %v3257_v27  ;;  %v3687_v59 = vrot.slane %v8236_v14, %v10449_v47  ;;  %v3759_v21 = vrot.slane %v8250_v18, %v10449_v47  ;;  %vm10472_vm15 = vmmov %vm10466_vm10 }
 0x508   :  { %v3371_v12 = vsel %vm10457_vm14, %v3244_v52, %v3235_v49  ;;  %v3678_v14 = vrot.slane %v8223_v31, %v10449_v47  ;;  %v3378_v52 = vsel %vm10466_vm10, %v3316_v51, %v3307_v45  ;;  %v8476_v31 = vpop.permute.xlu0 %2873  ;;  %v3709_v6 = vrot.slane %v8283_v13, %v10450_v60  ;;  %vm10473_vm14 = vmmov %vm10466_vm10 }
 0x509   :  { %v3372_v55 = vsel %vm10462_vm3, %v3253_v46, %v3371_v12  ;;  %v3692_v53 = vsel %vm10467_vm8, %v3691_v8, %v3687_v59  ;;  %v3764_v0 = vsel %vm10469_vm7, %v3763_v58, %v3759_v21  ;;  %v3325_v12 = vsel %vm10471_vm4, %v3324_v30, %v3320_v9  ;;  %vm10475_vm12 = vmmov %vm10470_vm2 }
 0x50a   :  { %v8452_v49 = vpop.permute.xlu1 %2876  ;;  %v3373_v27 = vsel %vm10463_vm0, %v3262_v26, %v3372_v55  ;;  %v3683_v4 = vsel %vm10470_vm2, %v3682_v23, %v3678_v14  ;;  %v3329_v46 = vrot.slane %v8268_v2, %v10449_v47  ;;  %v3781_v37 = vrot.slane %v8289_v22, %v10450_v60  ;;  %vm10477_vm6 = vmmov %vm10470_vm2 }
 0x50b   :  { %v3374_v18 = vsel %vm10465_vm1, %v3271_v54, %v3373_v27  ;;  %v3819_v8 = vsel %vm10472_vm15, %v3692_v53, %v3683_v4  ;;  %v3279_v42 = vrot.slane %v8298_v15, %v10450_v60  ;;  %v8498_v23 = vsel %vm10473_vm14, %v3764_v0, %v3755_v36  ;;  %vm10478_vm0 = vmmov %vm10470_vm2 }
 0x50c   :  { %v3284_v2 = vrot.slane %v8339_v28, %v10449_v47  ;;  %v3288_v26 = vrot.slane %v8333_v19, %v10450_v60  ;;  %v3379_v13 = vsel %vm10474_vm13, %v3325_v12, %v3378_v52  ;;  %v3701_v22 = vsel %vm10475_vm12, %v3700_v24, %v3696_v17  ;;  %vm10479_vm11 = vmmov %vm10478_vm0 }
 0x50d   :  { %v3718_v15 = vrot.slane %v8308_v10, %v10450_v60  ;;  %v3768_v58 = vrot.slane %v8264_v56, %v10449_v47  ;;  %v3334_v28 = vsel %vm10476_vm9, %v3333_v40, %v3329_v46  ;;  %v3705_v19 = vrot.slane %v8272_v3, %v10449_v47  ;;  %vm10481_vm10 = vmmov %vm10478_vm0  ;;  %v10491_v40 = vld [vmem:[#allocation13_spill] sm:$0xff] }
 0x50e   :  { %v3338_v59 = vrot.slane %v8281_v41, %v10449_v47  ;;  %v3347_v51 = vrot.slane %v8326_v62, %v10449_v47  ;;  %v3280_v10 = vsel %vm10477_vm6, %v3279_v42, %v3275_v35  ;;  %v3351_v56 = vrot.slane %v8310_v1, %v10450_v60  ;;  %vm10482_vm8 = vmmov %vm10478_vm0 }
 0x50f   :  { %v3820_v21 = vsel %vm10462_vm3, %v3701_v22, %v3819_v8  ;;  %v3356_v55 = vrot.slane %v8343_v44, %v10449_v47  ;;  %v3289_v3 = vsel %vm10478_vm0, %v3288_v26, %v3284_v2  ;;  %v3360_v41 = vrot.slane %v8337_v48, %v10450_v60  ;;  %vm10484_vm7 = vmmov %vm10478_vm0  ;;  %v10496_v2 = vld [vmem:[#allocation14_spill] sm:$0xff] }
 0x510   :  { %v3773_v62 = vsel %vm10479_vm11, %v3772_v5, %v3768_v58  ;;  %vm10480_vm1 = vcmask 1043459   ;;  %v3723_v1 = vrot.slane %v8331_v57, %v10449_v47  ;;  %v3710_v35 = vsel %vm10481_vm10, %v3709_v6, %v3705_v19  ;;  %vm10486_vm4 = vmmov %vm10478_vm0  ;;  %v10500_v58 = vld [vmem:[#allocation66_spill] sm:$0xff] }
 0x511   :  { %v3380_v14 = vsel %vm10480_vm1, %v3334_v28, %v3379_v13  ;;  %v3795_v44 = vrot.slane %v8335_v29, %v10449_v47  ;;  %v3343_v27 = vsel %vm10482_vm8, %v3342_v7, %v3338_v59  ;;  %vm10483_vm5 = vcmask 1045509   ;;  %vm10487_vm15 = vmmov %vm10478_vm0 }
 0x512   :  { %v3375_v45 = vsel %vm10483_vm5, %v3280_v10, %v3374_v18  ;;  %v3352_v48 = vsel %vm10484_vm7, %v3351_v56, %v3347_v51  ;;  %vm10485_vm2 = vcmask 1046534   ;;  %v3777_v57 = vrot.slane %v8276_v25, %v10449_v47  ;;  %vm10489_vm13 = vmmov %vm10480_vm1  ;;  %v10504_v10 = vld [vmem:[#allocation55_spill] sm:$0xff] }
 0x513   :  { %v3376_v52 = vsel %vm10485_vm2, %v3289_v3, %v3375_v45  ;;  %v3361_v29 = vsel %vm10487_vm15, %v3360_v41, %v3356_v55  ;;  %vm10488_vm14 = vcmask 1047559   ;;  %v3821_v0 = vsel %vm10489_vm13, %v3710_v35, %v3820_v21  ;;  %vm10492_vm9 = vmmov %vm10483_vm5  ;;  %v10507_v3 = vld [vmem:[#allocation21_spill] sm:$0xff] }
 0x514   :  { %vm10490_vm12 = vcmask 1044484   ;;  %v3732_v25 = vrot.slane %v8347_v33, %v10449_v47  ;;  %v3727_v46 = vrot.slane %v8321_v16, %v10450_v60  ;;  %v3736_v8 = vrot.slane %v8341_v34, %v10450_v60  ;;  %vm10493_vm6 = vmmov %vm10485_vm2 }
 0x515   :  { %v3381_v17 = vsel %vm10490_vm12, %v3343_v27, %v3380_v14  ;;  %vm10494_vm3 = vmmov %vm10478_vm0  ;;  %vm10495_vm0 = vcmask 130048   ;;  %v3786_v22 = vrot.slane %v8291_v63, %v10449_v47  ;;  %v3804_v28 = vrot.slane %v10500_v58, %v10449_v47 }
 0x516   :  { %vm10497_vm11 = vmmov %vm10494_vm3  ;;  %v3808_v56 = vrot.slane %v10504_v10, %v10450_v60 }
 0x517   :  { %v3782_v13 = vsel %vm10497_vm11, %v3781_v37, %v3777_v57  ;;  %vm10498_vm1 = vmmov %vm10494_vm3  ;;  %v10519_v57 = vld [vmem:[#allocation22_spill] sm:$0xff] }
 0x518   :  { %vm10499_vm10 = vmmov %vm10488_vm14 }
 0x519   :  { %v8506_v43 = vpop.permute.xlu0 %2879  ;;  %vm10501_vm8 = vmmov %vm10498_vm1 }
 0x51a   :  { %vm10503_vm5 = vmmov %vm10498_vm1 }
 0x51b   :  { %v3737_v51 = vsel %vm10503_vm5, %v3736_v8, %v3732_v25  ;;  %vm10505_vm7 = vmmov %vm10495_vm0 }
 0x51c   :  { %vm10506_vm2 = vmmov %vm10495_vm0 }
 0x51d   :  { %vm10509_vm15 = vmmov %vm10490_vm12 }
 0x51e   :  { %vm10511_vm13 = vmmov %vm10492_vm9 }
 0x51f   :  { %vm10512_vm12 = vmmov %vm10498_vm1 }
 0x520   :  { %vm10517_vm11 = vmmov %vm10506_vm2 }
 0x521   :  { %vm10522_vm5 = vmmov %vm10511_vm13 }
 0x53c   :  { %v3146_v11 = vpop.xlane.xlu1 %3145 }
 0x53d   :  { %v3297_v38 = vrot.slane %v3146_v11, %v10450_v60  ;;  %v3714_v11 = vrot.slane %v8285_v50, %v10449_v47  ;;  %v3382_v50 = vsel %vm10492_vm9, %v3352_v48, %v3381_v17  ;;  %vm10513_vm9 = vcmask 1043459  }
 0x53e   :  { %v3383_v6 = vsel %vm10493_vm6, %v3361_v29, %v3382_v50  ;;  %vm10514_vm6 = vmmov %vm10498_vm1 }
 0x53f   :  { %v3719_v33 = vsel %vm10498_vm1, %v3718_v15, %v3714_v11  ;;  %v3728_v15 = vsel %vm10501_vm8, %v3727_v46, %v3723_v1  ;;  %vm10521_vm8 = vcmask 1047559  }
 0x540   :  { %v3194_v54 = vpop.xlane.xlu1 %3193  ;;  %v3822_v1 = vsel %vm10509_vm15, %v3719_v33, %v3821_v0 }
 0x541   :  { %v3369_v53 = vrot.slane %v3194_v54, %v10450_v60  ;;  %v10502_v54 = vld [vmem:[#allocation56_spill] sm:$0xff]  ;;  %v3823_v27 = vsel %vm10511_vm13, %v3728_v15, %v3822_v1 }
 0x542   :  { %v3799_v63 = vrot.slane %v10502_v54, %v10450_v60 }
 0x544   :  { %v3594_v36 = vpop.xlane.xlu1 %3593 }
 0x545   :  { %v3745_v19 = vrot.slane %v3594_v36, %v10450_v60 }
 0x546   :  { %v3143_v30 = vpop.xlane.xlu0 %3142 }
 0x547   :  { %v3293_v9 = vrot.slane %v3143_v30, %v10449_v47 }
 0x549   :  { %v3298_v24 = vsel %vm10486_vm4, %v3297_v38, %v3293_v9  ;;  %v3642_v38 = vpop.xlane.xlu1 %3641  ;;  %vm10508_vm4 = vcmask 1042434  }
 0x54a   :  { %v8553_v5 = vsel %vm10488_vm14, %v3298_v24, %v3376_v52  ;;  %v3191_v18 = vpop.xlane.xlu0 %3190  ;;  %v3827_v14 = vsel %vm10508_vm4, %v3773_v62, %v8498_v23  ;;  %vm10510_vm14 = vmmov %vm10498_vm1  ;;  %v3817_v48 = vrot.slane %v3642_v38, %v10450_v60  ;;  %v3800_v62 = vsel %vm10514_vm6, %v3799_v63, %v3795_v44 }
 0x54b   :  { %v3365_v4 = vrot.slane %v3191_v18, %v10449_v47  ;;  %v3387_v12 = vadd.f32 %v8553_v5, %v10491_v40  ;;  %v3389_v26 = vadd.f32 %v8553_v5, %v10496_v2  ;;  %v3403_v41 = vadd.f32 %v8553_v5, %v10507_v3 }
 0x54c   :  { %v3791_v9 = vsel %vm10510_vm14, %v3790_v32, %v3786_v22  ;;  %v3828_v23 = vsel %vm10513_vm9, %v3782_v13, %v3827_v14  ;;  %v3405_v11 = vadd.f32 %v8553_v5, %v10519_v57  ;;  %vm10527_vm14 = vmmov %vm10521_vm8 }
 0x54d   :  { %v3370_v42 = vsel %vm10494_vm3, %v3369_v53, %v3365_v4  ;;  %v3419_v7 = vsel %vm10495_vm0, %v3387_v12, inf  ;;  %v3425_v21 = vsel %vm10505_vm7, %v3389_v26, inf  ;;  %vm10515_vm3 = vcmask 1046534   ;;  %vm10516_vm0 = vmmov %vm10498_vm1 }
 0x54e   :  { %v8577_v16 = vsel %vm10499_vm10, %v3370_v42, %v3383_v6  ;;  %3420 = vmin.xlane.f32.xlu0 %v3419_v7  ;;  %v3591_v34 = vpop.xlane.xlu0 %3590  ;;  %v3824_v24 = vsel %vm10515_vm3, %v3737_v51, %v3823_v27  ;;  %v3809_v39 = vsel %vm10516_vm0, %v3808_v56, %v3804_v28  ;;  %v3467_v32 = vsel %vm10517_vm11, %v3403_v41, inf  ;;  %vm10518_vm1 = vmmov %vm10506_vm2  ;;  %v10539_v51 = vld [vmem:[#allocation23_spill] sm:$0xff]  ;;  %v10546_v27 = vld [vmem:[#allocation17_spill] sm:$0xff] }
 0x54f   :  { %v3741_v59 = vrot.slane %v3591_v34, %v10449_v47  ;;  %v3388_v37 = vadd.f32 %v8577_v16, %v10491_v40  ;;  %v3390_v30 = vadd.f32 %v8577_v16, %v10496_v2  ;;  %v3404_v29 = vadd.f32 %v8577_v16, %v10507_v3  ;;  %vm10520_vm10 = vmmov %vm10509_vm15 }
 0x550   :  { %v3829_v18 = vsel %vm10520_vm10, %v3791_v9, %v3828_v23  ;;  %vm10523_vm7 = vmmov %vm10516_vm0  ;;  %v3406_v25 = vadd.f32 %v8577_v16, %v10519_v57  ;;  %v3407_v10 = vadd.f32 %v8553_v5, %v10539_v51 }
 0x551   :  { %v3422_v55 = vsel %vm10506_vm2, %v3388_v37, inf  ;;  %v3746_v45 = vsel %vm10512_vm12, %v3745_v19, %v3741_v59  ;;  %v3428_v53 = vsel %vm10518_vm1, %v3390_v30, inf  ;;  %v3830_v44 = vsel %vm10522_vm5, %v3800_v62, %v3829_v18  ;;  %vm10524_vm2 = vmmov %vm10515_vm3  ;;  %v10536_v37 = vld [vmem:[#allocation15_spill] sm:$0xff]  ;;  %v10549_v62 = vld [vmem:[#allocation24_spill] sm:$0xff] }
 0x552   :  { %3426 = vmin.xlane.f32.xlu0 %v3425_v21  ;;  %3423 = vmin.xlane.f32.xlu1 %v3422_v55  ;;  %v3639_v35 = vpop.xlane.xlu0 %3638  ;;  %v8620_v36 = vsel %vm10521_vm8, %v3746_v45, %v3824_v24  ;;  %v3831_v17 = vsel %vm10524_vm2, %v3809_v39, %v3830_v44  ;;  %vm10525_vm4 = vmmov %vm10518_vm1  ;;  %v3392_v56 = vadd.f32 %v8577_v16, %v10536_v37 }
 0x553   :  { %v3813_v52 = vrot.slane %v3639_v35, %v10449_v47  ;;  %v3473_v4 = vsel %vm10525_vm4, %v3405_v11, inf  ;;  %vm10526_vm15 = vmmov %vm10518_vm1  ;;  %v3835_v50 = vadd.f32 %v8620_v36, %v10491_v40  ;;  %v3837_v42 = vadd.f32 %v8620_v36, %v10496_v2 }
 0x554   :  { %v3470_v12 = vsel %vm10526_vm15, %v3404_v29, inf  ;;  %vm10528_vm13 = vmmov %vm10518_vm1  ;;  %v3851_v33 = vadd.f32 %v8620_v36, %v10507_v3  ;;  %v3839_v55 = vadd.f32 %v8620_v36, %v10536_v37  ;;  %v3855_v14 = vadd.f32 %v8620_v36, %v10539_v51 }
 0x555   :  { %v3818_v0 = vsel %vm10523_vm7, %v3817_v48, %v3813_v52  ;;  %v3476_v8 = vsel %vm10528_vm13, %v3406_v25, inf  ;;  %vm10529_vm12 = vmmov %vm10518_vm1  ;;  %v3393_v45 = vadd.f32 %v8553_v5, %v10546_v27  ;;  %v3409_v24 = vadd.f32 %v8553_v5, %v10549_v62 }
 0x556   :  { %3468 = vmin.xlane.f32.xlu0 %v3467_v32  ;;  %3429 = vmin.xlane.f32.xlu1 %v3428_v53  ;;  %v8632_v46 = vsel %vm10527_vm14, %v3818_v0, %v3831_v17  ;;  %v3867_v6 = vsel %vm10529_vm12, %v3835_v50, inf  ;;  %vm10530_vm9 = vmmov %vm10518_vm1  ;;  %v3394_v39 = vadd.f32 %v8577_v16, %v10546_v27  ;;  %v3410_v11 = vadd.f32 %v8577_v16, %v10549_v62 }
 0x557   :  { %v3836_v7 = vadd.f32 %v8632_v46, %v10491_v40  ;;  %v3873_v26 = vsel %vm10530_vm9, %v3837_v42, inf  ;;  %vm10531_vm6 = vmmov %vm10518_vm1  ;;  %v3838_v22 = vadd.f32 %v8632_v46, %v10496_v2  ;;  %v3853_v40 = vadd.f32 %v8620_v36, %v10519_v57  ;;  %v10558_v42 = vld [vmem:[#allocation25_spill] sm:$0xff] }
 0x558   :  { %vm10532_vm3 = vmmov %vm10518_vm1  ;;  %v3852_v28 = vadd.f32 %v8632_v46, %v10507_v3  ;;  %v3391_v2 = vadd.f32 %v8553_v5, %v10536_v37  ;;  %v3854_v15 = vadd.f32 %v8632_v46, %v10519_v57  ;;  %v3408_v3 = vadd.f32 %v8577_v16, %v10539_v51 }
 0x559   :  { %v3870_v13 = vsel %vm10531_vm6, %v3836_v7, inf  ;;  %v3915_v34 = vsel %vm10532_vm3, %v3851_v33, inf  ;;  %vm10533_vm0 = vmmov %vm10518_vm1  ;;  %v3840_v1 = vadd.f32 %v8632_v46, %v10536_v37  ;;  %v3856_v48 = vadd.f32 %v8632_v46, %v10539_v51 }
 0x55a   :  { %3474 = vmin.xlane.f32.xlu0 %v3473_v4  ;;  %3471 = vmin.xlane.f32.xlu1 %v3470_v12  ;;  %v3876_v58 = vsel %vm10533_vm0, %v3838_v22, inf  ;;  %vm10534_vm11 = vmmov %vm10533_vm0  ;;  %v3841_v57 = vadd.f32 %v8620_v36, %v10546_v27  ;;  %v3488_v18 = vsel %vm10533_vm0, %v3410_v11, inf  ;;  %v3857_v44 = vadd.f32 %v8620_v36, %v10549_v62  ;;  %v10555_v12 = vld [vmem:[#allocation16_spill] sm:$0xff]  ;;  %v10579_v11 = vld [vmem:[#allocation62_spill] sm:$0xff] }
 0x55b   :  { %v3921_v19 = vsel %vm10534_vm11, %v3853_v40, inf  ;;  %vm10535_vm1 = vmmov %vm10533_vm0  ;;  %v3842_v0 = vadd.f32 %v8632_v46, %v10546_v27  ;;  %v3395_v25 = vadd.f32 %v8553_v5, %v10555_v12  ;;  %v3858_v50 = vadd.f32 %v8632_v46, %v10549_v62 }
 0x55c   :  { %v3918_v59 = vsel %vm10535_vm1, %v3852_v28, inf  ;;  %vm10537_vm10 = vmmov %vm10533_vm0  ;;  %v3411_v7 = vadd.f32 %v8553_v5, %v10558_v42  ;;  %v3843_v22 = vadd.f32 %v8620_v36, %v10555_v12  ;;  %v3859_v28 = vadd.f32 %v8620_v36, %v10558_v42 }
 0x55d   :  { %v3431_v54 = vsel %vm10537_vm10, %v3391_v2, inf  ;;  %vm10538_vm8 = vmmov %vm10533_vm0  ;;  %v10565_v2 = vld [vmem:[#allocation18_spill] sm:$0xff] }
 0x55e   :  { %3477 = vmin.xlane.f32.xlu1 %v3476_v8  ;;  %3868 = vmin.xlane.f32.xlu0 %v3867_v6  ;;  %v3924_v63 = vsel %vm10538_vm8, %v3854_v15, inf  ;;  %vm10540_vm5 = vmmov %vm10533_vm0  ;;  %v3397_v15 = vadd.f32 %v8553_v5, %v10565_v2 }
 0x55f   :  { %v3479_v38 = vsel %vm10540_vm5, %v3407_v10, inf  ;;  %vm10541_vm7 = vmmov %vm10533_vm0  ;;  %v10568_v10 = vld [vmem:[#allocation26_spill] sm:$0xff] }
 0x560   :  { %v3434_v21 = vsel %vm10541_vm7, %v3392_v56, inf  ;;  %vm10542_vm2 = vmmov %vm10533_vm0  ;;  %v3413_v56 = vadd.f32 %v8553_v5, %v10568_v10 }
 0x561   :  { %v3879_v41 = vsel %vm10542_vm2, %v3839_v55, inf  ;;  %vm10543_vm4 = vmmov %vm10533_vm0 }
 0x562   :  { %3874 = vmin.xlane.f32.xlu0 %v3873_v26  ;;  %3871 = vmin.xlane.f32.xlu1 %v3870_v13  ;;  %v3482_v30 = vsel %vm10543_vm4, %v3408_v3, inf  ;;  %vm10544_vm15 = vmmov %vm10533_vm0  ;;  %v3396_v26 = vadd.f32 %v8577_v16, %v10555_v12  ;;  %v3845_v3 = vadd.f32 %v8620_v36, %v10565_v2 }
 0x563   :  { %v3927_v9 = vsel %vm10544_vm15, %v3855_v14, inf  ;;  %vm10545_vm14 = vmmov %vm10533_vm0 }
 0x564   :  { %v3882_v35 = vsel %vm10545_vm14, %v3840_v1, inf  ;;  %vm10547_vm13 = vmmov %vm10533_vm0  ;;  %v3861_v1 = vadd.f32 %v8620_v36, %v10568_v10 }
 0x565   :  { %v3437_v52 = vsel %vm10547_vm13, %v3393_v45, inf  ;;  %vm10548_vm12 = vmmov %vm10533_vm0  ;;  %v10574_v45 = vld [vmem:[#allocation19_spill] sm:$0xff] }
 0x566   :  { %3916 = vmin.xlane.f32.xlu0 %v3915_v34  ;;  %3877 = vmin.xlane.f32.xlu1 %v3876_v58  ;;  %v3930_v23 = vsel %vm10548_vm12, %v3856_v48, inf  ;;  %vm10550_vm9 = vmmov %vm10533_vm0  ;;  %v3412_v34 = vadd.f32 %v8577_v16, %v10558_v42  ;;  %v3399_v48 = vadd.f32 %v8553_v5, %v10574_v45 }
 0x567   :  { %v3485_v32 = vsel %vm10550_vm9, %v3409_v24, inf  ;;  %vm10551_vm6 = vmmov %vm10533_vm0 }
 0x568   :  { %v3440_v53 = vsel %vm10551_vm6, %v3394_v39, inf  ;;  %vm10552_vm3 = vmmov %vm10533_vm0 }
 0x569   :  { %v3885_v29 = vsel %vm10552_vm3, %v3841_v57, inf  ;;  %vm10553_vm11 = vmmov %vm10533_vm0  ;;  %v3400_v57 = vadd.f32 %v8577_v16, %v10574_v45 }
 0x56a   :  { %3922 = vmin.xlane.f32.xlu0 %v3921_v19  ;;  %3919 = vmin.xlane.f32.xlu1 %v3918_v59  ;;  %v3933_v17 = vsel %vm10553_vm11, %v3857_v44, inf  ;;  %vm10554_vm1 = vmmov %vm10533_vm0  ;;  %v3844_v19 = vadd.f32 %v8632_v46, %v10555_v12 }
 0x56b   :  { %v3888_v4 = vsel %vm10554_vm1, %v3842_v0, inf  ;;  %vm10556_vm10 = vmmov %vm10533_vm0  ;;  %v10581_v0 = vld [vmem:[#allocation61_spill] sm:$0xff] }
 0x56c   :  { %v3443_v8 = vsel %vm10556_vm10, %v3395_v25, inf  ;;  %vm10557_vm8 = vmmov %vm10533_vm0  ;;  %v10583_v25 = vld [vmem:[#allocation68_spill] sm:$0xff] }
 0x56d   :  { %v3936_v6 = vsel %vm10557_vm8, %v3858_v50, inf  ;;  %vm10559_vm5 = vmmov %vm10533_vm0  ;;  %v2906_v50 = vrot.slane %v10583_v25, %v10450_v60 }
 0x56e   :  { %3432 = vmin.xlane.f32.xlu0 %v3431_v54  ;;  %3925 = vmin.xlane.f32.xlu1 %v3924_v63  ;;  %v3491_v13 = vsel %vm10559_vm5, %v3411_v7, inf  ;;  %vm10560_vm7 = vmmov %vm10533_vm0  ;;  %v3860_v54 = vadd.f32 %v8632_v46, %v10558_v42  ;;  %vm10584_vm5 = vcmask 130112   ;;  %v3847_v7 = vadd.f32 %v8620_v36, %v10574_v45 }
 0x56f   :  { %v3446_v33 = vsel %vm10560_vm7, %v3396_v26, inf  ;;  %vm10561_vm2 = vmmov %vm10533_vm0 }
 0x570   :  { %v3891_v58 = vsel %vm10561_vm2, %v3843_v22, inf  ;;  %vm10562_vm4 = vmmov %vm10533_vm0  ;;  %v10588_v22 = vld [vmem:[#allocation54_spill] sm:$0xff] }
 0x571   :  { %v3494_v40 = vsel %vm10562_vm4, %v3412_v34, inf  ;;  %vm10563_vm15 = vmmov %vm10533_vm0  ;;  %v2920_v34 = vrot.slane %v10588_v22, %v10449_v47 }
 0x572   :  { %3480 = vmin.xlane.f32.xlu0 %v3479_v38  ;;  %3435 = vmin.xlane.f32.xlu1 %v3434_v21  ;;  %v3939_v59 = vsel %vm10563_vm15, %v3859_v28, inf  ;;  %vm10564_vm14 = vmmov %vm10533_vm0  ;;  %v3398_v38 = vadd.f32 %v8577_v16, %v10565_v2 }
 0x573   :  { %v3894_v37 = vsel %vm10564_vm14, %v3844_v19, inf  ;;  %vm10566_vm13 = vmmov %vm10533_vm0  ;;  %vm10591_vm14 = vcmask 1041409   ;;  %v10592_v19 = vld [vmem:[#allocation57_spill] sm:$0xff] }
 0x574   :  { %v3449_v63 = vsel %vm10566_vm13, %v3397_v15, inf  ;;  %vm10567_vm12 = vmmov %vm10533_vm0 }
 0x575   :  { %v3942_v51 = vsel %vm10567_vm12, %v3860_v54, inf  ;;  %vm10569_vm9 = vmmov %vm10533_vm0 }
 0x576   :  { %3880 = vmin.xlane.f32.xlu0 %v3879_v41  ;;  %3483 = vmin.xlane.f32.xlu1 %v3482_v30  ;;  %v3497_v21 = vsel %vm10569_vm9, %v3413_v56, inf  ;;  %vm10570_vm6 = vmmov %vm10533_vm0  ;;  %v3414_v41 = vadd.f32 %v8577_v16, %v10568_v10  ;;  %vm10596_vm9 = vcmask 1042434  }
 0x577   :  { %v3452_v55 = vsel %vm10570_vm6, %v3398_v38, inf  ;;  %vm10571_vm3 = vmmov %vm10533_vm0 }
 0x578   :  { %v3897_v30 = vsel %vm10571_vm3, %v3845_v3, inf  ;;  %v3500_v14 = vsel %vm10533_vm0, %v3414_v41, inf  ;;  %vm10572_vm11 = vmmov %vm10533_vm0  ;;  %v10600_v3 = vld [vmem:[#allocation73_spill] sm:$0xff] }
 0x579   :  { %vm10573_vm1 = vmmov %vm10533_vm0  ;;  %v2956_v41 = vrot.slane %v10600_v3, %v10449_v47 }
 0x57a   :  { %3928 = vmin.xlane.f32.xlu0 %v3927_v9  ;;  %3883 = vmin.xlane.f32.xlu1 %v3882_v35  ;;  %v3846_v9 = vadd.f32 %v8632_v46, %v10565_v2  ;;  %v3945_v35 = vsel %vm10572_vm11, %v3861_v1, inf  ;;  %vm10576_vm10 = vmmov %vm10533_vm0  ;;  %v10602_v1 = vld [vmem:[#allocation77_spill] sm:$0xff] }
 0x57b   :  { %v3455_v24 = vsel %vm10576_vm10, %v3399_v48, inf  ;;  %vm10577_vm8 = vmmov %vm10533_vm0 }
 0x57c   :  { %v3900_v27 = vsel %vm10573_vm1, %v3846_v9, inf  ;;  %vm10585_vm7 = vmmov %vm10533_vm0  ;;  %v2974_v9 = vrot.slane %v10602_v1, %v10449_v47 }
 0x57d   :  { %vm10586_vm2 = vmmov %vm10533_vm0 }
 0x57e   :  { %3438 = vmin.xlane.f32.xlu0 %v3437_v52  ;;  %3931 = vmin.xlane.f32.xlu1 %v3930_v23  ;;  %v3862_v52 = vadd.f32 %v8632_v46, %v10568_v10  ;;  %v10575_v23 = vld [vmem:[#allocation60_spill] sm:$0xff]  ;;  %v3458_v42 = vsel %vm10586_vm2, %v3400_v57, inf  ;;  %vm10589_vm4 = vmmov %vm10584_vm5 }
 0x57f   :  { %v2893_v62 = vrot.slane %v10575_v23, %v10449_v47  ;;  %vm10590_vm15 = vmmov %vm10589_vm4  ;;  %v10608_v57 = vld [vmem:[#allocation20_spill] sm:$0xff] }
 0x580   :  { %v3948_v39 = vsel %vm10577_vm8, %v3862_v52, inf  ;;  %vm10594_vm13 = vmmov %vm10533_vm0  ;;  %v10605_v52 = vld [vmem:[#allocation80_spill] sm:$0xff] }
 0x581   :  { %v3903_v15 = vsel %vm10594_vm13, %v3847_v7, inf  ;;  %vm10595_vm12 = vmmov %vm10533_vm0  ;;  %v2978_v23 = vrot.slane %v10605_v52, %v10450_v60  ;;  %vm10626_vm13 = vcmask 1043459  }
 0x582   :  { %3486 = vmin.xlane.f32.xlu0 %v3485_v32  ;;  %3441 = vmin.xlane.f32.xlu1 %v3440_v53  ;;  %v10578_v32 = vld [vmem:[#allocation27_spill] sm:$0xff]  ;;  %vm10597_vm6 = vmmov %vm10589_vm4 }
 0x583   :  { %v3415_v53 = vadd.f32 %v8553_v5, %v10578_v32  ;;  %v3416_v26 = vadd.f32 %v8577_v16, %v10578_v32  ;;  %vm10598_vm3 = vmmov %vm10589_vm4 }
 0x584   :  { %vm10607_vm11 = vmmov %vm10533_vm0 }
 0x585   :  { %v3506_v54 = vsel %vm10595_vm12, %v3416_v26, inf  ;;  %vm10611_vm1 = vmmov %vm10598_vm3  ;;  %v10617_v26 = vld [vmem:[#allocation82_spill] sm:$0xff] }
 0x586   :  { %3886 = vmin.xlane.f32.xlu0 %v3885_v29  ;;  %3489 = vmin.xlane.f32.xlu1 %v3488_v18  ;;  %v2897_v29 = vrot.slane %v10579_v11, %v10450_v60  ;;  %v10580_v18 = vld [vmem:[#allocation58_spill] sm:$0xff]  ;;  %v3401_v11 = vadd.f32 %v8553_v5, %v10608_v57  ;;  %vm10612_vm10 = vmmov %vm10611_vm1 }
 0x587   :  { %v2888_v44 = vrot.slane %v10580_v18, %v10450_v60  ;;  %v10609_v18 = vld [vmem:[#allocation70_spill] sm:$0xff]  ;;  %vm10613_vm8 = vmmov %vm10611_vm1 }
 0x588   :  { %vm10620_vm2 = vmmov %vm10533_vm0 }
 0x589   :  { %vm10627_vm12 = vmmov %vm10611_vm1 }
 0x58a   :  { %3934 = vmin.xlane.f32.xlu0 %v3933_v17  ;;  %3889 = vmin.xlane.f32.xlu1 %v3888_v4  ;;  %v2902_v17 = vrot.slane %v10581_v0, %v10449_v47  ;;  %v10582_v4 = vld [vmem:[#allocation67_spill] sm:$0xff]  ;;  %v10610_v0 = vld [vmem:[#allocation69_spill] sm:$0xff] }
 0x58b   :  { %v2884_v12 = vrot.slane %v10582_v4, %v10449_v47  ;;  %v2987_v4 = vrot.slane %v8399_v61, %v10450_v60  ;;  %v10618_v61 = vld [vmem:[#allocation30_spill] sm:$0xff] }
 0x58e   :  { %3444 = vmin.xlane.f32.xlu0 %v3443_v8  ;;  %3937 = vmin.xlane.f32.xlu1 %v3936_v6  ;;  %v2898_v8 = vsel %vm10584_vm5, %v2897_v29, %v2893_v62  ;;  %v3503_v6 = vsel %vm10585_vm7, %v3415_v53, inf  ;;  %v10606_v62 = vld [vmem:[#allocation79_spill] sm:$0xff]  ;;  %v3864_v29 = vadd.f32 %v8632_v46, %v10578_v32  ;;  %vm10616_vm5 = vmmov %vm10611_vm1 }
 0x58f   :  { %vm10619_vm7 = vmmov %vm10533_vm0 }
 0x590   :  { %v3461_v22 = vsel %vm10619_vm7, %v3401_v11, inf  ;;  %vm10638_vm7 = vmmov %vm10611_vm1 }
 0x592   :  { %3492 = vmin.xlane.f32.xlu0 %v3491_v13  ;;  %3447 = vmin.xlane.f32.xlu1 %v3446_v33  ;;  %v10587_v13 = vld [vmem:[#allocation63_spill] sm:$0xff] }
 0x593   :  { %v2911_v33 = vrot.slane %v10587_v13, %v10449_v47  ;;  %v3001_v13 = vrot.slane %v10617_v26, %v10449_v47 }
 0x596   :  { %3892 = vmin.xlane.f32.xlu0 %v3891_v58  ;;  %3495 = vmin.xlane.f32.xlu1 %v3494_v40  ;;  %v2889_v58 = vsel %vm10589_vm4, %v2888_v44, %v2884_v12  ;;  %v2907_v40 = vsel %vm10590_vm15, %v2906_v50, %v2902_v17  ;;  %v2933_v44 = vrot.slane %v10609_v18, %v10450_v60  ;;  %vm10622_vm4 = vmmov %vm10591_vm14 }
 0x597   :  { %v3025_v28 = vsel %vm10591_vm14, %v2898_v8, %v2889_v58  ;;  %v2938_v17 = vrot.slane %v10610_v0, %v10449_v47  ;;  %v2979_v50 = vsel %vm10613_vm8, %v2978_v23, %v2974_v9  ;;  %v10614_v8 = vld [vmem:[#allocation81_spill] sm:$0xff]  ;;  %v10621_v58 = vld [vmem:[#allocation28_spill] sm:$0xff]  ;;  %vm10624_vm15 = vmmov %vm10596_vm9 }
 0x598   :  { %v3026_v10 = vsel %vm10596_vm9, %v2907_v40, %v3025_v28  ;;  %v3417_v40 = vadd.f32 %v8553_v5, %v10621_v58  ;;  %v3402_v28 = vadd.f32 %v8577_v16, %v10608_v57  ;;  %vm10625_vm14 = vmmov %vm10611_vm1  ;;  %v10632_v9 = vld [vmem:[#allocation74_spill] sm:$0xff] }
 0x599   :  { %vm10628_vm9 = vmmov %vm10611_vm1 }
 0x59a   :  { %3940 = vmin.xlane.f32.xlu0 %v3939_v59  ;;  %3895 = vmin.xlane.f32.xlu1 %v3894_v37  ;;  %v2915_v59 = vrot.slane %v10592_v19, %v10450_v60  ;;  %v10593_v37 = vld [vmem:[#allocation59_spill] sm:$0xff]  ;;  %vm10636_vm8 = vmmov %vm10611_vm1 }
 0x59b   :  { %v2924_v2 = vrot.slane %v10593_v37, %v10450_v60  ;;  %v3014_v37 = vrot.slane %v8476_v31, %v10450_v60  ;;  %v3019_v31 = vrot.slane %v8452_v49, %v10449_v47 }
 0x59c   :  { %v2916_v56 = vsel %vm10597_vm6, %v2915_v59, %v2911_v33  ;;  %v3010_v33 = vrot.slane %v10618_v61, %v10449_v47  ;;  %v3005_v59 = vrot.slane %v8437_v20, %v10450_v60  ;;  %vm10629_vm6 = vmmov %vm10533_vm0 }
 0x59d   :  { %v2925_v38 = vsel %vm10598_vm3, %v2924_v2, %v2920_v34  ;;  %v3954_v34 = vsel %vm10620_vm2, %v3864_v29, inf  ;;  %v10623_v2 = vld [vmem:[#allocation71_spill] sm:$0xff]  ;;  %v3509_v3 = vsel %vm10629_vm6, %v3417_v40, inf  ;;  %vm10630_vm3 = vmmov %vm10533_vm0 }
 0x59e   :  { %3450 = vmin.xlane.f32.xlu0 %v3449_v63  ;;  %3943 = vmin.xlane.f32.xlu1 %v3942_v51  ;;  %v3863_v63 = vadd.f32 %v8620_v36, %v10578_v32  ;;  %v3848_v51 = vadd.f32 %v8632_v46, %v10574_v45  ;;  %v10604_v45 = vld [vmem:[#allocation78_spill] sm:$0xff]  ;;  %v2992_v32 = vrot.slane %v10614_v8, %v10449_v47  ;;  %vm10639_vm2 = vmmov %vm10611_vm1 }
 0x59f   :  { %v2969_v48 = vrot.slane %v10604_v45, %v10450_v60  ;;  %v3015_v20 = vsel %vm10628_vm9, %v3014_v37, %v3010_v33 }
 0x5a0   :  { %v3906_v53 = vsel %vm10607_vm11, %v3848_v51, inf  ;;  %vm10634_vm11 = vmmov %vm10626_vm13 }
 0x5a1   :  { %v3027_v49 = vsel %vm10634_vm11, %v2916_v56, %v3026_v10  ;;  %v3865_v10 = vadd.f32 %v8620_v36, %v10621_v58  ;;  %v3850_v56 = vadd.f32 %v8632_v46, %v10608_v57 }
 0x5a2   :  { %3498 = vmin.xlane.f32.xlu0 %v3497_v21  ;;  %3453 = vmin.xlane.f32.xlu1 %v3452_v55  ;;  %v10599_v21 = vld [vmem:[#allocation53_spill] sm:$0xff] }
 0x5a3   :  { %v2929_v55 = vrot.slane %v10599_v21, %v10449_v47  ;;  %v3006_v21 = vsel %vm10627_vm12, %v3005_v59, %v3001_v13  ;;  %vm10644_vm12 = vcmask 1047559   ;;  %v3957_v18 = vsel %vm10630_vm3, %v3865_v10, inf }
 0x5a4   :  { %vm10646_vm6 = vmmov %vm10644_vm12 }
 0x5a5   :  { %v2934_v45 = vsel %vm10611_vm1, %v2933_v44, %v2929_v55 }
 0x5a6   :  { %3898 = vmin.xlane.f32.xlu0 %v3897_v30  ;;  %3501 = vmin.xlane.f32.xlu1 %v3500_v14  ;;  %v10601_v30 = vld [vmem:[#allocation75_spill] sm:$0xff] }
 0x5a7   :  { %v2965_v14 = vrot.slane %v10601_v30, %v10449_v47  ;;  %v3849_v30 = vadd.f32 %v8620_v36, %v10608_v57 }
 0x5a9   :  { %v2970_v25 = vsel %vm10612_vm10, %v2969_v48, %v2965_v14  ;;  %v3418_v14 = vadd.f32 %v8577_v16, %v10621_v58  ;;  %vm10635_vm10 = vcmask 1045509  }
 0x5aa   :  { %3946 = vmin.xlane.f32.xlu0 %v3945_v35  ;;  %3901 = vmin.xlane.f32.xlu1 %v3900_v27  ;;  %v10603_v35 = vld [vmem:[#allocation76_spill] sm:$0xff] }
 0x5ab   :  { %v2960_v27 = vrot.slane %v10603_v35, %v10450_v60  ;;  %v2951_v35 = vrot.slane %v10632_v9, %v10450_v60 }
 0x5ad   :  { %v2961_v12 = vsel %vm10611_vm1, %v2960_v27, %v2956_v41  ;;  %v3464_v41 = vsel %vm10630_vm3, %v3402_v28, inf }
 0x5ae   :  { %3456 = vmin.xlane.f32.xlu0 %v3455_v24  ;;  %3949 = vmin.xlane.f32.xlu1 %v3948_v39  ;;  %v2983_v24 = vrot.slane %v10606_v62, %v10449_v47  ;;  %v3951_v39 = vsel %vm10533_vm0, %v3863_v63, inf  ;;  %v3032_v19 = vsel %vm10622_vm4, %v2970_v25, %v2961_v12  ;;  %v3023_v63 = vrot.slane %v8506_v43, %v10450_v60  ;;  %v10631_v43 = vld [vmem:[#allocation72_spill] sm:$0xff] }
 0x5af   :  { %v2942_v1 = vrot.slane %v10631_v43, %v10450_v60  ;;  %vm10633_vm0 = vcmask 1044484   ;;  %vm10640_vm4 = vcmask 1046534  }
 0x5b0   :  { %v2988_v7 = vsel %vm10616_vm5, %v2987_v4, %v2983_v24  ;;  %v3024_v52 = vsel %vm10636_vm8, %v3023_v63, %v3019_v31  ;;  %vm10637_vm5 = vmmov %vm10633_vm0 }
 0x5b1   :  { %v3028_v16 = vsel %vm10637_vm5, %v2925_v38, %v3027_v49  ;;  %v2943_v23 = vsel %vm10638_vm7, %v2942_v1, %v2938_v17  ;;  %vm10645_vm9 = vmmov %vm10640_vm4  ;;  %v3866_v17 = vadd.f32 %v8632_v46, %v10621_v58 }
 0x5b2   :  { %3504 = vmin.xlane.f32.xlu0 %v3503_v6  ;;  %3459 = vmin.xlane.f32.xlu1 %v3458_v42  ;;  %v10615_v6 = vld [vmem:[#allocation29_spill] sm:$0xff] }
 0x5b3   :  { %v2996_v42 = vrot.slane %v10615_v6, %v10450_v60 }
 0x5b5   :  { %v2997_v5 = vsel %vm10625_vm14, %v2996_v42, %v2992_v32  ;;  %vm10642_vm14 = vmmov %vm10630_vm3 }
 0x5b6   :  { %3904 = vmin.xlane.f32.xlu0 %v3903_v15  ;;  %3507 = vmin.xlane.f32.xlu1 %v3506_v54  ;;  %v2947_v15 = vrot.slane %v10623_v2, %v10449_v47  ;;  %v3033_v54 = vsel %vm10624_vm15, %v2979_v50, %v3032_v19  ;;  %vm10641_vm15 = vmmov %vm10630_vm3 }
 0x5b7   :  { %v3034_v51 = vsel %vm10626_vm13, %v2988_v7, %v3033_v54  ;;  %vm10643_vm13 = vmmov %vm10635_vm10 }
 0x5b8   :  { %v3035_v27 = vsel %vm10633_vm0, %v2997_v5, %v3034_v51  ;;  %v2952_v62 = vsel %vm10639_vm2, %v2951_v35, %v2947_v15  ;;  %v3029_v55 = vsel %vm10643_vm13, %v2934_v45, %v3028_v16  ;;  %vm10647_vm0 = vmmov %vm10630_vm3 }
 0x5b9   :  { %v3036_v48 = vsel %vm10635_vm10, %v3006_v21, %v3035_v27  ;;  %v3030_v11 = vsel %vm10645_vm9, %v2943_v23, %v3029_v55  ;;  %v3912_v44 = vsel %vm10647_vm0, %v3850_v56, inf  ;;  %vm10648_vm11 = vmmov %vm10647_vm0  ;;  %v10653_v56 = vmov 1e+09  }
 0x5ba   :  { %3952 = vmin.xlane.f32.xlu0 %v3951_v39  ;;  %3907 = vmin.xlane.f32.xlu1 %v3906_v53  ;;  %v3037_v24 = vsel %vm10640_vm4, %v3015_v20, %v3036_v48  ;;  %v3909_v39 = vsel %vm10641_vm15, %v3849_v30, inf  ;;  %v3512_v53 = vsel %vm10642_vm14, %v3418_v14, inf  ;;  %v3031_v29 = vsel %vm10646_vm6, %v2952_v62, %v3030_v11  ;;  %vm10649_vm1 = vmmov %vm10647_vm0 }
 0x5bb   :  { %v3038_v38 = vsel %vm10644_vm12, %v3024_v52, %v3037_v24  ;;  %v3041_v36 = vsel %vm10649_vm1, %v3031_v29, 0.0  ;;  %vm10650_vm10 = vmmov %vm10647_vm0 }
 0x5bc   :  { %v3042_v0 = vsel %vm10648_vm11, %v3038_v38, 0.0  ;;  %v3960_v4 = vsel %vm10650_vm10, %v3866_v17, inf }
 0x5bd   :  { %v3043_v57 = vadd.f32 %v3042_v0, %v3041_v36 }
 0x5be   :  { %3462 = vmin.xlane.f32.xlu0 %v3461_v22  ;;  %3955 = vmin.xlane.f32.xlu1 %v3954_v34 }
 0x5c2   :  { %3510 = vmin.xlane.f32.xlu0 %v3509_v3  ;;  %3465 = vmin.xlane.f32.xlu1 %v3464_v41 }
 0x5c6   :  { %3910 = vmin.xlane.f32.xlu0 %v3909_v39  ;;  %3513 = vmin.xlane.f32.xlu1 %v3512_v53  ;;  %v10651_v39 = vmov 0 }
 0x5ca   :  { %3958 = vmin.xlane.f32.xlu0 %v3957_v18  ;;  %3913 = vmin.xlane.f32.xlu1 %v3912_v44 }
 0x5ce   :  { %3044 = vadd.xlane.f32.xlu1 %v3043_v57 }
 0x5d2   :  { %3961 = vmin.xlane.f32.xlu1 %v3960_v4 }
 0x5db   :  { %v3421_v12 = vpop.xlane.xlu0 %3420 }
 0x5dc   :  { %vm3963_vm4 = vcmp.lt.f32.partialorder %v3421_v12, 5e+08 }
 0x5df   :  { %v3424_v25 = vpop.xlane.xlu1 %3423  ;;  %v3427_v50 = vpop.xlane.xlu0 %3426 }
 0x5e0   :  { %vm3964_vm7 = vcmp.lt.f32.partialorder %v3424_v25, 5e+08  ;;  %vm3965_vm6 = vcmp.lt.f32.partialorder %v3427_v50, 5e+08 }
 0x5e3   :  { %v3430_v8 = vpop.xlane.xlu1 %3429  ;;  %v8897_v32 = vpop.xlane.xlu0 %3468 }
 0x5e4   :  { %vm3966_vm13 = vcmp.lt.f32.partialorder %v3430_v8, 5e+08 }
 0x5e7   :  { %v8899_v6 = vpop.xlane.xlu1 %3471  ;;  %v8901_v42 = vpop.xlane.xlu0 %3474 }
 0x5eb   :  { %v3478_v7 = vpop.xlane.xlu1 %3477  ;;  %v3869_v26 = vpop.xlane.xlu0 %3868 }
 0x5ec   :  { %vm3995_vm5 = vcmp.lt.f32.partialorder %v3869_v26, 5e+08  ;;  %vm3982_vm11 = vcmp.lt.f32.partialorder %v3478_v7, 5e+08 }
 0x5ed   :  { %vm8967_vm12 = vmand %vm3963_vm4, %vm3995_vm5  ;;  %vm3981_vm4 = vcmp.lt.f32.partialorder %v8901_v42, 5e+08 }
 0x5ee   :  { %v10652_v39 = vsel %vm8967_vm12, 4294967295, %v10651_v39  ;;  %vm3979_vm12 = vcmp.lt.f32.partialorder %v8897_v32, 5e+08 }
 0x5ef   :  { %v3872_v13 = vpop.xlane.xlu1 %3871  ;;  %v3875_v61 = vpop.xlane.xlu0 %3874 }
 0x5f0   :  { %vm3996_vm8 = vcmp.lt.f32.partialorder %v3872_v13, 5e+08  ;;  %vm3997_vm14 = vcmp.lt.f32.partialorder %v3875_v61, 5e+08 }
 0x5f1   :  { %vm4028_vm15 = vmand %vm3964_vm7, %vm3996_vm8  ;;  %vm3980_vm8 = vcmp.lt.f32.partialorder %v8899_v6, 5e+08 }
 0x5f2   :  { %v4060_v55 = vsel %vm4028_vm15, 0.0, %v10653_v56  ;;  %vm4029_vm1 = vmand %vm3965_vm6, %vm3997_vm14  ;;  %vm10654_vm15 = vnez %v10652_v39 }
 0x5f3   :  { %v3878_v33 = vpop.xlane.xlu1 %3877  ;;  %v8903_v46 = vpop.xlane.xlu0 %3916  ;;  %v4059_v11 = vsel %vm10654_vm15, 0.0, %v10653_v56  ;;  %v4130_v29 = vrot.slane %v4060_v55, %v10450_v60  ;;  %v4061_v0 = vsel %vm4029_vm1, 0.0, %v10653_v56 }
 0x5f4   :  { %vm3998_vm2 = vcmp.lt.f32.partialorder %v3878_v33, 5e+08  ;;  %vm4011_vm5 = vcmp.lt.f32.partialorder %v8903_v46, 5e+08  ;;  %v4126_v4 = vrot.slane %v4059_v11, %v10449_v47  ;;  %v4135_v25 = vrot.slane %v4061_v0, %v10449_v47 }
 0x5f5   :  { %vm4030_vm3 = vmand %vm3966_vm13, %vm3998_vm2 }
 0x5f6   :  { %v4062_v38 = vsel %vm4030_vm3, 0.0, %v10653_v56 }
 0x5f7   :  { %v3920_v22 = vpop.xlane.xlu1 %3919  ;;  %v3923_v34 = vpop.xlane.xlu0 %3922  ;;  %v4139_v57 = vrot.slane %v4062_v38, %v10450_v60 }
 0x5f8   :  { %vm4012_vm0 = vcmp.lt.f32.partialorder %v3920_v22, 5e+08  ;;  %vm4013_vm10 = vcmp.lt.f32.partialorder %v3923_v34, 5e+08 }
 0x5f9   :  { %vm4044_vm2 = vmand %vm3980_vm8, %vm4012_vm0 }
 0x5fa   :  { %vm4045_vm14 = vmand %vm3981_vm4, %vm4013_vm10  ;;  %v4076_v17 = vsel %vm4044_vm2, 0.0, %v10653_v56  ;;  %vm10655_vm10 = vcmask 130112  }
 0x5fb   :  { %v3926_v58 = vpop.xlane.xlu1 %3925  ;;  %v8905_v40 = vpop.xlane.xlu0 %3432  ;;  %v4077_v12 = vsel %vm4045_vm14, 0.0, %v10653_v56  ;;  %v4131_v42 = vsel %vm10655_vm10, %v4130_v29, %v4126_v4  ;;  %v4202_v7 = vrot.slane %v4076_v17, %v10450_v60 }
 0x5fc   :  { %vm4014_vm9 = vcmp.lt.f32.partialorder %v3926_v58, 5e+08  ;;  %v4207_v61 = vrot.slane %v4077_v12, %v10449_v47 }
 0x5fd   :  { %vm4046_vm7 = vmand %vm3982_vm11, %vm4014_vm9  ;;  %vm3967_vm11 = vcmp.lt.f32.partialorder %v8905_v40, 5e+08 }
 0x5fe   :  { %vm4043_vm9 = vmand %vm3979_vm12, %vm4011_vm5  ;;  %v4078_v36 = vsel %vm4046_vm7, 0.0, %v10653_v56 }
 0x5ff   :  { %v8907_v28 = vpop.xlane.xlu1 %3435  ;;  %v8909_v19 = vpop.xlane.xlu0 %3480  ;;  %v4075_v50 = vsel %vm4043_vm9, 0.0, %v10653_v56  ;;  %v4211_v8 = vrot.slane %v4078_v36, %v10450_v60  ;;  %vm10656_vm5 = vmmov %vm10655_vm10 }
 0x600   :  { %vm3968_vm6 = vcmp.lt.f32.partialorder %v8907_v28, 5e+08  ;;  %v4140_v13 = vsel %vm10656_vm5, %v4139_v57, %v4135_v25  ;;  %v4198_v33 = vrot.slane %v4075_v50, %v10449_v47  ;;  %vm10659_vm14 = vmmov %vm10656_vm5  ;;  %vm3983_vm9 = vcmp.lt.f32.partialorder %v8909_v19, 5e+08 }
 0x601   :  { %v4212_v34 = vsel %vm10659_vm14, %v4211_v8, %v4207_v61  ;;  %v10710_v8 = vld [vmem:[#allocation35_spill] sm:$0xff] }
 0x603   :  { %v8911_v59 = vpop.xlane.xlu1 %3483  ;;  %v8913_v37 = vpop.xlane.xlu0 %3880 }
 0x604   :  { %vm3999_vm3 = vcmp.lt.f32.partialorder %v8913_v37, 5e+08  ;;  %vm3984_vm7 = vcmp.lt.f32.partialorder %v8911_v59, 5e+08 }
 0x605   :  { %vm4031_vm12 = vmand %vm3967_vm11, %vm3999_vm3 }
 0x606   :  { %v4063_v46 = vsel %vm4031_vm12, 0.0, %v10653_v56  ;;  %vm10663_vm11 = vmmov %vm10656_vm5 }
 0x607   :  { %v8915_v2 = vpop.xlane.xlu1 %3883  ;;  %v8917_v15 = vpop.xlane.xlu0 %3928  ;;  %v4144_v19 = vrot.slane %v4063_v46, %v10449_v47 }
 0x608   :  { %vm4000_vm13 = vcmp.lt.f32.partialorder %v8915_v2, 5e+08  ;;  %vm4015_vm4 = vcmp.lt.f32.partialorder %v8917_v15, 5e+08  ;;  %v4203_v2 = vsel %vm10663_vm11, %v4202_v7, %v4198_v33 }
 0x609   :  { %vm4032_vm0 = vmand %vm3968_vm6, %vm4000_vm13 }
 0x60a   :  { %v4064_v26 = vsel %vm4032_vm0, 0.0, %v10653_v56  ;;  %vm10662_vm0 = vcmask 1041409   ;;  %vm4047_vm12 = vmand %vm3983_vm9, %vm4015_vm4 }
 0x60b   :  { %v8919_v54 = vpop.xlane.xlu1 %3931  ;;  %v8921_v5 = vpop.xlane.xlu0 %3438  ;;  %v4148_v58 = vrot.slane %v4064_v26, %v10450_v60  ;;  %v4267_v37 = vsel %vm10662_vm0, %v4140_v13, %v4131_v42  ;;  %vm10665_vm9 = vmmov %vm10663_vm11 }
 0x60c   :  { %vm4016_vm1 = vcmp.lt.f32.partialorder %v8919_v54, 5e+08 }
 0x60d   :  { %vm9017_vm2 = vmand %vm3984_vm7, %vm4016_vm1  ;;  %vm3969_vm1 = vcmp.lt.f32.partialorder %v8921_v5, 5e+08 }
 0x60e   :  { %v4080_v54 = vsel %vm9017_vm2, 0.0, %v10653_v56 }
 0x60f   :  { %v8923_v63 = vpop.xlane.xlu1 %3441  ;;  %v8925_v51 = vpop.xlane.xlu0 %3486 }
 0x610   :  { %vm3970_vm13 = vcmp.lt.f32.partialorder %v8923_v63, 5e+08  ;;  %v4149_v63 = vsel %vm10665_vm9, %v4148_v58, %v4144_v19 }
 0x613   :  { %v8927_v21 = vpop.xlane.xlu1 %3489  ;;  %v8929_v20 = vpop.xlane.xlu0 %3886 }
 0x614   :  { %vm4001_vm15 = vcmp.lt.f32.partialorder %v8929_v20, 5e+08  ;;  %vm3986_vm4 = vcmp.lt.f32.partialorder %v8927_v21, 5e+08 }
 0x615   :  { %vm4033_vm5 = vmand %vm3969_vm1, %vm4001_vm15 }
 0x617   :  { %v8931_v31 = vpop.xlane.xlu1 %3889  ;;  %v8933_v3 = vpop.xlane.xlu0 %3934 }
 0x618   :  { %vm4002_vm8 = vcmp.lt.f32.partialorder %v8931_v31, 5e+08  ;;  %vm4017_vm3 = vcmp.lt.f32.partialorder %v8933_v3, 5e+08  ;;  %v4220_v3 = vrot.slane %v4080_v54, %v10450_v60 }
 0x619   :  { %vm9026_vm6 = vmand %vm3970_vm13, %vm4002_vm8  ;;  %vm3985_vm8 = vcmp.lt.f32.partialorder %v8925_v51, 5e+08  ;;  %v4079_v51 = vsel %vm4047_vm12, 0.0, %v10653_v56 }
 0x61a   :  { %vm10664_vm13 = vmmov %vm10662_vm0  ;;  %v4066_v5 = vsel %vm9026_vm6, 0.0, %v10653_v56 }
 0x61b   :  { %v8935_v41 = vpop.xlane.xlu1 %3937  ;;  %v8937_v30 = vpop.xlane.xlu0 %3444  ;;  %v9048_v15 = vsel %vm10664_vm13, %v4212_v34, %v4203_v2  ;;  %vm4049_vm14 = vmand %vm3985_vm8, %vm4017_vm3  ;;  %v4157_v39 = vrot.slane %v4066_v5, %v10450_v60 }
 0x61c   :  { %vm4018_vm10 = vcmp.lt.f32.partialorder %v8935_v41, 5e+08  ;;  %v4065_v41 = vsel %vm4033_vm5, 0.0, %v10653_v56  ;;  %vm3971_vm6 = vcmp.lt.f32.partialorder %v8937_v30, 5e+08  ;;  %vm10670_vm5 = vcmask 1042434  }
 0x61d   :  { %vm9059_vm15 = vmand %vm3986_vm4, %vm4018_vm10  ;;  %v4268_v30 = vsel %vm10670_vm5, %v4149_v63, %v4267_v37 }
 0x61f   :  { %v8939_v14 = vpop.xlane.xlu1 %3447  ;;  %v8941_v43 = vpop.xlane.xlu0 %3492 }
 0x620   :  { %vm3972_vm0 = vcmp.lt.f32.partialorder %v8939_v14, 5e+08  ;;  %v9075_v14 = vsel %vm4049_vm14, 0.0, %v10653_v56 }
 0x621   :  { %v4225_v29 = vrot.slane %v9075_v14, %v10449_v47 }
 0x623   :  { %v8943_v1 = vpop.xlane.xlu1 %3495  ;;  %v8945_v9 = vpop.xlane.xlu0 %3892 }
 0x624   :  { %vm4003_vm2 = vcmp.lt.f32.partialorder %v8945_v9, 5e+08  ;;  %v4153_v9 = vrot.slane %v4065_v41, %v10449_v47 }
 0x625   :  { %vm9079_vm1 = vmand %vm3971_vm6, %vm4003_vm2 }
 0x627   :  { %v8947_v35 = vpop.xlane.xlu1 %3895  ;;  %v8949_v27 = vpop.xlane.xlu0 %3940 }
 0x628   :  { %vm4004_vm7 = vcmp.lt.f32.partialorder %v8947_v35, 5e+08  ;;  %v4216_v35 = vrot.slane %v4079_v51, %v10449_v47 }
 0x629   :  { %vm4036_vm3 = vmand %vm3972_vm0, %vm4004_vm7  ;;  %vm4019_vm7 = vcmp.lt.f32.partialorder %v8949_v27, 5e+08  ;;  %vm10675_vm0 = vcmask 130112  }
 0x62a   :  { %v4068_v38 = vsel %vm4036_vm3, 0.0, %v10653_v56 }
 0x62b   :  { %v8951_v49 = vpop.xlane.xlu1 %3943  ;;  %v8953_v45 = vpop.xlane.xlu0 %3450 }
 0x62c   :  { %vm3973_vm10 = vcmp.lt.f32.partialorder %v8953_v45, 5e+08  ;;  %vm4020_vm6 = vcmp.lt.f32.partialorder %v8951_v49, 5e+08  ;;  %v4166_v49 = vrot.slane %v4068_v38, %v10450_v60 }
 0x62f   :  { %v8955_v48 = vpop.xlane.xlu1 %3453  ;;  %v8957_v52 = vpop.xlane.xlu0 %3498 }
 0x630   :  { %vm3974_vm13 = vcmp.lt.f32.partialorder %v8955_v48, 5e+08 }
 0x633   :  { %v8959_v16 = vpop.xlane.xlu1 %3501  ;;  %v8961_v23 = vpop.xlane.xlu0 %3898 }
 0x634   :  { %vm4005_vm11 = vcmp.lt.f32.partialorder %v8961_v23, 5e+08  ;;  %v9105_v23 = vsel %vm10675_vm0, %v4220_v3, %v4216_v35 }
 0x635   :  { %vm9090_vm4 = vmand %vm3973_vm10, %vm4005_vm11  ;;  %vm3987_vm11 = vcmp.lt.f32.partialorder %v8941_v43, 5e+08  ;;  %v9127_v43 = vsel %vm9059_vm15, 0.0, %v10653_v56 }
 0x636   :  { %vm9118_vm10 = vmand %vm3987_vm11, %vm4019_vm7  ;;  %v4229_v26 = vrot.slane %v9127_v43, %v10450_v60  ;;  %v10703_v43 = vld [vmem:[#allocation44_spill] sm:$0xff] }
 0x637   :  { %v8963_v62 = vpop.xlane.xlu1 %3901  ;;  %v8965_v24 = vpop.xlane.xlu0 %3946  ;;  %v4083_v22 = vsel %vm9118_vm10, 0.0, %v10653_v56  ;;  %vm10693_vm10 = vcmask 1045509  }
 0x638   :  { %vm4006_vm12 = vcmp.lt.f32.partialorder %v8963_v62, 5e+08  ;;  %vm4021_vm5 = vcmp.lt.f32.partialorder %v8965_v24, 5e+08 }
 0x639   :  { %vm9096_vm14 = vmand %vm3974_vm13, %vm4006_vm12 }
 0x63a   :  { %vm10676_vm12 = vmmov %vm10675_vm0  ;;  %v4070_v27 = vsel %vm9096_vm14, 0.0, %v10653_v56 }
 0x63b   :  { %v8971_v53 = vpop.xlane.xlu1 %3949  ;;  %v8973_v10 = vpop.xlane.xlu0 %3456  ;;  %v4158_v0 = vsel %vm10676_vm12, %v4157_v39, %v4153_v9 }
 0x63c   :  { %vm3975_vm13 = vcmp.lt.f32.partialorder %v8973_v10, 5e+08  ;;  %v4069_v10 = vsel %vm9090_vm4, 0.0, %v10653_v56  ;;  %vm4022_vm15 = vcmp.lt.f32.partialorder %v8971_v53, 5e+08 }
 0x63d   :  { %vm3990_vm4 = vcmp.lt.f32.partialorder %v8959_v16, 5e+08  ;;  %v4171_v13 = vrot.slane %v4069_v10, %v10449_v47 }
 0x63f   :  { %v8986_v18 = vpop.xlane.xlu1 %3459  ;;  %v8988_v44 = vpop.xlane.xlu0 %3504 }
 0x640   :  { %vm3976_vm2 = vcmp.lt.f32.partialorder %v8986_v18, 5e+08  ;;  %v4067_v18 = vsel %vm9079_vm1, 0.0, %v10653_v56 }
 0x641   :  { %v4162_v12 = vrot.slane %v4067_v18, %v10449_v47 }
 0x643   :  { %v9003_v32 = vpop.xlane.xlu1 %3507  ;;  %v9005_v6 = vpop.xlane.xlu0 %3904  ;;  %v4167_v24 = vsel %vm10676_vm12, %v4166_v49, %v4162_v12 }
 0x644   :  { %vm4007_vm9 = vcmp.lt.f32.partialorder %v9005_v6, 5e+08 }
 0x645   :  { %vm4039_vm1 = vmand %vm3975_vm13, %vm4007_vm9  ;;  %vm3991_vm13 = vcmp.lt.f32.partialorder %v8988_v44, 5e+08 }
 0x646   :  { %v4071_v50 = vsel %vm4039_vm1, 0.0, %v10653_v56  ;;  %vm3992_vm1 = vcmp.lt.f32.partialorder %v9003_v32, 5e+08 }
 0x647   :  { %v3908_v28 = vpop.xlane.xlu1 %3907  ;;  %v9031_v59 = vpop.xlane.xlu0 %3952  ;;  %v4180_v44 = vrot.slane %v4071_v50, %v10449_v47 }
 0x648   :  { %vm4008_vm8 = vcmp.lt.f32.partialorder %v3908_v28, 5e+08  ;;  %vm4023_vm9 = vcmp.lt.f32.partialorder %v9031_v59, 5e+08 }
 0x649   :  { %vm4040_vm3 = vmand %vm3976_vm2, %vm4008_vm8  ;;  %vm3988_vm8 = vcmp.lt.f32.partialorder %v8943_v1, 5e+08  ;;  %vm3989_vm2 = vcmp.lt.f32.partialorder %v8957_v52, 5e+08  ;;  %v4175_v52 = vrot.slane %v4070_v27, %v10450_v60 }
 0x64a   :  { %vm9136_vm7 = vmand %vm3988_vm8, %vm4020_vm6  ;;  %v4072_v1 = vsel %vm4040_vm3, 0.0, %v10653_v56  ;;  %vm10687_vm8 = vcmask 1043459  }
 0x64b   :  { %v9065_v21 = vpop.xlane.xlu1 %3955  ;;  %v3463_v31 = vpop.xlane.xlu0 %3462  ;;  %vm9151_vm14 = vmand %vm3989_vm2, %vm4021_vm5  ;;  %v4084_v6 = vsel %vm9136_vm7, 0.0, %v10653_v56  ;;  %v4184_v42 = vrot.slane %v4072_v1, %v10450_v60  ;;  %v4269_v7 = vsel %vm10687_vm8, %v4158_v0, %v4268_v30 }
 0x64c   :  { %vm3977_vm0 = vcmp.lt.f32.partialorder %v3463_v31, 5e+08  ;;  %vm4024_vm6 = vcmp.lt.f32.partialorder %v9065_v21, 5e+08  ;;  %vm9170_vm5 = vmand %vm3990_vm4, %vm4022_vm15  ;;  %v4238_v34 = vrot.slane %v4084_v6, %v10450_v60  ;;  %v4085_v37 = vsel %vm9151_vm14, 0.0, %v10653_v56 }
 0x64d   :  { %vm9183_vm7 = vmand %vm3991_vm13, %vm4023_vm9  ;;  %v4086_v40 = vsel %vm9170_vm5, 0.0, %v10653_v56  ;;  %v4234_v21 = vrot.slane %v4083_v22, %v10449_v47  ;;  %vm10694_vm14 = vcmask 1046534   ;;  %v4243_v9 = vrot.slane %v4085_v37, %v10449_v47 }
 0x64e   :  { %vm4056_vm2 = vmand %vm3992_vm1, %vm4024_vm6  ;;  %v4087_v51 = vsel %vm9183_vm7, 0.0, %v10653_v56  ;;  %v4247_v31 = vrot.slane %v4086_v40, %v10450_v60  ;;  %vm10697_vm1 = vcmask 1047559  }
 0x64f   :  { %v3466_v11 = vpop.xlane.xlu1 %3465  ;;  %v9102_v48 = vpop.xlane.xlu0 %3510  ;;  %vm10691_vm9 = vmmov %vm10676_vm12  ;;  %v4088_v2 = vsel %vm4056_vm2, 0.0, %v10653_v56  ;;  %v4252_v38 = vrot.slane %v4087_v51, %v10449_v47  ;;  %v10726_v51 = vld [vmem:[#allocation40_spill] sm:$0xff] }
 0x650   :  { %vm3978_vm15 = vcmp.lt.f32.partialorder %v3466_v11, 5e+08  ;;  %v4176_v58 = vsel %vm10691_vm9, %v4175_v52, %v4171_v13  ;;  %vm10692_vm6 = vmmov %vm10691_vm9  ;;  %vm3993_vm12 = vcmp.lt.f32.partialorder %v9102_v48, 5e+08  ;;  %v4256_v55 = vrot.slane %v4088_v2, %v10450_v60  ;;  %v10699_v11 = vld [vmem:[#allocation43_spill] sm:$0xff] }
 0x651   :  { %v4185_v28 = vsel %vm10692_vm6, %v4184_v42, %v4180_v44  ;;  %vm10695_vm5 = vmmov %vm10692_vm6  ;;  %vm10704_vm6 = vcmask 1043459   ;;  %v10717_v44 = vld [vmem:[#allocation45_spill] sm:$0xff]  ;;  %v10723_v2 = vld [vmem:[#allocation31_spill] sm:$0xff] }
 0x652   :  { %vm10696_vm8 = vmmov %vm10695_vm5 }
 0x653   :  { %v9146_v17 = vpop.xlane.xlu1 %3513  ;;  %v3911_v4 = vpop.xlane.xlu0 %3910  ;;  %v4230_v39 = vsel %vm10696_vm8, %v4229_v26, %v4225_v29  ;;  %vm10698_vm7 = vmmov %vm10695_vm5  ;;  %v10714_v26 = vld [vmem:[#allocation36_spill] sm:$0xff] }
 0x654   :  { %vm4009_vm11 = vcmp.lt.f32.partialorder %v3911_v4, 5e+08  ;;  %v4239_v62 = vsel %vm10698_vm7, %v4238_v34, %v4234_v21  ;;  %vm3994_vm2 = vcmp.lt.f32.partialorder %v9146_v17, 5e+08  ;;  %vm10711_vm8 = vmmov %vm10697_vm1 }
 0x655   :  { %vm9160_vm3 = vmand %vm3977_vm0, %vm4009_vm11  ;;  %vm10690_vm11 = vcmask 1044484  }
 0x656   :  { %v4073_v46 = vsel %vm9160_vm3, 0.0, %v10653_v56  ;;  %v4270_v32 = vsel %vm10690_vm11, %v4167_v24, %v4269_v7  ;;  %vm10701_vm11 = vmmov %vm10695_vm5 }
 0x657   :  { %v3914_v61 = vpop.xlane.xlu1 %3913  ;;  %v3959_v33 = vpop.xlane.xlu0 %3958  ;;  %v4189_v19 = vrot.slane %v4073_v46, %v10449_v47  ;;  %v4271_v63 = vsel %vm10693_vm10, %v4176_v58, %v4270_v32  ;;  %v4248_v18 = vsel %vm10701_vm11, %v4247_v31, %v4243_v9  ;;  %vm10706_vm10 = vcmask 1044484   ;;  %v10720_v58 = vld [vmem:[#allocation38_spill] sm:$0xff]  ;;  %v10732_v9 = vld [vmem:[#allocation39_spill] sm:$0xff] }
 0x658   :  { %vm4010_vm0 = vcmp.lt.f32.partialorder %v3914_v61, 5e+08  ;;  %vm4025_vm3 = vcmp.lt.f32.partialorder %v3959_v33, 5e+08  ;;  %v4272_v3 = vsel %vm10694_vm14, %v4185_v28, %v4271_v63 }
 0x659   :  { %vm4042_vm4 = vmand %vm3978_vm15, %vm4010_vm0  ;;  %vm10700_vm0 = vcmask 1042434  }
 0x65a   :  { %v4074_v59 = vsel %vm4042_vm4, 0.0, %v10653_v56  ;;  %vm4057_vm13 = vmand %vm3993_vm12, %vm4025_vm3  ;;  %v4275_v0 = vsel %vm10700_vm0, %v9105_v23, %v9048_v15  ;;  %vm10702_vm4 = vcmask 130048   ;;  %vm10707_vm12 = vcmask 1045509  }
 0x65b   :  { %v4193_v54 = vrot.slane %v4074_v59, %v10450_v60  ;;  %v3045_v5 = vpop.xlane.xlu1 %3044  ;;  %v4089_v14 = vsel %vm4057_vm13, 0.0, %v10653_v56  ;;  %v4276_v27 = vsel %vm10704_vm6, %v4230_v39, %v4275_v0  ;;  %vm10705_vm3 = vmmov %vm10695_vm5 }
 0x65c   :  { %v3046_v20 = vrot.slane %v3045_v5, 4  ;;  %v4257_v57 = vsel %vm10705_vm3, %v4256_v55, %v4252_v38  ;;  %v4277_v17 = vsel %vm10706_vm10, %v4239_v62, %v4276_v27  ;;  %v4261_v15 = vrot.slane %v4089_v14, %v10449_v47  ;;  %vm10709_vm13 = vmmov %vm10702_vm4  ;;  %v10738_v27 = vld [vmem:[#allocation41_spill] sm:$0xff] }
 0x65d   :  { %v4194_v41 = vsel %vm10695_vm5, %v4193_v54, %v4189_v19  ;;  %v4278_v4 = vsel %vm10707_vm12, %v4248_v18, %v4277_v17  ;;  %vm10708_vm5 = vmmov %vm10705_vm3 }
 0x65e   :  { %v9225_v30 = vsel %vm10697_vm1, %v4194_v41, %v4272_v3  ;;  %v3047_v35 = vadd.f32 %v3046_v20, %v3045_v5  ;;  %v4279_v25 = vsel %vm10694_vm14, %v4257_v57, %v4278_v4  ;;  %vm10712_vm1 = vmmov %vm10702_vm4  ;;  %v10729_v41 = vld [vmem:[#allocation32_spill] sm:$0xff] }
 0x65f   :  { %v3962_v45 = vpop.xlane.xlu1 %3961  ;;  %v4283_v48 = vadd.f32 %v9225_v30, %v10699_v11  ;;  %v4285_v49 = vadd.f32 %v9225_v30, %v10703_v43  ;;  %vm10713_vm7 = vmmov %vm10712_vm1  ;;  %v4301_v13 = vadd.f32 %v9225_v30, %v10714_v26  ;;  %v4287_v46 = vadd.f32 %v9225_v30, %v10717_v44 }
 0x660   :  { %vm4026_vm15 = vcmp.lt.f32.partialorder %v3962_v45, 5e+08  ;;  %v3048_v29 = vrot.slane %v3047_v35, 2  ;;  %vm10718_vm0 = vmmov %vm10712_vm1  ;;  %v4303_v40 = vadd.f32 %v9225_v30, %v10720_v58  ;;  %v4289_v19 = vadd.f32 %v9225_v30, %v10723_v2 }
 0x661   :  { %vm4058_vm9 = vmand %vm3994_vm2, %vm4026_vm15  ;;  %v4315_v36 = vsel %vm10702_vm4, %v4283_v48, inf  ;;  %v4321_v50 = vsel %vm10709_vm13, %v4285_v49, inf  ;;  %v4327_v22 = vsel %vm10718_vm0, %v4287_v46, inf  ;;  %v4305_v20 = vadd.f32 %v9225_v30, %v10726_v51 }
 0x662   :  { %v4090_v10 = vsel %vm4058_vm9, 0.0, %v10653_v56  ;;  %4316 = vmin.xlane.f32.xlu0 %v4315_v36  ;;  %v3049_v1 = vadd.f32 %v3048_v29, %v3047_v35  ;;  %v4299_v56 = vadd.f32 %v9225_v30, %v10710_v8  ;;  %vm10715_vm2 = vmmov %vm10712_vm1  ;;  %v4291_v39 = vadd.f32 %v9225_v30, %v10729_v41  ;;  %v10735_v29 = vld [vmem:[#allocation34_spill] sm:$0xff] }
 0x663   :  { %v4265_v23 = vrot.slane %v4090_v10, %v10450_v60  ;;  %v4369_v61 = vsel %vm10715_vm2, %v4301_v13, inf  ;;  %vm10716_vm15 = vmmov %vm10712_vm1  ;;  %v4307_v38 = vadd.f32 %v9225_v30, %v10732_v9  ;;  %v4293_v0 = vadd.f32 %v9225_v30, %v10735_v29 }
 0x664   :  { %v3050_v12 = vrot.slane %v3049_v1, 1  ;;  %v4363_v42 = vsel %vm10712_vm1, %v4299_v56, inf  ;;  %vm10719_vm11 = vmmov %vm10718_vm0  ;;  %v4309_v57 = vadd.f32 %v9225_v30, %v10738_v27 }
 0x665   :  { %v4266_v52 = vsel %vm10708_vm5, %v4265_v23, %v4261_v15  ;;  %vm10721_vm9 = vmmov %vm10718_vm0  ;;  %v10741_v15 = vld [vmem:[#allocation37_spill] sm:$0xff] }
 0x666   :  { %v9254_v24 = vsel %vm10711_vm8, %v4266_v52, %v4279_v25  ;;  %4322 = vmin.xlane.f32.xlu0 %v4321_v50  ;;  %v3051_v6 = vadd.f32 %v3050_v12, %v3049_v1  ;;  %v4375_v59 = vsel %vm10721_vm9, %v4303_v40, inf  ;;  %vm10722_vm4 = vmmov %vm10718_vm0  ;;  %v4295_v23 = vadd.f32 %v9225_v30, %v10741_v15  ;;  %v10743_v52 = vld [vmem:[#allocation12_spill] sm:$0xff] }
 0x667   :  { %v4284_v16 = vadd.f32 %v9254_v24, %v10699_v11  ;;  %v4286_v53 = vadd.f32 %v9254_v24, %v10703_v43  ;;  %v4300_v32 = vadd.f32 %v9254_v24, %v10710_v8  ;;  %v4302_v28 = vadd.f32 %v9254_v24, %v10714_v26  ;;  %vm10724_vm6 = vmmov %vm10718_vm0 }
 0x668   :  { %5699 = vpush %v3051_v6  ;;  %v4288_v54 = vadd.f32 %v9254_v24, %v10717_v44  ;;  %v4333_v5 = vsel %vm10724_vm6, %v4289_v19, inf  ;;  %vm10725_vm3 = vmmov %vm10718_vm0  ;;  %v4304_v21 = vadd.f32 %v9254_v24, %v10720_v58  ;;  %v4290_v55 = vadd.f32 %v9254_v24, %v10723_v2 }
 0x669   :  { %v4318_v7 = vsel %vm10713_vm7, %v4284_v16, inf  ;;  %v4324_v33 = vsel %vm10716_vm15, %v4286_v53, inf  ;;  %v4366_v34 = vsel %vm10719_vm11, %v4300_v32, inf  ;;  %v4372_v37 = vsel %vm10722_vm4, %v4302_v28, inf  ;;  %vm10727_vm10 = vmmov %vm10718_vm0 }
 0x66a   :  { %4364 = vmin.xlane.f32.xlu0 %v4363_v42  ;;  %4319 = vmin.xlane.f32.xlu1 %v4318_v7  ;;  %v4330_v63 = vsel %vm10725_vm3, %v4288_v54, inf  ;;  %v4381_v31 = vsel %vm10727_vm10, %v4305_v20, inf  ;;  %vm10728_vm12 = vmmov %vm10718_vm0  ;;  %v4306_v45 = vadd.f32 %v9254_v24, %v10726_v51  ;;  %v4292_v18 = vadd.f32 %v9254_v24, %v10729_v41  ;;  %v10746_v42 = vld [vmem:[#allocation33_spill] sm:$0xff] }
 0x66b   :  { %v4378_v3 = vsel %vm10728_vm12, %v4304_v21, inf  ;;  %vm10730_vm14 = vmmov %vm10718_vm0  ;;  %v4308_v10 = vadd.f32 %v9254_v24, %v10732_v9  ;;  %v4294_v4 = vadd.f32 %v9254_v24, %v10735_v29  ;;  %v4351_v12 = vsel %vm10718_vm0, %v4295_v23, inf }
 0x66c   :  { %v4339_v35 = vsel %vm10730_vm14, %v4291_v39, inf  ;;  %vm10731_vm5 = vmmov %vm10718_vm0  ;;  %v4311_v50 = vadd.f32 %v9225_v30, %v10743_v52  ;;  %v4310_v56 = vadd.f32 %v9254_v24, %v10738_v27  ;;  %v4297_v7 = vadd.f32 %v9225_v30, %v10746_v42 }
 0x66d   :  { %v4336_v62 = vsel %vm10731_vm5, %v4290_v55, inf  ;;  %vm10733_vm13 = vmmov %vm10718_vm0  ;;  %v4296_v13 = vadd.f32 %v9254_v24, %v10741_v15  ;;  %v4312_v32 = vadd.f32 %v9254_v24, %v10743_v52  ;;  %v4298_v28 = vadd.f32 %v9254_v24, %v10746_v42 }
 0x66e   :  { %4370 = vmin.xlane.f32.xlu0 %v4369_v61  ;;  %4325 = vmin.xlane.f32.xlu1 %v4324_v33  ;;  %v4387_v48 = vsel %vm10733_vm13, %v4307_v38, inf  ;;  %vm10734_vm8 = vmmov %vm10718_vm0  ;;  %v10749_v33 = vld [vmem:[#allocation46_spill] sm:$0xff]  ;;  %vm10754_vm13 = vcmask 130112  }
 0x66f   :  { %v4384_v14 = vsel %vm10734_vm8, %v4306_v45, inf  ;;  %vm10736_vm1 = vmmov %vm10718_vm0  ;;  %v4313_v46 = vadd.f32 %v9225_v30, %v10749_v33  ;;  %v4314_v30 = vadd.f32 %v9254_v24, %v10749_v33 }
 0x670   :  { %v4345_v36 = vsel %vm10736_vm1, %v4293_v0, inf  ;;  %vm10737_vm7 = vmmov %vm10718_vm0 }
 0x671   :  { %v4342_v49 = vsel %vm10737_vm7, %v4292_v18, inf  ;;  %vm10739_vm2 = vmmov %vm10718_vm0  ;;  %vm10757_vm7 = vcmask 1041409  }
 0x672   :  { %4328 = vmin.xlane.f32.xlu0 %v4327_v22  ;;  %4367 = vmin.xlane.f32.xlu1 %v4366_v34  ;;  %v4393_v1 = vsel %vm10739_vm2, %v4309_v57, inf  ;;  %vm10740_vm15 = vmmov %vm10718_vm0 }
 0x673   :  { %v4390_v17 = vsel %vm10740_vm15, %v4308_v10, inf  ;;  %vm10742_vm11 = vmmov %vm10718_vm0 }
 0x674   :  { %v4348_v25 = vsel %vm10742_vm11, %v4294_v4, inf  ;;  %vm10744_vm9 = vmmov %vm10718_vm0  ;;  %vm10761_vm11 = vcmask 1042434  }
 0x675   :  { %v4399_v6 = vsel %vm10744_vm9, %v4311_v50, inf  ;;  %vm10745_vm4 = vmmov %vm10718_vm0 }
 0x676   :  { %4376 = vmin.xlane.f32.xlu0 %v4375_v59  ;;  %4373 = vmin.xlane.f32.xlu1 %v4372_v37  ;;  %v4396_v16 = vsel %vm10745_vm4, %v4310_v56, inf  ;;  %vm10747_vm6 = vmmov %vm10718_vm0 }
 0x677   :  { %v4357_v53 = vsel %vm10747_vm6, %v4297_v7, inf  ;;  %vm10748_vm3 = vmmov %vm10718_vm0  ;;  %vm10764_vm6 = vcmask 1043459  }
 0x678   :  { %v4354_v61 = vsel %vm10748_vm3, %v4296_v13, inf  ;;  %vm10750_vm10 = vmmov %vm10718_vm0 }
 0x679   :  { %v4405_v34 = vsel %vm10750_vm10, %v4313_v46, inf  ;;  %vm10751_vm12 = vmmov %vm10718_vm0 }
 0x67a   :  { %4334 = vmin.xlane.f32.xlu0 %v4333_v5  ;;  %4331 = vmin.xlane.f32.xlu1 %v4330_v63  ;;  %v4402_v40 = vsel %vm10751_vm12, %v4312_v32, inf  ;;  %vm10752_vm14 = vmmov %vm10718_vm0 }
 0x67b   :  { %v4360_v59 = vsel %vm10752_vm14, %v4298_v28, inf  ;;  %vm10753_vm5 = vmmov %vm10718_vm0  ;;  %vm10768_vm14 = vcmask 1044484  }
 0x67c   :  { %v4408_v37 = vsel %vm10753_vm5, %v4314_v30, inf  ;;  %vm10755_vm8 = vmmov %vm10754_vm13 }
 0x67d   :  { %vm10756_vm1 = vmmov %vm10755_vm8 }
 0x67e   :  { %4382 = vmin.xlane.f32.xlu0 %v4381_v31  ;;  %4379 = vmin.xlane.f32.xlu1 %v4378_v3  ;;  %vm10758_vm2 = vmmov %vm10756_vm1 }
 0x67f   :  { %vm10759_vm15 = vmmov %vm10756_vm1 }
 0x680   :  { %vm10760_vm0 = vmmov %vm10756_vm1 }
 0x681   :  { %vm10762_vm9 = vmmov %vm10760_vm0 }
 0x682   :  { %4340 = vmin.xlane.f32.xlu0 %v4339_v35  ;;  %4337 = vmin.xlane.f32.xlu1 %v4336_v62  ;;  %vm10763_vm4 = vmmov %vm10760_vm0 }
 0x683   :  { %vm10765_vm3 = vmmov %vm10760_vm0 }
 0x684   :  { %vm10766_vm10 = vmmov %vm10760_vm0 }
 0x685   :  { %vm10767_vm12 = vmmov %vm10760_vm0 }
 0x686   :  { %4388 = vmin.xlane.f32.xlu0 %v4387_v48  ;;  %4385 = vmin.xlane.f32.xlu1 %v4384_v14  ;;  %vm10769_vm5 = vmmov %vm10757_vm7 }
 0x68a   :  { %4346 = vmin.xlane.f32.xlu0 %v4345_v36  ;;  %4343 = vmin.xlane.f32.xlu1 %v4342_v49 }
 0x68e   :  { %4394 = vmin.xlane.f32.xlu0 %v4393_v1  ;;  %4391 = vmin.xlane.f32.xlu1 %v4390_v17 }
 0x692   :  { %4352 = vmin.xlane.f32.xlu0 %v4351_v12  ;;  %4349 = vmin.xlane.f32.xlu1 %v4348_v25 }
 0x696   :  { %4400 = vmin.xlane.f32.xlu0 %v4399_v6  ;;  %4397 = vmin.xlane.f32.xlu1 %v4396_v16 }
 0x699   :  { %s5700_s1 = spop %5699 }
 0x69a   :  { %v3053_v22 = vstv %s5700_s1  ;;  %4358 = vmin.xlane.f32.xlu0 %v4357_v53  ;;  %4355 = vmin.xlane.f32.xlu1 %v4354_v61 }
 0x69b   :  { %3054 = vst [vmem:[#allocation7] sm:$0x1] %v3053_v22 }
 0x69e   :  { %4406 = vmin.xlane.f32.xlu0 %v4405_v34  ;;  %4403 = vmin.xlane.f32.xlu1 %v4402_v40 }
 0x6a2   :  { %4361 = vmin.xlane.f32.xlu1 %v4360_v59 }
 0x6a6   :  { %4409 = vmin.xlane.f32.xlu1 %v4408_v37 }
 0x6ef   :  { %v4317_v19 = vpop.xlane.xlu0 %4316 }
 0x6f0   :  { %v4446_v56 = vrot.slane %v4317_v19, %v10449_v47 }
 0x6f3   :  { %v4323_v54 = vpop.xlane.xlu0 %4322 }
 0x6f4   :  { %v4455_v12 = vrot.slane %v4323_v54, %v10449_v47 }
 0x6f7   :  { %v4320_v5 = vpop.xlane.xlu1 %4319  ;;  %v4365_v63 = vpop.xlane.xlu0 %4364 }
 0x6f8   :  { %v4450_v4 = vrot.slane %v4320_v5, %v10450_v60  ;;  %v4518_v46 = vrot.slane %v4365_v63, %v10449_v47 }
 0x6fa   :  { %v4451_v61 = vsel %vm10755_vm8, %v4450_v4, %v4446_v56  ;;  %vm10771_vm8 = vcmask 1045509  }
 0x6fb   :  { %v4326_v20 = vpop.xlane.xlu1 %4325  ;;  %v4371_v21 = vpop.xlane.xlu0 %4370 }
 0x6fc   :  { %v4459_v17 = vrot.slane %v4326_v20, %v10450_v60  ;;  %v4527_v22 = vrot.slane %v4371_v21, %v10449_v47 }
 0x6fe   :  { %v4460_v16 = vsel %vm10754_vm13, %v4459_v17, %v4455_v12  ;;  %vm10770_vm13 = vmmov %vm10760_vm0 }
 0x6ff   :  { %v4368_v31 = vpop.xlane.xlu1 %4367  ;;  %v4329_v3 = vpop.xlane.xlu0 %4328  ;;  %v4587_v59 = vsel %vm10757_vm7, %v4460_v16, %v4451_v61  ;;  %vm10773_vm7 = vmmov %vm10760_vm0 }
 0x700   :  { %v4522_v6 = vrot.slane %v4368_v31, %v10450_v60  ;;  %v4464_v7 = vrot.slane %v4329_v3, %v10449_v47 }
 0x702   :  { %v4523_v30 = vsel %vm10758_vm2, %v4522_v6, %v4518_v46  ;;  %vm10774_vm2 = vcmask 1046534  }
 0x703   :  { %v4374_v39 = vpop.xlane.xlu1 %4373  ;;  %v4377_v55 = vpop.xlane.xlu0 %4376 }
 0x704   :  { %v4531_v32 = vrot.slane %v4374_v39, %v10450_v60  ;;  %v4536_v39 = vrot.slane %v4377_v55, %v10449_v47 }
 0x706   :  { %v4532_v3 = vsel %vm10760_vm0, %v4531_v32, %v4527_v22 }
 0x707   :  { %v4332_v35 = vpop.xlane.xlu1 %4331  ;;  %v4335_v62 = vpop.xlane.xlu0 %4334  ;;  %v4594_v16 = vsel %vm10769_vm5, %v4532_v3, %v4523_v30 }
 0x708   :  { %v4468_v25 = vrot.slane %v4332_v35, %v10450_v60  ;;  %v4473_v40 = vrot.slane %v4335_v62, %v10449_v47 }
 0x70a   :  { %v4469_v34 = vsel %vm10756_vm1, %v4468_v25, %v4464_v7  ;;  %vm10772_vm1 = vmmov %vm10761_vm11 }
 0x70b   :  { %v4380_v38 = vpop.xlane.xlu1 %4379  ;;  %v4383_v45 = vpop.xlane.xlu0 %4382  ;;  %v4588_v35 = vsel %vm10761_vm11, %v4469_v34, %v4587_v59  ;;  %vm10777_vm11 = vmmov %vm10765_vm3 }
 0x70c   :  { %v4540_v37 = vrot.slane %v4380_v38, %v10450_v60  ;;  %v4545_v38 = vrot.slane %v4383_v45, %v10449_v47 }
 0x70f   :  { %v4338_v48 = vpop.xlane.xlu1 %4337  ;;  %v4341_v24 = vpop.xlane.xlu0 %4340 }
 0x710   :  { %v4477_v13 = vrot.slane %v4338_v48, %v10450_v60  ;;  %v4482_v5 = vrot.slane %v4341_v24, %v10449_v47 }
 0x712   :  { %v4478_v54 = vsel %vm10759_vm15, %v4477_v13, %v4473_v40  ;;  %vm10775_vm15 = vmmov %vm10760_vm0 }
 0x713   :  { %v4386_v14 = vpop.xlane.xlu1 %4385  ;;  %v4389_v0 = vpop.xlane.xlu0 %4388  ;;  %vm10776_vm0 = vmmov %vm10764_vm6 }
 0x714   :  { %v4549_v63 = vrot.slane %v4386_v14, %v10450_v60 }
 0x716   :  { %v4550_v4 = vsel %vm10766_vm10, %v4549_v63, %v4545_v38  ;;  %vm10782_vm10 = vmmov %vm10773_vm7 }
 0x717   :  { %v4344_v18 = vpop.xlane.xlu1 %4343  ;;  %v4347_v36 = vpop.xlane.xlu0 %4346 }
 0x718   :  { %v4486_v28 = vrot.slane %v4344_v18, %v10450_v60  ;;  %v4491_v62 = vrot.slane %v4347_v36, %v10449_v47  ;;  %v4541_v18 = vsel %vm10763_vm4, %v4540_v37, %v4536_v39  ;;  %v4554_v36 = vrot.slane %v4389_v0, %v10449_v47  ;;  %vm10779_vm4 = vmmov %vm10768_vm14 }
 0x71a   :  { %v4487_v48 = vsel %vm10762_vm9, %v4486_v28, %v4482_v5  ;;  %vm10778_vm9 = vcmask 1047559  }
 0x71b   :  { %v4392_v49 = vpop.xlane.xlu1 %4391  ;;  %v4395_v57 = vpop.xlane.xlu0 %4394 }
 0x71c   :  { %v4558_v24 = vrot.slane %v4392_v49, %v10450_v60 }
 0x71f   :  { %v4350_v10 = vpop.xlane.xlu1 %4349  ;;  %v4353_v1 = vpop.xlane.xlu0 %4352 }
 0x720   :  { %v4495_v19 = vrot.slane %v4350_v10, %v10450_v60  ;;  %v4500_v14 = vrot.slane %v4353_v1, %v10449_v47  ;;  %v4589_v10 = vsel %vm10764_vm6, %v4478_v54, %v4588_v35  ;;  %v4563_v1 = vrot.slane %v4395_v57, %v10449_v47  ;;  %vm10780_vm6 = vmmov %vm10771_vm8 }
 0x721   :  { %v4590_v49 = vsel %vm10768_vm14, %v4487_v48, %v4589_v10  ;;  %vm10784_vm14 = vmmov %vm10778_vm9 }
 0x722   :  { %v4496_v17 = vsel %vm10765_vm3, %v4495_v19, %v4491_v62  ;;  %vm10781_vm3 = vmmov %vm10774_vm2 }
 0x723   :  { %v4398_v23 = vpop.xlane.xlu1 %4397  ;;  %v4401_v50 = vpop.xlane.xlu0 %4400  ;;  %v4591_v7 = vsel %vm10771_vm8, %v4496_v17, %v4590_v49 }
 0x724   :  { %v4567_v55 = vrot.slane %v4398_v23, %v10450_v60  ;;  %v4559_v23 = vsel %vm10770_vm13, %v4558_v24, %v4554_v36  ;;  %v4572_v0 = vrot.slane %v4401_v50, %v10449_v47 }
 0x726   :  { %v4568_v61 = vsel %vm10773_vm7, %v4567_v55, %v4563_v1  ;;  %v9453_v1 = vld [vmem:[#allocation2 + $0x10] sm:$0xff] }
 0x727   :  { %v4356_v53 = vpop.xlane.xlu1 %4355  ;;  %v4359_v21 = vpop.xlane.xlu0 %4358 }
 0x728   :  { %v4504_v20 = vrot.slane %v4356_v53, %v10450_v60  ;;  %v4509_v56 = vrot.slane %v4359_v21, %v10449_v47  ;;  %v4595_v53 = vsel %vm10772_vm1, %v4541_v18, %v4594_v16 }
 0x729   :  { %v4596_v32 = vsel %vm10776_vm0, %v4550_v4, %v4595_v53 }
 0x72a   :  { %v4505_v45 = vsel %vm10767_vm12, %v4504_v20, %v4500_v14  ;;  %v4597_v28 = vsel %vm10779_vm4, %v4559_v23, %v4596_v32  ;;  %vm10783_vm12 = vcmask 130048   ;;  %v5121_v23 = vand.u32 2147483647, %v9453_v1 }
 0x72b   :  { %v4404_v31 = vpop.xlane.xlu1 %4403  ;;  %v4407_v13 = vpop.xlane.xlu0 %4406  ;;  %v4592_v46 = vsel %vm10774_vm2, %v4505_v45, %v4591_v7  ;;  %v4598_v37 = vsel %vm10780_vm6, %v4568_v61, %v4597_v28  ;;  %vm10785_vm5 = vmmov %vm10783_vm12  ;;  %v9462_v7 = vld [vmem:[#allocation2 + $0x18] sm:$0xff] }
 0x72c   :  { %v4576_v12 = vrot.slane %v4404_v31, %v10450_v60  ;;  %v4581_v50 = vrot.slane %v4407_v13, %v10449_v47  ;;  %vm10786_vm13 = vmmov %vm10785_vm5  ;;  %v5123_v61 = vsub.f32 0.0, %v5121_v23 }
 0x72d   :  { %vm10787_vm8 = vmmov %vm10785_vm5 }
 0x72e   :  { %v4577_v22 = vsel %vm10777_vm11, %v4576_v12, %v4572_v0  ;;  %vm10788_vm1 = vmmov %vm10785_vm5 }
 0x72f   :  { %v4362_v25 = vpop.xlane.xlu1 %4361  ;;  %v4599_v19 = vsel %vm10781_vm3, %v4577_v22, %v4598_v37  ;;  %vm10789_vm7 = vmmov %vm10788_vm1 }
 0x730   :  { %v4513_v6 = vrot.slane %v4362_v25, %v10450_v60  ;;  %vm10790_vm2 = vmmov %vm10788_vm1 }
 0x731   :  { %vm10792_vm0 = vmmov %vm10788_vm1 }
 0x732   :  { %v4514_v57 = vsel %vm10775_vm15, %v4513_v6, %v4509_v56  ;;  %vm10791_vm15 = vmmov %vm10788_vm1 }
 0x733   :  { %v9399_v34 = vsel %vm10778_vm9, %v4514_v57, %v4592_v46  ;;  %v4410_v40 = vpop.xlane.xlu1 %4409  ;;  %vm10793_vm11 = vmmov %vm10792_vm0 }
 0x734   :  { %v4585_v59 = vrot.slane %v4410_v40, %v10450_v60  ;;  %v4603_v30 = vadd.f32 %v9399_v34, %v10699_v11  ;;  %v4605_v63 = vadd.f32 %v9399_v34, %v10703_v43  ;;  %v4619_v39 = vadd.f32 %v9399_v34, %v10710_v8  ;;  %vm10794_vm9 = vmmov %vm10792_vm0 }
 0x735   :  { %v4621_v48 = vadd.f32 %v9399_v34, %v10714_v26  ;;  %vm10795_vm4 = vmmov %vm10792_vm0  ;;  %v4611_v6 = vadd.f32 %v9399_v34, %v10729_v41  ;;  %v4627_v13 = vadd.f32 %v9399_v34, %v10732_v9  ;;  %v4613_v32 = vadd.f32 %v9399_v34, %v10735_v29 }
 0x736   :  { %v4586_v54 = vsel %vm10782_vm10, %v4585_v59, %v4581_v50  ;;  %v4635_v5 = vsel %vm10783_vm12, %v4603_v30, inf  ;;  %v4641_v31 = vsel %vm10785_vm5, %v4605_v63, inf  ;;  %v4683_v62 = vsel %vm10787_vm8, %v4619_v39, inf  ;;  %vm10796_vm6 = vmmov %vm10792_vm0 }
 0x737   :  { %v9413_v20 = vsel %vm10784_vm14, %v4586_v54, %v4599_v19  ;;  %4636 = vmin.xlane.f32.xlu0 %v4635_v5  ;;  %v4689_v24 = vsel %vm10789_vm7, %v4621_v48, inf  ;;  %vm10797_vm3 = vmmov %vm10792_vm0  ;;  %v5125_v40 = vmul.f32 1.442695, %v5123_v61  ;;  %v4629_v59 = vadd.f32 %v9399_v34, %v10738_v27 }
 0x738   :  { %v4604_v21 = vadd.f32 %v9413_v20, %v10699_v11  ;;  %v4606_v35 = vadd.f32 %v9413_v20, %v10703_v43  ;;  %v4620_v11 = vadd.f32 %v9413_v20, %v10710_v8  ;;  %v4607_v43 = vadd.f32 %v9399_v34, %v10717_v44  ;;  %vm10798_vm10 = vmmov %vm10792_vm0 }
 0x739   :  { %v4622_v18 = vadd.f32 %v9413_v20, %v10714_v26  ;;  %v4623_v8 = vadd.f32 %v9399_v34, %v10720_v58  ;;  %v4608_v55 = vadd.f32 %v9413_v20, %v10717_v44  ;;  %v4609_v26 = vadd.f32 %v9399_v34, %v10723_v2  ;;  %vm10799_vm12 = vmmov %vm10792_vm0 }
 0x73a   :  { %v4638_v3 = vsel %vm10786_vm13, %v4604_v21, inf  ;;  %v4644_v38 = vsel %vm10788_vm1, %v4606_v35, inf  ;;  %v4686_v14 = vsel %vm10790_vm2, %v4620_v11, inf  ;;  %v4647_v10 = vsel %vm10791_vm15, %v4607_v43, inf  ;;  %vm10800_vm14 = vmmov %vm10792_vm0 }
 0x73b   :  { %4642 = vmin.xlane.f32.xlu0 %v4641_v31  ;;  %4639 = vmin.xlane.f32.xlu1 %v4638_v3  ;;  %v4692_v17 = vsel %vm10792_vm0, %v4622_v18, inf  ;;  %v4695_v4 = vsel %vm10793_vm11, %v4623_v8, inf  ;;  %v4650_v36 = vsel %vm10794_vm9, %v4608_v55, inf  ;;  %v4624_v45 = vadd.f32 %v9413_v20, %v10720_v58  ;;  %vm10801_vm5 = vmmov %vm10792_vm0 }
 0x73c   :  { %v4653_v12 = vsel %vm10795_vm4, %v4609_v26, inf  ;;  %v4625_v44 = vadd.f32 %v9399_v34, %v10726_v51  ;;  %v4610_v49 = vadd.f32 %v9413_v20, %v10723_v2  ;;  %v4626_v16 = vadd.f32 %v9413_v20, %v10726_v51  ;;  %vm10802_vm13 = vmmov %vm10792_vm0 }
 0x73d   :  { %v4698_v25 = vsel %vm10796_vm6, %v4624_v45, inf  ;;  %v4659_v2 = vsel %vm10799_vm12, %v4611_v6, inf  ;;  %v4612_v53 = vadd.f32 %v9413_v20, %v10729_v41  ;;  %v5122_v51 = vand.u32 2147483647, %v9462_v7  ;;  %vm10803_vm8 = vmmov %vm10792_vm0  ;;  %v5989_v45 = vld [vmem:[#allocation5 + $0x18] sm:$0xff] }
 0x73e   :  { %v4701_v56 = vsel %vm10797_vm3, %v4625_v44, inf  ;;  %v4656_v58 = vsel %vm10798_vm10, %v4610_v49, inf  ;;  %v4704_v0 = vsel %vm10800_vm14, %v4626_v16, inf  ;;  %v4707_v46 = vsel %vm10801_vm5, %v4627_v13, inf  ;;  %vm10804_vm1 = vmmov %vm10792_vm0  ;;  %v10815_v49 = vld [vmem:[#allocation11_spill] sm:$0xff]  ;;  %v10816_v6 = vld [vmem:[#allocation42_spill] sm:$0xff] }
 0x73f   :  { %4684 = vmin.xlane.f32.xlu0 %v4683_v62  ;;  %4645 = vmin.xlane.f32.xlu1 %v4644_v38  ;;  %v4662_v57 = vsel %vm10802_vm13, %v4612_v53, inf  ;;  %v4628_v22 = vadd.f32 %v9413_v20, %v10732_v9  ;;  %v5124_v28 = vsub.f32 0.0, %v5122_v51  ;;  %v4665_v41 = vsel %vm10803_vm8, %v4613_v32, inf  ;;  %vm10805_vm7 = vmmov %vm10792_vm0  ;;  %v10818_v13 = vld [vmem:[#allocation48_spill] sm:$0xff]  ;;  %v10819_v51 = vld [vmem:[#allocation49_spill] sm:$0xff] }
 0x740   :  { %v4614_v30 = vadd.f32 %v9413_v20, %v10735_v29  ;;  %5850 = vpow2.f32 %v5125_v40  ;;  %v4713_v9 = vsel %vm10805_vm7, %v4629_v59, inf  ;;  %vm10806_vm2 = vmmov %vm10792_vm0  ;;  %v4615_v54 = vadd.f32 %v9399_v34, %v10741_v15  ;;  %v10820_v32 = vld [vmem:[#allocation50_spill] sm:$0xff]  ;;  %v10822_v59 = vld [vmem:[#allocation52_spill] sm:$0xff] }
 0x741   :  { %v4710_v50 = vsel %vm10804_vm1, %v4628_v22, inf  ;;  %v5127_v37 = vmul.f32 1.442695, %v5124_v28  ;;  %v4630_v5 = vadd.f32 %v9413_v20, %v10738_v27  ;;  %vm10807_vm15 = vmmov %vm10792_vm0  ;;  %v4631_v21 = vadd.f32 %v9399_v34, %v10743_v52  ;;  %v10821_v28 = vld [vmem:[#allocation51_spill] sm:$0xff] }
 0x742   :  { %v4668_v19 = vsel %vm10806_vm2, %v4614_v30, inf  ;;  %v4671_v63 = vsel %vm10807_vm15, %v4615_v54, inf  ;;  %v4616_v31 = vadd.f32 %v9413_v20, %v10741_v15  ;;  %vm10808_vm11 = vmmov %vm10792_vm0  ;;  %v4617_v35 = vadd.f32 %v9399_v34, %v10746_v42 }
 0x743   :  { %4690 = vmin.xlane.f32.xlu0 %v4689_v24  ;;  %4687 = vmin.xlane.f32.xlu1 %v4686_v14  ;;  %5852 = vpow2.f32 %v5127_v37  ;;  %v4716_v29 = vsel %vm10792_vm0, %v4630_v5, inf  ;;  %v4719_v39 = vsel %vm10808_vm11, %v4631_v21, inf  ;;  %vm10809_vm9 = vmmov %vm10792_vm0  ;;  %v4632_v62 = vadd.f32 %v9413_v20, %v10743_v52 }
 0x744   :  { %v4674_v27 = vsel %vm10809_vm9, %v4616_v31, inf  ;;  %vm10810_vm4 = vmmov %vm10792_vm0  ;;  %v4633_v24 = vadd.f32 %v9399_v34, %v10749_v33  ;;  %v4618_v14 = vadd.f32 %v9413_v20, %v10746_v42  ;;  %v5115_v34 = vmax.f32 %v9453_v1, 0.0  ;;  %v5988_v42 = vld [vmem:[#allocation5 + $0x10] sm:$0xff] }
 0x745   :  { %v4677_v11 = vsel %vm10810_vm4, %v4617_v35, inf  ;;  %vm10811_vm6 = vmmov %vm10792_vm0  ;;  %v5117_v8 = vmul.f32 %v5988_v42, %v9453_v1  ;;  %v5116_v26 = vmax.f32 %v9462_v7, 0.0 }
 0x746   :  { %v4722_v15 = vsel %vm10811_vm6, %v4632_v62, inf  ;;  %vm10812_vm3 = vmmov %vm10792_vm0 }
 0x747   :  { %4648 = vmin.xlane.f32.xlu0 %v4647_v10  ;;  %4693 = vmin.xlane.f32.xlu1 %v4692_v17  ;;  %v4725_v52 = vsel %vm10812_vm3, %v4633_v24, inf  ;;  %vm10813_vm10 = vmmov %vm10792_vm0  ;;  %v4634_v10 = vadd.f32 %v9413_v20, %v10749_v33 }
 0x748   :  { %v4680_v18 = vsel %vm10813_vm10, %v4618_v14, inf  ;;  %vm10814_vm12 = vmmov %vm10792_vm0 }
 0x749   :  { %v4728_v17 = vsel %vm10814_vm12, %v4634_v10, inf }
 0x74a   :  { %v5851_v3 = vpop.eup %5850 }
 0x74b   :  { %4696 = vmin.xlane.f32.xlu0 %v4695_v4  ;;  %4651 = vmin.xlane.f32.xlu1 %v4650_v36  ;;  %v5129_v38 = vadd.f32 1.0, %v5851_v3  ;;  %v5119_v4 = vsub.f32 %v5115_v34, %v5117_v8 }
 0x74d   :  { %v5853_v48 = vpop.eup %5852  ;;  %5854 = vlog2.f32 %v5129_v38 }
 0x74e   :  { %v5130_v43 = vadd.f32 1.0, %v5853_v48 }
 0x74f   :  { %4654 = vmin.xlane.f32.xlu0 %v4653_v12  ;;  %4699 = vmin.xlane.f32.xlu1 %v4698_v25  ;;  %v5118_v12 = vmul.f32 %v5989_v45, %v9462_v7  ;;  %v10817_v7 = vld [vmem:[#allocation47_spill] sm:$0xff] }
 0x750   :  { %5856 = vlog2.f32 %v5130_v43 }
 0x751   :  { %v5120_v25 = vsub.f32 %v5116_v26, %v5118_v12 }
 0x753   :  { %4702 = vmin.xlane.f32.xlu0 %v4701_v56  ;;  %4657 = vmin.xlane.f32.xlu1 %v4656_v58 }
 0x757   :  { %4660 = vmin.xlane.f32.xlu0 %v4659_v2  ;;  %4705 = vmin.xlane.f32.xlu1 %v4704_v0  ;;  %v5855_v55 = vpop.eup %5854 }
 0x758   :  { %v5132_v36 = vmul.f32 0.6931472, %v5855_v55 }
 0x75a   :  { %v5857_v33 = vpop.eup %5856  ;;  %v5135_v20 = vadd.f32 %v5132_v36, %v5119_v4 }
 0x75b   :  { %4708 = vmin.xlane.f32.xlu0 %v4707_v46  ;;  %4663 = vmin.xlane.f32.xlu1 %v4662_v57  ;;  %v5134_v44 = vmul.f32 0.6931472, %v5857_v33 }
 0x75c   :  { %v5142_v56 = vrot.slane %v5135_v20, %v10815_v49  ;;  %v5153_v16 = vrot.slane %v5135_v20, %v10816_v6  ;;  %v5164_v2 = vrot.slane %v5135_v20, %v10817_v7  ;;  %v5175_v53 = vrot.slane %v5135_v20, %v10818_v13 }
 0x75d   :  { %v5136_v58 = vadd.f32 %v5134_v44, %v5120_v25  ;;  %v5186_v46 = vrot.slane %v5135_v20, %v10819_v51  ;;  %v5197_v22 = vrot.slane %v5135_v20, %v10820_v32  ;;  %v5219_v30 = vrot.slane %v5135_v20, %v10822_v59 }
 0x75f   :  { %4666 = vmin.xlane.f32.xlu0 %v4665_v41  ;;  %4711 = vmin.xlane.f32.xlu1 %v4710_v50  ;;  %v5230_v1 = vrot.slane %v5136_v58, %v10815_v49  ;;  %v5241_v23 = vrot.slane %v5136_v58, %v10816_v6  ;;  %v5252_v0 = vrot.slane %v5136_v58, %v10817_v7 }
 0x760   :  { %v5263_v61 = vrot.slane %v5136_v58, %v10818_v13  ;;  %v5274_v57 = vrot.slane %v5136_v58, %v10819_v51  ;;  %v5285_v40 = vrot.slane %v5136_v58, %v10820_v32  ;;  %v5208_v41 = vrot.slane %v5135_v20, %v10821_v28 }
 0x761   :  { %v5296_v50 = vrot.slane %v5136_v58, %v10821_v28  ;;  %v5307_v37 = vrot.slane %v5136_v58, %v10822_v59 }
 0x763   :  { %4714 = vmin.xlane.f32.xlu0 %v4713_v9  ;;  %4669 = vmin.xlane.f32.xlu1 %v4668_v19 }
 0x767   :  { %4672 = vmin.xlane.f32.xlu0 %v4671_v63  ;;  %4717 = vmin.xlane.f32.xlu1 %v4716_v29 }
 0x76b   :  { %4720 = vmin.xlane.f32.xlu0 %v4719_v39  ;;  %4675 = vmin.xlane.f32.xlu1 %v4674_v27 }
 0x76f   :  { %4678 = vmin.xlane.f32.xlu0 %v4677_v11  ;;  %4723 = vmin.xlane.f32.xlu1 %v4722_v15 }
 0x773   :  { %4726 = vmin.xlane.f32.xlu0 %v4725_v52  ;;  %4681 = vmin.xlane.f32.xlu1 %v4680_v18 }
 0x777   :  { %4729 = vmin.xlane.f32.xlu1 %v4728_v17 }
 0x788   :  { %5148 = vbcast.lane.b32.xlu1 %v5142_v56, 264 }
 0x789   :  { %5144 = vbcast.lane.b32.xlu0 %v5142_v56, 256 }
 0x78c   :  { %5155 = vbcast.lane.b32.xlu1 %v5153_v16, 256 }
 0x78d   :  { %5232 = vbcast.lane.b32.xlu0 %v5230_v1, 256 }
 0x790   :  { %5159 = vbcast.lane.b32.xlu1 %v5153_v16, 264 }
 0x791   :  { %5243 = vbcast.lane.b32.xlu0 %v5241_v23, 256 }
 0x794   :  { %5236 = vbcast.lane.b32.xlu1 %v5230_v1, 264 }
 0x795   :  { %5166 = vbcast.lane.b32.xlu0 %v5164_v2, 256 }
 0x798   :  { %5247 = vbcast.lane.b32.xlu1 %v5241_v23, 264 }
 0x799   :  { %5254 = vbcast.lane.b32.xlu0 %v5252_v0, 256 }
 0x79c   :  { %5170 = vbcast.lane.b32.xlu1 %v5164_v2, 264 }
 0x79d   :  { %5177 = vbcast.lane.b32.xlu0 %v5175_v53, 256 }
 0x7a0   :  { %5258 = vbcast.lane.b32.xlu1 %v5252_v0, 264 }
 0x7a1   :  { %5265 = vbcast.lane.b32.xlu0 %v5263_v61, 256 }
 0x7a4   :  { %5181 = vbcast.lane.b32.xlu1 %v5175_v53, 264 }
 0x7a5   :  { %5188 = vbcast.lane.b32.xlu0 %v5186_v46, 256 }
 0x7a8   :  { %5269 = vbcast.lane.b32.xlu1 %v5263_v61, 264 }
 0x7a9   :  { %5276 = vbcast.lane.b32.xlu0 %v5274_v57, 256 }
 0x7ac   :  { %5192 = vbcast.lane.b32.xlu1 %v5186_v46, 264 }
 0x7ad   :  { %5199 = vbcast.lane.b32.xlu0 %v5197_v22, 256 }
 0x7b0   :  { %5280 = vbcast.lane.b32.xlu1 %v5274_v57, 264 }
 0x7b1   :  { %5287 = vbcast.lane.b32.xlu0 %v5285_v40, 256 }
 0x7b4   :  { %5203 = vbcast.lane.b32.xlu1 %v5197_v22, 264 }
 0x7b5   :  { %5210 = vbcast.lane.b32.xlu0 %v5208_v41, 256 }
 0x7b8   :  { %5291 = vbcast.lane.b32.xlu1 %v5285_v40, 264 }
 0x7b9   :  { %5298 = vbcast.lane.b32.xlu0 %v5296_v50, 256 }
 0x7bc   :  { %5214 = vbcast.lane.b32.xlu1 %v5208_v41, 264 }
 0x7bd   :  { %5221 = vbcast.lane.b32.xlu0 %v5219_v30, 256 }
 0x7c0   :  { %5302 = vbcast.lane.b32.xlu1 %v5296_v50, 264 }
 0x7c1   :  { %5309 = vbcast.lane.b32.xlu0 %v5307_v37, 256 }
 0x7c4   :  { %v4637_v9 = vpop.xlane.xlu0 %4636  ;;  %5225 = vbcast.lane.b32.xlu1 %v5219_v30, 264 }
 0x7c5   :  { %v4731_v19 = vmax.f32 %v4637_v9, 0.0 }
 0x7c7   :  { %5858 = vrsqrt.f32 %v4731_v19  ;;  %vm4765_vm14 = vcmp.eq.f32.partialorder %v4731_v19, inf  ;;  %vm4767_vm5 = vcmp.eq.f32.partialorder %v4731_v19, 0.0  ;;  %v4768_v15 = vand.u32 2147483648, %v4731_v19 }
 0x7c8   :  { %v4640_v54 = vpop.xlane.xlu1 %4639  ;;  %v4643_v5 = vpop.xlane.xlu0 %4642  ;;  %5313 = vbcast.lane.b32.xlu1 %v5307_v37, 264 }
 0x7c9   :  { %v4732_v63 = vmax.f32 %v4640_v54, 0.0  ;;  %v4733_v29 = vmax.f32 %v4643_v5, 0.0 }
 0x7cb   :  { %5860 = vrsqrt.f32 %v4732_v63  ;;  %vm4772_vm13 = vcmp.eq.f32.partialorder %v4732_v63, inf  ;;  %vm4774_vm8 = vcmp.eq.f32.partialorder %v4732_v63, 0.0  ;;  %v4775_v24 = vand.u32 2147483648, %v4732_v63 }
 0x7cc   :  { %5862 = vrsqrt.f32 %v4733_v29  ;;  %v4646_v21 = vpop.xlane.xlu1 %4645  ;;  %v4685_v31 = vpop.xlane.xlu0 %4684  ;;  %vm4779_vm1 = vcmp.eq.f32.partialorder %v4733_v29, inf  ;;  %vm4781_vm7 = vcmp.eq.f32.partialorder %v4733_v29, 0.0  ;;  %v4782_v42 = vand.u32 2147483648, %v4733_v29 }
 0x7cd   :  { %v9532_v3 = vmax.f32 %v4646_v21, 0.0  ;;  %v9534_v39 = vmax.f32 %v4685_v31, 0.0 }
 0x7cf   :  { %5864 = vrsqrt.f32 %v9532_v3  ;;  %vm4877_vm2 = vcmp.eq.f32.partialorder %v9534_v39, inf  ;;  %vm4879_vm15 = vcmp.eq.f32.partialorder %v9534_v39, 0.0  ;;  %v4880_v26 = vand.u32 2147483648, %v9534_v39 }
 0x7d0   :  { %5866 = vrsqrt.f32 %v9534_v39  ;;  %v4688_v27 = vpop.xlane.xlu1 %4687  ;;  %v4691_v35 = vpop.xlane.xlu0 %4690  ;;  %vm4786_vm0 = vcmp.eq.f32.partialorder %v9532_v3, inf  ;;  %vm4788_vm11 = vcmp.eq.f32.partialorder %v9532_v3, 0.0  ;;  %v4789_v25 = vand.u32 2147483648, %v9532_v3 }
 0x7d1   :  { %v5859_v62 = vpop.eup %5858  ;;  %v9538_v38 = vmax.f32 %v4688_v27, 0.0  ;;  %v9540_v48 = vmax.f32 %v4691_v35, 0.0 }
 0x7d2   :  { %v4764_v11 = vmul.f32 %v5859_v62, %v4731_v19 }
 0x7d3   :  { %5868 = vrsqrt.f32 %v9538_v38  ;;  %v4894_v20 = vand.u32 2147483648, %v9540_v48  ;;  %vm4891_vm9 = vcmp.eq.f32.partialorder %v9540_v48, inf  ;;  %vm4893_vm4 = vcmp.eq.f32.partialorder %v9540_v48, 0.0 }
 0x7d4   :  { %5870 = vrsqrt.f32 %v9540_v48  ;;  %v4694_v14 = vpop.xlane.xlu1 %4693  ;;  %v4649_v43 = vpop.xlane.xlu0 %4648  ;;  %v4766_v52 = vsel %vm4765_vm14, %v4731_v19, %v4764_v11  ;;  %vm4884_vm6 = vcmp.eq.f32.partialorder %v9538_v38, inf  ;;  %vm4886_vm3 = vcmp.eq.f32.partialorder %v9538_v38, 0.0 }
 0x7d5   :  { %v5861_v18 = vpop.eup %5860  ;;  %v9544_v10 = vmax.f32 %v4694_v14, 0.0  ;;  %v9546_v17 = vmax.f32 %v4649_v43, 0.0  ;;  %v4769_v34 = vsel %vm4767_vm5, %v4768_v15, %v4766_v52  ;;  %v4887_v28 = vand.u32 2147483648, %v9538_v38 }
 0x7d6   :  { %v5863_v8 = vpop.eup %5862  ;;  %v4771_v55 = vmul.f32 %v5861_v18, %v4732_v63  ;;  %v4987_v4 = vsub.f32 0.0, %v4769_v34 }
 0x7d7   :  { %v4778_v36 = vmul.f32 %v5863_v8, %v4733_v29  ;;  %5872 = vrsqrt.f32 %v9546_v17  ;;  %vm4793_vm10 = vcmp.eq.f32.partialorder %v9546_v17, inf  ;;  %vm4795_vm12 = vcmp.eq.f32.partialorder %v9546_v17, 0.0 }
 0x7d8   :  { %v4652_v45 = vpop.xlane.xlu1 %4651  ;;  %v4697_v12 = vpop.xlane.xlu0 %4696  ;;  %v4773_v33 = vsel %vm4772_vm13, %v4732_v63, %v4771_v55  ;;  %5874 = vrsqrt.f32 %v9544_v10  ;;  %v5019_v1 = vmul.f32 0.7, %v4987_v4  ;;  %v4796_v14 = vand.u32 2147483648, %v9546_v17 }
 0x7d9   :  { %v5865_v44 = vpop.eup %5864  ;;  %v9558_v49 = vmax.f32 %v4697_v12, 0.0  ;;  %v4776_v56 = vsel %vm4774_vm8, %v4775_v24, %v4773_v33  ;;  %v4780_v58 = vsel %vm4779_vm1, %v4733_v29, %v4778_v36  ;;  %v9567_v0 = vmax.f32 %v4652_v45, 0.0 }
 0x7da   :  { %v5867_v6 = vpop.eup %5866  ;;  %v4785_v16 = vmul.f32 %v5865_v44, %v9532_v3  ;;  %v4988_v23 = vsub.f32 0.0, %v4776_v56  ;;  %v4783_v7 = vsel %vm4781_vm7, %v4782_v42, %v4780_v58  ;;  %v5051_v59 = vmul.f32 1.442695, %v5019_v1 }
 0x7db   :  { %v4876_v2 = vmul.f32 %v5867_v6, %v9534_v39  ;;  %v4989_v13 = vsub.f32 0.0, %v4783_v7  ;;  %5876 = vrsqrt.f32 %v9558_v49  ;;  %vm4905_vm14 = vcmp.eq.f32.partialorder %v9558_v49, inf }
 0x7dc   :  { %v4700_v53 = vpop.xlane.xlu1 %4699  ;;  %v4655_v61 = vpop.xlane.xlu0 %4654  ;;  %v5020_v51 = vmul.f32 0.7, %v4988_v23  ;;  %v4787_v46 = vsel %vm4786_vm0, %v9532_v3, %v4785_v16  ;;  %5878 = vrsqrt.f32 %v9567_v0  ;;  %vm4907_vm5 = vcmp.eq.f32.partialorder %v9558_v49, 0.0 }
 0x7dd   :  { %v5869_v57 = vpop.eup %5868  ;;  %v9575_v32 = vmax.f32 %v4700_v53, 0.0  ;;  %v9577_v22 = vmax.f32 %v4655_v61, 0.0  ;;  %v4878_v40 = vsel %vm4877_vm2, %v9534_v39, %v4876_v2  ;;  %v5021_v37 = vmul.f32 0.7, %v4989_v13 }
 0x7de   :  { %v5871_v41 = vpop.eup %5870  ;;  %v4883_v50 = vmul.f32 %v5869_v57, %v9538_v38  ;;  %v4881_v30 = vsel %vm4879_vm15, %v4880_v26, %v4878_v40  ;;  %v5053_v19 = vmul.f32 1.442695, %v5020_v51  ;;  %v4790_v54 = vsel %vm4788_vm11, %v4789_v25, %v4787_v46 }
 0x7df   :  { %v4890_v9 = vmul.f32 %v5871_v41, %v9540_v48  ;;  %5880 = vrsqrt.f32 %v9577_v22  ;;  %v5003_v29 = vsub.f32 0.0, %v4881_v30  ;;  %v5055_v27 = vmul.f32 1.442695, %v5021_v37 }
 0x7e0   :  { %v4658_v5 = vpop.xlane.xlu1 %4657  ;;  %v4703_v63 = vpop.xlane.xlu0 %4702  ;;  %5882 = vrsqrt.f32 %v9575_v32  ;;  %v4885_v3 = vsel %vm4884_vm6, %v9538_v38, %v4883_v50  ;;  %v4990_v62 = vsub.f32 0.0, %v4790_v54  ;;  %v4908_v7 = vand.u32 2147483648, %v9558_v49 }
 0x7e1   :  { %v9594_v21 = vmax.f32 %v4658_v5, 0.0  ;;  %v9596_v31 = vmax.f32 %v4703_v63, 0.0  ;;  %v5873_v39 = vpop.eup %5872  ;;  %5884 = vpow2.f32 %v5051_v59  ;;  %v4892_v35 = vsel %vm4891_vm9, %v9540_v48, %v4890_v9 }
 0x7e2   :  { %v5875_v11 = vpop.eup %5874  ;;  %v4792_v15 = vmul.f32 %v5873_v39, %v9546_v17  ;;  %5886 = vpow2.f32 %v5053_v19  ;;  %v4895_v24 = vsel %vm4893_vm4, %v4894_v20, %v4892_v35  ;;  %v5035_v18 = vmul.f32 0.7, %v5003_v29 }
 0x7e3   :  { %5888 = vrsqrt.f32 %v9594_v21  ;;  %v5005_v34 = vsub.f32 0.0, %v4895_v24  ;;  %v4888_v42 = vsel %vm4886_vm3, %v4887_v28, %v4885_v3  ;;  %v4897_v36 = vmul.f32 %v5875_v11, %v9544_v10 }
 0x7e4   :  { %v4706_v43 = vpop.xlane.xlu1 %4705  ;;  %v4661_v52 = vpop.xlane.xlu0 %4660  ;;  %5890 = vrsqrt.f32 %v9596_v31  ;;  %v4794_v48 = vsel %vm4793_vm10, %v9546_v17, %v4792_v15  ;;  %v5022_v26 = vmul.f32 0.7, %v4990_v62  ;;  %v5004_v20 = vsub.f32 0.0, %v4888_v42 }
 0x7e5   :  { %v9612_v8 = vmax.f32 %v4706_v43, 0.0  ;;  %v9614_v55 = vmax.f32 %v4661_v52, 0.0  ;;  %v5877_v4 = vpop.eup %5876  ;;  %5892 = vpow2.f32 %v5055_v27  ;;  %v4797_v45 = vsel %vm4795_vm12, %v4796_v14, %v4794_v48 }
 0x7e6   :  { %v4904_v38 = vmul.f32 %v5877_v4, %v9558_v49  ;;  %v5037_v12 = vmul.f32 0.7, %v5005_v34  ;;  %v4991_v33 = vsub.f32 0.0, %v4797_v45  ;;  %v5879_v56 = vpop.eup %5878  ;;  %v5083_v17 = vmul.f32 1.442695, %v5035_v18 }
 0x7e7   :  { %5894 = vrsqrt.f32 %v9612_v8  ;;  %v5057_v1 = vmul.f32 1.442695, %v5022_v26  ;;  %vm4898_vm13 = vcmp.eq.f32.partialorder %v9544_v10, inf  ;;  %v5036_v61 = vmul.f32 0.7, %v5004_v20 }
 0x7e8   :  { %v4664_v25 = vpop.xlane.xlu1 %4663  ;;  %v4709_v44 = vpop.xlane.xlu0 %4708  ;;  %5896 = vrsqrt.f32 %v9614_v55  ;;  %v5023_v6 = vmul.f32 0.7, %v4991_v33  ;;  %v4906_v23 = vsel %vm4905_vm14, %v9558_v49, %v4904_v38  ;;  %v5087_v53 = vmul.f32 1.442695, %v5037_v12 }
 0x7e9   :  { %v9627_v58 = vmax.f32 %v4664_v25, 0.0  ;;  %v5881_v16 = vpop.eup %5880  ;;  %v9632_v13 = vmax.f32 %v4709_v44, 0.0  ;;  %v4899_v51 = vsel %vm4898_vm13, %v9544_v10, %v4897_v36  ;;  %v4909_v41 = vsel %vm4907_vm5, %v4908_v7, %v4906_v23 }
 0x7ea   :  { %v5883_v2 = vpop.eup %5882  ;;  %v4806_v57 = vmul.f32 %v5881_v16, %v9577_v22  ;;  %v4901_v50 = vand.u32 2147483648, %v9544_v10  ;;  %v5059_v30 = vmul.f32 1.442695, %v5023_v6  ;;  %v5007_v37 = vsub.f32 0.0, %v4909_v41 }
 0x7eb   :  { %v9635_v46 = vpop.eup %5884  ;;  %5898 = vrsqrt.f32 %v9627_v58  ;;  %vm4900_vm8 = vcmp.eq.f32.partialorder %v9544_v10, 0.0  ;;  %v4799_v19 = vmul.f32 %v5879_v56, %v9567_v0  ;;  %v9647_v54 = vmul.f32 %v5883_v2, %v9575_v32 }
 0x7ec   :  { %v4712_v40 = vpop.xlane.xlu1 %4711  ;;  %v4667_v28 = vpop.xlane.xlu0 %4666  ;;  %5900 = vpow2.f32 %v5083_v17  ;;  %v4902_v5 = vsel %vm4900_vm8, %v4901_v50, %v4899_v51  ;;  %vm4807_vm1 = vcmp.eq.f32.partialorder %v9577_v22, inf  ;;  %v5085_v27 = vmul.f32 1.442695, %v5036_v61 }
 0x7ed   :  { %v9642_v59 = vpop.eup %5886  ;;  %5902 = vpow2.f32 %v5057_v1  ;;  %v9649_v49 = vmax.f32 %v4712_v40, 0.0  ;;  %v5006_v29 = vsub.f32 0.0, %v4902_v5  ;;  %v4808_v35 = vsel %vm4807_vm1, %v9577_v22, %v4806_v57 }
 0x7ee   :  { %v5889_v9 = vpop.eup %5888  ;;  %5904 = vpow2.f32 %v5087_v53  ;;  %v4810_v62 = vand.u32 2147483648, %v9577_v22  ;;  %v9657_v11 = vmax.f32 %v4667_v28, 0.0  ;;  %v5039_v15 = vmul.f32 0.7, %v5007_v37 }
 0x7ef   :  { %v5891_v63 = vpop.eup %5890  ;;  %5906 = vrsqrt.f32 %v9632_v13  ;;  %vm4809_vm7 = vcmp.eq.f32.partialorder %v9577_v22, 0.0  ;;  %v9661_v14 = vmul.f32 %v5889_v9, %v9594_v21  ;;  %v5038_v52 = vmul.f32 0.7, %v5006_v29 }
 0x7f0   :  { %v9652_v3 = vpop.eup %5892  ;;  %v4670_v10 = vpop.xlane.xlu1 %4669  ;;  %5908 = vpow2.f32 %v5059_v30  ;;  %v4918_v43 = vmul.f32 %v5891_v63, %v9596_v31  ;;  %v4811_v18 = vsel %vm4809_vm7, %v4810_v62, %v4808_v35  ;;  %vm4800_vm2 = vcmp.eq.f32.partialorder %v9567_v0, inf }
 0x7f1   :  { %v4715_v39 = vpop.xlane.xlu0 %4714  ;;  %v5895_v24 = vpop.eup %5894  ;;  %5910 = vrsqrt.f32 %v9649_v49  ;;  %v9665_v42 = vmax.f32 %v4670_v10, 0.0  ;;  %v4993_v48 = vsub.f32 0.0, %v4811_v18  ;;  %v4801_v26 = vsel %vm4800_vm2, %v9567_v0, %v4799_v19 }
 0x7f2   :  { %v5897_v34 = vpop.eup %5896  ;;  %v9668_v4 = vmax.f32 %v4715_v39, 0.0  ;;  %5912 = vpow2.f32 %v5085_v27  ;;  %v4803_v45 = vand.u32 2147483648, %v9567_v0  ;;  %v9673_v38 = vmul.f32 %v5895_v24, %v9612_v8 }
 0x7f3   :  { %5914 = vrsqrt.f32 %v9657_v11  ;;  %v5091_v12 = vmul.f32 1.442695, %v5039_v15  ;;  %vm4802_vm15 = vcmp.eq.f32.partialorder %v9567_v0, 0.0  ;;  %v4820_v20 = vmul.f32 %v5897_v34, %v9614_v55 }
 0x7f4   :  { %v4718_v36 = vpop.xlane.xlu1 %4717  ;;  %v5089_v25 = vmul.f32 1.442695, %v5038_v52  ;;  %v4804_v44 = vsel %vm4802_vm15, %v4803_v45, %v4801_v26  ;;  %vm4919_vm0 = vcmp.eq.f32.partialorder %v9596_v31, inf  ;;  %5916 = vrsqrt.f32 %v9665_v42 }
 0x7f5   :  { %v4673_v22 = vpop.xlane.xlu0 %4672  ;;  %v5899_v33 = vpop.eup %5898  ;;  %v9682_v17 = vmax.f32 %v4718_v36, 0.0  ;;  %v5025_v6 = vmul.f32 0.7, %v4993_v48  ;;  %v4920_v16 = vsel %vm4919_vm0, %v9596_v31, %v4918_v43  ;;  %5918 = vrsqrt.f32 %v9668_v4 }
 0x7f6   :  { %v9679_v56 = vpop.eup %5900  ;;  %v9688_v0 = vmax.f32 %v4673_v22, 0.0  ;;  %v4992_v2 = vsub.f32 0.0, %v4804_v44  ;;  %v4922_v53 = vand.u32 2147483648, %v9596_v31  ;;  %v9694_v51 = vmul.f32 %v5899_v33, %v9627_v58 }
 0x7f7   :  { %v9685_v1 = vpop.eup %5902  ;;  %5920 = vpow2.f32 %v5091_v12  ;;  %vm4921_vm11 = vcmp.eq.f32.partialorder %v9596_v31, 0.0  ;;  %vm4912_vm9 = vcmp.eq.f32.partialorder %v9575_v32, inf  ;;  %v5063_v30 = vmul.f32 1.442695, %v5025_v6 }
 0x7f8   :  { %v4676_v23 = vpop.xlane.xlu1 %4675  ;;  %v9691_v61 = vpop.eup %5904  ;;  %5922 = vpow2.f32 %v5089_v25  ;;  %v4923_v41 = vsel %vm4921_vm11, %v4922_v53, %v4920_v16  ;;  %v4913_v9 = vsel %vm4912_vm9, %v9575_v32, %v9647_v54  ;;  %v5024_v5 = vmul.f32 0.7, %v4992_v2 }
 0x7f9   :  { %v4721_v7 = vpop.xlane.xlu0 %4720  ;;  %v9696_v57 = vmax.f32 %v4676_v23, 0.0  ;;  %v5907_v40 = vpop.eup %5906  ;;  %5924 = vrsqrt.f32 %v9682_v17  ;;  %v5009_v37 = vsub.f32 0.0, %v4923_v41  ;;  %vm4914_vm4 = vcmp.eq.f32.partialorder %v9575_v32, 0.0 }
 0x7fa   :  { %v9699_v28 = vmax.f32 %v4721_v7, 0.0  ;;  %v9702_v50 = vpop.eup %5908  ;;  %5926 = vrsqrt.f32 %v9688_v0  ;;  %v4915_v63 = vand.u32 2147483648, %v9575_v32  ;;  %vm4821_vm6 = vcmp.eq.f32.partialorder %v9614_v55, inf }
 0x7fb   :  { %v5911_v29 = vpop.eup %5910  ;;  %5928 = vrsqrt.f32 %v9696_v57  ;;  %v5041_v39 = vmul.f32 0.7, %v5009_v37  ;;  %v4822_v35 = vsel %vm4821_vm6, %v9614_v55, %v4820_v20  ;;  %v4824_v62 = vand.u32 2147483648, %v9614_v55 }
 0x7fc   :  { %v4724_v19 = vpop.xlane.xlu1 %4723  ;;  %v9714_v27 = vpop.eup %5912  ;;  %5930 = vrsqrt.f32 %v9699_v28  ;;  %v4916_v54 = vsel %vm4914_vm4, %v4915_v63, %v4913_v9  ;;  %v4932_v32 = vmul.f32 %v5907_v40, %v9632_v13  ;;  %vm4823_vm3 = vcmp.eq.f32.partialorder %v9614_v55, 0.0 }
 0x7fd   :  { %v4679_v31 = vpop.xlane.xlu0 %4678  ;;  %v9711_v10 = vmax.f32 %v4724_v19, 0.0  ;;  %v5915_v15 = vpop.eup %5914  ;;  %v5008_v43 = vsub.f32 0.0, %v4916_v54  ;;  %v9724_v52 = vmul.f32 %v5911_v29, %v9649_v49  ;;  %5932 = vpow2.f32 %v5063_v30 }
 0x7fe   :  { %v9720_v24 = vmax.f32 %v4679_v31, 0.0  ;;  %v5061_v48 = vmul.f32 1.442695, %v5024_v5  ;;  %v4825_v36 = vsel %vm4823_vm3, %v4824_v62, %v4822_v35  ;;  %v5917_v22 = vpop.eup %5916  ;;  %v5095_v45 = vmul.f32 1.442695, %v5041_v39 }
 0x7ff   :  { %5934 = vrsqrt.f32 %v9711_v10  ;;  %vm4814_vm10 = vcmp.eq.f32.partialorder %v9594_v21, inf  ;;  %v5919_v12 = vpop.eup %5918  ;;  %v5040_v33 = vmul.f32 0.7, %v5008_v43  ;;  %v4995_v20 = vsub.f32 0.0, %v4825_v36 }
 0x800   :  { %v4682_v18 = vpop.xlane.xlu1 %4681  ;;  %v4815_v55 = vsel %vm4814_vm10, %v9594_v21, %v9661_v14  ;;  %v4817_v25 = vand.u32 2147483648, %v9594_v21  ;;  %v4834_v6 = vmul.f32 %v5915_v15, %v9657_v11  ;;  %5936 = vrsqrt.f32 %v9720_v24 }
 0x801   :  { %v4727_v34 = vpop.xlane.xlu0 %4726  ;;  %v9727_v26 = vmax.f32 %v4682_v18, 0.0  ;;  %v9733_v44 = vpop.eup %5920  ;;  %vm4816_vm12 = vcmp.eq.f32.partialorder %v9594_v21, 0.0  ;;  %v9743_v7 = vmul.f32 %v5917_v22, %v9665_v42  ;;  %5938 = vpow2.f32 %v5061_v48 }
 0x802   :  { %v9737_v16 = vmax.f32 %v4727_v34, 0.0  ;;  %v9740_v23 = vpop.eup %5922  ;;  %v4818_v14 = vsel %vm4816_vm12, %v4817_v25, %v4815_v55  ;;  %vm4933_vm14 = vcmp.eq.f32.partialorder %v9632_v13, inf  ;;  %5940 = vpow2.f32 %v5095_v45 }
 0x803   :  { %v5925_v40 = vpop.eup %5924  ;;  %v4994_v30 = vsub.f32 0.0, %v4818_v14  ;;  %v4934_v37 = vsel %vm4933_vm14, %v9632_v13, %v4932_v32  ;;  %5942 = vrsqrt.f32 %v9727_v26  ;;  %v5093_v21 = vmul.f32 1.442695, %v5040_v33 }
 0x804   :  { %v4730_v2 = vpop.xlane.xlu1 %4729  ;;  %v5927_v9 = vpop.eup %5926  ;;  %v5027_v19 = vmul.f32 0.7, %v4995_v20  ;;  %v4936_v31 = vand.u32 2147483648, %v9632_v13  ;;  %v9751_v63 = vmul.f32 %v5919_v12, %v9668_v4  ;;  %5944 = vrsqrt.f32 %v9737_v16 }
 0x805   :  { %v5145_v53 = vpop.permute.xlu0 %5144  ;;  %v5929_v5 = vpop.eup %5928  ;;  %v9754_v29 = vmax.f32 %v4730_v2, 0.0  ;;  %vm4935_vm5 = vcmp.eq.f32.partialorder %v9632_v13, 0.0  ;;  %v9758_v39 = vmul.f32 %v5925_v40, %v9682_v17  ;;  %v5026_v62 = vmul.f32 0.7, %v4994_v30 }
 0x806   :  { %v5347_v41 = vmul.f32 %v9635_v46, %v5145_v53  ;;  %v5931_v46 = vpop.eup %5930  ;;  %v4937_v15 = vsel %vm4935_vm5, %v4936_v31, %v4934_v37  ;;  %vm4926_vm13 = vcmp.eq.f32.partialorder %v9612_v8, inf  ;;  %v9762_v32 = vmul.f32 %v5927_v9, %v9688_v0 }
 0x807   :  { %v5011_v18 = vsub.f32 0.0, %v4937_v15  ;;  %v4927_v34 = vsel %vm4926_vm13, %v9612_v8, %v9673_v38  ;;  %v9767_v13 = vpop.eup %5932  ;;  %v9770_v48 = vmul.f32 %v5929_v5, %v9696_v57  ;;  %5946 = vpow2.f32 %v5093_v21 }
 0x808   :  { %5412 = vperm.xlu0 %5712, %v5347_v41   ;;  %v5149_v54 = vpop.permute.xlu1 %5148  ;;  %v5067_v36 = vmul.f32 1.442695, %v5027_v19  ;;  %v4929_v22 = vand.u32 2147483648, %v9612_v8  ;;  %v9774_v12 = vmul.f32 %v5931_v46, %v9699_v28  ;;  %5948 = vrsqrt.f32 %v9754_v29 }
 0x809   :  { %v5233_v35 = vpop.permute.xlu0 %5232  ;;  %v5348_v43 = vmul.f32 %v9642_v59, %v5149_v54  ;;  %v5935_v45 = vpop.eup %5934  ;;  %vm4928_vm8 = vcmp.eq.f32.partialorder %v9612_v8, 0.0  ;;  %vm4835_vm1 = vcmp.eq.f32.partialorder %v9657_v11, inf  ;;  %v5065_v33 = vmul.f32 1.442695, %v5026_v62 }
 0x80a   :  { %v5043_v20 = vmul.f32 0.7, %v5011_v18  ;;  %v4930_v55 = vsel %vm4928_vm8, %v4929_v22, %v4927_v34  ;;  %v4836_v25 = vsel %vm4835_vm1, %v9657_v11, %v4834_v6  ;;  %v5937_v2 = vpop.eup %5936  ;;  %v4838_v40 = vand.u32 2147483648, %v9657_v11 }
 0x80b   :  { %5415 = vperm.xlu1 %5713, %v5348_v43   ;;  %v5010_v14 = vsub.f32 0.0, %v4930_v55  ;;  %vm4828_vm7 = vcmp.eq.f32.partialorder %v9627_v58, inf  ;;  %v9783_v41 = vpop.eup %5938  ;;  %5950 = vpow2.f32 %v5067_v36  ;;  %vm4837_vm2 = vcmp.eq.f32.partialorder %v9657_v11, 0.0 }
 0x80c   :  { %v5156_v59 = vpop.permute.xlu1 %5155  ;;  %v4829_v8 = vsel %vm4828_vm7, %v9627_v58, %v9694_v51  ;;  %v4831_v30 = vand.u32 2147483648, %v9627_v58  ;;  %v9789_v37 = vpop.eup %5940  ;;  %v9792_v6 = vmul.f32 %v5935_v45, %v9711_v10  ;;  %v4839_v9 = vsel %vm4837_vm2, %v4838_v40, %v4836_v25 }
 0x80d   :  { %v5244_v38 = vpop.permute.xlu0 %5243  ;;  %v5349_v53 = vmul.f32 %v9652_v3, %v5156_v59  ;;  %v5363_v3 = vmul.f32 %v9679_v56, %v5233_v35  ;;  %vm4830_vm15 = vcmp.eq.f32.partialorder %v9627_v58, 0.0  ;;  %v5943_v21 = vpop.eup %5942  ;;  %v9797_v19 = vmul.f32 %v5937_v2, %v9720_v24 }
 0x80e   :  { %5952 = vpow2.f32 %v5065_v33  ;;  %v5099_v51 = vmul.f32 1.442695, %v5043_v20  ;;  %v4832_v5 = vsel %vm4830_vm15, %v4831_v30, %v4829_v8  ;;  %v5945_v46 = vpop.eup %5944  ;;  %v5042_v62 = vmul.f32 0.7, %v5010_v14 }
 0x80f   :  { %5418 = vperm.xlu0 %5712, %v5349_v53   ;;  %vm4947_vm0 = vcmp.eq.f32.partialorder %v9668_v4, inf  ;;  %v4950_v56 = vand.u32 2147483648, %v9668_v4  ;;  %v4997_v35 = vsub.f32 0.0, %v4839_v9  ;;  %vm4949_vm11 = vcmp.eq.f32.partialorder %v9668_v4, 0.0 }
 0x810   :  { %v5160_v11 = vpop.permute.xlu1 %5159  ;;  %v4948_v58 = vsel %vm4947_vm0, %v9668_v4, %v9751_v63  ;;  %vm4940_vm9 = vcmp.eq.f32.partialorder %v9649_v49, inf  ;;  %v5365_v15 = vmul.f32 %v9691_v61, %v5244_v38  ;;  %v4996_v43 = vsub.f32 0.0, %v4832_v5 }
 0x811   :  { %v5167_v31 = vpop.permute.xlu0 %5166  ;;  %v5350_v54 = vmul.f32 %v9685_v1, %v5160_v11  ;;  %v4951_v18 = vsel %vm4949_vm11, %v4950_v56, %v4948_v58  ;;  %v4941_v1 = vsel %vm4940_vm9, %v9649_v49, %v9724_v52  ;;  %v9809_v34 = vpop.eup %5946  ;;  %v9812_v36 = vmul.f32 %v5943_v21, %v9727_v26 }
 0x812   :  { %v9815_v63 = vmul.f32 %v5945_v46, %v9737_v16  ;;  %v5013_v45 = vsub.f32 0.0, %v4951_v18  ;;  %v4943_v61 = vand.u32 2147483648, %v9649_v49  ;;  %v5949_v59 = vpop.eup %5948  ;;  %v5097_v33 = vmul.f32 1.442695, %v5042_v62 }
 0x813   :  { %5421 = vperm.xlu1 %5713, %v5350_v54   ;;  %5460 = vperm.xlu0 %5712, %v5363_v3   ;;  %vm4942_vm4 = vcmp.eq.f32.partialorder %v9649_v49, 0.0  ;;  %vm4849_vm6 = vcmp.eq.f32.partialorder %v9688_v0, inf  ;;  %5954 = vpow2.f32 %v5099_v51  ;;  %v5029_v52 = vmul.f32 0.7, %v4997_v35 }
 0x814   :  { %v5237_v4 = vpop.permute.xlu1 %5236  ;;  %v4944_v20 = vsel %vm4942_vm4, %v4943_v61, %v4941_v1  ;;  %v4850_v55 = vsel %vm4849_vm6, %v9688_v0, %v9762_v32  ;;  %v5351_v25 = vmul.f32 %v9702_v50, %v5167_v31  ;;  %v5028_v2 = vmul.f32 0.7, %v4996_v43 }
 0x815   :  { %v5255_v22 = vpop.permute.xlu0 %5254  ;;  %v5364_v38 = vmul.f32 %v9714_v27, %v5237_v4  ;;  %v5012_v53 = vsub.f32 0.0, %v4944_v20  ;;  %v4852_v14 = vand.u32 2147483648, %v9688_v0  ;;  %v9825_v27 = vpop.eup %5950  ;;  %v9828_v49 = vmul.f32 %v5949_v59, %v9754_v29 }
 0x816   :  { %v5045_v30 = vmul.f32 0.7, %v5013_v45  ;;  %vm4851_vm3 = vcmp.eq.f32.partialorder %v9688_v0, 0.0  ;;  %vm4842_vm10 = vcmp.eq.f32.partialorder %v9665_v42, inf  ;;  %5956 = vpow2.f32 %v5097_v33 }
 0x817   :  { %5463 = vperm.xlu1 %5713, %v5364_v38   ;;  %5466 = vperm.xlu0 %5712, %v5365_v15   ;;  %v4853_v32 = vsel %vm4851_vm3, %v4852_v14, %v4850_v55  ;;  %v4843_v3 = vsel %vm4842_vm10, %v9665_v42, %v9743_v7  ;;  %v5367_v21 = vmul.f32 %v9733_v44, %v5255_v22  ;;  %v5071_v11 = vmul.f32 1.442695, %v5029_v52 }
 0x818   :  { %v5248_v40 = vpop.permute.xlu1 %5247  ;;  %v5953_v9 = vpop.eup %5952  ;;  %v4999_v31 = vsub.f32 0.0, %v4853_v32  ;;  %v4845_v51 = vand.u32 2147483648, %v9665_v42  ;;  %v5069_v5 = vmul.f32 1.442695, %v5028_v2  ;;  %v5044_v0 = vmul.f32 0.7, %v5012_v53 }
 0x819   :  { %v5178_v8 = vpop.permute.xlu0 %5177  ;;  %v5366_v50 = vmul.f32 %v9740_v23, %v5248_v40  ;;  %vm4844_vm12 = vcmp.eq.f32.partialorder %v9665_v42, 0.0  ;;  %vm4961_vm14 = vcmp.eq.f32.partialorder %v9699_v28, inf  ;;  %v5103_v54 = vmul.f32 1.442695, %v5045_v30 }
 0x81a   :  { %v5031_v62 = vmul.f32 0.7, %v4999_v31  ;;  %v4846_v7 = vsel %vm4844_vm12, %v4845_v51, %v4843_v3  ;;  %v4962_v44 = vsel %vm4961_vm14, %v9699_v28, %v9774_v12  ;;  %v4964_v58 = vand.u32 2147483648, %v9699_v28 }
 0x81b   :  { %5469 = vperm.xlu1 %5713, %v5366_v50   ;;  %5424 = vperm.xlu0 %5712, %v5351_v25   ;;  %v4998_v35 = vsub.f32 0.0, %v4846_v7  ;;  %vm4954_vm5 = vcmp.eq.f32.partialorder %v9682_v17, inf  ;;  %5958 = vpow2.f32 %v5071_v11  ;;  %vm4963_vm13 = vcmp.eq.f32.partialorder %v9699_v28, 0.0 }
 0x81c   :  { %v5171_v23 = vpop.permute.xlu1 %5170  ;;  %v4955_v42 = vsel %vm4954_vm5, %v9682_v17, %v9758_v39  ;;  %v4957_v15 = vand.u32 2147483648, %v9682_v17  ;;  %5960 = vpow2.f32 %v5069_v5  ;;  %v5101_v43 = vmul.f32 1.442695, %v5044_v0 }
 0x81d   :  { %v5266_v46 = vpop.permute.xlu0 %5265  ;;  %v5352_v56 = vmul.f32 %v9783_v41, %v5171_v23  ;;  %v4965_v12 = vsel %vm4963_vm13, %v4964_v58, %v4962_v44  ;;  %vm4956_vm8 = vcmp.eq.f32.partialorder %v9682_v17, 0.0  ;;  %v5955_v41 = vpop.eup %5954  ;;  %v5353_v18 = vmul.f32 %v9767_v13, %v5178_v8 }
 0x81e   :  { %v5075_v22 = vmul.f32 1.442695, %v5031_v62  ;;  %v4958_v45 = vsel %vm4956_vm8, %v4957_v15, %v4955_v42  ;;  %vm4863_vm1 = vcmp.eq.f32.partialorder %v9720_v24, inf  ;;  %5962 = vpow2.f32 %v5103_v54 }
 0x81f   :  { %5427 = vperm.xlu1 %5713, %v5352_v56   ;;  %5472 = vperm.xlu0 %5712, %v5367_v21   ;;  %v5030_v39 = vmul.f32 0.7, %v4998_v35  ;;  %v4864_v61 = vsel %vm4863_vm1, %v9720_v24, %v9797_v19  ;;  %v5015_v59 = vsub.f32 0.0, %v4965_v12  ;;  %v5014_v38 = vsub.f32 0.0, %v4958_v45 }
 0x820   :  { %v5259_v1 = vpop.permute.xlu1 %5258  ;;  %v4866_v17 = vand.u32 2147483648, %v9720_v24  ;;  %vm4856_vm7 = vcmp.eq.f32.partialorder %v9696_v57, inf  ;;  %v5957_v13 = vpop.eup %5956  ;;  %v5369_v33 = vmul.f32 %v9789_v37, %v5266_v46  ;;  %5964 = vpow2.f32 %v5101_v43 }
 0x821   :  { %v5189_v4 = vpop.permute.xlu0 %5188  ;;  %v5368_v28 = vmul.f32 %v9809_v34, %v5259_v1  ;;  %vm4865_vm2 = vcmp.eq.f32.partialorder %v9720_v24, 0.0  ;;  %v4857_v34 = vsel %vm4856_vm7, %v9696_v57, %v9770_v48  ;;  %5966 = vpow2.f32 %v5075_v22 }
 0x822   :  { %v5046_v19 = vmul.f32 0.7, %v5014_v38  ;;  %v4867_v55 = vsel %vm4865_vm2, %v4866_v17, %v4864_v61  ;;  %v4859_v25 = vand.u32 2147483648, %v9696_v57  ;;  %v5355_v2 = vmul.f32 %v9825_v27, %v5189_v4 }
 0x823   :  { %5475 = vperm.xlu1 %5713, %v5368_v28   ;;  %5430 = vperm.xlu0 %5712, %v5353_v18   ;;  %vm4858_vm15 = vcmp.eq.f32.partialorder %v9696_v57, 0.0  ;;  %vm4975_vm0 = vcmp.eq.f32.partialorder %v9737_v16, inf  ;;  %v5073_v37 = vmul.f32 1.442695, %v5030_v39  ;;  %v5047_v14 = vmul.f32 0.7, %v5015_v59 }
 0x824   :  { %v5182_v52 = vpop.permute.xlu1 %5181  ;;  %v4860_v24 = vsel %vm4858_vm15, %v4859_v25, %v4857_v34  ;;  %v4976_v48 = vsel %vm4975_vm0, %v9737_v16, %v9815_v63  ;;  %v5001_v40 = vsub.f32 0.0, %v4867_v55  ;;  %v4978_v30 = vand.u32 2147483648, %v9737_v16 }
 0x825   :  { %v5277_v20 = vpop.permute.xlu0 %5276  ;;  %v5354_v53 = vmul.f32 %v5953_v9, %v5182_v52  ;;  %v5000_v8 = vsub.f32 0.0, %v4860_v24  ;;  %vm4968_vm11 = vcmp.eq.f32.partialorder %v9711_v10, inf  ;;  %v5959_v27 = vpop.eup %5958  ;;  %v5105_v57 = vmul.f32 1.442695, %v5046_v19 }
 0x826   :  { %vm4977_vm9 = vcmp.eq.f32.partialorder %v9737_v16, 0.0  ;;  %v4969_v3 = vsel %vm4968_vm11, %v9711_v10, %v9792_v6  ;;  %v4971_v9 = vand.u32 2147483648, %v9711_v10  ;;  %v5961_v63 = vpop.eup %5960  ;;  %vm4970_vm4 = vcmp.eq.f32.partialorder %v9711_v10, 0.0 }
 0x827   :  { %5433 = vperm.xlu1 %5713, %v5354_v53   ;;  %5478 = vperm.xlu0 %5712, %v5369_v33   ;;  %v5032_v11 = vmul.f32 0.7, %v5000_v8  ;;  %v4979_v31 = vsel %vm4977_vm9, %v4978_v30, %v4976_v48  ;;  %5968 = vpow2.f32 %v5073_v37  ;;  %v5107_v51 = vmul.f32 1.442695, %v5047_v14 }
 0x828   :  { %v5270_v50 = vpop.permute.xlu1 %5269  ;;  %v4972_v5 = vsel %vm4970_vm4, %v4971_v9, %v4969_v3  ;;  %vm4870_vm6 = vcmp.eq.f32.partialorder %v9727_v26, inf  ;;  %v5963_v0 = vpop.eup %5962  ;;  %v5371_v23 = vmul.f32 %v5955_v41, %v5277_v20  ;;  %v5033_v16 = vmul.f32 0.7, %v5001_v40 }
 0x829   :  { %v5200_v32 = vpop.permute.xlu0 %5199  ;;  %v5370_v21 = vmul.f32 %v5957_v13, %v5270_v50  ;;  %v5016_v46 = vsub.f32 0.0, %v4972_v5  ;;  %v4871_v6 = vsel %vm4870_vm6, %v9727_v26, %v9812_v36  ;;  %5970 = vpow2.f32 %v5105_v57 }
 0x82a   :  { %v5017_v7 = vsub.f32 0.0, %v4979_v31  ;;  %vm4872_vm3 = vcmp.eq.f32.partialorder %v9727_v26, 0.0  ;;  %v4873_v10 = vand.u32 2147483648, %v9727_v26  ;;  %v5965_v44 = vpop.eup %5964  ;;  %v5077_v35 = vmul.f32 1.442695, %v5032_v11 }
 0x82b   :  { %5481 = vperm.xlu1 %5713, %v5370_v21   ;;  %5436 = vperm.xlu0 %5712, %v5355_v2   ;;  %vm4982_vm10 = vcmp.eq.f32.partialorder %v9754_v29, inf  ;;  %v4985_v58 = vand.u32 2147483648, %v9754_v29  ;;  %v5967_v42 = vpop.eup %5966  ;;  %v5048_v15 = vmul.f32 0.7, %v5016_v46  ;;  %vm4984_vm12 = vcmp.eq.f32.partialorder %v9754_v29, 0.0 }
 0x82c   :  { %v5193_v54 = vpop.permute.xlu1 %5192  ;;  %v4874_v43 = vsel %vm4872_vm3, %v4873_v10, %v4871_v6  ;;  %v4983_v36 = vsel %vm4982_vm10, %v9754_v29, %v9828_v49  ;;  %5972 = vpow2.f32 %v5107_v51  ;;  %v5357_v1 = vmul.f32 %v5959_v27, %v5200_v32 }
 0x82d   :  { %v5288_v62 = vpop.permute.xlu0 %5287  ;;  %v5356_v56 = vmul.f32 %v5961_v63, %v5193_v54  ;;  %v5002_v12 = vsub.f32 0.0, %v4874_v43  ;;  %v4986_v41 = vsel %vm4984_vm12, %v4985_v58, %v4983_v36  ;;  %v5079_v22 = vmul.f32 1.442695, %v5033_v16 }
 0x82e   :  { %v5049_v45 = vmul.f32 0.7, %v5017_v7  ;;  %5974 = vpow2.f32 %v5077_v35  ;;  %v5109_v28 = vmul.f32 1.442695, %v5048_v15  ;;  %v5018_v61 = vsub.f32 0.0, %v4986_v41 }
 0x82f   :  { %5439 = vperm.xlu1 %5713, %v5356_v56   ;;  %5484 = vperm.xlu0 %5712, %v5371_v23   ;;  %v5034_v39 = vmul.f32 0.7, %v5002_v12  ;;  %v5373_v29 = vmul.f32 %v5963_v0, %v5288_v62  ;;  %5976 = vpow2.f32 %v5079_v22  ;;  %vm10823_vm14 = vcmask 130112  }
 0x830   :  { %v5281_v26 = vpop.permute.xlu1 %5280  ;;  %v5111_v17 = vmul.f32 1.442695, %v5049_v45  ;;  %5978 = vpow2.f32 %v5109_v28  ;;  %v5050_v52 = vmul.f32 0.7, %v5018_v61  ;;  %vm10824_vm5 = vmmov %vm10823_vm14  ;;  %vm10828_vm7 = vcmask 1041409  }
 0x831   :  { %v5211_v18 = vpop.permute.xlu0 %5210  ;;  %v5372_v4 = vmul.f32 %v5965_v44, %v5281_v26  ;;  %v5969_v49 = vpop.eup %5968  ;;  %v5081_v34 = vmul.f32 1.442695, %v5034_v39  ;;  %vm10825_vm13 = vmmov %vm10824_vm5  ;;  %vm10830_vm15 = vcmask 1042434   ;;  %vm10836_vm3 = vcmask 1043459  }
 0x832   :  { %v5359_v19 = vmul.f32 %v5967_v42, %v5211_v18  ;;  %5980 = vpow2.f32 %v5111_v17  ;;  %v5113_v2 = vmul.f32 1.442695, %v5050_v52  ;;  %vm10826_vm8 = vmmov %vm10824_vm5 }
 0x833   :  { %5487 = vperm.xlu1 %5713, %v5372_v4   ;;  %5442 = vperm.xlu0 %5712, %v5357_v1   ;;  %v5971_v13 = vpop.eup %5970  ;;  %5982 = vpow2.f32 %v5081_v34  ;;  %vm10827_vm1 = vmmov %vm10824_vm5 }
 0x834   :  { %v5204_v59 = vpop.permute.xlu1 %5203  ;;  %5984 = vpow2.f32 %v5113_v2  ;;  %vm10829_vm2 = vmmov %vm10828_vm7 }
 0x835   :  { %v5358_v38 = vmul.f32 %v5969_v49, %v5204_v59  ;;  %v5299_v33 = vpop.permute.xlu0 %5298  ;;  %vm10831_vm0 = vmmov %vm10827_vm1 }
 0x836   :  { %v5973_v25 = vpop.eup %5972  ;;  %vm10832_vm11 = vmmov %vm10831_vm0 }
 0x837   :  { %5445 = vperm.xlu1 %5713, %v5358_v38   ;;  %5490 = vperm.xlu0 %5712, %v5373_v29   ;;  %v5375_v24 = vmul.f32 %v5973_v25, %v5299_v33  ;;  %vm10833_vm9 = vmmov %vm10831_vm0 }
 0x838   :  { %v5292_v20 = vpop.permute.xlu1 %5291  ;;  %v5975_v53 = vpop.eup %5974  ;;  %vm10834_vm4 = vmmov %vm10831_vm0 }
 0x839   :  { %v5374_v55 = vmul.f32 %v5971_v13, %v5292_v20  ;;  %v5222_v37 = vpop.permute.xlu0 %5221  ;;  %v5977_v40 = vpop.eup %5976  ;;  %vm10835_vm6 = vmmov %vm10831_vm0 }
 0x83a   :  { %v5979_v8 = vpop.eup %5978  ;;  %v5361_v27 = vmul.f32 %v5977_v40, %v5222_v37  ;;  %vm10837_vm10 = vmmov %vm10831_vm0 }
 0x83b   :  { %5493 = vperm.xlu1 %5713, %v5374_v55   ;;  %5448 = vperm.xlu0 %5712, %v5359_v19   ;;  %vm10838_vm12 = vmmov %vm10831_vm0 }
 0x83c   :  { %v5215_v14 = vpop.permute.xlu1 %5214  ;;  %v5981_v57 = vpop.eup %5980 }
 0x83d   :  { %v5360_v48 = vmul.f32 %v5975_v53, %v5215_v14  ;;  %v5310_v32 = vpop.permute.xlu0 %5309  ;;  %v5983_v3 = vpop.eup %5982 }
 0x83e   :  { %v5377_v63 = vmul.f32 %v5981_v57, %v5310_v32  ;;  %v5985_v11 = vpop.eup %5984 }
 0x83f   :  { %5451 = vperm.xlu1 %5713, %v5360_v48   ;;  %5496 = vperm.xlu0 %5712, %v5375_v24  }
 0x840   :  { %v5303_v30 = vpop.permute.xlu1 %5302 }
 0x841   :  { %v5376_v50 = vmul.f32 %v5979_v8, %v5303_v30 }
 0x843   :  { %5499 = vperm.xlu1 %5713, %v5376_v50   ;;  %5454 = vperm.xlu0 %5712, %v5361_v27  }
 0x844   :  { %v5226_v9 = vpop.permute.xlu1 %5225 }
 0x845   :  { %v5362_v21 = vmul.f32 %v5983_v3, %v5226_v9 }
 0x847   :  { %5457 = vperm.xlu1 %5713, %v5362_v21   ;;  %5502 = vperm.xlu0 %5712, %v5377_v63  }
 0x848   :  { %v5314_v31 = vpop.permute.xlu1 %5313 }
 0x849   :  { %v5378_v51 = vmul.f32 %v5985_v11, %v5314_v31 }
 0x84b   :  { %5505 = vperm.xlu1 %5713, %v5378_v51  }
 0x887   :  { %v5413_v5 = vpop.permute.xlu0 %5412 }
 0x888   :  { %v5510_v33 = vrot.slane %v5413_v5, %v10449_v47 }
 0x88a   :  { %v5416_v0 = vpop.permute.xlu1 %5415 }
 0x88b   :  { %v5514_v61 = vrot.slane %v5416_v0, %v10450_v60 }
 0x88d   :  { %v5515_v25 = vsel %vm10826_vm8, %v5514_v61, %v5510_v33  ;;  %vm10842_vm8 = vmmov %vm10831_vm0 }
 0x88e   :  { %v5419_v23 = vpop.permute.xlu0 %5418 }
 0x88f   :  { %v5519_v49 = vrot.slane %v5419_v23, %v10449_v47 }
 0x892   :  { %v5422_v16 = vpop.permute.xlu1 %5421  ;;  %v5461_v46 = vpop.permute.xlu0 %5460 }
 0x893   :  { %v5523_v45 = vrot.slane %v5422_v16, %v10450_v60  ;;  %v5582_v52 = vrot.slane %v5461_v46, %v10449_v47 }
 0x895   :  { %v5524_v34 = vsel %vm10823_vm14, %v5523_v45, %v5519_v49  ;;  %vm10839_vm14 = vmmov %vm10830_vm15 }
 0x896   :  { %v5464_v6 = vpop.permute.xlu1 %5463  ;;  %v5467_v54 = vpop.permute.xlu0 %5466  ;;  %v5651_v14 = vsel %vm10828_vm7, %v5524_v34, %v5515_v25  ;;  %vm10844_vm7 = vcmask 1045509  }
 0x897   :  { %v5586_v59 = vrot.slane %v5464_v6, %v10450_v60  ;;  %v5591_v29 = vrot.slane %v5467_v54, %v10449_v47 }
 0x899   :  { %v5587_v2 = vsel %vm10827_vm1, %v5586_v59, %v5582_v52  ;;  %vm10843_vm1 = vmmov %vm10836_vm3 }
 0x89a   :  { %v5470_v62 = vpop.permute.xlu1 %5469  ;;  %v5425_v7 = vpop.permute.xlu0 %5424 }
 0x89b   :  { %v5595_v28 = vrot.slane %v5470_v62, %v10450_v60  ;;  %v5528_v38 = vrot.slane %v5425_v7, %v10449_v47 }
 0x89d   :  { %v5596_v20 = vsel %vm10824_vm5, %v5595_v28, %v5591_v29  ;;  %vm10840_vm5 = vcmask 1044484  }
 0x89e   :  { %v5428_v10 = vpop.permute.xlu1 %5427  ;;  %v5473_v44 = vpop.permute.xlu0 %5472  ;;  %v5658_v24 = vsel %vm10829_vm2, %v5596_v20, %v5587_v2  ;;  %vm10845_vm2 = vmmov %vm10831_vm0 }
 0x89f   :  { %v5532_v39 = vrot.slane %v5428_v10, %v10450_v60  ;;  %v5600_v48 = vrot.slane %v5473_v44, %v10449_v47 }
 0x8a1   :  { %v5533_v19 = vsel %vm10825_vm13, %v5532_v39, %v5528_v38  ;;  %vm10841_vm13 = vmmov %vm10831_vm0 }
 0x8a2   :  { %v5476_v56 = vpop.permute.xlu1 %5475  ;;  %v5431_v35 = vpop.permute.xlu0 %5430  ;;  %v5652_v27 = vsel %vm10830_vm15, %v5533_v19, %v5651_v14  ;;  %vm10846_vm15 = vmmov %vm10840_vm5 }
 0x8a3   :  { %v5604_v55 = vrot.slane %v5476_v56, %v10450_v60  ;;  %v5537_v50 = vrot.slane %v5431_v35, %v10449_v47 }
 0x8a5   :  { %v5605_v3 = vsel %vm10831_vm0, %v5604_v55, %v5600_v48  ;;  %vm10847_vm0 = vcmask 1046534  }
 0x8a6   :  { %v5434_v58 = vpop.permute.xlu1 %5433  ;;  %v5479_v42 = vpop.permute.xlu0 %5478 }
 0x8a7   :  { %v5541_v53 = vrot.slane %v5434_v58, %v10450_v60  ;;  %v5609_v32 = vrot.slane %v5479_v42, %v10449_v47 }
 0x8a9   :  { %v5542_v11 = vsel %vm10832_vm11, %v5541_v53, %v5537_v50  ;;  %vm10848_vm11 = vmmov %vm10844_vm7 }
 0x8aa   :  { %v5482_v15 = vpop.permute.xlu1 %5481  ;;  %v5437_v43 = vpop.permute.xlu0 %5436  ;;  %v5653_v44 = vsel %vm10836_vm3, %v5542_v11, %v5652_v27 }
 0x8ab   :  { %v5613_v37 = vrot.slane %v5482_v15, %v10450_v60  ;;  %v5546_v9 = vrot.slane %v5437_v43, %v10449_v47  ;;  %v5659_v15 = vsel %vm10839_vm14, %v5605_v3, %v5658_v24 }
 0x8ad   :  { %v5614_v31 = vsel %vm10833_vm9, %v5613_v37, %v5609_v32  ;;  %vm10849_vm9 = vcmask 1047559  }
 0x8ae   :  { %v5440_v36 = vpop.permute.xlu1 %5439  ;;  %v5485_v12 = vpop.permute.xlu0 %5484  ;;  %vm10852_vm3 = vmmov %vm10849_vm9 }
 0x8af   :  { %v5550_v40 = vrot.slane %v5440_v36, %v10450_v60  ;;  %v5618_v23 = vrot.slane %v5485_v12, %v10449_v47 }
 0x8b1   :  { %v5551_v0 = vsel %vm10834_vm4, %v5550_v40, %v5546_v9  ;;  %vm10850_vm4 = vmmov %vm10847_vm0 }
 0x8b2   :  { %v5488_v41 = vpop.permute.xlu1 %5487  ;;  %v5443_v26 = vpop.permute.xlu0 %5442  ;;  %v5654_v43 = vsel %vm10840_vm5, %v5551_v0, %v5653_v44 }
 0x8b3   :  { %v5622_v63 = vrot.slane %v5488_v41, %v10450_v60  ;;  %v5555_v51 = vrot.slane %v5443_v26, %v10449_v47  ;;  %v5660_v41 = vsel %vm10843_vm1, %v5614_v31, %v5659_v15 }
 0x8b5   :  { %v5623_v56 = vsel %vm10837_vm10, %v5622_v63, %v5618_v23  ;;  %vm10853_vm10 = vcmask 130048  }
 0x8b6   :  { %v5446_v18 = vpop.permute.xlu1 %5445  ;;  %v5491_v1 = vpop.permute.xlu0 %5490 }
 0x8b7   :  { %v5559_v57 = vrot.slane %v5446_v18, %v10450_v60  ;;  %v5627_v62 = vrot.slane %v5491_v1, %v10449_v47 }
 0x8b9   :  { %v5560_v54 = vsel %vm10835_vm6, %v5559_v57, %v5555_v51  ;;  %vm10851_vm6 = vmmov %vm10845_vm2 }
 0x8ba   :  { %v5494_v4 = vpop.permute.xlu1 %5493  ;;  %v5449_v22 = vpop.permute.xlu0 %5448  ;;  %v5655_v26 = vsel %vm10844_vm7, %v5560_v54, %v5654_v43 }
 0x8bb   :  { %v5631_v5 = vrot.slane %v5494_v4, %v10450_v60  ;;  %v5564_v16 = vrot.slane %v5449_v22, %v10449_v47  ;;  %v5661_v4 = vsel %vm10846_vm15, %v5623_v56, %v5660_v41 }
 0x8bd   :  { %v5632_v36 = vsel %vm10841_vm13, %v5631_v5, %v5627_v62 }
 0x8be   :  { %v5452_v17 = vpop.permute.xlu1 %5451  ;;  %v5497_v13 = vpop.permute.xlu0 %5496  ;;  %v5662_v39 = vsel %vm10848_vm11, %v5632_v36, %v5661_v4 }
 0x8bf   :  { %v5568_v21 = vrot.slane %v5452_v17, %v10450_v60  ;;  %v5636_v58 = vrot.slane %v5497_v13, %v10449_v47 }
 0x8c1   :  { %v5569_v35 = vsel %vm10838_vm12, %v5568_v21, %v5564_v16  ;;  %vm10854_vm12 = vmmov %vm10853_vm10 }
 0x8c2   :  { %v5500_v8 = vpop.permute.xlu1 %5499  ;;  %v5455_v30 = vpop.permute.xlu0 %5454  ;;  %v5656_v22 = vsel %vm10847_vm0, %v5569_v35, %v5655_v26 }
 0x8c3   :  { %v5640_v46 = vrot.slane %v5500_v8, %v10450_v60  ;;  %v5573_v7 = vrot.slane %v5455_v30, %v10449_v47 }
 0x8c5   :  { %v5641_v18 = vsel %vm10845_vm2, %v5640_v46, %v5636_v58 }
 0x8c6   :  { %v5458_v6 = vpop.permute.xlu1 %5457  ;;  %v5503_v42 = vpop.permute.xlu0 %5502  ;;  %v5663_v49 = vsel %vm10850_vm4, %v5641_v18, %v5662_v39 }
 0x8c7   :  { %v5577_v10 = vrot.slane %v5458_v6, %v10450_v60  ;;  %v5645_v45 = vrot.slane %v5503_v42, %v10449_v47 }
 0x8c9   :  { %v5578_v12 = vsel %vm10842_vm8, %v5577_v10, %v5573_v7 }
 0x8ca   :  { %v5506_v1 = vpop.permute.xlu1 %5505  ;;  %v5657_v61 = vsel %vm10849_vm9, %v5578_v12, %v5656_v22 }
 0x8cb   :  { %v5649_v28 = vrot.slane %v5506_v1, %v10450_v60  ;;  %v5667_v38 = vsel %vm10853_vm10, %v5657_v61, 0.0 }
 0x8cd   :  { %v5650_v59 = vsel %vm10851_vm6, %v5649_v28, %v5645_v45 }
 0x8ce   :  { %v5664_v29 = vsel %vm10852_vm3, %v5650_v59, %v5663_v49 }
 0x8cf   :  { %v5668_v17 = vsel %vm10854_vm12, %v5664_v29, 0.0 }
 0x8d0   :  { %v5669_v13 = vadd.f32 %v5668_v17, %v5667_v38 }
 0x8d2   :  { %5670 = vadd.xlane.f32.xlu0 %v5669_v13 }
 0x95f   :  { %v5671_v33 = vpop.xlane.xlu0 %5670 }
 0x960   :  { %v5672_v47 = vrot.slane %v5671_v33, 4 }
 0x962   :  { %v5673_v34 = vadd.f32 %v5672_v47, %v5671_v33 }
 0x964   :  { %v5674_v60 = vrot.slane %v5673_v34, 2 }
 0x966   :  { %v5675_v52 = vadd.f32 %v5674_v60, %v5673_v34 }
 0x968   :  { %v5676_v20 = vrot.slane %v5675_v52, 1 }
 0x96a   :  { %v5677_v19 = vadd.f32 %v5676_v20, %v5675_v52 }
 0x96c   :  { %5701 = vpush %v5677_v19 }
 0x99d   :  { %s5702_s8 = spop %5701 }
 0x99e   :  { %v5679_v55 = vstv %s5702_s8 }
 0x99f   :  { %5680 = vst [vmem:[#allocation7 + $0x1] sm:$0x1] %v5679_v55 }
 0x9a0   :  { %6045 = shalt.err (!%p6042_p6)
}
 0x9a1   :  { %s6046_s12 = scalar_lea.hbm %s9961_s2, 32 }
 0x9a2   :  { %p6047_p7 = scmp.ne.s32.totalorder %s9961_s2, %s6046_s12  ;;  %p6050_p8 = scmp.lt.u32.totalorder %s6046_s12, %s9961_s2 }
 0x9a4   :  { %p6052_p9 = pnand %p6050_p8, %p6047_p7 }
 0x9a6   :  { %6055 = shalt.err (!%p6052_p9)
}
 0x9a7   :  { %5690 = dma.vmem_to_hbm [thread:$0]  %s5688_s7, 32, %s9961_s2, [#allocation4]  }
 0x9a8   :  { %6060 = dma.done.wait [#allocation4], 32  }
 0x9a9   :  { %6061 = vsyncadd [#allocation4], 4294967264 }
 0x9aa   :  { %5694 = vsyncpa [#allocation3], 1 }
 0x9ab   :  { %5695 = vsyncpa [#allocation6], 1 }
 0x9ac   :  { %5696 = vsyncpa [#allocation4], 1 }

</bundles_post_ra>
